<compile_context>
chip_gen: v7x
topology: tpu7x:2x2x1
jax: 0.10.0
libtpu: 0.0.40
codegen_flags: <defaults>
</compile_context>

<pallas_src>
import jax
import jax.numpy as jnp
from jax import lax
from jax.experimental import pallas as pl
from jax.experimental.pallas import tpu as pltpu

STACK_SIZE = 4        # from modelPath: ...ss4_rb...
BN_EPS = 1e-5         # PyTorch BatchNorm2d default eps


def conv2d_size_out(size, kernel_size, stride):
    return (size - (kernel_size - 1) - 1) // stride + 1


# ----------------------------------------------------------------------------
# XLA-side glue: conv1 patch extraction + parity-plane row reordering.
# ----------------------------------------------------------------------------
def conv1_patches_planes(x, kh, kw, stride):
    """NCHW -> [N, OH*OW, C*KH*KW] (bf16), rows ordered by stride-2 parity
    plane of the conv1 output: plane = (row%2, col%2), row-major inside each
    plane.  K is ordered (c, i, j) to match torch weight.reshape(OC, -1)."""
    n, c, h, w = x.shape
    oh = (h - kh) // stride + 1
    ow = (w - kw) // stride + 1
    cols = []
    for i in range(kh):
        for j in range(kw):
            cols.append(x[:, :, i:i + stride * oh:stride, j:j + stride * ow:stride])
    p = jnp.stack(cols, axis=2)                 # [N, C, KH*KW, OH, OW]
    p = p.reshape(n, c * kh * kw, oh, ow)       # K ordered (c, i, j)
    p = p.transpose(0, 2, 3, 1)                 # [N, OH, OW, K]
    p = p.reshape(n, oh // 2, 2, ow // 2, 2, c * kh * kw)
    p = p.transpose(0, 2, 4, 1, 3, 5)           # [N, rp, cp, OH/2, OW/2, K]
    return p.reshape(n, oh * ow, c * kh * kw).astype(jnp.bfloat16), oh, ow


# ----------------------------------------------------------------------------
# Parameter prep: fold conv bias + inference BatchNorm, bf16 weights.
# ----------------------------------------------------------------------------
def prepare_params(p, h, w):
    f32, bf16 = jnp.float32, jnp.bfloat16

    def bn_fold(bias, bn):
        gamma, beta, mean, var = bn
        scale = gamma / jnp.sqrt(var + BN_EPS)
        shift = (bias - mean) * scale + beta
        return scale, shift

    def taps(wc):  # [OC, C, KH, KW] -> [KH*KW, C, OC]
        oc, c, kh, kw = wc.shape
        return wc.transpose(2, 3, 1, 0).reshape(kh * kw, c, oc)

    s1, sh1 = bn_fold(p["conv1_b"], p["bn1"])
    s2, sh2 = bn_fold(p["conv2_b"], p["bn2"])
    s3, sh3 = bn_fold(p["conv3_b"], p["bn3"])
    s4, sh4 = bn_fold(p["conv4_b"], p["bn4"])

    sizes_h, sizes_w = [h], [w]
    for k_, s_ in ((7, 4), (5, 2), (3, 2), (3, 1), (3, 1)):
        sizes_h.append(conv2d_size_out(sizes_h[-1], k_, s_))
        sizes_w.append(conv2d_size_out(sizes_w[-1], k_, s_))
    oh5, ow5 = sizes_h[-1], sizes_w[-1]

    oc1 = p["conv1_w"].shape[0]
    c5 = p["conv5_w"].shape[0]
    nh = p["linear_w"].shape[0]
    # PyTorch's x.view(N, -1) flattens conv5's NCHW output in (c, h, w) order;
    # the kernel produces per-position [1, C] rows, so regroup linear_w per
    # position: wl[h*ow5 + w][ic, :] = linear_w[:, ic*oh5*ow5 + h*ow5 + w].
    wl = (p["linear_w"].reshape(nh, c5, oh5, ow5)
          .transpose(2, 3, 1, 0).reshape(oh5 * ow5, c5, nh))

    row = lambda v: v.reshape(1, -1).astype(f32)
    return {
        "w1": (p["conv1_w"].reshape(oc1, -1).T * s1[None, :]).astype(bf16),
        "w2": (taps(p["conv2_w"]) * s2[None, None, :]).astype(bf16),
        "w3": (taps(p["conv3_w"]) * s3[None, None, :]).astype(bf16),
        "w4": (taps(p["conv4_w"]) * s4[None, None, :]).astype(bf16),
        "w5": taps(p["conv5_w"]).astype(bf16),
        "wl": wl.astype(bf16),
        "wh": p["head_w"].T.astype(bf16),
        "s1": row(sh1), "s2": row(sh2), "s3": row(sh3), "s4": row(sh4),
        "s5": row(p["conv5_b"]), "sl": row(p["linear_b"]), "sh": row(p["head_b"]),
    }


# ----------------------------------------------------------------------------
# Fused Pallas forward: whole network in one pallas_call, grid over batch.
# ----------------------------------------------------------------------------
def dqn_forward(x, fp):
    n, _, h, w = x.shape

    kspec = ((7, 4), (5, 2), (3, 2), (3, 1), (3, 1))
    hs, ws = [h], [w]
    for k_, s_ in kspec:
        hs.append(conv2d_size_out(hs[-1], k_, s_))
        ws.append(conv2d_size_out(ws[-1], k_, s_))
    oh1, oh2, oh3, oh4, oh5 = hs[1:]
    ow1, ow2, ow3, ow4, ow5 = ws[1:]
    # The flat-offset layout constants below (parity planes, padded row widths,
    # over-read tails) are derived for exactly this geometry.
    assert (oh1, ow1, oh2, ow2, oh3, ow3, oh4, ow4, oh5, ow5) == \
        (32, 32, 14, 14, 6, 6, 4, 4, 2, 2), "re-derive layout for this input size"

    c1 = fp["w1"].shape[1]
    c2 = fp["w2"].shape[2]
    c3 = fp["w3"].shape[2]
    c4 = fp["w4"].shape[2]
    c5 = fp["w5"].shape[2]
    nh = fp["wl"].shape[2]
    nout = fp["wh"].shape[1]

    patches, poh, pow_ = conv1_patches_planes(x, 7, 7, 4)
    assert (poh, pow_) == (oh1, ow1)
    k1 = patches.shape[-1]
    assert k1 == fp["w1"].shape[0]

    # ---- flat VMEM layout constants ----------------------------------------
    HP1, WP1 = oh1 // 2, ow1 // 2     # conv1-output parity plane: 16 x 16
    P1 = HP1 * WP1                    # 256 rows per plane
    NP1 = 4 * P1                      # 1024 rows = full conv1 output
    M2 = oh2 * WP1                    # 224: conv2 plane-dot rows (14 x 16, 2 pad cols)
    HP2, WQ2 = oh2 // 2, ow2 // 2     # a2 parity plane valid size: 7 x 7
    WS2 = 8                           # storage row width for a2 planes / a3 / a4
    PL2 = HP2 * WS2                   # 56 rows per a2 plane
    NP2 = 4 * PL2                     # 224
    M3 = oh3 * WS2                    # 48
    M4 = oh4 * WS2                    # 32
    M5 = oh5 * WS2                    # 16
    FEAT_ROWS = tuple(r * WS2 + cc for r in range(oh5) for cc in range(ow5))

    def kernel(p_ref, w1_ref, w2_ref, w3_ref, w4_ref, w5_ref, wl_ref, wh_ref,
               b1_ref, b2_ref, b3_ref, b4_ref, b5_ref, bl_ref, bh_ref,
               o_ref, y1_ref, a2f_ref, a2p_ref, a3_ref, a4_ref):
        f32, bf16 = jnp.float32, jnp.bfloat16

        # Zero the small over-read tails.  Window reads may run a few rows past
        # the valid data; those rows only ever feed padded output rows that are
        # never consumed, but keep them finite/deterministic anyway.
        y1_ref[pl.ds(NP1, 8), :] = jnp.zeros((8, c1), f32)
        a2p_ref[pl.ds(NP2, 8), :] = jnp.zeros((8, c2), f32)
        a3_ref[pl.ds(M3, 8), :] = jnp.zeros((8, c3), f32)
        a4_ref[pl.ds(M4, 8), :] = jnp.zeros((8, c4), f32)

        # ---- conv1 + BN1 + ReLU: 4 MXU dots (one per stride-2 parity plane).
        for pi in range(4):
            lhs = p_ref[pl.ds(pi * P1, P1), :]                       # bf16 [256,196]
            y = jnp.dot(lhs, w1_ref[...], preferred_element_type=f32)
            y1_ref[pl.ds(pi * P1, P1), :] = jnp.maximum(y + b1_ref[...], 0.0)

        # ---- conv2 + BN2 + ReLU (5x5, s2): 25 plane dots, M=224. ------------
        # Per tap, the LHS is one contiguous row-range of the parity plane;
        # columns >= ow2 of each 16-wide row are don't-care pad rows.
        acc = jnp.zeros((M2, c2), f32)
        for i in range(5):
            for j in range(5):
                start = (2 * (i % 2) + (j % 2)) * P1 + (i // 2) * WP1 + (j // 2)
                lhs = y1_ref[pl.ds(start, M2), :].astype(bf16)
                acc = acc + jnp.dot(lhs, w2_ref[i * 5 + j],
                                    preferred_element_type=f32)
        a2f_ref[...] = jnp.maximum(acc + b2_ref[...], 0.0)           # [224, 64]

        # ---- deinterleave a2 into 4 stride-2 parity planes (flat, width 8). --
        for rho in range(2):
            for gam in range(2):
                base = (2 * rho + gam) * PL2
                for pp in range(HP2):
                    src = a2f_ref[pl.ds((2 * pp + rho) * WP1 + gam, WQ2, 2), :]
                    a2p_ref[pl.ds(base + pp * WS2, WQ2), :] = src

        # ---- conv3 + BN3 + ReLU (3x3, s2): 9 plane dots, M=48. ---------------
        acc = jnp.zeros((M3, c3), f32)
        for i in range(3):
            for j in range(3):
                start = (2 * (i % 2) + (j % 2)) * PL2 + (i // 2) * WS2 + (j // 2)
                lhs = a2p_ref[pl.ds(start, M3), :].astype(bf16)
                acc = acc + jnp.dot(lhs, w3_ref[i * 3 + j],
                                    preferred_element_type=f32)
        a3_ref[pl.ds(0, M3), :] = jnp.maximum(acc + b3_ref[...], 0.0)

        # ---- conv4 + BN4 + ReLU (3x3, s1): 9 plane dots, M=32. ---------------
        acc = jnp.zeros((M4, c4), f32)
        for i in range(3):
            for j in range(3):
                lhs = a3_ref[pl.ds(i * WS2 + j, M4), :].astype(bf16)
                acc = acc + jnp.dot(lhs, w4_ref[i * 3 + j],
                                    preferred_element_type=f32)
        a4_ref[pl.ds(0, M4), :] = jnp.maximum(acc + b4_ref[...], 0.0)

        # ---- conv5 + ReLU (3x3, s1): 9 plane dots, M=16. ---------------------
        acc = jnp.zeros((M5, c5), f32)
        for i in range(3):
            for j in range(3):
                lhs = a4_ref[pl.ds(i * WS2 + j, M5), :].astype(bf16)
                acc = acc + jnp.dot(lhs, w5_ref[i * 3 + j],
                                    preferred_element_type=f32)
        feat = jnp.maximum(acc + b5_ref[...], 0.0)   # [16, 64]; valid rows 0,1,8,9

        # ---- linear + ReLU (accumulate over valid conv5 positions), head. ----
        hacc = jnp.zeros((1, nh), f32)
        for k, frow in enumerate(FEAT_ROWS):
            hacc = hacc + jnp.dot(feat[frow:frow + 1, :].astype(bf16), wl_ref[k],
                                  preferred_element_type=f32)
        hid = jnp.maximum(hacc + bl_ref[...], 0.0)
        out = jnp.dot(hid.astype(bf16), wh_ref[...],
                      preferred_element_type=f32) + bh_ref[...]
        o_ref[...] = out.astype(o_ref.dtype)

    def full_spec(arr):
        zeros = (0,) * arr.ndim
        return pl.BlockSpec(arr.shape, lambda b: zeros)

    weight_args = (fp["w1"], fp["w2"], fp["w3"], fp["w4"], fp["w5"],
                   fp["wl"], fp["wh"],
                   fp["s1"], fp["s2"], fp["s3"], fp["s4"], fp["s5"],
                   fp["sl"], fp["sh"])

    in_specs = [pl.BlockSpec((None, NP1, k1), lambda b: (b, 0, 0))]
    in_specs += [full_spec(a) for a in weight_args]

    out = pl.pallas_call(
        kernel,
        out_shape=jax.ShapeDtypeStruct((n, 1, nout), jnp.float32),
        grid_spec=pltpu.PrefetchScalarGridSpec(
            num_scalar_prefetch=0,
            grid=(n,),
            in_specs=in_specs,
            out_specs=pl.BlockSpec((None, 1, nout), lambda b: (b, 0, 0)),
            scratch_shapes=[
                pltpu.VMEM((NP1 + 8, c1), jnp.float32),   # conv1 out (parity planes, flat)
                pltpu.VMEM((M2, c2), jnp.float32),        # conv2 out (14 x 16 flat)
                pltpu.VMEM((NP2 + 8, c2), jnp.float32),   # conv2 out, stride-2 deinterleaved
                pltpu.VMEM((M3 + 8, c3), jnp.float32),    # conv3 out (6 x 8 flat)
                pltpu.VMEM((M4 + 8, c4), jnp.float32),    # conv4 out (4 x 8 flat)
            ]),
        compiler_params=pltpu.CompilerParams(
            dimension_semantics=("parallel",),
            vmem_limit_bytes=32 * 1024 * 1024),
    )(patches, *weight_args)
    return out.reshape(n, nout)


# ----------------------------------------------------------------------------
# Pure-JAX reference (mirrors the PyTorch module, BN in eval mode).
# ----------------------------------------------------------------------------
def _conv_ref(x, w, b, stride):
    y = lax.conv_general_dilated(
        x, w, (stride, stride), "VALID",
        dimension_numbers=("NCHW", "OIHW", "NCHW"),
        precision=lax.Precision.HIGHEST)
    return y + b.reshape(1, -1, 1, 1)


def _bn_ref(x, bn):
    gamma, beta, mean, var = (v.reshape(1, -1, 1, 1) for v in bn)
    return (x - mean) / jnp.sqrt(var + BN_EPS) * gamma + beta


def dqn_forward_ref(x, p):
    x = jax.nn.relu(_bn_ref(_conv_ref(x, p["conv1_w"], p["conv1_b"], 4), p["bn1"]))
    x = jax.nn.relu(_bn_ref(_conv_ref(x, p["conv2_w"], p["conv2_b"], 2), p["bn2"]))
    x = jax.nn.relu(_bn_ref(_conv_ref(x, p["conv3_w"], p["conv3_b"], 2), p["bn3"]))
    x = jax.nn.relu(_bn_ref(_conv_ref(x, p["conv4_w"], p["conv4_b"], 1), p["bn4"]))
    x = jax.nn.relu(_conv_ref(x, p["conv5_w"], p["conv5_b"], 1))
    xf = x.reshape(x.shape[0], -1)
    hdn = jax.nn.relu(jnp.dot(xf, p["linear_w"].T,
                              precision=lax.Precision.HIGHEST) + p["linear_b"])
    return jnp.dot(hdn, p["head_w"].T,
                   precision=lax.Precision.HIGHEST) + p["head_b"]


# ----------------------------------------------------------------------------
# Deterministic synthetic parameters (shapes from the module __init__).
# ----------------------------------------------------------------------------
def init_params(key, h, w, outputs):
    def dense(k, shape, scale=0.05):
        return scale * jax.random.normal(k, shape, jnp.float32)

    def bn(k, c):
        k1, k2, k3, k4 = jax.random.split(k, 4)
        gamma = 1.0 + 0.1 * jax.random.normal(k1, (c,), jnp.float32)
        beta = 0.1 * jax.random.normal(k2, (c,), jnp.float32)
        mean = 0.1 * jax.random.normal(k3, (c,), jnp.float32)
        var = 0.5 + 0.1 * jnp.abs(jax.random.normal(k4, (c,), jnp.float32))
        return gamma, beta, mean, var

    ks = jax.random.split(key, 18)
    p = {
        "conv1_w": dense(ks[0], (32, STACK_SIZE, 7, 7)), "conv1_b": dense(ks[1], (32,), 0.01),
        "conv2_w": dense(ks[2], (64, 32, 5, 5)),         "conv2_b": dense(ks[3], (64,), 0.01),
        "conv3_w": dense(ks[4], (64, 64, 3, 3)),         "conv3_b": dense(ks[5], (64,), 0.01),
        "conv4_w": dense(ks[6], (64, 64, 3, 3)),         "conv4_b": dense(ks[7], (64,), 0.01),
        "conv5_w": dense(ks[8], (64, 64, 3, 3)),         "conv5_b": dense(ks[9], (64,), 0.01),
        "bn1": bn(ks[10], 32), "bn2": bn(ks[11], 64),
        "bn3": bn(ks[12], 64), "bn4": bn(ks[13], 64),
    }
    convw, convh = w, h
    for k_, s_ in ((7, 4), (5, 2), (3, 2), (3, 1), (3, 1)):
        convw = conv2d_size_out(convw, k_, s_)
        convh = conv2d_size_out(convh, k_, s_)
    lin_in = convw * convh * 64
    p.update({
        "linear_w": dense(ks[14], (512, lin_in)), "linear_b": dense(ks[15], (512,), 0.01),
        "head_w": dense(ks[16], (outputs, 512)),  "head_b": dense(ks[17], (outputs,), 0.01),
    })
    return p


if __name__ == "__main__":
    key = jax.random.PRNGKey(0)
    # 131x131 input -> conv outputs 32, 14, 6, 4, 2 (conv1 plane width 16 keeps
    # every in-kernel read contiguous / every layout transform a no-op).
    N, H, W = 2, 131, 131
    OUTPUTS = 4

    params = init_params(key, H, W, OUTPUTS)
    folded = prepare_params(params, H, W)
    x = jax.random.normal(jax.random.fold_in(key, 999),
                          (N, STACK_SIZE, H, W), jnp.float32)

    fwd = jax.jit(dqn_forward)
    y = jax.block_until_ready(fwd(x, folded))

    y_ref = dqn_forward_ref(x, params)
    assert y.shape == (N, OUTPUTS)
    err = float(jnp.max(jnp.abs(y - y_ref)))
    # bf16 MXU operands vs. HIGHEST-precision f32 reference.
    assert jnp.allclose(y, y_ref, atol=3e-2, rtol=3e-2), f"max abs diff {err}"

    print("KERNEL_OK")
</pallas_src>

<mosaic_0001>
module attributes {stable_mosaic.version = 11 : i64} {
  func.func @kernel(%arg0: i32, %arg1: memref<1x1024x196xbf16, #tpu.memory_space<vmem>>, %arg2: memref<196x32xbf16, #tpu.memory_space<vmem>>, %arg3: memref<25x32x64xbf16, #tpu.memory_space<vmem>>, %arg4: memref<9x64x64xbf16, #tpu.memory_space<vmem>>, %arg5: memref<9x64x64xbf16, #tpu.memory_space<vmem>>, %arg6: memref<9x64x64xbf16, #tpu.memory_space<vmem>>, %arg7: memref<4x64x512xbf16, #tpu.memory_space<vmem>>, %arg8: memref<512x4xbf16, #tpu.memory_space<vmem>>, %arg9: memref<1x32xf32, #tpu.memory_space<vmem>>, %arg10: memref<1x64xf32, #tpu.memory_space<vmem>>, %arg11: memref<1x64xf32, #tpu.memory_space<vmem>>, %arg12: memref<1x64xf32, #tpu.memory_space<vmem>>, %arg13: memref<1x64xf32, #tpu.memory_space<vmem>>, %arg14: memref<1x512xf32, #tpu.memory_space<vmem>>, %arg15: memref<1x4xf32, #tpu.memory_space<vmem>>, %arg16: memref<1x1x4xf32, #tpu.memory_space<vmem>>, %arg17: memref<1032x32xf32, #tpu.memory_space<vmem>>, %arg18: memref<224x64xf32, #tpu.memory_space<vmem>>, %arg19: memref<232x64xf32, #tpu.memory_space<vmem>>, %arg20: memref<56x64xf32, #tpu.memory_space<vmem>>, %arg21: memref<40x64xf32, #tpu.memory_space<vmem>>) attributes {dimension_semantics = [#tpu.dimension_semantics<parallel>], iteration_bounds = array<i64: 2>, scalar_prefetch = 0 : i64, scratch_operands = 5 : i64, tpu.core_type = #tpu.core_type<tc>, window_params = [{transform_indices = @transform_0, window_bounds = array<i64: 1, 1024, 196>}, {pipeline_mode = #tpu.pipeline_mode<synchronous>, transform_indices = @transform_1, window_bounds = array<i64: 196, 32>}, {pipeline_mode = #tpu.pipeline_mode<synchronous>, transform_indices = @transform_2, window_bounds = array<i64: 25, 32, 64>}, {pipeline_mode = #tpu.pipeline_mode<synchronous>, transform_indices = @transform_3, window_bounds = array<i64: 9, 64, 64>}, {pipeline_mode = #tpu.pipeline_mode<synchronous>, transform_indices = @transform_4, window_bounds = array<i64: 9, 64, 64>}, {pipeline_mode = #tpu.pipeline_mode<synchronous>, transform_indices = @transform_5, window_bounds = array<i64: 9, 64, 64>}, {pipeline_mode = #tpu.pipeline_mode<synchronous>, transform_indices = @transform_6, window_bounds = array<i64: 4, 64, 512>}, {pipeline_mode = #tpu.pipeline_mode<synchronous>, transform_indices = @transform_7, window_bounds = array<i64: 512, 4>}, {pipeline_mode = #tpu.pipeline_mode<synchronous>, transform_indices = @transform_8, window_bounds = array<i64: 1, 32>}, {pipeline_mode = #tpu.pipeline_mode<synchronous>, transform_indices = @transform_9, window_bounds = array<i64: 1, 64>}, {pipeline_mode = #tpu.pipeline_mode<synchronous>, transform_indices = @transform_10, window_bounds = array<i64: 1, 64>}, {pipeline_mode = #tpu.pipeline_mode<synchronous>, transform_indices = @transform_11, window_bounds = array<i64: 1, 64>}, {pipeline_mode = #tpu.pipeline_mode<synchronous>, transform_indices = @transform_12, window_bounds = array<i64: 1, 64>}, {pipeline_mode = #tpu.pipeline_mode<synchronous>, transform_indices = @transform_13, window_bounds = array<i64: 1, 512>}, {pipeline_mode = #tpu.pipeline_mode<synchronous>, transform_indices = @transform_14, window_bounds = array<i64: 1, 4>}, {transform_indices = @transform_15, window_bounds = array<i64: 1, 1, 4>}]} {
    %cst = arith.constant 0.000000e+00 : f32
    %0 = vector.broadcast %cst : f32 to vector<8x32xf32>
    %c1024 = arith.constant 1024 : index
    %c0 = arith.constant 0 : index
    %1 = vector.load %arg17[%c1024, %c0] : memref<1032x32xf32, #tpu.memory_space<vmem>>, vector<8x32xf32>
    tpu.vector_store %arg17[%c1024, %c0], %0 {strides = array<i32>} : memref<1032x32xf32, #tpu.memory_space<vmem>>, vector<8x32xf32>,
    %cst_0 = arith.constant 0.000000e+00 : f32
    %2 = vector.broadcast %cst_0 : f32 to vector<8x64xf32>
    %c224 = arith.constant 224 : index
    %c0_1 = arith.constant 0 : index
    %3 = vector.load %arg19[%c224, %c0_1] : memref<232x64xf32, #tpu.memory_space<vmem>>, vector<8x64xf32>
    tpu.vector_store %arg19[%c224, %c0_1], %2 {strides = array<i32>} : memref<232x64xf32, #tpu.memory_space<vmem>>, vector<8x64xf32>,
    %cst_2 = arith.constant 0.000000e+00 : f32
    %4 = vector.broadcast %cst_2 : f32 to vector<8x64xf32>
    %c48 = arith.constant 48 : index
    %c0_3 = arith.constant 0 : index
    %5 = vector.load %arg20[%c48, %c0_3] : memref<56x64xf32, #tpu.memory_space<vmem>>, vector<8x64xf32>
    tpu.vector_store %arg20[%c48, %c0_3], %4 {strides = array<i32>} : memref<56x64xf32, #tpu.memory_space<vmem>>, vector<8x64xf32>,
    %cst_4 = arith.constant 0.000000e+00 : f32
    %6 = vector.broadcast %cst_4 : f32 to vector<8x64xf32>
    %c32 = arith.constant 32 : index
    %c0_5 = arith.constant 0 : index
    %7 = vector.load %arg21[%c32, %c0_5] : memref<40x64xf32, #tpu.memory_space<vmem>>, vector<8x64xf32>
    tpu.vector_store %arg21[%c32, %c0_5], %6 {strides = array<i32>} : memref<40x64xf32, #tpu.memory_space<vmem>>, vector<8x64xf32>,
    %c0_6 = arith.constant 0 : index
    %c0_7 = arith.constant 0 : index
    %c0_8 = arith.constant 0 : index
    %8 = vector.load %arg1[%c0_6, %c0_7, %c0_8] : memref<1x1024x196xbf16, #tpu.memory_space<vmem>>, vector<1x256x196xbf16>
    %9 = vector.shape_cast %8 : vector<1x256x196xbf16> to vector<256x196xbf16>
    %c0_9 = arith.constant 0 : index
    %c0_10 = arith.constant 0 : index
    %10 = vector.load %arg2[%c0_9, %c0_10] : memref<196x32xbf16, #tpu.memory_space<vmem>>, vector<196x32xbf16>
    %cst_11 = arith.constant dense<0.000000e+00> : vector<256x32xf32>
    %11 = tpu.matmul %9, %10, %cst_11 {dimension_numbers = #tpu.dot_dimension_numbers<[1], [0], [0], [1], [0, 0, 1, 1], [], []>} : vector<256x196xbf16>, vector<196x32xbf16>, vector<256x32xf32> -> vector<256x32xf32>
    %c0_12 = arith.constant 0 : index
    %c0_13 = arith.constant 0 : index
    %12 = vector.load %arg9[%c0_12, %c0_13] : memref<1x32xf32, #tpu.memory_space<vmem>>, vector<1x32xf32>
    %13 = vector.broadcast %12 : vector<1x32xf32> to vector<256x32xf32>
    %14 = arith.addf %11, %13 : vector<256x32xf32>
    %cst_14 = arith.constant 0.000000e+00 : f32
    %15 = vector.broadcast %cst_14 : f32 to vector<256x32xf32>
    %16 = arith.maximumf %14, %15 : vector<256x32xf32>
    %c0_15 = arith.constant 0 : index
    %c0_16 = arith.constant 0 : index
    %17 = vector.load %arg17[%c0_15, %c0_16] : memref<1032x32xf32, #tpu.memory_space<vmem>>, vector<256x32xf32>
    tpu.vector_store %arg17[%c0_15, %c0_16], %16 {strides = array<i32>} : memref<1032x32xf32, #tpu.memory_space<vmem>>, vector<256x32xf32>,
    %c0_17 = arith.constant 0 : index
    %c256 = arith.constant 256 : index
    %c0_18 = arith.constant 0 : index
    %18 = vector.load %arg1[%c0_17, %c256, %c0_18] : memref<1x1024x196xbf16, #tpu.memory_space<vmem>>, vector<1x256x196xbf16>
    %19 = vector.shape_cast %18 : vector<1x256x196xbf16> to vector<256x196xbf16>
    %c0_19 = arith.constant 0 : index
    %c0_20 = arith.constant 0 : index
    %20 = vector.load %arg2[%c0_19, %c0_20] : memref<196x32xbf16, #tpu.memory_space<vmem>>, vector<196x32xbf16>
    %cst_21 = arith.constant dense<0.000000e+00> : vector<256x32xf32>
    %21 = tpu.matmul %19, %20, %cst_21 {dimension_numbers = #tpu.dot_dimension_numbers<[1], [0], [0], [1], [0, 0, 1, 1], [], []>} : vector<256x196xbf16>, vector<196x32xbf16>, vector<256x32xf32> -> vector<256x32xf32>
    %c0_22 = arith.constant 0 : index
    %c0_23 = arith.constant 0 : index
    %22 = vector.load %arg9[%c0_22, %c0_23] : memref<1x32xf32, #tpu.memory_space<vmem>>, vector<1x32xf32>
    %23 = vector.broadcast %22 : vector<1x32xf32> to vector<256x32xf32>
    %24 = arith.addf %21, %23 : vector<256x32xf32>
    %cst_24 = arith.constant 0.000000e+00 : f32
    %25 = vector.broadcast %cst_24 : f32 to vector<256x32xf32>
    %26 = arith.maximumf %24, %25 : vector<256x32xf32>
    %c256_25 = arith.constant 256 : index
    %c0_26 = arith.constant 0 : index
    %27 = vector.load %arg17[%c256_25, %c0_26] : memref<1032x32xf32, #tpu.memory_space<vmem>>, vector<256x32xf32>
    tpu.vector_store %arg17[%c256_25, %c0_26], %26 {strides = array<i32>} : memref<1032x32xf32, #tpu.memory_space<vmem>>, vector<256x32xf32>,
    %c0_27 = arith.constant 0 : index
    %c512 = arith.constant 512 : index
    %c0_28 = arith.constant 0 : index
    %28 = vector.load %arg1[%c0_27, %c512, %c0_28] : memref<1x1024x196xbf16, #tpu.memory_space<vmem>>, vector<1x256x196xbf16>
    %29 = vector.shape_cast %28 : vector<1x256x196xbf16> to vector<256x196xbf16>
    %c0_29 = arith.constant 0 : index
    %c0_30 = arith.constant 0 : index
    %30 = vector.load %arg2[%c0_29, %c0_30] : memref<196x32xbf16, #tpu.memory_space<vmem>>, vector<196x32xbf16>
    %cst_31 = arith.constant dense<0.000000e+00> : vector<256x32xf32>
    %31 = tpu.matmul %29, %30, %cst_31 {dimension_numbers = #tpu.dot_dimension_numbers<[1], [0], [0], [1], [0, 0, 1, 1], [], []>} : vector<256x196xbf16>, vector<196x32xbf16>, vector<256x32xf32> -> vector<256x32xf32>
    %c0_32 = arith.constant 0 : index
    %c0_33 = arith.constant 0 : index
    %32 = vector.load %arg9[%c0_32, %c0_33] : memref<1x32xf32, #tpu.memory_space<vmem>>, vector<1x32xf32>
    %33 = vector.broadcast %32 : vector<1x32xf32> to vector<256x32xf32>
    %34 = arith.addf %31, %33 : vector<256x32xf32>
    %cst_34 = arith.constant 0.000000e+00 : f32
    %35 = vector.broadcast %cst_34 : f32 to vector<256x32xf32>
    %36 = arith.maximumf %34, %35 : vector<256x32xf32>
    %c512_35 = arith.constant 512 : index
    %c0_36 = arith.constant 0 : index
    %37 = vector.load %arg17[%c512_35, %c0_36] : memref<1032x32xf32, #tpu.memory_space<vmem>>, vector<256x32xf32>
    tpu.vector_store %arg17[%c512_35, %c0_36], %36 {strides = array<i32>} : memref<1032x32xf32, #tpu.memory_space<vmem>>, vector<256x32xf32>,
    %c0_37 = arith.constant 0 : index
    %c768 = arith.constant 768 : index
    %c0_38 = arith.constant 0 : index
    %38 = vector.load %arg1[%c0_37, %c768, %c0_38] : memref<1x1024x196xbf16, #tpu.memory_space<vmem>>, vector<1x256x196xbf16>
    %39 = vector.shape_cast %38 : vector<1x256x196xbf16> to vector<256x196xbf16>
    %c0_39 = arith.constant 0 : index
    %c0_40 = arith.constant 0 : index
    %40 = vector.load %arg2[%c0_39, %c0_40] : memref<196x32xbf16, #tpu.memory_space<vmem>>, vector<196x32xbf16>
    %cst_41 = arith.constant dense<0.000000e+00> : vector<256x32xf32>
    %41 = tpu.matmul %39, %40, %cst_41 {dimension_numbers = #tpu.dot_dimension_numbers<[1], [0], [0], [1], [0, 0, 1, 1], [], []>} : vector<256x196xbf16>, vector<196x32xbf16>, vector<256x32xf32> -> vector<256x32xf32>
    %c0_42 = arith.constant 0 : index
    %c0_43 = arith.constant 0 : index
    %42 = vector.load %arg9[%c0_42, %c0_43] : memref<1x32xf32, #tpu.memory_space<vmem>>, vector<1x32xf32>
    %43 = vector.broadcast %42 : vector<1x32xf32> to vector<256x32xf32>
    %44 = arith.addf %41, %43 : vector<256x32xf32>
    %cst_44 = arith.constant 0.000000e+00 : f32
    %45 = vector.broadcast %cst_44 : f32 to vector<256x32xf32>
    %46 = arith.maximumf %44, %45 : vector<256x32xf32>
    %c768_45 = arith.constant 768 : index
    %c0_46 = arith.constant 0 : index
    %47 = vector.load %arg17[%c768_45, %c0_46] : memref<1032x32xf32, #tpu.memory_space<vmem>>, vector<256x32xf32>
    tpu.vector_store %arg17[%c768_45, %c0_46], %46 {strides = array<i32>} : memref<1032x32xf32, #tpu.memory_space<vmem>>, vector<256x32xf32>,
    %cst_47 = arith.constant 0.000000e+00 : f32
    %48 = vector.broadcast %cst_47 : f32 to vector<224x64xf32>
    %c0_48 = arith.constant 0 : index
    %c0_49 = arith.constant 0 : index
    %49 = vector.load %arg17[%c0_48, %c0_49] : memref<1032x32xf32, #tpu.memory_space<vmem>>, vector<224x32xf32>
    %50 = arith.truncf %49 : vector<224x32xf32> to vector<224x32xbf16>
    %c0_50 = arith.constant 0 : index
    %c0_51 = arith.constant 0 : index
    %c0_52 = arith.constant 0 : index
    %51 = vector.load %arg3[%c0_50, %c0_51, %c0_52] : memref<25x32x64xbf16, #tpu.memory_space<vmem>>, vector<1x32x64xbf16>
    %52 = vector.shape_cast %51 : vector<1x32x64xbf16> to vector<32x64xbf16>
    %cst_53 = arith.constant dense<0.000000e+00> : vector<224x64xf32>
    %53 = tpu.matmul %50, %52, %cst_53 {dimension_numbers = #tpu.dot_dimension_numbers<[1], [0], [0], [1], [0, 0, 1, 1], [], []>} : vector<224x32xbf16>, vector<32x64xbf16>, vector<224x64xf32> -> vector<224x64xf32>
    %54 = arith.addf %48, %53 : vector<224x64xf32>
    %c256_54 = arith.constant 256 : index
    %c0_55 = arith.constant 0 : index
    %55 = vector.load %arg17[%c256_54, %c0_55] : memref<1032x32xf32, #tpu.memory_space<vmem>>, vector<224x32xf32>
    %56 = arith.truncf %55 : vector<224x32xf32> to vector<224x32xbf16>
    %c1 = arith.constant 1 : index
    %c0_56 = arith.constant 0 : index
    %c0_57 = arith.constant 0 : index
    %57 = vector.load %arg3[%c1, %c0_56, %c0_57] : memref<25x32x64xbf16, #tpu.memory_space<vmem>>, vector<1x32x64xbf16>
    %58 = vector.shape_cast %57 : vector<1x32x64xbf16> to vector<32x64xbf16>
    %cst_58 = arith.constant dense<0.000000e+00> : vector<224x64xf32>
    %59 = tpu.matmul %56, %58, %cst_58 {dimension_numbers = #tpu.dot_dimension_numbers<[1], [0], [0], [1], [0, 0, 1, 1], [], []>} : vector<224x32xbf16>, vector<32x64xbf16>, vector<224x64xf32> -> vector<224x64xf32>
    %60 = arith.addf %54, %59 : vector<224x64xf32>
    %c1_59 = arith.constant 1 : index
    %c0_60 = arith.constant 0 : index
    %61 = vector.load %arg17[%c1_59, %c0_60] : memref<1032x32xf32, #tpu.memory_space<vmem>>, vector<224x32xf32>
    %62 = arith.truncf %61 : vector<224x32xf32> to vector<224x32xbf16>
    %c2 = arith.constant 2 : index
    %c0_61 = arith.constant 0 : index
    %c0_62 = arith.constant 0 : index
    %63 = vector.load %arg3[%c2, %c0_61, %c0_62] : memref<25x32x64xbf16, #tpu.memory_space<vmem>>, vector<1x32x64xbf16>
    %64 = vector.shape_cast %63 : vector<1x32x64xbf16> to vector<32x64xbf16>
    %cst_63 = arith.constant dense<0.000000e+00> : vector<224x64xf32>
    %65 = tpu.matmul %62, %64, %cst_63 {dimension_numbers = #tpu.dot_dimension_numbers<[1], [0], [0], [1], [0, 0, 1, 1], [], []>} : vector<224x32xbf16>, vector<32x64xbf16>, vector<224x64xf32> -> vector<224x64xf32>
    %66 = arith.addf %60, %65 : vector<224x64xf32>
    %c257 = arith.constant 257 : index
    %c0_64 = arith.constant 0 : index
    %67 = vector.load %arg17[%c257, %c0_64] : memref<1032x32xf32, #tpu.memory_space<vmem>>, vector<224x32xf32>
    %68 = arith.truncf %67 : vector<224x32xf32> to vector<224x32xbf16>
    %c3 = arith.constant 3 : index
    %c0_65 = arith.constant 0 : index
    %c0_66 = arith.constant 0 : index
    %69 = vector.load %arg3[%c3, %c0_65, %c0_66] : memref<25x32x64xbf16, #tpu.memory_space<vmem>>, vector<1x32x64xbf16>
    %70 = vector.shape_cast %69 : vector<1x32x64xbf16> to vector<32x64xbf16>
    %cst_67 = arith.constant dense<0.000000e+00> : vector<224x64xf32>
    %71 = tpu.matmul %68, %70, %cst_67 {dimension_numbers = #tpu.dot_dimension_numbers<[1], [0], [0], [1], [0, 0, 1, 1], [], []>} : vector<224x32xbf16>, vector<32x64xbf16>, vector<224x64xf32> -> vector<224x64xf32>
    %72 = arith.addf %66, %71 : vector<224x64xf32>
    %c2_68 = arith.constant 2 : index
    %c0_69 = arith.constant 0 : index
    %73 = vector.load %arg17[%c2_68, %c0_69] : memref<1032x32xf32, #tpu.memory_space<vmem>>, vector<224x32xf32>
    %74 = arith.truncf %73 : vector<224x32xf32> to vector<224x32xbf16>
    %c4 = arith.constant 4 : index
    %c0_70 = arith.constant 0 : index
    %c0_71 = arith.constant 0 : index
    %75 = vector.load %arg3[%c4, %c0_70, %c0_71] : memref<25x32x64xbf16, #tpu.memory_space<vmem>>, vector<1x32x64xbf16>
    %76 = vector.shape_cast %75 : vector<1x32x64xbf16> to vector<32x64xbf16>
    %cst_72 = arith.constant dense<0.000000e+00> : vector<224x64xf32>
    %77 = tpu.matmul %74, %76, %cst_72 {dimension_numbers = #tpu.dot_dimension_numbers<[1], [0], [0], [1], [0, 0, 1, 1], [], []>} : vector<224x32xbf16>, vector<32x64xbf16>, vector<224x64xf32> -> vector<224x64xf32>
    %78 = arith.addf %72, %77 : vector<224x64xf32>
    %c512_73 = arith.constant 512 : index
    %c0_74 = arith.constant 0 : index
    %79 = vector.load %arg17[%c512_73, %c0_74] : memref<1032x32xf32, #tpu.memory_space<vmem>>, vector<224x32xf32>
    %80 = arith.truncf %79 : vector<224x32xf32> to vector<224x32xbf16>
    %c5 = arith.constant 5 : index
    %c0_75 = arith.constant 0 : index
    %c0_76 = arith.constant 0 : index
    %81 = vector.load %arg3[%c5, %c0_75, %c0_76] : memref<25x32x64xbf16, #tpu.memory_space<vmem>>, vector<1x32x64xbf16>
    %82 = vector.shape_cast %81 : vector<1x32x64xbf16> to vector<32x64xbf16>
    %cst_77 = arith.constant dense<0.000000e+00> : vector<224x64xf32>
    %83 = tpu.matmul %80, %82, %cst_77 {dimension_numbers = #tpu.dot_dimension_numbers<[1], [0], [0], [1], [0, 0, 1, 1], [], []>} : vector<224x32xbf16>, vector<32x64xbf16>, vector<224x64xf32> -> vector<224x64xf32>
    %84 = arith.addf %78, %83 : vector<224x64xf32>
    %c768_78 = arith.constant 768 : index
    %c0_79 = arith.constant 0 : index
    %85 = vector.load %arg17[%c768_78, %c0_79] : memref<1032x32xf32, #tpu.memory_space<vmem>>, vector<224x32xf32>
    %86 = arith.truncf %85 : vector<224x32xf32> to vector<224x32xbf16>
    %c6 = arith.constant 6 : index
    %c0_80 = arith.constant 0 : index
    %c0_81 = arith.constant 0 : index
    %87 = vector.load %arg3[%c6, %c0_80, %c0_81] : memref<25x32x64xbf16, #tpu.memory_space<vmem>>, vector<1x32x64xbf16>
    %88 = vector.shape_cast %87 : vector<1x32x64xbf16> to vector<32x64xbf16>
    %cst_82 = arith.constant dense<0.000000e+00> : vector<224x64xf32>
    %89 = tpu.matmul %86, %88, %cst_82 {dimension_numbers = #tpu.dot_dimension_numbers<[1], [0], [0], [1], [0, 0, 1, 1], [], []>} : vector<224x32xbf16>, vector<32x64xbf16>, vector<224x64xf32> -> vector<224x64xf32>
    %90 = arith.addf %84, %89 : vector<224x64xf32>
    %c513 = arith.constant 513 : index
    %c0_83 = arith.constant 0 : index
    %91 = vector.load %arg17[%c513, %c0_83] : memref<1032x32xf32, #tpu.memory_space<vmem>>, vector<224x32xf32>
    %92 = arith.truncf %91 : vector<224x32xf32> to vector<224x32xbf16>
    %c7 = arith.constant 7 : index
    %c0_84 = arith.constant 0 : index
    %c0_85 = arith.constant 0 : index
    %93 = vector.load %arg3[%c7, %c0_84, %c0_85] : memref<25x32x64xbf16, #tpu.memory_space<vmem>>, vector<1x32x64xbf16>
    %94 = vector.shape_cast %93 : vector<1x32x64xbf16> to vector<32x64xbf16>
    %cst_86 = arith.constant dense<0.000000e+00> : vector<224x64xf32>
    %95 = tpu.matmul %92, %94, %cst_86 {dimension_numbers = #tpu.dot_dimension_numbers<[1], [0], [0], [1], [0, 0, 1, 1], [], []>} : vector<224x32xbf16>, vector<32x64xbf16>, vector<224x64xf32> -> vector<224x64xf32>
    %96 = arith.addf %90, %95 : vector<224x64xf32>
    %c769 = arith.constant 769 : index
    %c0_87 = arith.constant 0 : index
    %97 = vector.load %arg17[%c769, %c0_87] : memref<1032x32xf32, #tpu.memory_space<vmem>>, vector<224x32xf32>
    %98 = arith.truncf %97 : vector<224x32xf32> to vector<224x32xbf16>
    %c8 = arith.constant 8 : index
    %c0_88 = arith.constant 0 : index
    %c0_89 = arith.constant 0 : index
    %99 = vector.load %arg3[%c8, %c0_88, %c0_89] : memref<25x32x64xbf16, #tpu.memory_space<vmem>>, vector<1x32x64xbf16>
    %100 = vector.shape_cast %99 : vector<1x32x64xbf16> to vector<32x64xbf16>
    %cst_90 = arith.constant dense<0.000000e+00> : vector<224x64xf32>
    %101 = tpu.matmul %98, %100, %cst_90 {dimension_numbers = #tpu.dot_dimension_numbers<[1], [0], [0], [1], [0, 0, 1, 1], [], []>} : vector<224x32xbf16>, vector<32x64xbf16>, vector<224x64xf32> -> vector<224x64xf32>
    %102 = arith.addf %96, %101 : vector<224x64xf32>
    %c514 = arith.constant 514 : index
    %c0_91 = arith.constant 0 : index
    %103 = vector.load %arg17[%c514, %c0_91] : memref<1032x32xf32, #tpu.memory_space<vmem>>, vector<224x32xf32>
    %104 = arith.truncf %103 : vector<224x32xf32> to vector<224x32xbf16>
    %c9 = arith.constant 9 : index
    %c0_92 = arith.constant 0 : index
    %c0_93 = arith.constant 0 : index
    %105 = vector.load %arg3[%c9, %c0_92, %c0_93] : memref<25x32x64xbf16, #tpu.memory_space<vmem>>, vector<1x32x64xbf16>
    %106 = vector.shape_cast %105 : vector<1x32x64xbf16> to vector<32x64xbf16>
    %cst_94 = arith.constant dense<0.000000e+00> : vector<224x64xf32>
    %107 = tpu.matmul %104, %106, %cst_94 {dimension_numbers = #tpu.dot_dimension_numbers<[1], [0], [0], [1], [0, 0, 1, 1], [], []>} : vector<224x32xbf16>, vector<32x64xbf16>, vector<224x64xf32> -> vector<224x64xf32>
    %108 = arith.addf %102, %107 : vector<224x64xf32>
    %c16 = arith.constant 16 : index
    %c0_95 = arith.constant 0 : index
    %109 = vector.load %arg17[%c16, %c0_95] : memref<1032x32xf32, #tpu.memory_space<vmem>>, vector<224x32xf32>
    %110 = arith.truncf %109 : vector<224x32xf32> to vector<224x32xbf16>
    %c10 = arith.constant 10 : index
    %c0_96 = arith.constant 0 : index
    %c0_97 = arith.constant 0 : index
    %111 = vector.load %arg3[%c10, %c0_96, %c0_97] : memref<25x32x64xbf16, #tpu.memory_space<vmem>>, vector<1x32x64xbf16>
    %112 = vector.shape_cast %111 : vector<1x32x64xbf16> to vector<32x64xbf16>
    %cst_98 = arith.constant dense<0.000000e+00> : vector<224x64xf32>
    %113 = tpu.matmul %110, %112, %cst_98 {dimension_numbers = #tpu.dot_dimension_numbers<[1], [0], [0], [1], [0, 0, 1, 1], [], []>} : vector<224x32xbf16>, vector<32x64xbf16>, vector<224x64xf32> -> vector<224x64xf32>
    %114 = arith.addf %108, %113 : vector<224x64xf32>
    %c272 = arith.constant 272 : index
    %c0_99 = arith.constant 0 : index
    %115 = vector.load %arg17[%c272, %c0_99] : memref<1032x32xf32, #tpu.memory_space<vmem>>, vector<224x32xf32>
    %116 = arith.truncf %115 : vector<224x32xf32> to vector<224x32xbf16>
    %c11 = arith.constant 11 : index
    %c0_100 = arith.constant 0 : index
    %c0_101 = arith.constant 0 : index
    %117 = vector.load %arg3[%c11, %c0_100, %c0_101] : memref<25x32x64xbf16, #tpu.memory_space<vmem>>, vector<1x32x64xbf16>
    %118 = vector.shape_cast %117 : vector<1x32x64xbf16> to vector<32x64xbf16>
    %cst_102 = arith.constant dense<0.000000e+00> : vector<224x64xf32>
    %119 = tpu.matmul %116, %118, %cst_102 {dimension_numbers = #tpu.dot_dimension_numbers<[1], [0], [0], [1], [0, 0, 1, 1], [], []>} : vector<224x32xbf16>, vector<32x64xbf16>, vector<224x64xf32> -> vector<224x64xf32>
    %120 = arith.addf %114, %119 : vector<224x64xf32>
    %c17 = arith.constant 17 : index
    %c0_103 = arith.constant 0 : index
    %121 = vector.load %arg17[%c17, %c0_103] : memref<1032x32xf32, #tpu.memory_space<vmem>>, vector<224x32xf32>
    %122 = arith.truncf %121 : vector<224x32xf32> to vector<224x32xbf16>
    %c12 = arith.constant 12 : index
    %c0_104 = arith.constant 0 : index
    %c0_105 = arith.constant 0 : index
    %123 = vector.load %arg3[%c12, %c0_104, %c0_105] : memref<25x32x64xbf16, #tpu.memory_space<vmem>>, vector<1x32x64xbf16>
    %124 = vector.shape_cast %123 : vector<1x32x64xbf16> to vector<32x64xbf16>
    %cst_106 = arith.constant dense<0.000000e+00> : vector<224x64xf32>
    %125 = tpu.matmul %122, %124, %cst_106 {dimension_numbers = #tpu.dot_dimension_numbers<[1], [0], [0], [1], [0, 0, 1, 1], [], []>} : vector<224x32xbf16>, vector<32x64xbf16>, vector<224x64xf32> -> vector<224x64xf32>
    %126 = arith.addf %120, %125 : vector<224x64xf32>
    %c273 = arith.constant 273 : index
    %c0_107 = arith.constant 0 : index
    %127 = vector.load %arg17[%c273, %c0_107] : memref<1032x32xf32, #tpu.memory_space<vmem>>, vector<224x32xf32>
    %128 = arith.truncf %127 : vector<224x32xf32> to vector<224x32xbf16>
    %c13 = arith.constant 13 : index
    %c0_108 = arith.constant 0 : index
    %c0_109 = arith.constant 0 : index
    %129 = vector.load %arg3[%c13, %c0_108, %c0_109] : memref<25x32x64xbf16, #tpu.memory_space<vmem>>, vector<1x32x64xbf16>
    %130 = vector.shape_cast %129 : vector<1x32x64xbf16> to vector<32x64xbf16>
    %cst_110 = arith.constant dense<0.000000e+00> : vector<224x64xf32>
    %131 = tpu.matmul %128, %130, %cst_110 {dimension_numbers = #tpu.dot_dimension_numbers<[1], [0], [0], [1], [0, 0, 1, 1], [], []>} : vector<224x32xbf16>, vector<32x64xbf16>, vector<224x64xf32> -> vector<224x64xf32>
    %132 = arith.addf %126, %131 : vector<224x64xf32>
    %c18 = arith.constant 18 : index
    %c0_111 = arith.constant 0 : index
    %133 = vector.load %arg17[%c18, %c0_111] : memref<1032x32xf32, #tpu.memory_space<vmem>>, vector<224x32xf32>
    %134 = arith.truncf %133 : vector<224x32xf32> to vector<224x32xbf16>
    %c14 = arith.constant 14 : index
    %c0_112 = arith.constant 0 : index
    %c0_113 = arith.constant 0 : index
    %135 = vector.load %arg3[%c14, %c0_112, %c0_113] : memref<25x32x64xbf16, #tpu.memory_space<vmem>>, vector<1x32x64xbf16>
    %136 = vector.shape_cast %135 : vector<1x32x64xbf16> to vector<32x64xbf16>
    %cst_114 = arith.constant dense<0.000000e+00> : vector<224x64xf32>
    %137 = tpu.matmul %134, %136, %cst_114 {dimension_numbers = #tpu.dot_dimension_numbers<[1], [0], [0], [1], [0, 0, 1, 1], [], []>} : vector<224x32xbf16>, vector<32x64xbf16>, vector<224x64xf32> -> vector<224x64xf32>
    %138 = arith.addf %132, %137 : vector<224x64xf32>
    %c528 = arith.constant 528 : index
    %c0_115 = arith.constant 0 : index
    %139 = vector.load %arg17[%c528, %c0_115] : memref<1032x32xf32, #tpu.memory_space<vmem>>, vector<224x32xf32>
    %140 = arith.truncf %139 : vector<224x32xf32> to vector<224x32xbf16>
    %c15 = arith.constant 15 : index
    %c0_116 = arith.constant 0 : index
    %c0_117 = arith.constant 0 : index
    %141 = vector.load %arg3[%c15, %c0_116, %c0_117] : memref<25x32x64xbf16, #tpu.memory_space<vmem>>, vector<1x32x64xbf16>
    %142 = vector.shape_cast %141 : vector<1x32x64xbf16> to vector<32x64xbf16>
    %cst_118 = arith.constant dense<0.000000e+00> : vector<224x64xf32>
    %143 = tpu.matmul %140, %142, %cst_118 {dimension_numbers = #tpu.dot_dimension_numbers<[1], [0], [0], [1], [0, 0, 1, 1], [], []>} : vector<224x32xbf16>, vector<32x64xbf16>, vector<224x64xf32> -> vector<224x64xf32>
    %144 = arith.addf %138, %143 : vector<224x64xf32>
    %c784 = arith.constant 784 : index
    %c0_119 = arith.constant 0 : index
    %145 = vector.load %arg17[%c784, %c0_119] : memref<1032x32xf32, #tpu.memory_space<vmem>>, vector<224x32xf32>
    %146 = arith.truncf %145 : vector<224x32xf32> to vector<224x32xbf16>
    %c16_120 = arith.constant 16 : index
    %c0_121 = arith.constant 0 : index
    %c0_122 = arith.constant 0 : index
    %147 = vector.load %arg3[%c16_120, %c0_121, %c0_122] : memref<25x32x64xbf16, #tpu.memory_space<vmem>>, vector<1x32x64xbf16>
    %148 = vector.shape_cast %147 : vector<1x32x64xbf16> to vector<32x64xbf16>
    %cst_123 = arith.constant dense<0.000000e+00> : vector<224x64xf32>
    %149 = tpu.matmul %146, %148, %cst_123 {dimension_numbers = #tpu.dot_dimension_numbers<[1], [0], [0], [1], [0, 0, 1, 1], [], []>} : vector<224x32xbf16>, vector<32x64xbf16>, vector<224x64xf32> -> vector<224x64xf32>
    %150 = arith.addf %144, %149 : vector<224x64xf32>
    %c529 = arith.constant 529 : index
    %c0_124 = arith.constant 0 : index
    %151 = vector.load %arg17[%c529, %c0_124] : memref<1032x32xf32, #tpu.memory_space<vmem>>, vector<224x32xf32>
    %152 = arith.truncf %151 : vector<224x32xf32> to vector<224x32xbf16>
    %c17_125 = arith.constant 17 : index
    %c0_126 = arith.constant 0 : index
    %c0_127 = arith.constant 0 : index
    %153 = vector.load %arg3[%c17_125, %c0_126, %c0_127] : memref<25x32x64xbf16, #tpu.memory_space<vmem>>, vector<1x32x64xbf16>
    %154 = vector.shape_cast %153 : vector<1x32x64xbf16> to vector<32x64xbf16>
    %cst_128 = arith.constant dense<0.000000e+00> : vector<224x64xf32>
    %155 = tpu.matmul %152, %154, %cst_128 {dimension_numbers = #tpu.dot_dimension_numbers<[1], [0], [0], [1], [0, 0, 1, 1], [], []>} : vector<224x32xbf16>, vector<32x64xbf16>, vector<224x64xf32> -> vector<224x64xf32>
    %156 = arith.addf %150, %155 : vector<224x64xf32>
    %c785 = arith.constant 785 : index
    %c0_129 = arith.constant 0 : index
    %157 = vector.load %arg17[%c785, %c0_129] : memref<1032x32xf32, #tpu.memory_space<vmem>>, vector<224x32xf32>
    %158 = arith.truncf %157 : vector<224x32xf32> to vector<224x32xbf16>
    %c18_130 = arith.constant 18 : index
    %c0_131 = arith.constant 0 : index
    %c0_132 = arith.constant 0 : index
    %159 = vector.load %arg3[%c18_130, %c0_131, %c0_132] : memref<25x32x64xbf16, #tpu.memory_space<vmem>>, vector<1x32x64xbf16>
    %160 = vector.shape_cast %159 : vector<1x32x64xbf16> to vector<32x64xbf16>
    %cst_133 = arith.constant dense<0.000000e+00> : vector<224x64xf32>
    %161 = tpu.matmul %158, %160, %cst_133 {dimension_numbers = #tpu.dot_dimension_numbers<[1], [0], [0], [1], [0, 0, 1, 1], [], []>} : vector<224x32xbf16>, vector<32x64xbf16>, vector<224x64xf32> -> vector<224x64xf32>
    %162 = arith.addf %156, %161 : vector<224x64xf32>
    %c530 = arith.constant 530 : index
    %c0_134 = arith.constant 0 : index
    %163 = vector.load %arg17[%c530, %c0_134] : memref<1032x32xf32, #tpu.memory_space<vmem>>, vector<224x32xf32>
    %164 = arith.truncf %163 : vector<224x32xf32> to vector<224x32xbf16>
    %c19 = arith.constant 19 : index
    %c0_135 = arith.constant 0 : index
    %c0_136 = arith.constant 0 : index
    %165 = vector.load %arg3[%c19, %c0_135, %c0_136] : memref<25x32x64xbf16, #tpu.memory_space<vmem>>, vector<1x32x64xbf16>
    %166 = vector.shape_cast %165 : vector<1x32x64xbf16> to vector<32x64xbf16>
    %cst_137 = arith.constant dense<0.000000e+00> : vector<224x64xf32>
    %167 = tpu.matmul %164, %166, %cst_137 {dimension_numbers = #tpu.dot_dimension_numbers<[1], [0], [0], [1], [0, 0, 1, 1], [], []>} : vector<224x32xbf16>, vector<32x64xbf16>, vector<224x64xf32> -> vector<224x64xf32>
    %168 = arith.addf %162, %167 : vector<224x64xf32>
    %c32_138 = arith.constant 32 : index
    %c0_139 = arith.constant 0 : index
    %169 = vector.load %arg17[%c32_138, %c0_139] : memref<1032x32xf32, #tpu.memory_space<vmem>>, vector<224x32xf32>
    %170 = arith.truncf %169 : vector<224x32xf32> to vector<224x32xbf16>
    %c20 = arith.constant 20 : index
    %c0_140 = arith.constant 0 : index
    %c0_141 = arith.constant 0 : index
    %171 = vector.load %arg3[%c20, %c0_140, %c0_141] : memref<25x32x64xbf16, #tpu.memory_space<vmem>>, vector<1x32x64xbf16>
    %172 = vector.shape_cast %171 : vector<1x32x64xbf16> to vector<32x64xbf16>
    %cst_142 = arith.constant dense<0.000000e+00> : vector<224x64xf32>
    %173 = tpu.matmul %170, %172, %cst_142 {dimension_numbers = #tpu.dot_dimension_numbers<[1], [0], [0], [1], [0, 0, 1, 1], [], []>} : vector<224x32xbf16>, vector<32x64xbf16>, vector<224x64xf32> -> vector<224x64xf32>
    %174 = arith.addf %168, %173 : vector<224x64xf32>
    %c288 = arith.constant 288 : index
    %c0_143 = arith.constant 0 : index
    %175 = vector.load %arg17[%c288, %c0_143] : memref<1032x32xf32, #tpu.memory_space<vmem>>, vector<224x32xf32>
    %176 = arith.truncf %175 : vector<224x32xf32> to vector<224x32xbf16>
    %c21 = arith.constant 21 : index
    %c0_144 = arith.constant 0 : index
    %c0_145 = arith.constant 0 : index
    %177 = vector.load %arg3[%c21, %c0_144, %c0_145] : memref<25x32x64xbf16, #tpu.memory_space<vmem>>, vector<1x32x64xbf16>
    %178 = vector.shape_cast %177 : vector<1x32x64xbf16> to vector<32x64xbf16>
    %cst_146 = arith.constant dense<0.000000e+00> : vector<224x64xf32>
    %179 = tpu.matmul %176, %178, %cst_146 {dimension_numbers = #tpu.dot_dimension_numbers<[1], [0], [0], [1], [0, 0, 1, 1], [], []>} : vector<224x32xbf16>, vector<32x64xbf16>, vector<224x64xf32> -> vector<224x64xf32>
    %180 = arith.addf %174, %179 : vector<224x64xf32>
    %c33 = arith.constant 33 : index
    %c0_147 = arith.constant 0 : index
    %181 = vector.load %arg17[%c33, %c0_147] : memref<1032x32xf32, #tpu.memory_space<vmem>>, vector<224x32xf32>
    %182 = arith.truncf %181 : vector<224x32xf32> to vector<224x32xbf16>
    %c22 = arith.constant 22 : index
    %c0_148 = arith.constant 0 : index
    %c0_149 = arith.constant 0 : index
    %183 = vector.load %arg3[%c22, %c0_148, %c0_149] : memref<25x32x64xbf16, #tpu.memory_space<vmem>>, vector<1x32x64xbf16>
    %184 = vector.shape_cast %183 : vector<1x32x64xbf16> to vector<32x64xbf16>
    %cst_150 = arith.constant dense<0.000000e+00> : vector<224x64xf32>
    %185 = tpu.matmul %182, %184, %cst_150 {dimension_numbers = #tpu.dot_dimension_numbers<[1], [0], [0], [1], [0, 0, 1, 1], [], []>} : vector<224x32xbf16>, vector<32x64xbf16>, vector<224x64xf32> -> vector<224x64xf32>
    %186 = arith.addf %180, %185 : vector<224x64xf32>
    %c289 = arith.constant 289 : index
    %c0_151 = arith.constant 0 : index
    %187 = vector.load %arg17[%c289, %c0_151] : memref<1032x32xf32, #tpu.memory_space<vmem>>, vector<224x32xf32>
    %188 = arith.truncf %187 : vector<224x32xf32> to vector<224x32xbf16>
    %c23 = arith.constant 23 : index
    %c0_152 = arith.constant 0 : index
    %c0_153 = arith.constant 0 : index
    %189 = vector.load %arg3[%c23, %c0_152, %c0_153] : memref<25x32x64xbf16, #tpu.memory_space<vmem>>, vector<1x32x64xbf16>
    %190 = vector.shape_cast %189 : vector<1x32x64xbf16> to vector<32x64xbf16>
    %cst_154 = arith.constant dense<0.000000e+00> : vector<224x64xf32>
    %191 = tpu.matmul %188, %190, %cst_154 {dimension_numbers = #tpu.dot_dimension_numbers<[1], [0], [0], [1], [0, 0, 1, 1], [], []>} : vector<224x32xbf16>, vector<32x64xbf16>, vector<224x64xf32> -> vector<224x64xf32>
    %192 = arith.addf %186, %191 : vector<224x64xf32>
    %c34 = arith.constant 34 : index
    %c0_155 = arith.constant 0 : index
    %193 = vector.load %arg17[%c34, %c0_155] : memref<1032x32xf32, #tpu.memory_space<vmem>>, vector<224x32xf32>
    %194 = arith.truncf %193 : vector<224x32xf32> to vector<224x32xbf16>
    %c24 = arith.constant 24 : index
    %c0_156 = arith.constant 0 : index
    %c0_157 = arith.constant 0 : index
    %195 = vector.load %arg3[%c24, %c0_156, %c0_157] : memref<25x32x64xbf16, #tpu.memory_space<vmem>>, vector<1x32x64xbf16>
    %196 = vector.shape_cast %195 : vector<1x32x64xbf16> to vector<32x64xbf16>
    %cst_158 = arith.constant dense<0.000000e+00> : vector<224x64xf32>
    %197 = tpu.matmul %194, %196, %cst_158 {dimension_numbers = #tpu.dot_dimension_numbers<[1], [0], [0], [1], [0, 0, 1, 1], [], []>} : vector<224x32xbf16>, vector<32x64xbf16>, vector<224x64xf32> -> vector<224x64xf32>
    %198 = arith.addf %192, %197 : vector<224x64xf32>
    %c0_159 = arith.constant 0 : index
    %c0_160 = arith.constant 0 : index
    %199 = vector.load %arg10[%c0_159, %c0_160] : memref<1x64xf32, #tpu.memory_space<vmem>>, vector<1x64xf32>
    %200 = vector.broadcast %199 : vector<1x64xf32> to vector<224x64xf32>
    %201 = arith.addf %198, %200 : vector<224x64xf32>
    %cst_161 = arith.constant 0.000000e+00 : f32
    %202 = vector.broadcast %cst_161 : f32 to vector<224x64xf32>
    %203 = arith.maximumf %201, %202 : vector<224x64xf32>
    %c0_162 = arith.constant 0 : index
    %c0_163 = arith.constant 0 : index
    %204 = vector.load %arg18[%c0_162, %c0_163] : memref<224x64xf32, #tpu.memory_space<vmem>>, vector<224x64xf32>
    tpu.vector_store %arg18[%c0_162, %c0_163], %203 {strides = array<i32>} : memref<224x64xf32, #tpu.memory_space<vmem>>, vector<224x64xf32>,
    %c0_164 = arith.constant 0 : index
    %c0_165 = arith.constant 0 : index
    %205 = tpu.strided_load %arg18[%c0_164, %c0_165] {strides = array<i32: 2, 1>} : memref<224x64xf32, #tpu.memory_space<vmem>>, vector<7x64xf32>
    %c0_166 = arith.constant 0 : index
    %c0_167 = arith.constant 0 : index
    %206 = vector.load %arg19[%c0_166, %c0_167] : memref<232x64xf32, #tpu.memory_space<vmem>>, vector<7x64xf32>
    tpu.vector_store %arg19[%c0_166, %c0_167], %205 {strides = array<i32>} : memref<232x64xf32, #tpu.memory_space<vmem>>, vector<7x64xf32>,
    %c32_168 = arith.constant 32 : index
    %c0_169 = arith.constant 0 : index
    %207 = tpu.strided_load %arg18[%c32_168, %c0_169] {strides = array<i32: 2, 1>} : memref<224x64xf32, #tpu.memory_space<vmem>>, vector<7x64xf32>
    %c8_170 = arith.constant 8 : index
    %c0_171 = arith.constant 0 : index
    %208 = vector.load %arg19[%c8_170, %c0_171] : memref<232x64xf32, #tpu.memory_space<vmem>>, vector<7x64xf32>
    tpu.vector_store %arg19[%c8_170, %c0_171], %207 {strides = array<i32>} : memref<232x64xf32, #tpu.memory_space<vmem>>, vector<7x64xf32>,
    %c64 = arith.constant 64 : index
    %c0_172 = arith.constant 0 : index
    %209 = tpu.strided_load %arg18[%c64, %c0_172] {strides = array<i32: 2, 1>} : memref<224x64xf32, #tpu.memory_space<vmem>>, vector<7x64xf32>
    %c16_173 = arith.constant 16 : index
    %c0_174 = arith.constant 0 : index
    %210 = vector.load %arg19[%c16_173, %c0_174] : memref<232x64xf32, #tpu.memory_space<vmem>>, vector<7x64xf32>
    tpu.vector_store %arg19[%c16_173, %c0_174], %209 {strides = array<i32>} : memref<232x64xf32, #tpu.memory_space<vmem>>, vector<7x64xf32>,
    %c96 = arith.constant 96 : index
    %c0_175 = arith.constant 0 : index
    %211 = tpu.strided_load %arg18[%c96, %c0_175] {strides = array<i32: 2, 1>} : memref<224x64xf32, #tpu.memory_space<vmem>>, vector<7x64xf32>
    %c24_176 = arith.constant 24 : index
    %c0_177 = arith.constant 0 : index
    %212 = vector.load %arg19[%c24_176, %c0_177] : memref<232x64xf32, #tpu.memory_space<vmem>>, vector<7x64xf32>
    tpu.vector_store %arg19[%c24_176, %c0_177], %211 {strides = array<i32>} : memref<232x64xf32, #tpu.memory_space<vmem>>, vector<7x64xf32>,
    %c128 = arith.constant 128 : index
    %c0_178 = arith.constant 0 : index
    %213 = tpu.strided_load %arg18[%c128, %c0_178] {strides = array<i32: 2, 1>} : memref<224x64xf32, #tpu.memory_space<vmem>>, vector<7x64xf32>
    %c32_179 = arith.constant 32 : index
    %c0_180 = arith.constant 0 : index
    %214 = vector.load %arg19[%c32_179, %c0_180] : memref<232x64xf32, #tpu.memory_space<vmem>>, vector<7x64xf32>
    tpu.vector_store %arg19[%c32_179, %c0_180], %213 {strides = array<i32>} : memref<232x64xf32, #tpu.memory_space<vmem>>, vector<7x64xf32>,
    %c160 = arith.constant 160 : index
    %c0_181 = arith.constant 0 : index
    %215 = tpu.strided_load %arg18[%c160, %c0_181] {strides = array<i32: 2, 1>} : memref<224x64xf32, #tpu.memory_space<vmem>>, vector<7x64xf32>
    %c40 = arith.constant 40 : index
    %c0_182 = arith.constant 0 : index
    %216 = vector.load %arg19[%c40, %c0_182] : memref<232x64xf32, #tpu.memory_space<vmem>>, vector<7x64xf32>
    tpu.vector_store %arg19[%c40, %c0_182], %215 {strides = array<i32>} : memref<232x64xf32, #tpu.memory_space<vmem>>, vector<7x64xf32>,
    %c192 = arith.constant 192 : index
    %c0_183 = arith.constant 0 : index
    %217 = tpu.strided_load %arg18[%c192, %c0_183] {strides = array<i32: 2, 1>} : memref<224x64xf32, #tpu.memory_space<vmem>>, vector<7x64xf32>
    %c48_184 = arith.constant 48 : index
    %c0_185 = arith.constant 0 : index
    %218 = vector.load %arg19[%c48_184, %c0_185] : memref<232x64xf32, #tpu.memory_space<vmem>>, vector<7x64xf32>
    tpu.vector_store %arg19[%c48_184, %c0_185], %217 {strides = array<i32>} : memref<232x64xf32, #tpu.memory_space<vmem>>, vector<7x64xf32>,
    %c1_186 = arith.constant 1 : index
    %c0_187 = arith.constant 0 : index
    %219 = tpu.strided_load %arg18[%c1_186, %c0_187] {strides = array<i32: 2, 1>} : memref<224x64xf32, #tpu.memory_space<vmem>>, vector<7x64xf32>
    %c56 = arith.constant 56 : index
    %c0_188 = arith.constant 0 : index
    %220 = vector.load %arg19[%c56, %c0_188] : memref<232x64xf32, #tpu.memory_space<vmem>>, vector<7x64xf32>
    tpu.vector_store %arg19[%c56, %c0_188], %219 {strides = array<i32>} : memref<232x64xf32, #tpu.memory_space<vmem>>, vector<7x64xf32>,
    %c33_189 = arith.constant 33 : index
    %c0_190 = arith.constant 0 : index
    %221 = tpu.strided_load %arg18[%c33_189, %c0_190] {strides = array<i32: 2, 1>} : memref<224x64xf32, #tpu.memory_space<vmem>>, vector<7x64xf32>
    %c64_191 = arith.constant 64 : index
    %c0_192 = arith.constant 0 : index
    %222 = vector.load %arg19[%c64_191, %c0_192] : memref<232x64xf32, #tpu.memory_space<vmem>>, vector<7x64xf32>
    tpu.vector_store %arg19[%c64_191, %c0_192], %221 {strides = array<i32>} : memref<232x64xf32, #tpu.memory_space<vmem>>, vector<7x64xf32>,
    %c65 = arith.constant 65 : index
    %c0_193 = arith.constant 0 : index
    %223 = tpu.strided_load %arg18[%c65, %c0_193] {strides = array<i32: 2, 1>} : memref<224x64xf32, #tpu.memory_space<vmem>>, vector<7x64xf32>
    %c72 = arith.constant 72 : index
    %c0_194 = arith.constant 0 : index
    %224 = vector.load %arg19[%c72, %c0_194] : memref<232x64xf32, #tpu.memory_space<vmem>>, vector<7x64xf32>
    tpu.vector_store %arg19[%c72, %c0_194], %223 {strides = array<i32>} : memref<232x64xf32, #tpu.memory_space<vmem>>, vector<7x64xf32>,
    %c97 = arith.constant 97 : index
    %c0_195 = arith.constant 0 : index
    %225 = tpu.strided_load %arg18[%c97, %c0_195] {strides = array<i32: 2, 1>} : memref<224x64xf32, #tpu.memory_space<vmem>>, vector<7x64xf32>
    %c80 = arith.constant 80 : index
    %c0_196 = arith.constant 0 : index
    %226 = vector.load %arg19[%c80, %c0_196] : memref<232x64xf32, #tpu.memory_space<vmem>>, vector<7x64xf32>
    tpu.vector_store %arg19[%c80, %c0_196], %225 {strides = array<i32>} : memref<232x64xf32, #tpu.memory_space<vmem>>, vector<7x64xf32>,
    %c129 = arith.constant 129 : index
    %c0_197 = arith.constant 0 : index
    %227 = tpu.strided_load %arg18[%c129, %c0_197] {strides = array<i32: 2, 1>} : memref<224x64xf32, #tpu.memory_space<vmem>>, vector<7x64xf32>
    %c88 = arith.constant 88 : index
    %c0_198 = arith.constant 0 : index
    %228 = vector.load %arg19[%c88, %c0_198] : memref<232x64xf32, #tpu.memory_space<vmem>>, vector<7x64xf32>
    tpu.vector_store %arg19[%c88, %c0_198], %227 {strides = array<i32>} : memref<232x64xf32, #tpu.memory_space<vmem>>, vector<7x64xf32>,
    %c161 = arith.constant 161 : index
    %c0_199 = arith.constant 0 : index
    %229 = tpu.strided_load %arg18[%c161, %c0_199] {strides = array<i32: 2, 1>} : memref<224x64xf32, #tpu.memory_space<vmem>>, vector<7x64xf32>
    %c96_200 = arith.constant 96 : index
    %c0_201 = arith.constant 0 : index
    %230 = vector.load %arg19[%c96_200, %c0_201] : memref<232x64xf32, #tpu.memory_space<vmem>>, vector<7x64xf32>
    tpu.vector_store %arg19[%c96_200, %c0_201], %229 {strides = array<i32>} : memref<232x64xf32, #tpu.memory_space<vmem>>, vector<7x64xf32>,
    %c193 = arith.constant 193 : index
    %c0_202 = arith.constant 0 : index
    %231 = tpu.strided_load %arg18[%c193, %c0_202] {strides = array<i32: 2, 1>} : memref<224x64xf32, #tpu.memory_space<vmem>>, vector<7x64xf32>
    %c104 = arith.constant 104 : index
    %c0_203 = arith.constant 0 : index
    %232 = vector.load %arg19[%c104, %c0_203] : memref<232x64xf32, #tpu.memory_space<vmem>>, vector<7x64xf32>
    tpu.vector_store %arg19[%c104, %c0_203], %231 {strides = array<i32>} : memref<232x64xf32, #tpu.memory_space<vmem>>, vector<7x64xf32>,
    %c16_204 = arith.constant 16 : index
    %c0_205 = arith.constant 0 : index
    %233 = tpu.strided_load %arg18[%c16_204, %c0_205] {strides = array<i32: 2, 1>} : memref<224x64xf32, #tpu.memory_space<vmem>>, vector<7x64xf32>
    %c112 = arith.constant 112 : index
    %c0_206 = arith.constant 0 : index
    %234 = vector.load %arg19[%c112, %c0_206] : memref<232x64xf32, #tpu.memory_space<vmem>>, vector<7x64xf32>
    tpu.vector_store %arg19[%c112, %c0_206], %233 {strides = array<i32>} : memref<232x64xf32, #tpu.memory_space<vmem>>, vector<7x64xf32>,
    %c48_207 = arith.constant 48 : index
    %c0_208 = arith.constant 0 : index
    %235 = tpu.strided_load %arg18[%c48_207, %c0_208] {strides = array<i32: 2, 1>} : memref<224x64xf32, #tpu.memory_space<vmem>>, vector<7x64xf32>
    %c120 = arith.constant 120 : index
    %c0_209 = arith.constant 0 : index
    %236 = vector.load %arg19[%c120, %c0_209] : memref<232x64xf32, #tpu.memory_space<vmem>>, vector<7x64xf32>
    tpu.vector_store %arg19[%c120, %c0_209], %235 {strides = array<i32>} : memref<232x64xf32, #tpu.memory_space<vmem>>, vector<7x64xf32>,
    %c80_210 = arith.constant 80 : index
    %c0_211 = arith.constant 0 : index
    %237 = tpu.strided_load %arg18[%c80_210, %c0_211] {strides = array<i32: 2, 1>} : memref<224x64xf32, #tpu.memory_space<vmem>>, vector<7x64xf32>
    %c128_212 = arith.constant 128 : index
    %c0_213 = arith.constant 0 : index
    %238 = vector.load %arg19[%c128_212, %c0_213] : memref<232x64xf32, #tpu.memory_space<vmem>>, vector<7x64xf32>
    tpu.vector_store %arg19[%c128_212, %c0_213], %237 {strides = array<i32>} : memref<232x64xf32, #tpu.memory_space<vmem>>, vector<7x64xf32>,
    %c112_214 = arith.constant 112 : index
    %c0_215 = arith.constant 0 : index
    %239 = tpu.strided_load %arg18[%c112_214, %c0_215] {strides = array<i32: 2, 1>} : memref<224x64xf32, #tpu.memory_space<vmem>>, vector<7x64xf32>
    %c136 = arith.constant 136 : index
    %c0_216 = arith.constant 0 : index
    %240 = vector.load %arg19[%c136, %c0_216] : memref<232x64xf32, #tpu.memory_space<vmem>>, vector<7x64xf32>
    tpu.vector_store %arg19[%c136, %c0_216], %239 {strides = array<i32>} : memref<232x64xf32, #tpu.memory_space<vmem>>, vector<7x64xf32>,
    %c144 = arith.constant 144 : index
    %c0_217 = arith.constant 0 : index
    %241 = tpu.strided_load %arg18[%c144, %c0_217] {strides = array<i32: 2, 1>} : memref<224x64xf32, #tpu.memory_space<vmem>>, vector<7x64xf32>
    %c144_218 = arith.constant 144 : index
    %c0_219 = arith.constant 0 : index
    %242 = vector.load %arg19[%c144_218, %c0_219] : memref<232x64xf32, #tpu.memory_space<vmem>>, vector<7x64xf32>
    tpu.vector_store %arg19[%c144_218, %c0_219], %241 {strides = array<i32>} : memref<232x64xf32, #tpu.memory_space<vmem>>, vector<7x64xf32>,
    %c176 = arith.constant 176 : index
    %c0_220 = arith.constant 0 : index
    %243 = tpu.strided_load %arg18[%c176, %c0_220] {strides = array<i32: 2, 1>} : memref<224x64xf32, #tpu.memory_space<vmem>>, vector<7x64xf32>
    %c152 = arith.constant 152 : index
    %c0_221 = arith.constant 0 : index
    %244 = vector.load %arg19[%c152, %c0_221] : memref<232x64xf32, #tpu.memory_space<vmem>>, vector<7x64xf32>
    tpu.vector_store %arg19[%c152, %c0_221], %243 {strides = array<i32>} : memref<232x64xf32, #tpu.memory_space<vmem>>, vector<7x64xf32>,
    %c208 = arith.constant 208 : index
    %c0_222 = arith.constant 0 : index
    %245 = tpu.strided_load %arg18[%c208, %c0_222] {strides = array<i32: 2, 1>} : memref<224x64xf32, #tpu.memory_space<vmem>>, vector<7x64xf32>
    %c160_223 = arith.constant 160 : index
    %c0_224 = arith.constant 0 : index
    %246 = vector.load %arg19[%c160_223, %c0_224] : memref<232x64xf32, #tpu.memory_space<vmem>>, vector<7x64xf32>
    tpu.vector_store %arg19[%c160_223, %c0_224], %245 {strides = array<i32>} : memref<232x64xf32, #tpu.memory_space<vmem>>, vector<7x64xf32>,
    %c17_225 = arith.constant 17 : index
    %c0_226 = arith.constant 0 : index
    %247 = tpu.strided_load %arg18[%c17_225, %c0_226] {strides = array<i32: 2, 1>} : memref<224x64xf32, #tpu.memory_space<vmem>>, vector<7x64xf32>
    %c168 = arith.constant 168 : index
    %c0_227 = arith.constant 0 : index
    %248 = vector.load %arg19[%c168, %c0_227] : memref<232x64xf32, #tpu.memory_space<vmem>>, vector<7x64xf32>
    tpu.vector_store %arg19[%c168, %c0_227], %247 {strides = array<i32>} : memref<232x64xf32, #tpu.memory_space<vmem>>, vector<7x64xf32>,
    %c49 = arith.constant 49 : index
    %c0_228 = arith.constant 0 : index
    %249 = tpu.strided_load %arg18[%c49, %c0_228] {strides = array<i32: 2, 1>} : memref<224x64xf32, #tpu.memory_space<vmem>>, vector<7x64xf32>
    %c176_229 = arith.constant 176 : index
    %c0_230 = arith.constant 0 : index
    %250 = vector.load %arg19[%c176_229, %c0_230] : memref<232x64xf32, #tpu.memory_space<vmem>>, vector<7x64xf32>
    tpu.vector_store %arg19[%c176_229, %c0_230], %249 {strides = array<i32>} : memref<232x64xf32, #tpu.memory_space<vmem>>, vector<7x64xf32>,
    %c81 = arith.constant 81 : index
    %c0_231 = arith.constant 0 : index
    %251 = tpu.strided_load %arg18[%c81, %c0_231] {strides = array<i32: 2, 1>} : memref<224x64xf32, #tpu.memory_space<vmem>>, vector<7x64xf32>
    %c184 = arith.constant 184 : index
    %c0_232 = arith.constant 0 : index
    %252 = vector.load %arg19[%c184, %c0_232] : memref<232x64xf32, #tpu.memory_space<vmem>>, vector<7x64xf32>
    tpu.vector_store %arg19[%c184, %c0_232], %251 {strides = array<i32>} : memref<232x64xf32, #tpu.memory_space<vmem>>, vector<7x64xf32>,
    %c113 = arith.constant 113 : index
    %c0_233 = arith.constant 0 : index
    %253 = tpu.strided_load %arg18[%c113, %c0_233] {strides = array<i32: 2, 1>} : memref<224x64xf32, #tpu.memory_space<vmem>>, vector<7x64xf32>
    %c192_234 = arith.constant 192 : index
    %c0_235 = arith.constant 0 : index
    %254 = vector.load %arg19[%c192_234, %c0_235] : memref<232x64xf32, #tpu.memory_space<vmem>>, vector<7x64xf32>
    tpu.vector_store %arg19[%c192_234, %c0_235], %253 {strides = array<i32>} : memref<232x64xf32, #tpu.memory_space<vmem>>, vector<7x64xf32>,
    %c145 = arith.constant 145 : index
    %c0_236 = arith.constant 0 : index
    %255 = tpu.strided_load %arg18[%c145, %c0_236] {strides = array<i32: 2, 1>} : memref<224x64xf32, #tpu.memory_space<vmem>>, vector<7x64xf32>
    %c200 = arith.constant 200 : index
    %c0_237 = arith.constant 0 : index
    %256 = vector.load %arg19[%c200, %c0_237] : memref<232x64xf32, #tpu.memory_space<vmem>>, vector<7x64xf32>
    tpu.vector_store %arg19[%c200, %c0_237], %255 {strides = array<i32>} : memref<232x64xf32, #tpu.memory_space<vmem>>, vector<7x64xf32>,
    %c177 = arith.constant 177 : index
    %c0_238 = arith.constant 0 : index
    %257 = tpu.strided_load %arg18[%c177, %c0_238] {strides = array<i32: 2, 1>} : memref<224x64xf32, #tpu.memory_space<vmem>>, vector<7x64xf32>
    %c208_239 = arith.constant 208 : index
    %c0_240 = arith.constant 0 : index
    %258 = vector.load %arg19[%c208_239, %c0_240] : memref<232x64xf32, #tpu.memory_space<vmem>>, vector<7x64xf32>
    tpu.vector_store %arg19[%c208_239, %c0_240], %257 {strides = array<i32>} : memref<232x64xf32, #tpu.memory_space<vmem>>, vector<7x64xf32>,
    %c209 = arith.constant 209 : index
    %c0_241 = arith.constant 0 : index
    %259 = tpu.strided_load %arg18[%c209, %c0_241] {strides = array<i32: 2, 1>} : memref<224x64xf32, #tpu.memory_space<vmem>>, vector<7x64xf32>
    %c216 = arith.constant 216 : index
    %c0_242 = arith.constant 0 : index
    %260 = vector.load %arg19[%c216, %c0_242] : memref<232x64xf32, #tpu.memory_space<vmem>>, vector<7x64xf32>
    tpu.vector_store %arg19[%c216, %c0_242], %259 {strides = array<i32>} : memref<232x64xf32, #tpu.memory_space<vmem>>, vector<7x64xf32>,
    %cst_243 = arith.constant 0.000000e+00 : f32
    %261 = vector.broadcast %cst_243 : f32 to vector<48x64xf32>
    %c0_244 = arith.constant 0 : index
    %c0_245 = arith.constant 0 : index
    %262 = vector.load %arg19[%c0_244, %c0_245] : memref<232x64xf32, #tpu.memory_space<vmem>>, vector<48x64xf32>
    %263 = arith.truncf %262 : vector<48x64xf32> to vector<48x64xbf16>
    %c0_246 = arith.constant 0 : index
    %c0_247 = arith.constant 0 : index
    %c0_248 = arith.constant 0 : index
    %264 = vector.load %arg4[%c0_246, %c0_247, %c0_248] : memref<9x64x64xbf16, #tpu.memory_space<vmem>>, vector<1x64x64xbf16>
    %265 = vector.shape_cast %264 : vector<1x64x64xbf16> to vector<64x64xbf16>
    %cst_249 = arith.constant dense<0.000000e+00> : vector<48x64xf32>
    %266 = tpu.matmul %263, %265, %cst_249 {dimension_numbers = #tpu.dot_dimension_numbers<[1], [0], [0], [1], [0, 0, 1, 1], [], []>} : vector<48x64xbf16>, vector<64x64xbf16>, vector<48x64xf32> -> vector<48x64xf32>
    %267 = arith.addf %261, %266 : vector<48x64xf32>
    %c56_250 = arith.constant 56 : index
    %c0_251 = arith.constant 0 : index
    %268 = vector.load %arg19[%c56_250, %c0_251] : memref<232x64xf32, #tpu.memory_space<vmem>>, vector<48x64xf32>
    %269 = arith.truncf %268 : vector<48x64xf32> to vector<48x64xbf16>
    %c1_252 = arith.constant 1 : index
    %c0_253 = arith.constant 0 : index
    %c0_254 = arith.constant 0 : index
    %270 = vector.load %arg4[%c1_252, %c0_253, %c0_254] : memref<9x64x64xbf16, #tpu.memory_space<vmem>>, vector<1x64x64xbf16>
    %271 = vector.shape_cast %270 : vector<1x64x64xbf16> to vector<64x64xbf16>
    %cst_255 = arith.constant dense<0.000000e+00> : vector<48x64xf32>
    %272 = tpu.matmul %269, %271, %cst_255 {dimension_numbers = #tpu.dot_dimension_numbers<[1], [0], [0], [1], [0, 0, 1, 1], [], []>} : vector<48x64xbf16>, vector<64x64xbf16>, vector<48x64xf32> -> vector<48x64xf32>
    %273 = arith.addf %267, %272 : vector<48x64xf32>
    %c1_256 = arith.constant 1 : index
    %c0_257 = arith.constant 0 : index
    %274 = vector.load %arg19[%c1_256, %c0_257] : memref<232x64xf32, #tpu.memory_space<vmem>>, vector<48x64xf32>
    %275 = arith.truncf %274 : vector<48x64xf32> to vector<48x64xbf16>
    %c2_258 = arith.constant 2 : index
    %c0_259 = arith.constant 0 : index
    %c0_260 = arith.constant 0 : index
    %276 = vector.load %arg4[%c2_258, %c0_259, %c0_260] : memref<9x64x64xbf16, #tpu.memory_space<vmem>>, vector<1x64x64xbf16>
    %277 = vector.shape_cast %276 : vector<1x64x64xbf16> to vector<64x64xbf16>
    %cst_261 = arith.constant dense<0.000000e+00> : vector<48x64xf32>
    %278 = tpu.matmul %275, %277, %cst_261 {dimension_numbers = #tpu.dot_dimension_numbers<[1], [0], [0], [1], [0, 0, 1, 1], [], []>} : vector<48x64xbf16>, vector<64x64xbf16>, vector<48x64xf32> -> vector<48x64xf32>
    %279 = arith.addf %273, %278 : vector<48x64xf32>
    %c112_262 = arith.constant 112 : index
    %c0_263 = arith.constant 0 : index
    %280 = vector.load %arg19[%c112_262, %c0_263] : memref<232x64xf32, #tpu.memory_space<vmem>>, vector<48x64xf32>
    %281 = arith.truncf %280 : vector<48x64xf32> to vector<48x64xbf16>
    %c3_264 = arith.constant 3 : index
    %c0_265 = arith.constant 0 : index
    %c0_266 = arith.constant 0 : index
    %282 = vector.load %arg4[%c3_264, %c0_265, %c0_266] : memref<9x64x64xbf16, #tpu.memory_space<vmem>>, vector<1x64x64xbf16>
    %283 = vector.shape_cast %282 : vector<1x64x64xbf16> to vector<64x64xbf16>
    %cst_267 = arith.constant dense<0.000000e+00> : vector<48x64xf32>
    %284 = tpu.matmul %281, %283, %cst_267 {dimension_numbers = #tpu.dot_dimension_numbers<[1], [0], [0], [1], [0, 0, 1, 1], [], []>} : vector<48x64xbf16>, vector<64x64xbf16>, vector<48x64xf32> -> vector<48x64xf32>
    %285 = arith.addf %279, %284 : vector<48x64xf32>
    %c168_268 = arith.constant 168 : index
    %c0_269 = arith.constant 0 : index
    %286 = vector.load %arg19[%c168_268, %c0_269] : memref<232x64xf32, #tpu.memory_space<vmem>>, vector<48x64xf32>
    %287 = arith.truncf %286 : vector<48x64xf32> to vector<48x64xbf16>
    %c4_270 = arith.constant 4 : index
    %c0_271 = arith.constant 0 : index
    %c0_272 = arith.constant 0 : index
    %288 = vector.load %arg4[%c4_270, %c0_271, %c0_272] : memref<9x64x64xbf16, #tpu.memory_space<vmem>>, vector<1x64x64xbf16>
    %289 = vector.shape_cast %288 : vector<1x64x64xbf16> to vector<64x64xbf16>
    %cst_273 = arith.constant dense<0.000000e+00> : vector<48x64xf32>
    %290 = tpu.matmul %287, %289, %cst_273 {dimension_numbers = #tpu.dot_dimension_numbers<[1], [0], [0], [1], [0, 0, 1, 1], [], []>} : vector<48x64xbf16>, vector<64x64xbf16>, vector<48x64xf32> -> vector<48x64xf32>
    %291 = arith.addf %285, %290 : vector<48x64xf32>
    %c113_274 = arith.constant 113 : index
    %c0_275 = arith.constant 0 : index
    %292 = vector.load %arg19[%c113_274, %c0_275] : memref<232x64xf32, #tpu.memory_space<vmem>>, vector<48x64xf32>
    %293 = arith.truncf %292 : vector<48x64xf32> to vector<48x64xbf16>
    %c5_276 = arith.constant 5 : index
    %c0_277 = arith.constant 0 : index
    %c0_278 = arith.constant 0 : index
    %294 = vector.load %arg4[%c5_276, %c0_277, %c0_278] : memref<9x64x64xbf16, #tpu.memory_space<vmem>>, vector<1x64x64xbf16>
    %295 = vector.shape_cast %294 : vector<1x64x64xbf16> to vector<64x64xbf16>
    %cst_279 = arith.constant dense<0.000000e+00> : vector<48x64xf32>
    %296 = tpu.matmul %293, %295, %cst_279 {dimension_numbers = #tpu.dot_dimension_numbers<[1], [0], [0], [1], [0, 0, 1, 1], [], []>} : vector<48x64xbf16>, vector<64x64xbf16>, vector<48x64xf32> -> vector<48x64xf32>
    %297 = arith.addf %291, %296 : vector<48x64xf32>
    %c8_280 = arith.constant 8 : index
    %c0_281 = arith.constant 0 : index
    %298 = vector.load %arg19[%c8_280, %c0_281] : memref<232x64xf32, #tpu.memory_space<vmem>>, vector<48x64xf32>
    %299 = arith.truncf %298 : vector<48x64xf32> to vector<48x64xbf16>
    %c6_282 = arith.constant 6 : index
    %c0_283 = arith.constant 0 : index
    %c0_284 = arith.constant 0 : index
    %300 = vector.load %arg4[%c6_282, %c0_283, %c0_284] : memref<9x64x64xbf16, #tpu.memory_space<vmem>>, vector<1x64x64xbf16>
    %301 = vector.shape_cast %300 : vector<1x64x64xbf16> to vector<64x64xbf16>
    %cst_285 = arith.constant dense<0.000000e+00> : vector<48x64xf32>
    %302 = tpu.matmul %299, %301, %cst_285 {dimension_numbers = #tpu.dot_dimension_numbers<[1], [0], [0], [1], [0, 0, 1, 1], [], []>} : vector<48x64xbf16>, vector<64x64xbf16>, vector<48x64xf32> -> vector<48x64xf32>
    %303 = arith.addf %297, %302 : vector<48x64xf32>
    %c64_286 = arith.constant 64 : index
    %c0_287 = arith.constant 0 : index
    %304 = vector.load %arg19[%c64_286, %c0_287] : memref<232x64xf32, #tpu.memory_space<vmem>>, vector<48x64xf32>
    %305 = arith.truncf %304 : vector<48x64xf32> to vector<48x64xbf16>
    %c7_288 = arith.constant 7 : index
    %c0_289 = arith.constant 0 : index
    %c0_290 = arith.constant 0 : index
    %306 = vector.load %arg4[%c7_288, %c0_289, %c0_290] : memref<9x64x64xbf16, #tpu.memory_space<vmem>>, vector<1x64x64xbf16>
    %307 = vector.shape_cast %306 : vector<1x64x64xbf16> to vector<64x64xbf16>
    %cst_291 = arith.constant dense<0.000000e+00> : vector<48x64xf32>
    %308 = tpu.matmul %305, %307, %cst_291 {dimension_numbers = #tpu.dot_dimension_numbers<[1], [0], [0], [1], [0, 0, 1, 1], [], []>} : vector<48x64xbf16>, vector<64x64xbf16>, vector<48x64xf32> -> vector<48x64xf32>
    %309 = arith.addf %303, %308 : vector<48x64xf32>
    %c9_292 = arith.constant 9 : index
    %c0_293 = arith.constant 0 : index
    %310 = vector.load %arg19[%c9_292, %c0_293] : memref<232x64xf32, #tpu.memory_space<vmem>>, vector<48x64xf32>
    %311 = arith.truncf %310 : vector<48x64xf32> to vector<48x64xbf16>
    %c8_294 = arith.constant 8 : index
    %c0_295 = arith.constant 0 : index
    %c0_296 = arith.constant 0 : index
    %312 = vector.load %arg4[%c8_294, %c0_295, %c0_296] : memref<9x64x64xbf16, #tpu.memory_space<vmem>>, vector<1x64x64xbf16>
    %313 = vector.shape_cast %312 : vector<1x64x64xbf16> to vector<64x64xbf16>
    %cst_297 = arith.constant dense<0.000000e+00> : vector<48x64xf32>
    %314 = tpu.matmul %311, %313, %cst_297 {dimension_numbers = #tpu.dot_dimension_numbers<[1], [0], [0], [1], [0, 0, 1, 1], [], []>} : vector<48x64xbf16>, vector<64x64xbf16>, vector<48x64xf32> -> vector<48x64xf32>
    %315 = arith.addf %309, %314 : vector<48x64xf32>
    %c0_298 = arith.constant 0 : index
    %c0_299 = arith.constant 0 : index
    %316 = vector.load %arg11[%c0_298, %c0_299] : memref<1x64xf32, #tpu.memory_space<vmem>>, vector<1x64xf32>
    %317 = vector.broadcast %316 : vector<1x64xf32> to vector<48x64xf32>
    %318 = arith.addf %315, %317 : vector<48x64xf32>
    %cst_300 = arith.constant 0.000000e+00 : f32
    %319 = vector.broadcast %cst_300 : f32 to vector<48x64xf32>
    %320 = arith.maximumf %318, %319 : vector<48x64xf32>
    %c0_301 = arith.constant 0 : index
    %c0_302 = arith.constant 0 : index
    %321 = vector.load %arg20[%c0_301, %c0_302] : memref<56x64xf32, #tpu.memory_space<vmem>>, vector<48x64xf32>
    tpu.vector_store %arg20[%c0_301, %c0_302], %320 {strides = array<i32>} : memref<56x64xf32, #tpu.memory_space<vmem>>, vector<48x64xf32>,
    %cst_303 = arith.constant 0.000000e+00 : f32
    %322 = vector.broadcast %cst_303 : f32 to vector<32x64xf32>
    %c0_304 = arith.constant 0 : index
    %c0_305 = arith.constant 0 : index
    %323 = vector.load %arg20[%c0_304, %c0_305] : memref<56x64xf32, #tpu.memory_space<vmem>>, vector<32x64xf32>
    %324 = arith.truncf %323 : vector<32x64xf32> to vector<32x64xbf16>
    %c0_306 = arith.constant 0 : index
    %c0_307 = arith.constant 0 : index
    %c0_308 = arith.constant 0 : index
    %325 = vector.load %arg5[%c0_306, %c0_307, %c0_308] : memref<9x64x64xbf16, #tpu.memory_space<vmem>>, vector<1x64x64xbf16>
    %326 = vector.shape_cast %325 : vector<1x64x64xbf16> to vector<64x64xbf16>
    %cst_309 = arith.constant dense<0.000000e+00> : vector<32x64xf32>
    %327 = tpu.matmul %324, %326, %cst_309 {dimension_numbers = #tpu.dot_dimension_numbers<[1], [0], [0], [1], [0, 0, 1, 1], [], []>} : vector<32x64xbf16>, vector<64x64xbf16>, vector<32x64xf32> -> vector<32x64xf32>
    %328 = arith.addf %322, %327 : vector<32x64xf32>
    %c1_310 = arith.constant 1 : index
    %c0_311 = arith.constant 0 : index
    %329 = vector.load %arg20[%c1_310, %c0_311] : memref<56x64xf32, #tpu.memory_space<vmem>>, vector<32x64xf32>
    %330 = arith.truncf %329 : vector<32x64xf32> to vector<32x64xbf16>
    %c1_312 = arith.constant 1 : index
    %c0_313 = arith.constant 0 : index
    %c0_314 = arith.constant 0 : index
    %331 = vector.load %arg5[%c1_312, %c0_313, %c0_314] : memref<9x64x64xbf16, #tpu.memory_space<vmem>>, vector<1x64x64xbf16>
    %332 = vector.shape_cast %331 : vector<1x64x64xbf16> to vector<64x64xbf16>
    %cst_315 = arith.constant dense<0.000000e+00> : vector<32x64xf32>
    %333 = tpu.matmul %330, %332, %cst_315 {dimension_numbers = #tpu.dot_dimension_numbers<[1], [0], [0], [1], [0, 0, 1, 1], [], []>} : vector<32x64xbf16>, vector<64x64xbf16>, vector<32x64xf32> -> vector<32x64xf32>
    %334 = arith.addf %328, %333 : vector<32x64xf32>
    %c2_316 = arith.constant 2 : index
    %c0_317 = arith.constant 0 : index
    %335 = vector.load %arg20[%c2_316, %c0_317] : memref<56x64xf32, #tpu.memory_space<vmem>>, vector<32x64xf32>
    %336 = arith.truncf %335 : vector<32x64xf32> to vector<32x64xbf16>
    %c2_318 = arith.constant 2 : index
    %c0_319 = arith.constant 0 : index
    %c0_320 = arith.constant 0 : index
    %337 = vector.load %arg5[%c2_318, %c0_319, %c0_320] : memref<9x64x64xbf16, #tpu.memory_space<vmem>>, vector<1x64x64xbf16>
    %338 = vector.shape_cast %337 : vector<1x64x64xbf16> to vector<64x64xbf16>
    %cst_321 = arith.constant dense<0.000000e+00> : vector<32x64xf32>
    %339 = tpu.matmul %336, %338, %cst_321 {dimension_numbers = #tpu.dot_dimension_numbers<[1], [0], [0], [1], [0, 0, 1, 1], [], []>} : vector<32x64xbf16>, vector<64x64xbf16>, vector<32x64xf32> -> vector<32x64xf32>
    %340 = arith.addf %334, %339 : vector<32x64xf32>
    %c8_322 = arith.constant 8 : index
    %c0_323 = arith.constant 0 : index
    %341 = vector.load %arg20[%c8_322, %c0_323] : memref<56x64xf32, #tpu.memory_space<vmem>>, vector<32x64xf32>
    %342 = arith.truncf %341 : vector<32x64xf32> to vector<32x64xbf16>
    %c3_324 = arith.constant 3 : index
    %c0_325 = arith.constant 0 : index
    %c0_326 = arith.constant 0 : index
    %343 = vector.load %arg5[%c3_324, %c0_325, %c0_326] : memref<9x64x64xbf16, #tpu.memory_space<vmem>>, vector<1x64x64xbf16>
    %344 = vector.shape_cast %343 : vector<1x64x64xbf16> to vector<64x64xbf16>
    %cst_327 = arith.constant dense<0.000000e+00> : vector<32x64xf32>
    %345 = tpu.matmul %342, %344, %cst_327 {dimension_numbers = #tpu.dot_dimension_numbers<[1], [0], [0], [1], [0, 0, 1, 1], [], []>} : vector<32x64xbf16>, vector<64x64xbf16>, vector<32x64xf32> -> vector<32x64xf32>
    %346 = arith.addf %340, %345 : vector<32x64xf32>
    %c9_328 = arith.constant 9 : index
    %c0_329 = arith.constant 0 : index
    %347 = vector.load %arg20[%c9_328, %c0_329] : memref<56x64xf32, #tpu.memory_space<vmem>>, vector<32x64xf32>
    %348 = arith.truncf %347 : vector<32x64xf32> to vector<32x64xbf16>
    %c4_330 = arith.constant 4 : index
    %c0_331 = arith.constant 0 : index
    %c0_332 = arith.constant 0 : index
    %349 = vector.load %arg5[%c4_330, %c0_331, %c0_332] : memref<9x64x64xbf16, #tpu.memory_space<vmem>>, vector<1x64x64xbf16>
    %350 = vector.shape_cast %349 : vector<1x64x64xbf16> to vector<64x64xbf16>
    %cst_333 = arith.constant dense<0.000000e+00> : vector<32x64xf32>
    %351 = tpu.matmul %348, %350, %cst_333 {dimension_numbers = #tpu.dot_dimension_numbers<[1], [0], [0], [1], [0, 0, 1, 1], [], []>} : vector<32x64xbf16>, vector<64x64xbf16>, vector<32x64xf32> -> vector<32x64xf32>
    %352 = arith.addf %346, %351 : vector<32x64xf32>
    %c10_334 = arith.constant 10 : index
    %c0_335 = arith.constant 0 : index
    %353 = vector.load %arg20[%c10_334, %c0_335] : memref<56x64xf32, #tpu.memory_space<vmem>>, vector<32x64xf32>
    %354 = arith.truncf %353 : vector<32x64xf32> to vector<32x64xbf16>
    %c5_336 = arith.constant 5 : index
    %c0_337 = arith.constant 0 : index
    %c0_338 = arith.constant 0 : index
    %355 = vector.load %arg5[%c5_336, %c0_337, %c0_338] : memref<9x64x64xbf16, #tpu.memory_space<vmem>>, vector<1x64x64xbf16>
    %356 = vector.shape_cast %355 : vector<1x64x64xbf16> to vector<64x64xbf16>
    %cst_339 = arith.constant dense<0.000000e+00> : vector<32x64xf32>
    %357 = tpu.matmul %354, %356, %cst_339 {dimension_numbers = #tpu.dot_dimension_numbers<[1], [0], [0], [1], [0, 0, 1, 1], [], []>} : vector<32x64xbf16>, vector<64x64xbf16>, vector<32x64xf32> -> vector<32x64xf32>
    %358 = arith.addf %352, %357 : vector<32x64xf32>
    %c16_340 = arith.constant 16 : index
    %c0_341 = arith.constant 0 : index
    %359 = vector.load %arg20[%c16_340, %c0_341] : memref<56x64xf32, #tpu.memory_space<vmem>>, vector<32x64xf32>
    %360 = arith.truncf %359 : vector<32x64xf32> to vector<32x64xbf16>
    %c6_342 = arith.constant 6 : index
    %c0_343 = arith.constant 0 : index
    %c0_344 = arith.constant 0 : index
    %361 = vector.load %arg5[%c6_342, %c0_343, %c0_344] : memref<9x64x64xbf16, #tpu.memory_space<vmem>>, vector<1x64x64xbf16>
    %362 = vector.shape_cast %361 : vector<1x64x64xbf16> to vector<64x64xbf16>
    %cst_345 = arith.constant dense<0.000000e+00> : vector<32x64xf32>
    %363 = tpu.matmul %360, %362, %cst_345 {dimension_numbers = #tpu.dot_dimension_numbers<[1], [0], [0], [1], [0, 0, 1, 1], [], []>} : vector<32x64xbf16>, vector<64x64xbf16>, vector<32x64xf32> -> vector<32x64xf32>
    %364 = arith.addf %358, %363 : vector<32x64xf32>
    %c17_346 = arith.constant 17 : index
    %c0_347 = arith.constant 0 : index
    %365 = vector.load %arg20[%c17_346, %c0_347] : memref<56x64xf32, #tpu.memory_space<vmem>>, vector<32x64xf32>
    %366 = arith.truncf %365 : vector<32x64xf32> to vector<32x64xbf16>
    %c7_348 = arith.constant 7 : index
    %c0_349 = arith.constant 0 : index
    %c0_350 = arith.constant 0 : index
    %367 = vector.load %arg5[%c7_348, %c0_349, %c0_350] : memref<9x64x64xbf16, #tpu.memory_space<vmem>>, vector<1x64x64xbf16>
    %368 = vector.shape_cast %367 : vector<1x64x64xbf16> to vector<64x64xbf16>
    %cst_351 = arith.constant dense<0.000000e+00> : vector<32x64xf32>
    %369 = tpu.matmul %366, %368, %cst_351 {dimension_numbers = #tpu.dot_dimension_numbers<[1], [0], [0], [1], [0, 0, 1, 1], [], []>} : vector<32x64xbf16>, vector<64x64xbf16>, vector<32x64xf32> -> vector<32x64xf32>
    %370 = arith.addf %364, %369 : vector<32x64xf32>
    %c18_352 = arith.constant 18 : index
    %c0_353 = arith.constant 0 : index
    %371 = vector.load %arg20[%c18_352, %c0_353] : memref<56x64xf32, #tpu.memory_space<vmem>>, vector<32x64xf32>
    %372 = arith.truncf %371 : vector<32x64xf32> to vector<32x64xbf16>
    %c8_354 = arith.constant 8 : index
    %c0_355 = arith.constant 0 : index
    %c0_356 = arith.constant 0 : index
    %373 = vector.load %arg5[%c8_354, %c0_355, %c0_356] : memref<9x64x64xbf16, #tpu.memory_space<vmem>>, vector<1x64x64xbf16>
    %374 = vector.shape_cast %373 : vector<1x64x64xbf16> to vector<64x64xbf16>
    %cst_357 = arith.constant dense<0.000000e+00> : vector<32x64xf32>
    %375 = tpu.matmul %372, %374, %cst_357 {dimension_numbers = #tpu.dot_dimension_numbers<[1], [0], [0], [1], [0, 0, 1, 1], [], []>} : vector<32x64xbf16>, vector<64x64xbf16>, vector<32x64xf32> -> vector<32x64xf32>
    %376 = arith.addf %370, %375 : vector<32x64xf32>
    %c0_358 = arith.constant 0 : index
    %c0_359 = arith.constant 0 : index
    %377 = vector.load %arg12[%c0_358, %c0_359] : memref<1x64xf32, #tpu.memory_space<vmem>>, vector<1x64xf32>
    %378 = vector.broadcast %377 : vector<1x64xf32> to vector<32x64xf32>
    %379 = arith.addf %376, %378 : vector<32x64xf32>
    %cst_360 = arith.constant 0.000000e+00 : f32
    %380 = vector.broadcast %cst_360 : f32 to vector<32x64xf32>
    %381 = arith.maximumf %379, %380 : vector<32x64xf32>
    %c0_361 = arith.constant 0 : index
    %c0_362 = arith.constant 0 : index
    %382 = vector.load %arg21[%c0_361, %c0_362] : memref<40x64xf32, #tpu.memory_space<vmem>>, vector<32x64xf32>
    tpu.vector_store %arg21[%c0_361, %c0_362], %381 {strides = array<i32>} : memref<40x64xf32, #tpu.memory_space<vmem>>, vector<32x64xf32>,
    %cst_363 = arith.constant 0.000000e+00 : f32
    %383 = vector.broadcast %cst_363 : f32 to vector<16x64xf32>
    %c0_364 = arith.constant 0 : index
    %c0_365 = arith.constant 0 : index
    %384 = vector.load %arg21[%c0_364, %c0_365] : memref<40x64xf32, #tpu.memory_space<vmem>>, vector<16x64xf32>
    %385 = arith.truncf %384 : vector<16x64xf32> to vector<16x64xbf16>
    %c0_366 = arith.constant 0 : index
    %c0_367 = arith.constant 0 : index
    %c0_368 = arith.constant 0 : index
    %386 = vector.load %arg6[%c0_366, %c0_367, %c0_368] : memref<9x64x64xbf16, #tpu.memory_space<vmem>>, vector<1x64x64xbf16>
    %387 = vector.shape_cast %386 : vector<1x64x64xbf16> to vector<64x64xbf16>
    %cst_369 = arith.constant dense<0.000000e+00> : vector<16x64xf32>
    %388 = tpu.matmul %385, %387, %cst_369 {dimension_numbers = #tpu.dot_dimension_numbers<[1], [0], [0], [1], [0, 0, 1, 1], [], []>} : vector<16x64xbf16>, vector<64x64xbf16>, vector<16x64xf32> -> vector<16x64xf32>
    %389 = arith.addf %383, %388 : vector<16x64xf32>
    %c1_370 = arith.constant 1 : index
    %c0_371 = arith.constant 0 : index
    %390 = vector.load %arg21[%c1_370, %c0_371] : memref<40x64xf32, #tpu.memory_space<vmem>>, vector<16x64xf32>
    %391 = arith.truncf %390 : vector<16x64xf32> to vector<16x64xbf16>
    %c1_372 = arith.constant 1 : index
    %c0_373 = arith.constant 0 : index
    %c0_374 = arith.constant 0 : index
    %392 = vector.load %arg6[%c1_372, %c0_373, %c0_374] : memref<9x64x64xbf16, #tpu.memory_space<vmem>>, vector<1x64x64xbf16>
    %393 = vector.shape_cast %392 : vector<1x64x64xbf16> to vector<64x64xbf16>
    %cst_375 = arith.constant dense<0.000000e+00> : vector<16x64xf32>
    %394 = tpu.matmul %391, %393, %cst_375 {dimension_numbers = #tpu.dot_dimension_numbers<[1], [0], [0], [1], [0, 0, 1, 1], [], []>} : vector<16x64xbf16>, vector<64x64xbf16>, vector<16x64xf32> -> vector<16x64xf32>
    %395 = arith.addf %389, %394 : vector<16x64xf32>
    %c2_376 = arith.constant 2 : index
    %c0_377 = arith.constant 0 : index
    %396 = vector.load %arg21[%c2_376, %c0_377] : memref<40x64xf32, #tpu.memory_space<vmem>>, vector<16x64xf32>
    %397 = arith.truncf %396 : vector<16x64xf32> to vector<16x64xbf16>
    %c2_378 = arith.constant 2 : index
    %c0_379 = arith.constant 0 : index
    %c0_380 = arith.constant 0 : index
    %398 = vector.load %arg6[%c2_378, %c0_379, %c0_380] : memref<9x64x64xbf16, #tpu.memory_space<vmem>>, vector<1x64x64xbf16>
    %399 = vector.shape_cast %398 : vector<1x64x64xbf16> to vector<64x64xbf16>
    %cst_381 = arith.constant dense<0.000000e+00> : vector<16x64xf32>
    %400 = tpu.matmul %397, %399, %cst_381 {dimension_numbers = #tpu.dot_dimension_numbers<[1], [0], [0], [1], [0, 0, 1, 1], [], []>} : vector<16x64xbf16>, vector<64x64xbf16>, vector<16x64xf32> -> vector<16x64xf32>
    %401 = arith.addf %395, %400 : vector<16x64xf32>
    %c8_382 = arith.constant 8 : index
    %c0_383 = arith.constant 0 : index
    %402 = vector.load %arg21[%c8_382, %c0_383] : memref<40x64xf32, #tpu.memory_space<vmem>>, vector<16x64xf32>
    %403 = arith.truncf %402 : vector<16x64xf32> to vector<16x64xbf16>
    %c3_384 = arith.constant 3 : index
    %c0_385 = arith.constant 0 : index
    %c0_386 = arith.constant 0 : index
    %404 = vector.load %arg6[%c3_384, %c0_385, %c0_386] : memref<9x64x64xbf16, #tpu.memory_space<vmem>>, vector<1x64x64xbf16>
    %405 = vector.shape_cast %404 : vector<1x64x64xbf16> to vector<64x64xbf16>
    %cst_387 = arith.constant dense<0.000000e+00> : vector<16x64xf32>
    %406 = tpu.matmul %403, %405, %cst_387 {dimension_numbers = #tpu.dot_dimension_numbers<[1], [0], [0], [1], [0, 0, 1, 1], [], []>} : vector<16x64xbf16>, vector<64x64xbf16>, vector<16x64xf32> -> vector<16x64xf32>
    %407 = arith.addf %401, %406 : vector<16x64xf32>
    %c9_388 = arith.constant 9 : index
    %c0_389 = arith.constant 0 : index
    %408 = vector.load %arg21[%c9_388, %c0_389] : memref<40x64xf32, #tpu.memory_space<vmem>>, vector<16x64xf32>
    %409 = arith.truncf %408 : vector<16x64xf32> to vector<16x64xbf16>
    %c4_390 = arith.constant 4 : index
    %c0_391 = arith.constant 0 : index
    %c0_392 = arith.constant 0 : index
    %410 = vector.load %arg6[%c4_390, %c0_391, %c0_392] : memref<9x64x64xbf16, #tpu.memory_space<vmem>>, vector<1x64x64xbf16>
    %411 = vector.shape_cast %410 : vector<1x64x64xbf16> to vector<64x64xbf16>
    %cst_393 = arith.constant dense<0.000000e+00> : vector<16x64xf32>
    %412 = tpu.matmul %409, %411, %cst_393 {dimension_numbers = #tpu.dot_dimension_numbers<[1], [0], [0], [1], [0, 0, 1, 1], [], []>} : vector<16x64xbf16>, vector<64x64xbf16>, vector<16x64xf32> -> vector<16x64xf32>
    %413 = arith.addf %407, %412 : vector<16x64xf32>
    %c10_394 = arith.constant 10 : index
    %c0_395 = arith.constant 0 : index
    %414 = vector.load %arg21[%c10_394, %c0_395] : memref<40x64xf32, #tpu.memory_space<vmem>>, vector<16x64xf32>
    %415 = arith.truncf %414 : vector<16x64xf32> to vector<16x64xbf16>
    %c5_396 = arith.constant 5 : index
    %c0_397 = arith.constant 0 : index
    %c0_398 = arith.constant 0 : index
    %416 = vector.load %arg6[%c5_396, %c0_397, %c0_398] : memref<9x64x64xbf16, #tpu.memory_space<vmem>>, vector<1x64x64xbf16>
    %417 = vector.shape_cast %416 : vector<1x64x64xbf16> to vector<64x64xbf16>
    %cst_399 = arith.constant dense<0.000000e+00> : vector<16x64xf32>
    %418 = tpu.matmul %415, %417, %cst_399 {dimension_numbers = #tpu.dot_dimension_numbers<[1], [0], [0], [1], [0, 0, 1, 1], [], []>} : vector<16x64xbf16>, vector<64x64xbf16>, vector<16x64xf32> -> vector<16x64xf32>
    %419 = arith.addf %413, %418 : vector<16x64xf32>
    %c16_400 = arith.constant 16 : index
    %c0_401 = arith.constant 0 : index
    %420 = vector.load %arg21[%c16_400, %c0_401] : memref<40x64xf32, #tpu.memory_space<vmem>>, vector<16x64xf32>
    %421 = arith.truncf %420 : vector<16x64xf32> to vector<16x64xbf16>
    %c6_402 = arith.constant 6 : index
    %c0_403 = arith.constant 0 : index
    %c0_404 = arith.constant 0 : index
    %422 = vector.load %arg6[%c6_402, %c0_403, %c0_404] : memref<9x64x64xbf16, #tpu.memory_space<vmem>>, vector<1x64x64xbf16>
    %423 = vector.shape_cast %422 : vector<1x64x64xbf16> to vector<64x64xbf16>
    %cst_405 = arith.constant dense<0.000000e+00> : vector<16x64xf32>
    %424 = tpu.matmul %421, %423, %cst_405 {dimension_numbers = #tpu.dot_dimension_numbers<[1], [0], [0], [1], [0, 0, 1, 1], [], []>} : vector<16x64xbf16>, vector<64x64xbf16>, vector<16x64xf32> -> vector<16x64xf32>
    %425 = arith.addf %419, %424 : vector<16x64xf32>
    %c17_406 = arith.constant 17 : index
    %c0_407 = arith.constant 0 : index
    %426 = vector.load %arg21[%c17_406, %c0_407] : memref<40x64xf32, #tpu.memory_space<vmem>>, vector<16x64xf32>
    %427 = arith.truncf %426 : vector<16x64xf32> to vector<16x64xbf16>
    %c7_408 = arith.constant 7 : index
    %c0_409 = arith.constant 0 : index
    %c0_410 = arith.constant 0 : index
    %428 = vector.load %arg6[%c7_408, %c0_409, %c0_410] : memref<9x64x64xbf16, #tpu.memory_space<vmem>>, vector<1x64x64xbf16>
    %429 = vector.shape_cast %428 : vector<1x64x64xbf16> to vector<64x64xbf16>
    %cst_411 = arith.constant dense<0.000000e+00> : vector<16x64xf32>
    %430 = tpu.matmul %427, %429, %cst_411 {dimension_numbers = #tpu.dot_dimension_numbers<[1], [0], [0], [1], [0, 0, 1, 1], [], []>} : vector<16x64xbf16>, vector<64x64xbf16>, vector<16x64xf32> -> vector<16x64xf32>
    %431 = arith.addf %425, %430 : vector<16x64xf32>
    %c18_412 = arith.constant 18 : index
    %c0_413 = arith.constant 0 : index
    %432 = vector.load %arg21[%c18_412, %c0_413] : memref<40x64xf32, #tpu.memory_space<vmem>>, vector<16x64xf32>
    %433 = arith.truncf %432 : vector<16x64xf32> to vector<16x64xbf16>
    %c8_414 = arith.constant 8 : index
    %c0_415 = arith.constant 0 : index
    %c0_416 = arith.constant 0 : index
    %434 = vector.load %arg6[%c8_414, %c0_415, %c0_416] : memref<9x64x64xbf16, #tpu.memory_space<vmem>>, vector<1x64x64xbf16>
    %435 = vector.shape_cast %434 : vector<1x64x64xbf16> to vector<64x64xbf16>
    %cst_417 = arith.constant dense<0.000000e+00> : vector<16x64xf32>
    %436 = tpu.matmul %433, %435, %cst_417 {dimension_numbers = #tpu.dot_dimension_numbers<[1], [0], [0], [1], [0, 0, 1, 1], [], []>} : vector<16x64xbf16>, vector<64x64xbf16>, vector<16x64xf32> -> vector<16x64xf32>
    %437 = arith.addf %431, %436 : vector<16x64xf32>
    %c0_418 = arith.constant 0 : index
    %c0_419 = arith.constant 0 : index
    %438 = vector.load %arg13[%c0_418, %c0_419] : memref<1x64xf32, #tpu.memory_space<vmem>>, vector<1x64xf32>
    %439 = vector.broadcast %438 : vector<1x64xf32> to vector<16x64xf32>
    %440 = arith.addf %437, %439 : vector<16x64xf32>
    %cst_420 = arith.constant 0.000000e+00 : f32
    %441 = vector.broadcast %cst_420 : f32 to vector<16x64xf32>
    %442 = arith.maximumf %440, %441 : vector<16x64xf32>
    %cst_421 = arith.constant 0.000000e+00 : f32
    %443 = vector.broadcast %cst_421 : f32 to vector<1x512xf32>
    %444 = vector.extract_strided_slice %442 {offsets = [0, 0], sizes = [1, 64], strides = [1, 1]} : vector<16x64xf32> to vector<1x64xf32>
    %445 = arith.truncf %444 : vector<1x64xf32> to vector<1x64xbf16>
    %c0_422 = arith.constant 0 : index
    %c0_423 = arith.constant 0 : index
    %c0_424 = arith.constant 0 : index
    %446 = vector.load %arg7[%c0_422, %c0_423, %c0_424] : memref<4x64x512xbf16, #tpu.memory_space<vmem>>, vector<1x64x512xbf16>
    %447 = vector.shape_cast %446 : vector<1x64x512xbf16> to vector<64x512xbf16>
    %cst_425 = arith.constant dense<0.000000e+00> : vector<1x512xf32>
    %448 = tpu.matmul %445, %447, %cst_425 {dimension_numbers = #tpu.dot_dimension_numbers<[1], [0], [0], [1], [0, 0, 1, 1], [], []>} : vector<1x64xbf16>, vector<64x512xbf16>, vector<1x512xf32> -> vector<1x512xf32>
    %449 = arith.addf %443, %448 : vector<1x512xf32>
    %450 = vector.extract_strided_slice %442 {offsets = [1, 0], sizes = [1, 64], strides = [1, 1]} : vector<16x64xf32> to vector<1x64xf32>
    %451 = arith.truncf %450 : vector<1x64xf32> to vector<1x64xbf16>
    %c1_426 = arith.constant 1 : index
    %c0_427 = arith.constant 0 : index
    %c0_428 = arith.constant 0 : index
    %452 = vector.load %arg7[%c1_426, %c0_427, %c0_428] : memref<4x64x512xbf16, #tpu.memory_space<vmem>>, vector<1x64x512xbf16>
    %453 = vector.shape_cast %452 : vector<1x64x512xbf16> to vector<64x512xbf16>
    %cst_429 = arith.constant dense<0.000000e+00> : vector<1x512xf32>
    %454 = tpu.matmul %451, %453, %cst_429 {dimension_numbers = #tpu.dot_dimension_numbers<[1], [0], [0], [1], [0, 0, 1, 1], [], []>} : vector<1x64xbf16>, vector<64x512xbf16>, vector<1x512xf32> -> vector<1x512xf32>
    %455 = arith.addf %449, %454 : vector<1x512xf32>
    %456 = vector.extract_strided_slice %442 {offsets = [8, 0], sizes = [1, 64], strides = [1, 1]} : vector<16x64xf32> to vector<1x64xf32>
    %457 = arith.truncf %456 : vector<1x64xf32> to vector<1x64xbf16>
    %c2_430 = arith.constant 2 : index
    %c0_431 = arith.constant 0 : index
    %c0_432 = arith.constant 0 : index
    %458 = vector.load %arg7[%c2_430, %c0_431, %c0_432] : memref<4x64x512xbf16, #tpu.memory_space<vmem>>, vector<1x64x512xbf16>
    %459 = vector.shape_cast %458 : vector<1x64x512xbf16> to vector<64x512xbf16>
    %cst_433 = arith.constant dense<0.000000e+00> : vector<1x512xf32>
    %460 = tpu.matmul %457, %459, %cst_433 {dimension_numbers = #tpu.dot_dimension_numbers<[1], [0], [0], [1], [0, 0, 1, 1], [], []>} : vector<1x64xbf16>, vector<64x512xbf16>, vector<1x512xf32> -> vector<1x512xf32>
    %461 = arith.addf %455, %460 : vector<1x512xf32>
    %462 = vector.extract_strided_slice %442 {offsets = [9, 0], sizes = [1, 64], strides = [1, 1]} : vector<16x64xf32> to vector<1x64xf32>
    %463 = arith.truncf %462 : vector<1x64xf32> to vector<1x64xbf16>
    %c3_434 = arith.constant 3 : index
    %c0_435 = arith.constant 0 : index
    %c0_436 = arith.constant 0 : index
    %464 = vector.load %arg7[%c3_434, %c0_435, %c0_436] : memref<4x64x512xbf16, #tpu.memory_space<vmem>>, vector<1x64x512xbf16>
    %465 = vector.shape_cast %464 : vector<1x64x512xbf16> to vector<64x512xbf16>
    %cst_437 = arith.constant dense<0.000000e+00> : vector<1x512xf32>
    %466 = tpu.matmul %463, %465, %cst_437 {dimension_numbers = #tpu.dot_dimension_numbers<[1], [0], [0], [1], [0, 0, 1, 1], [], []>} : vector<1x64xbf16>, vector<64x512xbf16>, vector<1x512xf32> -> vector<1x512xf32>
    %467 = arith.addf %461, %466 : vector<1x512xf32>
    %c0_438 = arith.constant 0 : index
    %c0_439 = arith.constant 0 : index
    %468 = vector.load %arg14[%c0_438, %c0_439] : memref<1x512xf32, #tpu.memory_space<vmem>>, vector<1x512xf32>
    %469 = arith.addf %467, %468 : vector<1x512xf32>
    %cst_440 = arith.constant 0.000000e+00 : f32
    %470 = vector.broadcast %cst_440 : f32 to vector<1x512xf32>
    %471 = arith.maximumf %469, %470 : vector<1x512xf32>
    %472 = arith.truncf %471 : vector<1x512xf32> to vector<1x512xbf16>
    %c0_441 = arith.constant 0 : index
    %c0_442 = arith.constant 0 : index
    %473 = vector.load %arg8[%c0_441, %c0_442] : memref<512x4xbf16, #tpu.memory_space<vmem>>, vector<512x4xbf16>
    %cst_443 = arith.constant dense<0.000000e+00> : vector<1x4xf32>
    %474 = tpu.matmul %472, %473, %cst_443 {dimension_numbers = #tpu.dot_dimension_numbers<[1], [0], [0], [1], [0, 0, 1, 1], [], []>} : vector<1x512xbf16>, vector<512x4xbf16>, vector<1x4xf32> -> vector<1x4xf32>
    %c0_444 = arith.constant 0 : index
    %c0_445 = arith.constant 0 : index
    %475 = vector.load %arg15[%c0_444, %c0_445] : memref<1x4xf32, #tpu.memory_space<vmem>>, vector<1x4xf32>
    %476 = arith.addf %474, %475 : vector<1x4xf32>
    %c0_446 = arith.constant 0 : index
    %c0_447 = arith.constant 0 : index
    %c0_448 = arith.constant 0 : index
    %477 = vector.load %arg16[%c0_446, %c0_447, %c0_448] : memref<1x1x4xf32, #tpu.memory_space<vmem>>, vector<1x1x4xf32>
    %478 = vector.shape_cast %477 : vector<1x1x4xf32> to vector<1x4xf32>
    %479 = vector.shape_cast %476 : vector<1x4xf32> to vector<1x1x4xf32>
    tpu.vector_store %arg16[%c0_446, %c0_447, %c0_448], %479 {strides = array<i32>} : memref<1x1x4xf32, #tpu.memory_space<vmem>>, vector<1x1x4xf32>,
    return
  }
  func.func @transform_0(%arg0: i32) -> (i32, i32, i32) {
    %c0_i32 = arith.constant 0 : i32
    %c0_i32_0 = arith.constant 0 : i32
    %c0_i32_1 = arith.constant 0 : i32
    return %arg0, %c0_i32, %c0_i32_0 : i32, i32, i32
  }
  func.func @transform_1(%arg0: i32) -> (i32, i32) {
    %c0_i32 = arith.constant 0 : i32
    %c0_i32_0 = arith.constant 0 : i32
    %c0_i32_1 = arith.constant 0 : i32
    return %c0_i32, %c0_i32_0 : i32, i32
  }
  func.func @transform_2(%arg0: i32) -> (i32, i32, i32) {
    %c0_i32 = arith.constant 0 : i32
    %c0_i32_0 = arith.constant 0 : i32
    %c0_i32_1 = arith.constant 0 : i32
    %c0_i32_2 = arith.constant 0 : i32
    return %c0_i32, %c0_i32_0, %c0_i32_1 : i32, i32, i32
  }
  func.func @transform_3(%arg0: i32) -> (i32, i32, i32) {
    %c0_i32 = arith.constant 0 : i32
    %c0_i32_0 = arith.constant 0 : i32
    %c0_i32_1 = arith.constant 0 : i32
    %c0_i32_2 = arith.constant 0 : i32
    return %c0_i32, %c0_i32_0, %c0_i32_1 : i32, i32, i32
  }
  func.func @transform_4(%arg0: i32) -> (i32, i32, i32) {
    %c0_i32 = arith.constant 0 : i32
    %c0_i32_0 = arith.constant 0 : i32
    %c0_i32_1 = arith.constant 0 : i32
    %c0_i32_2 = arith.constant 0 : i32
    return %c0_i32, %c0_i32_0, %c0_i32_1 : i32, i32, i32
  }
  func.func @transform_5(%arg0: i32) -> (i32, i32, i32) {
    %c0_i32 = arith.constant 0 : i32
    %c0_i32_0 = arith.constant 0 : i32
    %c0_i32_1 = arith.constant 0 : i32
    %c0_i32_2 = arith.constant 0 : i32
    return %c0_i32, %c0_i32_0, %c0_i32_1 : i32, i32, i32
  }
  func.func @transform_6(%arg0: i32) -> (i32, i32, i32) {
    %c0_i32 = arith.constant 0 : i32
    %c0_i32_0 = arith.constant 0 : i32
    %c0_i32_1 = arith.constant 0 : i32
    %c0_i32_2 = arith.constant 0 : i32
    return %c0_i32, %c0_i32_0, %c0_i32_1 : i32, i32, i32
  }
  func.func @transform_7(%arg0: i32) -> (i32, i32) {
    %c0_i32 = arith.constant 0 : i32
    %c0_i32_0 = arith.constant 0 : i32
    %c0_i32_1 = arith.constant 0 : i32
    return %c0_i32, %c0_i32_0 : i32, i32
  }
  func.func @transform_8(%arg0: i32) -> (i32, i32) {
    %c0_i32 = arith.constant 0 : i32
    %c0_i32_0 = arith.constant 0 : i32
    %c0_i32_1 = arith.constant 0 : i32
    return %c0_i32, %c0_i32_0 : i32, i32
  }
  func.func @transform_9(%arg0: i32) -> (i32, i32) {
    %c0_i32 = arith.constant 0 : i32
    %c0_i32_0 = arith.constant 0 : i32
    %c0_i32_1 = arith.constant 0 : i32
    return %c0_i32, %c0_i32_0 : i32, i32
  }
  func.func @transform_10(%arg0: i32) -> (i32, i32) {
    %c0_i32 = arith.constant 0 : i32
    %c0_i32_0 = arith.constant 0 : i32
    %c0_i32_1 = arith.constant 0 : i32
    return %c0_i32, %c0_i32_0 : i32, i32
  }
  func.func @transform_11(%arg0: i32) -> (i32, i32) {
    %c0_i32 = arith.constant 0 : i32
    %c0_i32_0 = arith.constant 0 : i32
    %c0_i32_1 = arith.constant 0 : i32
    return %c0_i32, %c0_i32_0 : i32, i32
  }
  func.func @transform_12(%arg0: i32) -> (i32, i32) {
    %c0_i32 = arith.constant 0 : i32
    %c0_i32_0 = arith.constant 0 : i32
    %c0_i32_1 = arith.constant 0 : i32
    return %c0_i32, %c0_i32_0 : i32, i32
  }
  func.func @transform_13(%arg0: i32) -> (i32, i32) {
    %c0_i32 = arith.constant 0 : i32
    %c0_i32_0 = arith.constant 0 : i32
    %c0_i32_1 = arith.constant 0 : i32
    return %c0_i32, %c0_i32_0 : i32, i32
  }
  func.func @transform_14(%arg0: i32) -> (i32, i32) {
    %c0_i32 = arith.constant 0 : i32
    %c0_i32_0 = arith.constant 0 : i32
    %c0_i32_1 = arith.constant 0 : i32
    return %c0_i32, %c0_i32_0 : i32, i32
  }
  func.func @transform_15(%arg0: i32) -> (i32, i32, i32) {
    %c0_i32 = arith.constant 0 : i32
    %c0_i32_0 = arith.constant 0 : i32
    %c0_i32_1 = arith.constant 0 : i32
    return %arg0, %c0_i32, %c0_i32_0 : i32, i32, i32
  }
}

</mosaic_0001>

<bundles_post_ra>
// kernel: dqn_forward.1
= control target key start
LH: loop header
LB: loop body
LE: loop exit
PB: predicated region body
PF: predicated region fallthrough
CT: control target
= control target key end

     0   :  { %s20527_s0 = inlined_call_operand.vmem [shape: bf16[2,1024,196], index: 0, kind: input, shape index: {}]   ;;  %s20528_s1 = inlined_call_operand.vmem [shape: bf16[196,32], index: 1, kind: input, shape index: {}]   ;;  %s20529_s2 = inlined_call_operand.vmem [shape: bf16[25,32,64], index: 2, kind: input, shape index: {}]   ;;  %s20530_s3 = inlined_call_operand.vmem [shape: bf16[9,64,64], index: 3, kind: input, shape index: {}]   ;;  %s20531_s4 = inlined_call_operand.vmem [shape: bf16[9,64,64], index: 4, kind: input, shape index: {}]   ;;  %s20532_s5 = inlined_call_operand.vmem [shape: bf16[9,64,64], index: 5, kind: input, shape index: {}]   ;;  %s20533_s6 = inlined_call_operand.vmem [shape: bf16[4,64,512], index: 6, kind: input, shape index: {}]   ;;  %s20534_s7 = inlined_call_operand.vmem [shape: bf16[512,4], index: 7, kind: input, shape index: {}]   ;;  %s20535_s8 = inlined_call_operand.vmem [shape: f32[1,32], index: 8, kind: input, shape index: {}]   ;;  %s20536_s9 = inlined_call_operand.vmem [shape: f32[1,64], index: 9, kind: input, shape index: {}]   ;;  %s20537_s10 = inlined_call_operand.vmem [shape: f32[1,64], index: 10, kind: input, shape index: {}]   ;;  %s20538_s11 = inlined_call_operand.vmem [shape: f32[1,64], index: 11, kind: input, shape index: {}]   ;;  %s20539_s12 = inlined_call_operand.vmem [shape: f32[1,64], index: 12, kind: input, shape index: {}]   ;;  %s20540_s13 = inlined_call_operand.vmem [shape: f32[1,512], index: 13, kind: input, shape index: {}]   ;;  %s20541_s14 = inlined_call_operand.vmem [shape: f32[1,4], index: 14, kind: input, shape index: {}]   ;;  %s20542_s15 = inlined_call_operand.hbm [shape: f32[2,1,4], index: 15, kind: output, shape index: {}]  }
   0x1   :  { %20546 = sst [smem:[#allocation13_spill]] %s20527_s0 }
   0x2   :  { %20547 = sst [smem:[#allocation14_spill]] %s20528_s1 }
   0x3   :  { %20 = vsyncpa [#allocation8], 0 }
   0x4   :  { %22 = vsyncpa [#allocation8 + $0x1], 0  ;;  %s18059_s18 = smov 0   ;;  %s18061_s19 = smov 0  }
   0x5   :  { %s18063_s20 = smov 0   ;;  %s18065_s21 = smov 0  }
   0x6 LB: > { %20548 = sst [smem:[#allocation10_spill]] %s17969_s20  ;;  %s18080_s22 = sadd.s32 4294967295, %s17973_s21   ;;  %s17973_s21 = sphi %s18065_s21, %s20555_s21   ;;  %s17969_s20 = sphi %s18063_s20, %s20557_s20   ;;  %s17965_s19 = sphi %s18061_s19, %s20559_s19   ;;  %s17961_s18 = sphi %s18059_s18, %s20558_s18  }
   0x7   : > { %s13561_s23 = sadd.s32 4294967294, %s17973_s21   ;;  %s18084_s24 = sadd.s32 1, %s17973_s21  }
   0x8   : > { %20549 = sst [smem:[#allocation11_spill]] %s18084_s24  ;;  %s355_s25 = sadd.s32 1, %s17969_s20 }
   0x9   : > { %s352_s26 = ssub.s32 %s17973_s21, %s18084_s24  ;;  %p365_p0 = scmp.ne.s32.totalorder %s17969_s20, %s17965_s19 }
   0xa   : > { %p353_p1 = scmp.eq.s32.totalorder %s352_s26, 0  ;;  %p366_p2 = scmp.eq.s32.totalorder %s18080_s22, 1 }
   0xb   : > { %p371_p3 = scmp.ne.s32.totalorder %s17965_s19, %s17961_s18  ;;  %p372_p4 = scmp.eq.s32.totalorder %s13561_s23, 1 }
   0xc   : > { %s18095_s27 = scalar_select %p353_p1, %s17969_s20, %s355_s25  }
   0xd   : > { %p18097_p5 = por %p366_p2, %p365_p0  ;;  %p18101_p6 = por %p372_p4, %p371_p3 }
   0xe   : > { %20550 = sst [smem:[#allocation12_spill]] %s18095_s27  ;;  %p13564_p7 = scmp.ge.s32.totalorder %s17973_s21, 1 }
   0xf   : > { %p440_p8 = scmp.lt.s32.totalorder %s17973_s21, 3 }
  0x11   : > { %p441_p9 = pnand %p13564_p7, %p440_p8 }
  0x12   : > { %s20553_s1 = sld [smem:[#allocation14_spill]] (!%p441_p9)  ;;  %v17975_v1 = vmov (!%p441_p9), 0   ;;  %p487_p10 = scmp.lt.s32.totalorder (!%p441_p9), %s18080_s22, 1  ;;  %vm782_vm0 = vcmask (!%p441_p9), 556032   ;;  %vm831_vm1 = vcmask (!%p441_p9), 1041408   ;;  %v17501_v57 = vld [vmem:[%s20529_s2] sm:$0xff] (!%p441_p9)  }
  0x13   : > { %444 = sbr.rel (%p441_p9) target bundleno = 3743 (0xe9f), region = 80  ;;  %835 = vmatprep.subr.bf16.mxu1 (!%p441_p9), %v17975_v1  ;;  %s20554_s0 = sld [smem:[#allocation13_spill]] (!%p441_p9)  ;;  %15463 = vmatprep.subr.bf16.mxu0 (!%p441_p9), %v17501_v57  ;;  %v17505_v59 = vld [vmem:[%s20529_s2 + $0x8] sm:$0xff] (!%p441_p9)   ;;  %vm493_vm2 = vcmask (!%p441_p9), 261120   ;;  %vm495_vm3 = vcmask (!%p441_p9), 523264   ;;  %vm17977_vm4 = vmmov (!%p441_p9), 0  }
  0x14   : > { %15464 = vmatpush3.bf16.msra.mxu0 (!%p441_p9), %v17501_v57  ;;  %vm9622_vm5 = vcmask (!%p441_p9), 522240   ;;  %s14821_s16 = sshll.u32 (!%p441_p9), %s18080_s22, 4  ;;  %vm13491_vm6 = vcmask (!%p441_p9), 24576   ;;  %s17978_s24 = smov (!%p441_p9), [#allocation7]  }
  0x15   : > { %15465 = vmatprep.subr.bf16.mxu0 (!%p441_p9), %v17505_v59 }
  0x18   : > { %v17377_v0 = vld [vmem:[%s20553_s1] sm:$0xff] (!%p441_p9)   ;;  %v17378_v2 = vld [vmem:[%s20553_s1 + $0x8] sm:$0xff] (!%p441_p9)   ;;  %v17379_v3 = vld [vmem:[%s20553_s1 + $0x10] sm:$0xff] (!%p441_p9)   ;;  %15466 = vmatpush3.bf16.msra.mxu0 (!%p441_p9), %v17505_v59 }
  0x19   : > { %836 = vmatpush1.bf16.msra.mxu1 (!%p441_p9), %v17377_v0  ;;  %v17380_v4 = vld [vmem:[%s20553_s1 + $0x18] sm:$0xff] (!%p441_p9)   ;;  %v17381_v6 = vld [vmem:[%s20553_s1 + $0x20] sm:$0xff] (!%p441_p9)   ;;  %v17382_v7 = vld [vmem:[%s20553_s1 + $0x28] sm:$0xff] (!%p441_p9)  }
  0x1a   : > { %837 = vmatprep.subr.bf16.mxu1 %v17975_v1  ;;  %s488_s25 = scalar_select %p487_p10, %s18080_s22, 1  ;;  %v17383_v8 = vld [vmem:[%s20553_s1 + $0x30] sm:$0xff]   ;;  %v17384_v9 = vld [vmem:[%s20553_s1 + $0x38] sm:$0xff]   ;;  %v17385_v10 = vld [vmem:[%s20553_s1 + $0x40] sm:$0xff]  }
  0x1b   : > { %v17386_v11 = vld [vmem:[%s20553_s1 + $0x48] sm:$0xff]   ;;  %v17387_v12 = vld [vmem:[%s20553_s1 + $0x50] sm:$0xff]   ;;  %v17388_v13 = vld [vmem:[%s20553_s1 + $0x58] sm:$0xff]  }
  0x1c   : > { %s14824_s30 = sshll.u32 %s488_s25, 10  ;;  %v17389_v14 = vld [vmem:[%s20553_s1 + $0x60] ss:$0 sps:$4 sm:$0x33]   ;;  %v17397_v19 = vld [vmem:[%s20553_s1 + $0x8] sm:$0xff]   ;;  %v17401_v22 = vld [vmem:[%s20553_s1 + $0x10] sm:$0xff]  }
  0x1d   : > { %838 = vmatpush1.bf16.msra.mxu1 %v17378_v2  ;;  %s18127_s23 = scalar_lea.vmem %s20554_s0, %s14824_s30  ;;  %v833_v15 = vsel %vm831_vm1, %v17389_v14, 0  ;;  %v17393_v17 = vld [vmem:[%s20553_s1] sm:$0xff]   ;;  %v17407_v23 = vld [vmem:[%s20553_s1 + $0x18] sm:$0xff]   ;;  %v17416_v27 = vld [vmem:[%s20553_s1 + $0x28] sm:$0xff]   ;;  %s485_s25 = sand.u32 1, %s17965_s19  }
  0x1e   : > { %839 = vmatprep.subr.bf16.mxu1 %v17975_v1  ;;  %v17392_v5 = vld [vmem:[%s18127_s23 + $0x4] ss:$8 sps:$4 sm:$0xff]   ;;  %v17390_v16 = vld [vmem:[%s18127_s23] ss:$8 sps:$4 sm:$0xff]   ;;  %v17394_v18 = vld [vmem:[%s18127_s23 + $0x14] ss:$8 sps:$4 sm:$0xff]  }
  0x1f   : > { %13613 = vmatprep.mubr.msk.bf16.mxu1 %vm782_vm0, %v17392_v5  ;;  %v17396_v20 = vld [vmem:[%s18127_s23 + $0x10] ss:$8 sps:$4 sm:$0xff]   ;;  %v17398_v21 = vld [vmem:[%s18127_s23 + $0x24] ss:$8 sps:$4 sm:$0xff]   ;;  %v17400_v24 = vld [vmem:[%s18127_s23 + $0x20] ss:$8 sps:$4 sm:$0xff]  }
  0x20   : > { %v17402_v25 = vld [vmem:[%s18127_s23 + $0x34] ss:$8 sps:$4 sm:$0xff]   ;;  %v17412_v26 = vld [vmem:[%s20553_s1 + $0x20] sm:$0xff]   ;;  %v17404_v28 = vld [vmem:[%s18127_s23 + $0x30] ss:$8 sps:$4 sm:$0xff]   ;;  %s486_s17 = scalar_lea.vmem [#allocation7], %s485_s25 }
  0x21   : > { %840 = vmatpush1.bf16.msra.mxu1 %v17379_v3  ;;  %v17405_v29 = vld [vmem:[%s18127_s23 + $0x44] ss:$8 sps:$4 sm:$0xff]   ;;  %v17420_v30 = vld [vmem:[%s20553_s1 + $0x30] sm:$0xff]   ;;  %v17424_v31 = vld [vmem:[%s20553_s1 + $0x38] sm:$0xff]   ;;  %s13506_s27 = sshll.u32 %s486_s17, 4  ;;  %s13494_s22 = scalar_lea.sflag [#allocation8], %s485_s25  ;;  %s20487_s27 = int_to_ptr.vmem [resolvable:$true] %s13506_s27 }
  0x22   : > { %841 = vmatprep.subr.bf16.mxu1 %v17975_v1  ;;  %v17408_v32 = vld [vmem:[%s18127_s23 + $0x40] ss:$8 sps:$4 sm:$0xff]   ;;  %v17409_v33 = vld [vmem:[%s18127_s23 + $0x54] ss:$8 sps:$4 sm:$0xff]   ;;  %v17411_v36 = vld [vmem:[%s18127_s23 + $0x50] ss:$8 sps:$4 sm:$0xff]  }
  0x23   : > { %v17431_v34 = vld [vmem:[%s20553_s1 + $0x40] sm:$0xff]   ;;  %v17435_v35 = vld [vmem:[%s20553_s1 + $0x48] sm:$0xff]   ;;  %v17439_v38 = vld [vmem:[%s20553_s1 + $0x50] sm:$0xff]   ;;  %s17911_s20 = scalar_lea.vmem %s20487_s27, 16  ;;  %s17915_s30 = sshll.u32 %s17978_s24, 4  ;;  %s17916_s30 = int_to_ptr.vmem [resolvable:$false] %s17915_s30 }
  0x24   : > { %v17413_v37 = vld [vmem:[%s18127_s23 + $0x64] ss:$8 sps:$4 sm:$0xff]   ;;  %v17443_v39 = vld [vmem:[%s20553_s1 + $0x58] sm:$0xff]   ;;  %v17450_v40 = vld [vmem:[%s20553_s1 + $0x60] ss:$0 sps:$4 sm:$0x33]   ;;  %p17912_p11 = scmp.ne.s32.totalorder %s20487_s27, %s17911_s20  ;;  %p17918_p0 = scmp.lt.s32.totalorder %s20487_s27, %s17916_s30 }
  0x25   : > { %842 = vmatpush1.bf16.msra.mxu1 %v17380_v4  ;;  %v17415_v41 = vld [vmem:[%s18127_s23 + $0x60] ss:$8 sps:$4 sm:$0xff]   ;;  %v17417_v42 = vld [vmem:[%s18127_s23 + $0x74] ss:$8 sps:$4 sm:$0xff]   ;;  %v1392_v43 = vsel %vm831_vm1, %v17450_v40, 0 }
  0x26   : > { %843 = vmatprep.subr.bf16.mxu1 %v17975_v1  ;;  %v17419_v44 = vld [vmem:[%s18127_s23 + $0x70] ss:$8 sps:$4 sm:$0xff]   ;;  %v17421_v45 = vld [vmem:[%s18127_s23 + $0x84] ss:$8 sps:$4 sm:$0xff]   ;;  %v17423_v46 = vld [vmem:[%s18127_s23 + $0x80] ss:$8 sps:$4 sm:$0xff]   ;;  %p17913_p12 = pnand %p17912_p11, %p18097_p5 }
  0x27   : > { %v17425_v47 = vld [vmem:[%s18127_s23 + $0x94] ss:$8 sps:$4 sm:$0xff]   ;;  %v17427_v48 = vld [vmem:[%s18127_s23 + $0x90] ss:$8 sps:$4 sm:$0xff]   ;;  %v17428_v49 = vld [vmem:[%s18127_s23 + $0xa4] ss:$8 sps:$4 sm:$0xff]  }
  0x28   : > { %v17430_v50 = vld [vmem:[%s18127_s23 + $0xa0] ss:$8 sps:$4 sm:$0xff]   ;;  %v17432_v51 = vld [vmem:[%s18127_s23 + $0xb4] ss:$8 sps:$4 sm:$0xff]   ;;  %v17434_v52 = vld [vmem:[%s18127_s23 + $0xb0] ss:$8 sps:$4 sm:$0xff]   ;;  %p17914_p13 = pneg %p17913_p12 }
  0x29   : > { %844 = vmatpush1.bf16.msra.mxu1 %v17381_v6  ;;  %v17436_v53 = vld [vmem:[%s18127_s23 + $0xc4] ss:$8 sps:$4 sm:$0xff]   ;;  %v17438_v54 = vld [vmem:[%s18127_s23 + $0xc0] ss:$8 sps:$4 sm:$0xff]   ;;  %v17440_v55 = vld [vmem:[%s18127_s23 + $0xd4] ss:$8 sps:$4 sm:$0xff]  }
  0x2a   : > { %845 = vmatprep.subr.bf16.mxu1 %v17975_v1  ;;  %v17442_v56 = vld [vmem:[%s18127_s23 + $0xd0] ss:$8 sps:$4 sm:$0xff]   ;;  %v17444_v58 = vld [vmem:[%s18127_s23 + $0xe4] ss:$8 sps:$4 sm:$0xff]   ;;  %v17446_v60 = vld [vmem:[%s18127_s23 + $0xe0] ss:$8 sps:$4 sm:$0xff]  }
  0x2b   : > { %v17447_v61 = vld [vmem:[%s18127_s23 + $0xf4] ss:$8 sps:$4 sm:$0xff]   ;;  %v17449_v62 = vld [vmem:[%s18127_s23 + $0xf0] ss:$8 sps:$4 sm:$0xff]   ;;  %v17453_v63 = vld [vmem:[%s18127_s23 + $0x104] ss:$8 sps:$4 sm:$0xff]  }
  0x2c   : > { %v17451_v0 = vld [vmem:[%s18127_s23 + $0x100] ss:$8 sps:$4 sm:$0xff]   ;;  %v17455_v3 = vld [vmem:[%s18127_s23 + $0x114] ss:$8 sps:$4 sm:$0xff]   ;;  %v17457_v5 = vld [vmem:[%s18127_s23 + $0x110] ss:$8 sps:$4 sm:$0xff]  }
  0x2d   : > { %846 = vmatpush1.bf16.msra.mxu1 %v17382_v7  ;;  %v17454_v2 = vld [vmem:[%s20553_s1] sm:$0xff]   ;;  %v17458_v4 = vld [vmem:[%s20553_s1 + $0x8] sm:$0xff]   ;;  %v17462_v7 = vld [vmem:[%s20553_s1 + $0x10] sm:$0xff]  }
  0x2e   : > { %847 = vmatprep.subr.bf16.mxu1 %v17975_v1  ;;  %v17459_v6 = vld [vmem:[%s18127_s23 + $0x124] ss:$8 sps:$4 sm:$0xff]  }
  0x2f   : > { %v17466_v14 = vld [vmem:[%s18127_s23 + $0x144] ss:$8 sps:$4 sm:$0xff]  }
  0x31   : > { %848 = vmatpush1.bf16.msra.mxu1 %v17383_v8  ;;  %v17468_v8 = vld [vmem:[%s20553_s1 + $0x18] sm:$0xff]  }
  0x32   : > { %849 = vmatprep.subr.bf16.mxu1 %v17975_v1 }
  0x35   : > { %850 = vmatpush1.bf16.msra.mxu1 %v17384_v9  ;;  %v17461_v9 = vld [vmem:[%s18127_s23 + $0x120] ss:$8 sps:$4 sm:$0xff]  }
  0x36   : > { %851 = vmatprep.subr.bf16.mxu1 %v17975_v1 }
  0x39   : > { %852 = vmatpush1.bf16.msra.mxu1 %v17385_v10  ;;  %v17463_v10 = vld [vmem:[%s18127_s23 + $0x134] ss:$8 sps:$4 sm:$0xff]  }
  0x3a   : > { %853 = vmatprep.subr.bf16.mxu1 %v17975_v1 }
  0x3d   : > { %854 = vmatpush1.bf16.msra.mxu1 %v17386_v11  ;;  %v17473_v11 = vld [vmem:[%s20553_s1 + $0x20] sm:$0xff]  }
  0x3e   : > { %855 = vmatprep.subr.bf16.mxu1 %v17975_v1 }
  0x41   : > { %856 = vmatpush1.bf16.msra.mxu1 %v17387_v12  ;;  %v17477_v12 = vld [vmem:[%s20553_s1 + $0x28] sm:$0xff]  }
  0x42   : > { %857 = vmatprep.subr.bf16.mxu1 %v17975_v1 }
  0x45   : > { %858 = vmatpush1.bf16.msra.mxu1 %v17388_v13  ;;  %v17465_v13 = vld [vmem:[%s18127_s23 + $0x130] ss:$8 sps:$4 sm:$0xff]  }
  0x46   : > { %859 = vmatprep.subr.bf16.mxu1 %v17975_v1 }
  0x49   : > { %860 = vmatpush1.bf16.msra.mxu1 %v833_v15  ;;  %v17481_v15 = vld [vmem:[%s20553_s1 + $0x30] sm:$0xff]  }
  0x4a   : > { %1394 = vmatprep.subr.bf16.mxu1 %v17975_v1 }
  0x4c   : > { %868 = vmatmul.mubr.bf16.vlgmr.msra.gmra.mrb[0].mxu1 %v17390_v16  ;;  %v17485_v16 = vld [vmem:[%s20553_s1 + $0x38] sm:$0xff]  }
  0x4d   : > { %1395 = vmatpush1.bf16.msra.mxu1 %v17393_v17  ;;  %13614 = vmatprep.mubr.msk.bf16.mxu1 %vm782_vm0, %v17394_v18  ;;  %v17469_v17 = vld [vmem:[%s18127_s23 + $0x140] ss:$8 sps:$4 sm:$0xff]   ;;  %v17470_v18 = vld [vmem:[%s18127_s23 + $0x154] ss:$8 sps:$4 sm:$0xff]  }
  0x4e   : > { %1396 = vmatprep.subr.bf16.mxu1 %v17975_v1 }
  0x51   : > { %1397 = vmatpush1.bf16.msra.mxu1 %v17397_v19  ;;  %v17492_v19 = vld [vmem:[%s20553_s1 + $0x40] sm:$0xff]  }
  0x52   : > { %1398 = vmatprep.subr.bf16.mxu1 %v17975_v1 }
  0x54   : > { %876 = vmatmul.mubr.bf16.gmra.mrb[4].mxu1 %v17396_v20  ;;  %v17496_v20 = vld [vmem:[%s20553_s1 + $0x48] sm:$0xff]  }
  0x55   : > { %13615 = vmatprep.mubr.msk.bf16.mxu1 %vm782_vm0, %v17398_v21  ;;  %1399 = vmatpush1.bf16.msra.mxu1 %v17401_v22  ;;  %v17472_v21 = vld [vmem:[%s18127_s23 + $0x150] ss:$8 sps:$4 sm:$0xff]   ;;  %v17474_v22 = vld [vmem:[%s18127_s23 + $0x164] ss:$8 sps:$4 sm:$0xff]  }
  0x56   : > { %1400 = vmatprep.subr.bf16.mxu1 %v17975_v1 }
  0x59   : > { %1401 = vmatpush1.bf16.msra.mxu1 %v17407_v23  ;;  %v17500_v23 = vld [vmem:[%s20553_s1 + $0x50] sm:$0xff]  }
  0x5a   : > { %1402 = vmatprep.subr.bf16.mxu1 %v17975_v1 }
  0x5c   : > { %884 = vmatmul.mubr.bf16.gmra.mrb[8].mxu1 %v17400_v24  ;;  %v17506_v24 = vld [vmem:[%s20553_s1 + $0x58] sm:$0xff]  }
  0x5d   : > { %13616 = vmatprep.mubr.msk.bf16.mxu1 %vm782_vm0, %v17402_v25  ;;  %1403 = vmatpush1.bf16.msra.mxu1 %v17412_v26  ;;  %v17476_v25 = vld [vmem:[%s18127_s23 + $0x160] ss:$8 sps:$4 sm:$0xff]  }
  0x5e   : > { %1404 = vmatprep.subr.bf16.mxu1 %v17975_v1  ;;  %v17513_v26 = vld [vmem:[%s20553_s1 + $0x60] ss:$0 sps:$4 sm:$0x33]  }
  0x61   : > { %1405 = vmatpush1.bf16.msra.mxu1 %v17416_v27  ;;  %v18349_v27 = vld [vmem:[%s20529_s2 + $0x20] sm:$0xff]  }
  0x62   : > { %1406 = vmatprep.subr.bf16.mxu1 %v17975_v1  ;;  %15495 = vmatprep.subr.bf16.mxu0 %v18349_v27 }
  0x64   : > { %892 = vmatmul.mubr.bf16.gmra.mrb[12].mxu1 %v17404_v28  ;;  %v17478_v28 = vld [vmem:[%s18127_s23 + $0x174] ss:$8 sps:$4 sm:$0xff]  }
  0x65   : > { %13617 = vmatprep.mubr.msk.bf16.mxu1 %vm782_vm0, %v17405_v29  ;;  %1407 = vmatpush1.bf16.msra.mxu1 %v17420_v30  ;;  %v1951_v29 = vsel %vm831_vm1, %v17513_v26, 0  ;;  %v17480_v30 = vld [vmem:[%s18127_s23 + $0x170] ss:$8 sps:$4 sm:$0xff]  }
  0x66   : > { %1408 = vmatprep.subr.bf16.mxu1 %v17975_v1 }
  0x69   : > { %1409 = vmatpush1.bf16.msra.mxu1 %v17424_v31  ;;  %v17482_v31 = vld [vmem:[%s18127_s23 + $0x184] ss:$8 sps:$4 sm:$0xff]  }
  0x6a   : > { %1410 = vmatprep.subr.bf16.mxu1 %v17975_v1 }
  0x6c   : > { %900 = vmatmul.mubr.bf16.gmra.mrb[16].mxu1 %v17408_v32  ;;  %v17484_v32 = vld [vmem:[%s18127_s23 + $0x180] ss:$8 sps:$4 sm:$0xff]  }
  0x6d   : > { %13618 = vmatprep.mubr.msk.bf16.mxu1 %vm782_vm0, %v17409_v33  ;;  %1411 = vmatpush1.bf16.msra.mxu1 %v17431_v34  ;;  %v17486_v33 = vld [vmem:[%s18127_s23 + $0x194] ss:$8 sps:$4 sm:$0xff]   ;;  %v17488_v34 = vld [vmem:[%s18127_s23 + $0x190] ss:$8 sps:$4 sm:$0xff]  }
  0x6e   : > { %1412 = vmatprep.subr.bf16.mxu1 %v17975_v1 }
  0x71   : > { %1413 = vmatpush1.bf16.msra.mxu1 %v17435_v35  ;;  %v17489_v35 = vld [vmem:[%s18127_s23 + $0x1a4] ss:$8 sps:$4 sm:$0xff]  }
  0x72   : > { %1414 = vmatprep.subr.bf16.mxu1 %v17975_v1 }
  0x74   : > { %908 = vmatmul.mubr.bf16.gmra.mrb[20].mxu1 %v17411_v36  ;;  %v17491_v36 = vld [vmem:[%s18127_s23 + $0x1a0] ss:$8 sps:$4 sm:$0xff]  }
  0x75   : > { %13619 = vmatprep.mubr.msk.bf16.mxu1 %vm782_vm0, %v17413_v37  ;;  %1415 = vmatpush1.bf16.msra.mxu1 %v17439_v38  ;;  %v17493_v37 = vld [vmem:[%s18127_s23 + $0x1b4] ss:$8 sps:$4 sm:$0xff]   ;;  %v18371_v38 = vld [vmem:[%s20535_s8] ss:$0 sm:$0xff] }
  0x76   : > { %1416 = vmatprep.subr.bf16.mxu1 %v17975_v1 }
  0x79   : > { %1417 = vmatpush1.bf16.msra.mxu1 %v17443_v39  ;;  %v17495_v39 = vld [vmem:[%s18127_s23 + $0x1b0] ss:$8 sps:$4 sm:$0xff]  }
  0x7a   : > { %1418 = vmatprep.subr.bf16.mxu1 %v17975_v1 }
  0x7c   : > { %916 = vmatmul.mubr.bf16.gmra.mrb[24].mxu1 %v17415_v41 }
  0x7d   : > { %13620 = vmatprep.mubr.msk.bf16.mxu1 %vm782_vm0, %v17417_v42  ;;  %1419 = vmatpush1.bf16.msra.mxu1 %v1392_v43 }
  0x7e   : > { %1953 = vmatprep.subr.bf16.mxu1 %v17975_v1 }
  0x84   : > { %924 = vmatmul.mubr.bf16.gmra.mrb[28].mxu1 %v17419_v44  ;;  %v17497_v44 = vld [vmem:[%s18127_s23 + $0x1c4] ss:$8 sps:$4 sm:$0xff]  }
  0x85   : > { %13621 = vmatprep.mubr.msk.bf16.mxu1 %vm782_vm0, %v17421_v45 }
  0x8c   : > { %932 = vmatmul.mubr.bf16.gmra.mrb[32].mxu1 %v17423_v46 }
  0x8d   : > { %13622 = vmatprep.mubr.msk.bf16.mxu1 %vm782_vm0, %v17425_v47 }
  0x94   : > { %940 = vmatmul.mubr.bf16.gmra.mrb[36].mxu1 %v17427_v48 }
  0x95   : > { %13623 = vmatprep.mubr.msk.bf16.mxu1 %vm782_vm0, %v17428_v49 }
  0x9c   : > { %948 = vmatmul.mubr.bf16.gmra.mrb[40].mxu1 %v17430_v50 }
  0x9d   : > { %13624 = vmatprep.mubr.msk.bf16.mxu1 %vm782_vm0, %v17432_v51 }
  0xa4   : > { %956 = vmatmul.mubr.bf16.gmra.mrb[44].mxu1 %v17434_v52  ;;  %v17499_v52 = vld [vmem:[%s18127_s23 + $0x1c0] ss:$8 sps:$4 sm:$0xff]  }
  0xa5   : > { %13625 = vmatprep.mubr.msk.bf16.mxu1 %vm782_vm0, %v17436_v53 }
  0xac   : > { %964 = vmatmul.mubr.bf16.gmra.mrb[48].mxu1 %v17438_v54  ;;  %v17502_v54 = vld [vmem:[%s18127_s23 + $0x1d4] ss:$8 sps:$4 sm:$0xff]  }
  0xad   : > { %13626 = vmatprep.mubr.msk.bf16.mxu1 %vm782_vm0, %v17440_v55 }
  0xb4   : > { %972 = vmatmul.mubr.bf16.gmra.mrb[52].mxu1 %v17442_v56 }
  0xb5   : > { %13627 = vmatprep.mubr.msk.bf16.mxu1 %vm782_vm0, %v17444_v58 }
  0xbc   : > { %980 = vmatmul.mubr.bf16.gmra.mrb[56].mxu1 %v17446_v60 }
  0xbd   : > { %13628 = vmatprep.mubr.msk.bf16.mxu1 %vm782_vm0, %v17447_v61 }
  0xc4   : > { %988 = vmatmul.mubr.bf16.gmra.mrb[60].mxu1 %v17449_v62 }
  0xc5   : > { %13675 = vmatprep.mubr.msk.bf16.mxu1 %vm782_vm0, %v17453_v63 }
  0xcc   : > { %1427 = vmatmul.mubr.bf16.vlgmr.msra.gmra.mrb[64].mxu1 %v17451_v0 }
  0xcd   : > { %1954 = vmatpush1.bf16.msra.mxu1 %v17454_v2  ;;  %13676 = vmatprep.mubr.msk.bf16.mxu1 %vm782_vm0, %v17455_v3  ;;  %v17504_v2 = vld [vmem:[%s18127_s23 + $0x1d0] ss:$8 sps:$4 sm:$0xff]  }
  0xce   : > { %1955 = vmatprep.subr.bf16.mxu1 %v17975_v1 }
  0xd1   : > { %1956 = vmatpush1.bf16.msra.mxu1 %v17458_v4  ;;  %v17507_v4 = vld [vmem:[%s18127_s23 + $0x1e4] ss:$8 sps:$4 sm:$0xff]  }
  0xd2   : > { %1957 = vmatprep.subr.bf16.mxu1 %v17975_v1 }
  0xd4   : > { %1435 = vmatmul.mubr.bf16.gmra.mrb[68].mxu1 %v17457_v5 }
  0xd5   : > { %13677 = vmatprep.mubr.msk.bf16.mxu1 %vm782_vm0, %v17459_v6  ;;  %1958 = vmatpush1.bf16.msra.mxu1 %v17462_v7 }
  0xd6   : > { %1959 = vmatprep.subr.bf16.mxu1 %v17975_v1 }
  0xd9   : > { %1960 = vmatpush1.bf16.msra.mxu1 %v17468_v8 }
  0xda   : > { %1961 = vmatprep.subr.bf16.mxu1 %v17975_v1 }
  0xdc   : > { %1443 = vmatmul.mubr.bf16.gmra.mrb[72].mxu1 %v17461_v9 }
  0xdd   : > { %13678 = vmatprep.mubr.msk.bf16.mxu1 %vm782_vm0, %v17463_v10  ;;  %1962 = vmatpush1.bf16.msra.mxu1 %v17473_v11 }
  0xde   : > { %1963 = vmatprep.subr.bf16.mxu1 %v17975_v1 }
  0xe1   : > { %1964 = vmatpush1.bf16.msra.mxu1 %v17477_v12  ;;  %v17541_v12 = vld [vmem:[%s20529_s2 + $0x28] sm:$0xff]  }
  0xe2   : > { %1965 = vmatprep.subr.bf16.mxu1 %v17975_v1 }
  0xe4   : > { %1451 = vmatmul.mubr.bf16.gmra.mrb[76].mxu1 %v17465_v13 }
  0xe5   : > { %13679 = vmatprep.mubr.msk.bf16.mxu1 %vm782_vm0, %v17466_v14  ;;  %1966 = vmatpush1.bf16.msra.mxu1 %v17481_v15 }
  0xe6   : > { %1967 = vmatprep.subr.bf16.mxu1 %v17975_v1 }
  0xe9   : > { %1968 = vmatpush1.bf16.msra.mxu1 %v17485_v16  ;;  %v17509_v16 = vld [vmem:[%s18127_s23 + $0x1e0] ss:$8 sps:$4 sm:$0xff]  }
  0xea   : > { %1969 = vmatprep.subr.bf16.mxu1 %v17975_v1 }
  0xec   : > { %1459 = vmatmul.mubr.bf16.gmra.mrb[80].mxu1 %v17469_v17 }
  0xed   : > { %13680 = vmatprep.mubr.msk.bf16.mxu1 %vm782_vm0, %v17470_v18  ;;  %1970 = vmatpush1.bf16.msra.mxu1 %v17492_v19  ;;  %v17510_v18 = vld [vmem:[%s18127_s23 + $0x1f4] ss:$8 sps:$4 sm:$0xff]  }
  0xee   : > { %1971 = vmatprep.subr.bf16.mxu1 %v17975_v1 }
  0xf1   : > { %1972 = vmatpush1.bf16.msra.mxu1 %v17496_v20 }
  0xf2   : > { %1973 = vmatprep.subr.bf16.mxu1 %v17975_v1 }
  0xf4   : > { %1467 = vmatmul.mubr.bf16.gmra.mrb[84].mxu1 %v17472_v21 }
  0xf5   : > { %13681 = vmatprep.mubr.msk.bf16.mxu1 %vm782_vm0, %v17474_v22  ;;  %1974 = vmatpush1.bf16.msra.mxu1 %v17500_v23  ;;  %v18408_v22 = vld [vmem:[%s20529_s2 + $0x30] sm:$0xff]  }
  0xf6   : > { %1975 = vmatprep.subr.bf16.mxu1 %v17975_v1 }
  0xf9   : > { %1976 = vmatpush1.bf16.msra.mxu1 %v17506_v24 }
  0xfa   : > { %1977 = vmatprep.subr.bf16.mxu1 %v17975_v1 }
  0xfc   : > { %1475 = vmatmul.mubr.bf16.gmra.mrb[88].mxu1 %v17476_v25 }
  0xfd   : > { %13682 = vmatprep.mubr.msk.bf16.mxu1 %vm782_vm0, %v17478_v28  ;;  %1978 = vmatpush1.bf16.msra.mxu1 %v1951_v29 }
  0xfe   : > { %2512 = vmatprep.subr.bf16.mxu1 %v17975_v1 }
 0x104   : > { %1483 = vmatmul.mubr.bf16.gmra.mrb[92].mxu1 %v17480_v30  ;;  %v17512_v30 = vld [vmem:[%s18127_s23 + $0x1f0] ss:$8 sps:$4 sm:$0xff]  }
 0x105   : > { %13683 = vmatprep.mubr.msk.bf16.mxu1 %vm782_vm0, %v17482_v31 }
 0x10c   : > { %1491 = vmatmul.mubr.bf16.gmra.mrb[96].mxu1 %v17484_v32  ;;  %v17516_v32 = vld [vmem:[%s18127_s23 + $0x204] ss:$8 sps:$4 sm:$0xff]  }
 0x10d   : > { %13684 = vmatprep.mubr.msk.bf16.mxu1 %vm782_vm0, %v17486_v33 }
 0x114   : > { %1499 = vmatmul.mubr.bf16.gmra.mrb[100].mxu1 %v17488_v34 }
 0x115   : > { %13685 = vmatprep.mubr.msk.bf16.mxu1 %vm782_vm0, %v17489_v35 }
 0x11c   : > { %1507 = vmatmul.mubr.bf16.gmra.mrb[104].mxu1 %v17491_v36 }
 0x11d   : > { %13686 = vmatprep.mubr.msk.bf16.mxu1 %vm782_vm0, %v17493_v37 }
 0x11f   : > { %v869_v40 = vpop.f32.mrb[0].mxu1 }
 0x120   : > { %v870_v41 = vadd.f32 %v18371_v38, %v869_v40  ;;  %v871_v42 = vpop.f32.mrb[1].mxu1 }
 0x121   : > { %v872_v43 = vpop.f32.mrb[2].mxu1 }
 0x122   : > { %v996_v45 = vmax.f32 %v870_v41, 0.0  ;;  %v873_v46 = vadd.f32 %v18371_v38, %v872_v43  ;;  %v874_v47 = vpop.f32.mrb[3].mxu1 }
 0x123   : > { %v17518_v47 = vld [vmem:[%s18127_s23 + $0x214] ss:$8 sps:$4 sm:$0xff]  }
 0x124   : > { %1028 = vst.msk [vmem:[#allocation2] sm:$0xff] %vm493_vm2, %v996_v45  ;;  %v997_v48 = vmax.f32 %v873_v46, 0.0  ;;  %1515 = vmatmul.mubr.bf16.gmra.mrb[108].mxu1 %v17495_v39  ;;  %v17517_v46 = vld [vmem:[%s20553_s1] sm:$0xff]  }
 0x125   : > { %13687 = vmatprep.mubr.msk.bf16.mxu1 %vm782_vm0, %v17497_v44  ;;  %v17514_v44 = vld [vmem:[%s18127_s23 + $0x200] ss:$8 sps:$4 sm:$0xff]  }
 0x126   : > { %1029 = vst.msk [vmem:[#allocation2 + $0x8] sm:$0xff] %vm493_vm2, %v997_v48 }
 0x127   : > { %v877_v49 = vpop.f32.mrb[4].mxu1 }
 0x128   : > { %v878_v50 = vadd.f32 %v18371_v38, %v877_v49  ;;  %v879_v51 = vpop.f32.mrb[5].mxu1 }
 0x129   : > { %v880_v53 = vpop.f32.mrb[6].mxu1 }
 0x12a   : > { %v998_v55 = vmax.f32 %v878_v50, 0.0  ;;  %v881_v56 = vadd.f32 %v18371_v38, %v880_v53  ;;  %v882_v57 = vpop.f32.mrb[7].mxu1 }
 0x12b   : > { %v2737_v59 = vld [vmem:[#allocation2] sm:$0xff] }
 0x12c   : > { %1030 = vst.msk [vmem:[#allocation2 + $0x10] sm:$0xff] %vm493_vm2, %v998_v55  ;;  %v999_v58 = vmax.f32 %v881_v56, 0.0  ;;  %1523 = vmatmul.mubr.bf16.gmra.mrb[112].mxu1 %v17499_v52 }
 0x12d   : > { %v2738_v60 = vld [vmem:[#allocation2 + $0x8] sm:$0xff]  ;;  %13688 = vmatprep.mubr.msk.bf16.mxu1 %vm782_vm0, %v17502_v54 }
 0x12e   : > { %1031 = vst.msk [vmem:[#allocation2 + $0x18] sm:$0xff] %vm493_vm2, %v999_v58  ;;  %v2765_v61 = vpack.c.bf16 %v2738_v60, %v2737_v59  ;;  %v17521_v54 = vld [vmem:[%s20553_s1 + $0x8] sm:$0xff]   ;;  %v17520_v59 = vld [vmem:[%s18127_s23 + $0x210] ss:$8 sps:$4 sm:$0xff]  }
 0x12f   : > { %v885_v62 = vpop.f32.mrb[8].mxu1 }
 0x130   : > { %v886_v63 = vadd.f32 %v18371_v38, %v885_v62  ;;  %v887_v0 = vpop.f32.mrb[9].mxu1  ;;  %15467 = vmatprep.mubr.msk.bf16.mxu0 %vm493_vm2, %v2765_v61  ;;  %v17522_v61 = vld [vmem:[%s18127_s23 + $0x224] ss:$8 sps:$4 sm:$0xff]   ;;  %v17525_v62 = vld [vmem:[%s20553_s1 + $0x10] sm:$0xff]  }
 0x131   : > { %v888_v3 = vpop.f32.mrb[10].mxu1 }
 0x132   : > { %v1000_v5 = vmax.f32 %v886_v63, 0.0  ;;  %v889_v6 = vadd.f32 %v18371_v38, %v888_v3  ;;  %v890_v7 = vpop.f32.mrb[11].mxu1 }
 0x133   : > { %v2739_v9 = vld [vmem:[#allocation2 + $0x10] sm:$0xff] }
 0x134   : > { %1032 = vst.msk [vmem:[#allocation2 + $0x20] sm:$0xff] %vm493_vm2, %v1000_v5  ;;  %v1001_v8 = vmax.f32 %v889_v6, 0.0  ;;  %1531 = vmatmul.mubr.bf16.gmra.mrb[116].mxu1 %v17504_v2  ;;  %v17531_v6 = vld [vmem:[%s20553_s1 + $0x18] sm:$0xff]  }
 0x135   : > { %v2740_v10 = vld [vmem:[#allocation2 + $0x18] sm:$0xff]  ;;  %13689 = vmatprep.mubr.msk.bf16.mxu1 %vm782_vm0, %v17507_v4 }
 0x136   : > { %1033 = vst.msk [vmem:[#allocation2 + $0x28] sm:$0xff] %vm493_vm2, %v1001_v8  ;;  %v2766_v11 = vpack.c.bf16 %v2740_v10, %v2739_v9 }
 0x137   : > { %v893_v13 = vpop.f32.mrb[12].mxu1 }
 0x138   : > { %v894_v14 = vadd.f32 %v18371_v38, %v893_v13  ;;  %v895_v15 = vpop.f32.mrb[13].mxu1  ;;  %15468 = vmatmul.mubr.msk.bf16.vlgmr.msra.gmra.mrb[0].mxu0 %vm493_vm2, %v2766_v11  ;;  %v17524_v11 = vld [vmem:[%s18127_s23 + $0x220] ss:$8 sps:$4 sm:$0xff]   ;;  %v17526_v13 = vld [vmem:[%s18127_s23 + $0x234] ss:$8 sps:$4 sm:$0xff]  }
 0x139   : > { %v896_v17 = vpop.f32.mrb[14].mxu1  ;;  %15496 = vmatpush3.bf16.msra.mxu0 %v18349_v27 }
 0x13a   : > { %v1002_v19 = vmax.f32 %v894_v14, 0.0  ;;  %v897_v20 = vadd.f32 %v18371_v38, %v896_v17  ;;  %v898_v21 = vpop.f32.mrb[15].mxu1  ;;  %15497 = vmatprep.subr.bf16.mxu0 %v17541_v12  ;;  %v17536_v14 = vld [vmem:[%s20553_s1 + $0x20] sm:$0xff]  }
 0x13b   : > { %v2741_v24 = vld [vmem:[#allocation2 + $0x20] sm:$0xff]  ;;  %v17542_v21 = vld [vmem:[%s20553_s1 + $0x28] sm:$0xff]  }
 0x13c   : > { %1034 = vst.msk [vmem:[#allocation2 + $0x30] sm:$0xff] %vm493_vm2, %v1002_v19  ;;  %v1003_v23 = vmax.f32 %v897_v20, 0.0  ;;  %1539 = vmatmul.mubr.bf16.gmra.mrb[120].mxu1 %v17509_v16 }
 0x13d   : > { %v2742_v25 = vld [vmem:[#allocation2 + $0x28] sm:$0xff]  ;;  %13690 = vmatprep.mubr.msk.bf16.mxu1 %vm782_vm0, %v17510_v18  ;;  %15498 = vmatpush3.bf16.msra.mxu0 %v17541_v12 }
 0x13e   : > { %1035 = vst.msk [vmem:[#allocation2 + $0x38] sm:$0xff] %vm493_vm2, %v1003_v23  ;;  %v2767_v26 = vpack.c.bf16 %v2742_v25, %v2741_v24  ;;  %15527 = vmatprep.subr.bf16.mxu0 %v18408_v22 }
 0x13f   : > { %v901_v27 = vpop.f32.mrb[16].mxu1 }
 0x140   : > { %v902_v28 = vadd.f32 %v18371_v38, %v901_v27  ;;  %v903_v29 = vpop.f32.mrb[17].mxu1  ;;  %15471 = vmatprep.mubr.msk.bf16.mxu0 %vm493_vm2, %v2767_v26  ;;  %v17528_v27 = vld [vmem:[%s18127_s23 + $0x230] ss:$8 sps:$4 sm:$0xff]  }
 0x141   : > { %v904_v31 = vpop.f32.mrb[18].mxu1  ;;  %v17529_v29 = vld [vmem:[%s18127_s23 + $0x244] ss:$8 sps:$4 sm:$0xff]  }
 0x142   : > { %v1004_v33 = vmax.f32 %v902_v28, 0.0  ;;  %v905_v34 = vadd.f32 %v18371_v38, %v904_v31  ;;  %v906_v35 = vpop.f32.mrb[19].mxu1 }
 0x143   : > { %v2743_v37 = vld [vmem:[#allocation2 + $0x30] sm:$0xff] }
 0x144   : > { %1036 = vst.msk [vmem:[#allocation2 + $0x40] sm:$0xff] %vm493_vm2, %v1004_v33  ;;  %v1005_v36 = vmax.f32 %v905_v34, 0.0  ;;  %1547 = vmatmul.mubr.bf16.gmra.mrb[124].mxu1 %v17512_v30  ;;  %v17546_v30 = vld [vmem:[%s20553_s1 + $0x30] sm:$0xff]  }
 0x145   : > { %v2744_v39 = vld [vmem:[#allocation2 + $0x38] sm:$0xff]  ;;  %13737 = vmatprep.mubr.msk.bf16.mxu1 %vm782_vm0, %v17516_v32 }
 0x146   : > { %1037 = vst.msk [vmem:[#allocation2 + $0x48] sm:$0xff] %vm493_vm2, %v1005_v36  ;;  %v2768_v40 = vpack.c.bf16 %v2744_v39, %v2743_v37  ;;  %v17550_v37 = vld [vmem:[%s20553_s1 + $0x38] sm:$0xff]  }
 0x147   : > { %v909_v41 = vpop.f32.mrb[20].mxu1 }
 0x148   : > { %v910_v42 = vadd.f32 %v18371_v38, %v909_v41  ;;  %v911_v43 = vpop.f32.mrb[21].mxu1  ;;  %15472 = vmatmul.mubr.msk.bf16.gmra.mrb[4].mxu0 %vm493_vm2, %v2768_v40 }
 0x149   : > { %v912_v45 = vpop.f32.mrb[22].mxu1  ;;  %v17532_v43 = vld [vmem:[%s18127_s23 + $0x240] ss:$8 sps:$4 sm:$0xff]  }
 0x14a   : > { %v1006_v48 = vmax.f32 %v910_v42, 0.0  ;;  %v913_v49 = vadd.f32 %v18371_v38, %v912_v45  ;;  %v914_v50 = vpop.f32.mrb[23].mxu1  ;;  %v17533_v45 = vld [vmem:[%s18127_s23 + $0x254] ss:$8 sps:$4 sm:$0xff]  }
 0x14b   : > { %v2745_v52 = vld [vmem:[#allocation2 + $0x40] sm:$0xff] }
 0x14c   : > { %1038 = vst.msk [vmem:[#allocation2 + $0x50] sm:$0xff] %vm493_vm2, %v1006_v48  ;;  %v1007_v51 = vmax.f32 %v913_v49, 0.0  ;;  %1986 = vmatmul.mubr.bf16.vlgmr.msra.gmra.mrb[128].mxu1 %v17514_v44 }
 0x14d   : > { %2513 = vmatpush1.bf16.msra.mxu1 %v17517_v46  ;;  %v2746_v53 = vld [vmem:[#allocation2 + $0x48] sm:$0xff]  ;;  %13738 = vmatprep.mubr.msk.bf16.mxu1 %vm782_vm0, %v17518_v47  ;;  %v17557_v46 = vld [vmem:[%s20553_s1 + $0x40] sm:$0xff]  }
 0x14e   : > { %1039 = vst.msk [vmem:[#allocation2 + $0x58] sm:$0xff] %vm493_vm2, %v1007_v51  ;;  %v2769_v55 = vpack.c.bf16 %v2746_v53, %v2745_v52  ;;  %2514 = vmatprep.subr.bf16.mxu1 %v17975_v1  ;;  %v17561_v53 = vld [vmem:[%s20553_s1 + $0x48] sm:$0xff]  }
 0x14f   : > { %v917_v56 = vpop.f32.mrb[24].mxu1 }
 0x150   : > { %v918_v57 = vadd.f32 %v18371_v38, %v917_v56  ;;  %v919_v58 = vpop.f32.mrb[25].mxu1  ;;  %15475 = vmatprep.mubr.msk.bf16.mxu0 %vm493_vm2, %v2769_v55 }
 0x151   : > { %v920_v60 = vpop.f32.mrb[26].mxu1  ;;  %2515 = vmatpush1.bf16.msra.mxu1 %v17521_v54  ;;  %v17535_v58 = vld [vmem:[%s18127_s23 + $0x250] ss:$8 sps:$4 sm:$0xff]  }
 0x152   : > { %v1008_v63 = vmax.f32 %v918_v57, 0.0  ;;  %v921_v0 = vadd.f32 %v18371_v38, %v920_v60  ;;  %v922_v2 = vpop.f32.mrb[27].mxu1  ;;  %2516 = vmatprep.subr.bf16.mxu1 %v17975_v1  ;;  %v17538_v60 = vld [vmem:[%s18127_s23 + $0x264] ss:$8 sps:$4 sm:$0xff]  }
 0x153   : > { %v2747_v4 = vld [vmem:[#allocation2 + $0x50] sm:$0xff] }
 0x154   : > { %1040 = vst.msk [vmem:[#allocation2 + $0x60] sm:$0xff] %vm493_vm2, %v1008_v63  ;;  %v1009_v3 = vmax.f32 %v921_v0, 0.0  ;;  %1994 = vmatmul.mubr.bf16.gmra.mrb[132].mxu1 %v17520_v59 }
 0x155   : > { %v2748_v5 = vld [vmem:[#allocation2 + $0x58] sm:$0xff]  ;;  %13739 = vmatprep.mubr.msk.bf16.mxu1 %vm782_vm0, %v17522_v61  ;;  %2517 = vmatpush1.bf16.msra.mxu1 %v17525_v62  ;;  %v17565_v61 = vld [vmem:[%s20553_s1 + $0x50] sm:$0xff]  }
 0x156   : > { %1041 = vst.msk [vmem:[#allocation2 + $0x68] sm:$0xff] %vm493_vm2, %v1009_v3  ;;  %v2770_v7 = vpack.c.bf16 %v2748_v5, %v2747_v4  ;;  %2518 = vmatprep.subr.bf16.mxu1 %v17975_v1  ;;  %v3229_v3 = vld [vmem:[#allocation2 + $0x9] sm:$0xff] }
 0x157   : > { %v925_v8 = vpop.f32.mrb[28].mxu1 }
 0x158   : > { %v926_v9 = vadd.f32 %v18371_v38, %v925_v8  ;;  %v927_v10 = vpop.f32.mrb[29].mxu1  ;;  %15476 = vmatmul.mubr.msk.bf16.gmra.mrb[8].mxu0 %vm493_vm2, %v2770_v7  ;;  %v3228_v8 = vld [vmem:[#allocation2 + $0x1] sm:$0xff] }
 0x159   : > { %v928_v12 = vpop.f32.mrb[30].mxu1  ;;  %2519 = vmatpush1.bf16.msra.mxu1 %v17531_v6  ;;  %v17570_v6 = vld [vmem:[%s20553_s1 + $0x58] sm:$0xff]  }
 0x15a   : > { %v1010_v15 = vmax.f32 %v926_v9, 0.0  ;;  %v929_v16 = vadd.f32 %v18371_v38, %v928_v12  ;;  %v930_v17 = vpop.f32.mrb[31].mxu1  ;;  %2520 = vmatprep.subr.bf16.mxu1 %v17975_v1  ;;  %v17578_v9 = vld [vmem:[%s20553_s1 + $0x60] ss:$0 sps:$4 sm:$0x33]   ;;  %s17917_s1 = scalar_lea.vmem %s17916_s30, 32 }
 0x15b   : > { %v2749_v19 = vld [vmem:[#allocation2 + $0x60] sm:$0xff]  ;;  %p17919_p1 = scmp.lt.s32.totalorder %s17917_s1, %s17911_s20 }
 0x15c   : > { %1042 = vst.msk [vmem:[#allocation2 + $0x70] sm:$0xff] %vm493_vm2, %v1010_v15  ;;  %v1011_v18 = vmax.f32 %v929_v16, 0.0  ;;  %2002 = vmatmul.mubr.bf16.gmra.mrb[136].mxu1 %v17524_v11  ;;  %v3256_v11 = vpack.c.bf16 %v3229_v3, %v3228_v8  ;;  %v17543_v16 = vld [vmem:[%s18127_s23 + $0x274] ss:$8 sps:$4 sm:$0xff]  }
 0x15d   : > { %v2750_v20 = vld [vmem:[#allocation2 + $0x68] sm:$0xff]  ;;  %13740 = vmatprep.mubr.msk.bf16.mxu1 %vm782_vm0, %v17526_v13  ;;  %2521 = vmatpush1.bf16.msra.mxu1 %v17536_v14  ;;  %p17920_p2 = por %p17919_p1, %p17918_p0 }
 0x15e   : > { %1043 = vst.msk [vmem:[#allocation2 + $0x78] sm:$0xff] %vm493_vm2, %v1011_v18  ;;  %v2771_v23 = vpack.c.bf16 %v2750_v20, %v2749_v19  ;;  %2522 = vmatprep.subr.bf16.mxu1 %v17975_v1  ;;  %v17540_v14 = vld [vmem:[%s18127_s23 + $0x260] ss:$8 sps:$4 sm:$0xff]   ;;  %v2510_v20 = vsel %vm831_vm1, %v17578_v9, 0 }
 0x15f   : > { %v933_v24 = vpop.f32.mrb[32].mxu1  ;;  %p17921_p3 = pnand %p17920_p2, %p17914_p13 }
 0x160   : > { %v934_v25 = vadd.f32 %v18371_v38, %v933_v24  ;;  %v935_v26 = vpop.f32.mrb[33].mxu1  ;;  %15479 = vmatprep.mubr.msk.bf16.mxu0 %vm493_vm2, %v2771_v23  ;;  %v3233_v24 = vld [vmem:[#allocation2 + $0x29] sm:$0xff] }
 0x161   : > { %v936_v28 = vpop.f32.mrb[34].mxu1  ;;  %2523 = vmatpush1.bf16.msra.mxu1 %v17542_v21  ;;  %v3231_v21 = vld [vmem:[#allocation2 + $0x19] sm:$0xff] }
 0x162   : > { %v1012_v31 = vmax.f32 %v934_v25, 0.0  ;;  %v937_v32 = vadd.f32 %v18371_v38, %v936_v28  ;;  %v938_v33 = vpop.f32.mrb[35].mxu1  ;;  %2524 = vmatprep.subr.bf16.mxu1 %v17975_v1  ;;  %v3230_v25 = vld [vmem:[#allocation2 + $0x11] sm:$0xff] }
 0x163   : > { %v2751_v35 = vld [vmem:[#allocation2 + $0x70] sm:$0xff]  ;;  %v3257_v26 = vpack.c.bf16 %v3231_v21, %v3230_v25  ;;  %v17571_v28 = vld [vmem:[%s20529_s2 + $0x38] sm:$0xff]  }
 0x164   : > { %1044 = vst.msk [vmem:[#allocation2 + $0x80] sm:$0xff] %vm493_vm2, %v1012_v31  ;;  %v1013_v34 = vmax.f32 %v937_v32, 0.0  ;;  %2010 = vmatmul.mubr.bf16.gmra.mrb[140].mxu1 %v17528_v27  ;;  %v3232_v27 = vld [vmem:[#allocation2 + $0x21] sm:$0xff]  ;;  %v17545_v33 = vld [vmem:[%s18127_s23 + $0x270] ss:$8 sps:$4 sm:$0xff]  }
 0x165   : > { %v2752_v36 = vld [vmem:[#allocation2 + $0x78] sm:$0xff]  ;;  %13741 = vmatprep.mubr.msk.bf16.mxu1 %vm782_vm0, %v17529_v29  ;;  %2525 = vmatpush1.bf16.msra.mxu1 %v17546_v30  ;;  %v3258_v30 = vpack.c.bf16 %v3233_v24, %v3232_v27 }
 0x166   : > { %1045 = vst.msk [vmem:[#allocation2 + $0x88] sm:$0xff] %vm493_vm2, %v1013_v34  ;;  %v2772_v39 = vpack.c.bf16 %v2752_v36, %v2751_v35  ;;  %2526 = vmatprep.subr.bf16.mxu1 %v17975_v1  ;;  %v17547_v35 = vld [vmem:[%s18127_s23 + $0x284] ss:$8 sps:$4 sm:$0xff]  }
 0x167   : > { %v941_v40 = vpop.f32.mrb[36].mxu1 }
 0x168   : > { %v942_v41 = vadd.f32 %v18371_v38, %v941_v40  ;;  %v943_v42 = vpop.f32.mrb[37].mxu1  ;;  %15480 = vmatmul.mubr.msk.bf16.gmra.mrb[12].mxu0 %vm493_vm2, %v2772_v39  ;;  %v3235_v40 = vld [vmem:[#allocation2 + $0x39] sm:$0xff] }
 0x169   : > { %v944_v44 = vpop.f32.mrb[38].mxu1  ;;  %2527 = vmatpush1.bf16.msra.mxu1 %v17550_v37  ;;  %v3237_v42 = vld [vmem:[#allocation2 + $0x49] sm:$0xff] }
 0x16a   : > { %v1014_v47 = vmax.f32 %v942_v41, 0.0  ;;  %v945_v48 = vadd.f32 %v18371_v38, %v944_v44  ;;  %v946_v49 = vpop.f32.mrb[39].mxu1  ;;  %2528 = vmatprep.subr.bf16.mxu1 %v17975_v1  ;;  %v3236_v44 = vld [vmem:[#allocation2 + $0x41] sm:$0xff] }
 0x16b   : > { %v2753_v51 = vld [vmem:[#allocation2 + $0x80] sm:$0xff] }
 0x16c   : > { %1046 = vst.msk [vmem:[#allocation2 + $0x90] sm:$0xff] %vm493_vm2, %v1014_v47  ;;  %v1015_v50 = vmax.f32 %v945_v48, 0.0  ;;  %2018 = vmatmul.mubr.bf16.gmra.mrb[144].mxu1 %v17532_v43  ;;  %v3234_v43 = vld [vmem:[#allocation2 + $0x31] sm:$0xff]  ;;  %v17549_v49 = vld [vmem:[%s18127_s23 + $0x280] ss:$8 sps:$4 sm:$0xff]  }
 0x16d   : > { %v2754_v52 = vld [vmem:[#allocation2 + $0x88] sm:$0xff]  ;;  %13742 = vmatprep.mubr.msk.bf16.mxu1 %vm782_vm0, %v17533_v45  ;;  %2529 = vmatpush1.bf16.msra.mxu1 %v17557_v46  ;;  %v3260_v46 = vpack.c.bf16 %v3237_v42, %v3236_v44  ;;  %v3243_v8 = vld [vmem:[#allocation2 + $0x79] sm:$0xff] }
 0x16e   : > { %1047 = vst.msk [vmem:[#allocation2 + $0x98] sm:$0xff] %vm493_vm2, %v1015_v50  ;;  %v2773_v54 = vpack.c.bf16 %v2754_v52, %v2753_v51  ;;  %2530 = vmatprep.subr.bf16.mxu1 %v17975_v1  ;;  %v17551_v51 = vld [vmem:[%s18127_s23 + $0x294] ss:$8 sps:$4 sm:$0xff]  }
 0x16f   : > { %v949_v55 = vpop.f32.mrb[40].mxu1 }
 0x170   : > { %v950_v56 = vadd.f32 %v18371_v38, %v949_v55  ;;  %v951_v57 = vpop.f32.mrb[41].mxu1  ;;  %15483 = vmatprep.mubr.msk.bf16.mxu0 %vm493_vm2, %v2773_v54  ;;  %v3239_v55 = vld [vmem:[#allocation2 + $0x59] sm:$0xff] }
 0x171   : > { %v952_v59 = vpop.f32.mrb[42].mxu1  ;;  %2531 = vmatpush1.bf16.msra.mxu1 %v17561_v53  ;;  %v3241_v57 = vld [vmem:[#allocation2 + $0x69] sm:$0xff] }
 0x172   : > { %v1016_v62 = vmax.f32 %v950_v56, 0.0  ;;  %v953_v63 = vadd.f32 %v18371_v38, %v952_v59  ;;  %v954_v0 = vpop.f32.mrb[43].mxu1  ;;  %2532 = vmatprep.subr.bf16.mxu1 %v17975_v1 }
 0x173   : > { %v2755_v4 = vld [vmem:[#allocation2 + $0x90] sm:$0xff] }
 0x174   : > { %1048 = vst.msk [vmem:[#allocation2 + $0xa0] sm:$0xff] %vm493_vm2, %v1016_v62  ;;  %v1017_v2 = vmax.f32 %v953_v63, 0.0  ;;  %2026 = vmatmul.mubr.bf16.gmra.mrb[148].mxu1 %v17535_v58  ;;  %v3238_v58 = vld [vmem:[#allocation2 + $0x51] sm:$0xff] }
 0x175   : > { %v2756_v5 = vld [vmem:[#allocation2 + $0x98] sm:$0xff]  ;;  %13743 = vmatprep.mubr.msk.bf16.mxu1 %vm782_vm0, %v17538_v60  ;;  %2533 = vmatpush1.bf16.msra.mxu1 %v17565_v61  ;;  %v3261_v59 = vpack.c.bf16 %v3239_v55, %v3238_v58  ;;  %v3240_v60 = vld [vmem:[#allocation2 + $0x61] sm:$0xff] }
 0x176   : > { %1049 = vst.msk [vmem:[#allocation2 + $0xa8] sm:$0xff] %vm493_vm2, %v1017_v2  ;;  %v2774_v7 = vpack.c.bf16 %v2756_v5, %v2755_v4  ;;  %2534 = vmatprep.subr.bf16.mxu1 %v17975_v1  ;;  %v3262_v62 = vpack.c.bf16 %v3241_v57, %v3240_v60  ;;  %v17553_v2 = vld [vmem:[%s18127_s23 + $0x290] ss:$8 sps:$4 sm:$0xff]   ;;  %v17554_v4 = vld [vmem:[%s18127_s23 + $0x2a4] ss:$8 sps:$4 sm:$0xff]  }
 0x177   : > { %v957_v10 = vpop.f32.mrb[44].mxu1 }
 0x178   : > { %v958_v12 = vadd.f32 %v18371_v38, %v957_v10  ;;  %v959_v13 = vpop.f32.mrb[45].mxu1  ;;  %15484 = vmatmul.mubr.msk.bf16.gmra.mrb[16].mxu0 %vm493_vm2, %v2774_v7  ;;  %v3245_v10 = vld [vmem:[#allocation2 + $0x89] sm:$0xff] }
 0x179   : > { %v960_v15 = vpop.f32.mrb[46].mxu1  ;;  %15499 = vmatprep.mubr.msk.bf16.mxu0 %vm493_vm2, %v3256_v11  ;;  %2535 = vmatpush1.bf16.msra.mxu1 %v17570_v6  ;;  %v3242_v11 = vld [vmem:[#allocation2 + $0x71] sm:$0xff]  ;;  %v3244_v13 = vld [vmem:[#allocation2 + $0x81] sm:$0xff] }
 0x17a   : > { %v1018_v17 = vmax.f32 %v958_v12, 0.0  ;;  %v961_v18 = vadd.f32 %v18371_v38, %v960_v15  ;;  %v962_v19 = vpop.f32.mrb[47].mxu1  ;;  %2536 = vmatprep.subr.bf16.mxu1 %v17975_v1  ;;  %v3263_v12 = vpack.c.bf16 %v3243_v8, %v3242_v11  ;;  %v3264_v15 = vpack.c.bf16 %v3245_v10, %v3244_v13 }
 0x17b   : > { %v3247_v25 = vld [vmem:[#allocation2 + $0x99] sm:$0xff] }
 0x17c   : > { %1050 = vst.msk [vmem:[#allocation2 + $0xb0] sm:$0xff] %vm493_vm2, %v1018_v17  ;;  %v1019_v23 = vmax.f32 %v961_v18, 0.0  ;;  %2034 = vmatmul.mubr.bf16.gmra.mrb[152].mxu1 %v17540_v14  ;;  %v17556_v18 = vld [vmem:[%s18127_s23 + $0x2a0] ss:$8 sps:$4 sm:$0xff]  }
 0x17d   : > { %13744 = vmatprep.mubr.msk.bf16.mxu1 %vm782_vm0, %v17543_v16  ;;  %2537 = vmatpush1.bf16.msra.mxu1 %v2510_v20  ;;  %v17558_v20 = vld [vmem:[%s18127_s23 + $0x2b4] ss:$8 sps:$4 sm:$0xff]  }
 0x17e   : > { %1051 = vst.msk [vmem:[#allocation2 + $0xb8] sm:$0xff] %vm493_vm2, %v1019_v23 }
 0x17f   : > { %v965_v29 = vpop.f32.mrb[48].mxu1 }
 0x180   : > { %v966_v31 = vadd.f32 %v18371_v38, %v965_v29  ;;  %v967_v32 = vpop.f32.mrb[49].mxu1  ;;  %15500 = vmatmul.mubr.msk.bf16.vlgmr.msra.gmra.mrb[0].mxu0 %vm493_vm2, %v3257_v26  ;;  %v3246_v29 = vld [vmem:[#allocation2 + $0x91] sm:$0xff] }
 0x181   : > { %v968_v34 = vpop.f32.mrb[50].mxu1  ;;  %15503 = vmatprep.mubr.msk.bf16.mxu0 %vm493_vm2, %v3258_v30  ;;  %15528 = vmatpush3.bf16.msra.mxu0 %v18408_v22  ;;  %v3259_v22 = vpack.c.bf16 %v3235_v40, %v3234_v43  ;;  %v3265_v30 = vpack.c.bf16 %v3247_v25, %v3246_v29 }
 0x182   : > { %v1020_v36 = vmax.f32 %v966_v31, 0.0  ;;  %v969_v37 = vadd.f32 %v18371_v38, %v968_v34  ;;  %v970_v39 = vpop.f32.mrb[51].mxu1  ;;  %15529 = vmatprep.subr.bf16.mxu0 %v17571_v28  ;;  %v3248_v31 = vld [vmem:[#allocation2 + $0xa1] sm:$0xff] }
 0x183   : > { %v3249_v27 = vld [vmem:[#allocation2 + $0xa9] sm:$0xff] }
 0x184   : > { %1052 = vst.msk [vmem:[#allocation2 + $0xc0] sm:$0xff] %vm493_vm2, %v1020_v36  ;;  %v1021_v41 = vmax.f32 %v969_v37, 0.0  ;;  %2042 = vmatmul.mubr.bf16.gmra.mrb[156].mxu1 %v17545_v33  ;;  %v3266_v33 = vpack.c.bf16 %v3249_v27, %v3248_v31  ;;  %v17560_v36 = vld [vmem:[%s18127_s23 + $0x2b0] ss:$8 sps:$4 sm:$0xff]   ;;  %v17562_v39 = vld [vmem:[%s18127_s23 + $0x2c4] ss:$8 sps:$4 sm:$0xff]  }
 0x185   : > { %13745 = vmatprep.mubr.msk.bf16.mxu1 %vm782_vm0, %v17547_v35  ;;  %15530 = vmatpush3.bf16.msra.mxu0 %v17571_v28  ;;  %v18572_v28 = vld [vmem:[%s20529_s2 + $0x40] sm:$0xff]   ;;  %v17577_v31 = vld [vmem:[%s18127_s23 + $0x2f0] ss:$8 sps:$4 sm:$0xff]  }
 0x186   : > { %1053 = vst.msk [vmem:[#allocation2 + $0xc8] sm:$0xff] %vm493_vm2, %v1021_v41  ;;  %15559 = vmatprep.subr.bf16.mxu0 %v18572_v28 }
 0x187   : > { %v973_v45 = vpop.f32.mrb[52].mxu1 }
 0x188   : > { %v974_v47 = vadd.f32 %v18371_v38, %v973_v45  ;;  %v975_v48 = vpop.f32.mrb[53].mxu1  ;;  %15504 = vmatmul.mubr.msk.bf16.gmra.mrb[4].mxu0 %vm493_vm2, %v3259_v22  ;;  %v3250_v45 = vld [vmem:[#allocation2 + $0xb1] sm:$0xff] }
 0x189   : > { %v976_v50 = vpop.f32.mrb[54].mxu1  ;;  %15507 = vmatprep.mubr.msk.bf16.mxu0 %vm493_vm2, %v3260_v46 }
 0x18a   : > { %v1022_v52 = vmax.f32 %v974_v47, 0.0  ;;  %v977_v53 = vadd.f32 %v18371_v38, %v976_v50  ;;  %v978_v54 = vpop.f32.mrb[55].mxu1 }
 0x18b   : > { %v3251_v43 = vld [vmem:[#allocation2 + $0xb9] sm:$0xff] }
 0x18c   : > { %1054 = vst.msk [vmem:[#allocation2 + $0xd0] sm:$0xff] %vm493_vm2, %v1022_v52  ;;  %v1023_v56 = vmax.f32 %v977_v53, 0.0  ;;  %2050 = vmatmul.mubr.bf16.gmra.mrb[160].mxu1 %v17549_v49  ;;  %v3267_v46 = vpack.c.bf16 %v3251_v43, %v3250_v45  ;;  %v17564_v52 = vld [vmem:[%s18127_s23 + $0x2c0] ss:$8 sps:$4 sm:$0xff]   ;;  %v17566_v54 = vld [vmem:[%s18127_s23 + $0x2d4] ss:$8 sps:$4 sm:$0xff]  }
 0x18d   : > { %13746 = vmatprep.mubr.msk.bf16.mxu1 %vm782_vm0, %v17551_v51  ;;  %v3252_v47 = vld [vmem:[#allocation2 + $0xc1] sm:$0xff] }
 0x18e   : > { %1055 = vst.msk [vmem:[#allocation2 + $0xd8] sm:$0xff] %vm493_vm2, %v1023_v56 }
 0x18f   : > { %v981_v61 = vpop.f32.mrb[56].mxu1 }
 0x190   : > { %v982_v63 = vadd.f32 %v18371_v38, %v981_v61  ;;  %v983_v0 = vpop.f32.mrb[57].mxu1  ;;  %15508 = vmatmul.mubr.msk.bf16.gmra.mrb[8].mxu0 %vm493_vm2, %v3261_v59 }
 0x191   : > { %v984_v3 = vpop.f32.mrb[58].mxu1  ;;  %15511 = vmatprep.mubr.msk.bf16.mxu0 %vm493_vm2, %v3262_v62 }
 0x192   : > { %v1024_v5 = vmax.f32 %v982_v63, 0.0  ;;  %v985_v6 = vadd.f32 %v18371_v38, %v984_v3  ;;  %v986_v7 = vpop.f32.mrb[59].mxu1 }
 0x193   : > { %v3253_v44 = vld [vmem:[#allocation2 + $0xc9] sm:$0xff] }
 0x194   : > { %1056 = vst.msk [vmem:[#allocation2 + $0xe0] sm:$0xff] %vm493_vm2, %v1024_v5  ;;  %v1025_v9 = vmax.f32 %v985_v6, 0.0  ;;  %2058 = vmatmul.mubr.bf16.gmra.mrb[164].mxu1 %v17553_v2  ;;  %v3268_v49 = vpack.c.bf16 %v3253_v44, %v3252_v47  ;;  %v17568_v2 = vld [vmem:[%s18127_s23 + $0x2d0] ss:$8 sps:$4 sm:$0xff]   ;;  %v17579_v44 = vld [vmem:[%s18127_s23 + $0x300] ss:$8 sps:$4 sm:$0xff]  }
 0x195   : > { %13747 = vmatprep.mubr.msk.bf16.mxu1 %vm782_vm0, %v17554_v4  ;;  %v3254_v60 = vld [vmem:[#allocation2 + $0xd1] sm:$0xff]  ;;  %v17572_v4 = vld [vmem:[%s18127_s23 + $0x2e4] ss:$8 sps:$4 sm:$0xff]  }
 0x196   : > { %1057 = vst.msk [vmem:[#allocation2 + $0xe8] sm:$0xff] %vm493_vm2, %v1025_v9 }
 0x197   : > { %v989_v14 = vpop.f32.mrb[60].mxu1 }
 0x198   : > { %v990_v16 = vadd.f32 %v18371_v38, %v989_v14  ;;  %v991_v17 = vpop.f32.mrb[61].mxu1  ;;  %15512 = vmatmul.mubr.msk.bf16.gmra.mrb[12].mxu0 %vm493_vm2, %v3263_v12 }
 0x199   : > { %v992_v19 = vpop.f32.mrb[62].mxu1  ;;  %15515 = vmatprep.mubr.msk.bf16.mxu0 %vm493_vm2, %v3264_v15  ;;  %v17574_v15 = vld [vmem:[%s18127_s23 + $0x2e0] ss:$8 sps:$4 sm:$0xff]   ;;  %v17575_v17 = vld [vmem:[%s18127_s23 + $0x2f4] ss:$8 sps:$4 sm:$0xff]  }
 0x19a   : > { %v1026_v21 = vmax.f32 %v990_v16, 0.0  ;;  %v993_v23 = vadd.f32 %v18371_v38, %v992_v19  ;;  %v994_v24 = vpop.f32.mrb[63].mxu1 }
 0x19b   : > { %v3255_v58 = vld [vmem:[#allocation2 + $0xd9] sm:$0xff] }
 0x19c   : > { %1058 = vst.msk [vmem:[#allocation2 + $0xf0] sm:$0xff] %vm493_vm2, %v1026_v21  ;;  %v1027_v26 = vmax.f32 %v993_v23, 0.0  ;;  %2066 = vmatmul.mubr.bf16.gmra.mrb[168].mxu1 %v17556_v18  ;;  %v3269_v61 = vpack.c.bf16 %v3255_v58, %v3254_v60  ;;  %v17584_v58 = vld [vmem:[%s18127_s23 + $0x310] ss:$8 sps:$4 sm:$0xff]   ;;  %v17585_v60 = vld [vmem:[%s18127_s23 + $0x324] ss:$8 sps:$4 sm:$0xff]  }
 0x19d   : > { %13748 = vmatprep.mubr.msk.bf16.mxu1 %vm782_vm0, %v17558_v20 }
 0x19e   : > { %1059 = vst.msk [vmem:[#allocation2 + $0xf8] sm:$0xff] %vm493_vm2, %v1027_v26  ;;  %v17613_v26 = vld [vmem:[%s20529_s2 + $0x48] sm:$0xff]  }
 0x19f   : > { %v1428_v32 = vpop.f32.mrb[64].mxu1 }
 0x1a0   : > { %v1429_v34 = vadd.f32 %v18371_v38, %v1428_v32  ;;  %v1430_v35 = vpop.f32.mrb[65].mxu1  ;;  %15516 = vmatmul.mubr.msk.bf16.gmra.mrb[16].mxu0 %vm493_vm2, %v3265_v30 }
 0x1a1   : > { %v1431_v37 = vpop.f32.mrb[66].mxu1  ;;  %15519 = vmatprep.mubr.msk.bf16.mxu0 %vm493_vm2, %v3266_v33  ;;  %v17581_v33 = vld [vmem:[%s18127_s23 + $0x304] ss:$8 sps:$4 sm:$0xff]  }
 0x1a2   : > { %v1555_v40 = vmax.f32 %v1429_v34, 0.0  ;;  %v1432_v41 = vadd.f32 %v18371_v38, %v1431_v37  ;;  %v1433_v42 = vpop.f32.mrb[67].mxu1  ;;  %v17629_v37 = vld [vmem:[%s20529_s2 + $0x10] sm:$0xff]  }
 0x1a3   : > { %15431 = vmatprep.subr.bf16.mxu1 %v17629_v37 }
 0x1a4   : > { %1587 = vst.msk [vmem:[#allocation2 + $0x100] sm:$0xff] %vm493_vm2, %v1555_v40  ;;  %v1556_v22 = vmax.f32 %v1432_v41, 0.0  ;;  %2074 = vmatmul.mubr.bf16.gmra.mrb[172].mxu1 %v17560_v36 }
 0x1a5   : > { %13749 = vmatprep.mubr.msk.bf16.mxu1 %vm782_vm0, %v17562_v39 }
 0x1a6   : > { %1588 = vst.msk [vmem:[#allocation2 + $0x108] sm:$0xff] %vm493_vm2, %v1556_v22 }
 0x1a7   : > { %v1436_v48 = vpop.f32.mrb[68].mxu1 }
 0x1a8   : > { %v1437_v50 = vadd.f32 %v18371_v38, %v1436_v48  ;;  %v1438_v51 = vpop.f32.mrb[69].mxu1  ;;  %15520 = vmatmul.mubr.msk.bf16.gmra.mrb[20].mxu0 %vm493_vm2, %v3267_v46  ;;  %v17582_v46 = vld [vmem:[%s18127_s23 + $0x314] ss:$8 sps:$4 sm:$0xff]  }
 0x1a9   : > { %v1439_v53 = vpop.f32.mrb[70].mxu1  ;;  %15523 = vmatprep.mubr.msk.bf16.mxu0 %vm493_vm2, %v3268_v49 }
 0x1aa   : > { %v1557_v55 = vmax.f32 %v1437_v50, 0.0  ;;  %v1440_v56 = vadd.f32 %v18371_v38, %v1439_v53  ;;  %v1441_v57 = vpop.f32.mrb[71].mxu1  ;;  %v17630_v50 = vld [vmem:[%s20529_s2 + $0x18] sm:$0xff]  }
 0x1ac   : > { %1589 = vst.msk [vmem:[#allocation2 + $0x110] sm:$0xff] %vm493_vm2, %v1557_v55  ;;  %v1558_v59 = vmax.f32 %v1440_v56, 0.0  ;;  %2082 = vmatmul.mubr.bf16.gmra.mrb[176].mxu1 %v17564_v52  ;;  %v18641_v55 = vld [vmem:[%s20535_s8] ss:$0 sm:$0xff] }
 0x1ad   : > { %13750 = vmatprep.mubr.msk.bf16.mxu1 %vm782_vm0, %v17566_v54  ;;  %v3502_v8 = vld [vmem:[#allocation2 + $0x101] sm:$0xff] }
 0x1ae   : > { %1590 = vst.msk [vmem:[#allocation2 + $0x118] sm:$0xff] %vm493_vm2, %v1558_v59 }
 0x1af   : > { %v1444_v62 = vpop.f32.mrb[72].mxu1 }
 0x1b0   : > { %v1445_v63 = vadd.f32 %v18371_v38, %v1444_v62  ;;  %v1446_v0 = vpop.f32.mrb[73].mxu1  ;;  %15524 = vmatmul.mubr.msk.bf16.gmra.mrb[24].mxu0 %vm493_vm2, %v3269_v61 }
 0x1b1   : > { %v1447_v3 = vpop.f32.mrb[74].mxu1  ;;  %v18650_v0 = vld [vmem:[%s20529_s2] sm:$0xff]  }
 0x1b2   : > { %v1559_v5 = vmax.f32 %v1445_v63, 0.0  ;;  %v1448_v6 = vadd.f32 %v18371_v38, %v1447_v3  ;;  %v1449_v7 = vpop.f32.mrb[75].mxu1 }
 0x1b3   : > { %v3503_v9 = vld [vmem:[#allocation2 + $0x109] sm:$0xff] }
 0x1b4   : > { %1591 = vst.msk [vmem:[#allocation2 + $0x120] sm:$0xff] %vm493_vm2, %v1559_v5  ;;  %v1560_v10 = vmax.f32 %v1448_v6, 0.0  ;;  %2090 = vmatmul.mubr.bf16.gmra.mrb[180].mxu1 %v17568_v2  ;;  %v3530_v11 = vpack.c.bf16 %v3503_v9, %v3502_v8  ;;  %v18657_v6 = vld [vmem:[%s20529_s2 + $0x50] sm:$0xff]  }
 0x1b5   : > { %13751 = vmatprep.mubr.msk.bf16.mxu1 %vm782_vm0, %v17572_v4  ;;  %v3504_v21 = vld [vmem:[#allocation2 + $0x111] sm:$0xff] }
 0x1b6   : > { %1592 = vst.msk [vmem:[#allocation2 + $0x128] sm:$0xff] %vm493_vm2, %v1560_v10  ;;  %15531 = vmatprep.mubr.msk.bf16.mxu0 %vm493_vm2, %v3530_v11  ;;  %v17587_v10 = vld [vmem:[%s18127_s23 + $0x320] ss:$8 sps:$4 sm:$0xff]  }
 0x1b7   : > { %v1452_v12 = vpop.f32.mrb[76].mxu1 }
 0x1b8   : > { %v1453_v13 = vadd.f32 %v18371_v38, %v1452_v12  ;;  %v1454_v14 = vpop.f32.mrb[77].mxu1  ;;  %v17588_v12 = vld [vmem:[%s18127_s23 + $0x334] ss:$8 sps:$4 sm:$0xff]  }
 0x1b9   : > { %v1455_v16 = vpop.f32.mrb[78].mxu1 }
 0x1ba   : > { %v1561_v18 = vmax.f32 %v1453_v13, 0.0  ;;  %v1456_v19 = vadd.f32 %v18371_v38, %v1455_v16  ;;  %v1457_v20 = vpop.f32.mrb[79].mxu1 }
 0x1bb   : > { %v3505_v23 = vld [vmem:[#allocation2 + $0x119] sm:$0xff] }
 0x1bc   : > { %1593 = vst.msk [vmem:[#allocation2 + $0x130] sm:$0xff] %vm493_vm2, %v1561_v18  ;;  %v1562_v24 = vmax.f32 %v1456_v19, 0.0  ;;  %2098 = vmatmul.mubr.bf16.gmra.mrb[184].mxu1 %v17574_v15  ;;  %v3531_v25 = vpack.c.bf16 %v3505_v23, %v3504_v21 }
 0x1bd   : > { %13752 = vmatprep.mubr.msk.bf16.mxu1 %vm782_vm0, %v17575_v17  ;;  %v3506_v39 = vld [vmem:[#allocation2 + $0x121] sm:$0xff] }
 0x1be   : > { %1594 = vst.msk [vmem:[#allocation2 + $0x138] sm:$0xff] %vm493_vm2, %v1562_v24  ;;  %15532 = vmatmul.mubr.msk.bf16.vlgmr.msra.gmra.mrb[0].mxu0 %vm493_vm2, %v3531_v25  ;;  %v17590_v24 = vld [vmem:[%s18127_s23 + $0x330] ss:$8 sps:$4 sm:$0xff]  }
 0x1bf   : > { %v1460_v27 = vpop.f32.mrb[80].mxu1  ;;  %15560 = vmatpush3.bf16.msra.mxu0 %v18572_v28 }
 0x1c0   : > { %v1461_v29 = vadd.f32 %v18371_v38, %v1460_v27  ;;  %v1462_v30 = vpop.f32.mrb[81].mxu1  ;;  %15561 = vmatprep.subr.bf16.mxu0 %v17613_v26 }
 0x1c1   : > { %v1463_v32 = vpop.f32.mrb[82].mxu1 }
 0x1c2   : > { %v1563_v34 = vmax.f32 %v1461_v29, 0.0  ;;  %v1464_v35 = vadd.f32 %v18371_v38, %v1463_v32  ;;  %v1465_v36 = vpop.f32.mrb[83].mxu1 }
 0x1c3   : > { %v3507_v40 = vld [vmem:[#allocation2 + $0x129] sm:$0xff]  ;;  %15562 = vmatpush3.bf16.msra.mxu0 %v17613_v26 }
 0x1c4   : > { %1595 = vst.msk [vmem:[#allocation2 + $0x140] sm:$0xff] %vm493_vm2, %v1563_v34  ;;  %v1564_v28 = vmax.f32 %v1464_v35, 0.0  ;;  %2106 = vmatmul.mubr.bf16.gmra.mrb[188].mxu1 %v17577_v31  ;;  %v3532_v41 = vpack.c.bf16 %v3507_v40, %v3506_v39  ;;  %15591 = vmatprep.subr.bf16.mxu0 %v18657_v6  ;;  %v17591_v26 = vld [vmem:[%s18127_s23 + $0x344] ss:$8 sps:$4 sm:$0xff]   ;;  %v17593_v39 = vld [vmem:[%s18127_s23 + $0x340] ss:$8 sps:$4 sm:$0xff]  }
 0x1c5   : > { %13799 = vmatprep.mubr.msk.bf16.mxu1 %vm782_vm0, %v17581_v33  ;;  %v3508_v51 = vld [vmem:[#allocation2 + $0x131] sm:$0xff] }
 0x1c6   : > { %1596 = vst.msk [vmem:[#allocation2 + $0x148] sm:$0xff] %vm493_vm2, %v1564_v28  ;;  %15535 = vmatprep.mubr.msk.bf16.mxu0 %vm493_vm2, %v3532_v41  ;;  %v17594_v28 = vld [vmem:[%s18127_s23 + $0x354] ss:$8 sps:$4 sm:$0xff]  }
 0x1c7   : > { %v1468_v42 = vpop.f32.mrb[84].mxu1 }
 0x1c8   : > { %v1469_v43 = vadd.f32 %v18371_v38, %v1468_v42  ;;  %v1470_v22 = vpop.f32.mrb[85].mxu1 }
 0x1c9   : > { %v1471_v45 = vpop.f32.mrb[86].mxu1 }
 0x1ca   : > { %v1565_v47 = vmax.f32 %v1469_v43, 0.0  ;;  %v1472_v48 = vadd.f32 %v18371_v38, %v1471_v45  ;;  %v1473_v49 = vpop.f32.mrb[87].mxu1 }
 0x1cb   : > { %v3509_v52 = vld [vmem:[#allocation2 + $0x139] sm:$0xff] }
 0x1cc   : > { %1597 = vst.msk [vmem:[#allocation2 + $0x150] sm:$0xff] %vm493_vm2, %v1565_v47  ;;  %v1566_v53 = vmax.f32 %v1472_v48, 0.0  ;;  %2545 = vmatmul.mubr.bf16.vlgmr.msra.gmra.mrb[192].mxu1 %v17579_v44  ;;  %v3533_v54 = vpack.c.bf16 %v3509_v52, %v3508_v51  ;;  %v17597_v52 = vld [vmem:[%s18127_s23 + $0x364] ss:$8 sps:$4 sm:$0xff]  }
 0x1cd   : > { %13800 = vmatprep.mubr.msk.bf16.mxu1 %vm782_vm0, %v17582_v46  ;;  %15432 = vmatpush3.bf16.msra.mxu1 %v17629_v37  ;;  %v3510_v2 = vld [vmem:[#allocation2 + $0x141] sm:$0xff] }
 0x1ce   : > { %1598 = vst.msk [vmem:[#allocation2 + $0x158] sm:$0xff] %vm493_vm2, %v1566_v53  ;;  %15536 = vmatmul.mubr.msk.bf16.gmra.mrb[4].mxu0 %vm493_vm2, %v3533_v54  ;;  %15433 = vmatprep.subr.bf16.mxu1 %v17630_v50 }
 0x1cf   : > { %v1476_v38 = vpop.f32.mrb[88].mxu1 }
 0x1d0   : > { %v1477_v56 = vadd.f32 %v18641_v55, %v1476_v38  ;;  %v1478_v57 = vpop.f32.mrb[89].mxu1 }
 0x1d1   : > { %v1479_v59 = vpop.f32.mrb[90].mxu1  ;;  %15434 = vmatpush3.bf16.msra.mxu1 %v17630_v50  ;;  %v17596_v50 = vld [vmem:[%s18127_s23 + $0x350] ss:$8 sps:$4 sm:$0xff]  }
 0x1d2   : > { %v1567_v61 = vmax.f32 %v1477_v56, 0.0  ;;  %v1480_v62 = vadd.f32 %v18641_v55, %v1479_v59  ;;  %v1481_v63 = vpop.f32.mrb[91].mxu1  ;;  %16627 = vmatprep.subr.bf16.mxu1 %v18650_v0 }
 0x1d3   : > { %v3511_v3 = vld [vmem:[#allocation2 + $0x149] sm:$0xff] }
 0x1d4   : > { %1599 = vst.msk [vmem:[#allocation2 + $0x160] sm:$0xff] %vm493_vm2, %v1567_v61  ;;  %v1568_v4 = vmax.f32 %v1480_v62, 0.0  ;;  %2553 = vmatmul.mubr.bf16.gmra.mrb[196].mxu1 %v17584_v58  ;;  %v3534_v5 = vpack.c.bf16 %v3511_v3, %v3510_v2  ;;  %v17599_v63 = vld [vmem:[%s18127_s23 + $0x360] ss:$8 sps:$4 sm:$0xff]   ;;  %v17600_v3 = vld [vmem:[%s18127_s23 + $0x374] ss:$8 sps:$4 sm:$0xff]  }
 0x1d5   : > { %13801 = vmatprep.mubr.msk.bf16.mxu1 %vm782_vm0, %v17585_v60  ;;  %v3512_v16 = vld [vmem:[#allocation2 + $0x151] sm:$0xff] }
 0x1d6   : > { %1600 = vst.msk [vmem:[#allocation2 + $0x168] sm:$0xff] %vm493_vm2, %v1568_v4  ;;  %15539 = vmatprep.mubr.msk.bf16.mxu0 %vm493_vm2, %v3534_v5 }
 0x1d7   : > { %v1484_v7 = vpop.f32.mrb[92].mxu1 }
 0x1d8   : > { %v1485_v8 = vadd.f32 %v18641_v55, %v1484_v7  ;;  %v1486_v9 = vpop.f32.mrb[93].mxu1 }
 0x1d9   : > { %v1487_v11 = vpop.f32.mrb[94].mxu1 }
 0x1da   : > { %v1569_v13 = vmax.f32 %v1485_v8, 0.0  ;;  %v1488_v14 = vadd.f32 %v18641_v55, %v1487_v11  ;;  %v1489_v15 = vpop.f32.mrb[95].mxu1 }
 0x1db   : > { %v3513_v17 = vld [vmem:[#allocation2 + $0x159] sm:$0xff] }
 0x1dc   : > { %1601 = vst.msk [vmem:[#allocation2 + $0x170] sm:$0xff] %vm493_vm2, %v1569_v13  ;;  %v1570_v18 = vmax.f32 %v1488_v14, 0.0  ;;  %2561 = vmatmul.mubr.bf16.gmra.mrb[200].mxu1 %v17587_v10  ;;  %v3535_v19 = vpack.c.bf16 %v3513_v17, %v3512_v16  ;;  %v17602_v15 = vld [vmem:[%s18127_s23 + $0x370] ss:$8 sps:$4 sm:$0xff]   ;;  %v17603_v17 = vld [vmem:[%s18127_s23 + $0x384] ss:$8 sps:$4 sm:$0xff]  }
 0x1dd   : > { %13802 = vmatprep.mubr.msk.bf16.mxu1 %vm782_vm0, %v17588_v12  ;;  %v3514_v31 = vld [vmem:[#allocation2 + $0x161] sm:$0xff] }
 0x1de   : > { %1602 = vst.msk [vmem:[#allocation2 + $0x178] sm:$0xff] %vm493_vm2, %v1570_v18  ;;  %15540 = vmatmul.mubr.msk.bf16.gmra.mrb[8].mxu0 %vm493_vm2, %v3535_v19 }
 0x1df   : > { %v1492_v20 = vpop.f32.mrb[96].mxu1 }
 0x1e0   : > { %v1493_v21 = vadd.f32 %v18641_v55, %v1492_v20  ;;  %v1494_v23 = vpop.f32.mrb[97].mxu1 }
 0x1e1   : > { %v1495_v25 = vpop.f32.mrb[98].mxu1 }
 0x1e2   : > { %v1571_v27 = vmax.f32 %v1493_v21, 0.0  ;;  %v1496_v29 = vadd.f32 %v18641_v55, %v1495_v25  ;;  %v1497_v30 = vpop.f32.mrb[99].mxu1 }
 0x1e3   : > { %v3515_v32 = vld [vmem:[#allocation2 + $0x169] sm:$0xff] }
 0x1e4   : > { %1603 = vst.msk [vmem:[#allocation2 + $0x180] sm:$0xff] %vm493_vm2, %v1571_v27  ;;  %v1572_v33 = vmax.f32 %v1496_v29, 0.0  ;;  %2569 = vmatmul.mubr.bf16.gmra.mrb[204].mxu1 %v17590_v24  ;;  %v3536_v34 = vpack.c.bf16 %v3515_v32, %v3514_v31  ;;  %v17605_v30 = vld [vmem:[%s18127_s23 + $0x380] ss:$8 sps:$4 sm:$0xff]   ;;  %v17606_v32 = vld [vmem:[%s18127_s23 + $0x394] ss:$8 sps:$4 sm:$0xff]  }
 0x1e5   : > { %13803 = vmatprep.mubr.msk.bf16.mxu1 %vm782_vm0, %v17591_v26  ;;  %v3516_v22 = vld [vmem:[#allocation2 + $0x171] sm:$0xff] }
 0x1e6   : > { %1604 = vst.msk [vmem:[#allocation2 + $0x188] sm:$0xff] %vm493_vm2, %v1572_v33  ;;  %15543 = vmatprep.mubr.msk.bf16.mxu0 %vm493_vm2, %v3536_v34 }
 0x1e7   : > { %v1500_v35 = vpop.f32.mrb[100].mxu1 }
 0x1e8   : > { %v1501_v36 = vadd.f32 %v18641_v55, %v1500_v35  ;;  %v1502_v37 = vpop.f32.mrb[101].mxu1 }
 0x1e9   : > { %v1503_v40 = vpop.f32.mrb[102].mxu1 }
 0x1ea   : > { %v1573_v41 = vmax.f32 %v1501_v36, 0.0  ;;  %v1504_v42 = vadd.f32 %v18641_v55, %v1503_v40  ;;  %v1505_v43 = vpop.f32.mrb[103].mxu1 }
 0x1eb   : > { %v3517_v44 = vld [vmem:[#allocation2 + $0x179] sm:$0xff] }
 0x1ec   : > { %1605 = vst.msk [vmem:[#allocation2 + $0x190] sm:$0xff] %vm493_vm2, %v1573_v41  ;;  %v1574_v45 = vmax.f32 %v1504_v42, 0.0  ;;  %2577 = vmatmul.mubr.bf16.gmra.mrb[208].mxu1 %v17593_v39  ;;  %v3537_v46 = vpack.c.bf16 %v3517_v44, %v3516_v22  ;;  %v17608_v43 = vld [vmem:[%s18127_s23 + $0x390] ss:$8 sps:$4 sm:$0xff]   ;;  %v17609_v44 = vld [vmem:[%s18127_s23 + $0x3a4] ss:$8 sps:$4 sm:$0xff]  }
 0x1ed   : > { %13804 = vmatprep.mubr.msk.bf16.mxu1 %vm782_vm0, %v17594_v28  ;;  %v3518_v56 = vld [vmem:[#allocation2 + $0x181] sm:$0xff] }
 0x1ee   : > { %1606 = vst.msk [vmem:[#allocation2 + $0x198] sm:$0xff] %vm493_vm2, %v1574_v45  ;;  %15544 = vmatmul.mubr.msk.bf16.gmra.mrb[12].mxu0 %vm493_vm2, %v3537_v46 }
 0x1ef   : > { %v1508_v47 = vpop.f32.mrb[104].mxu1 }
 0x1f0   : > { %v1509_v48 = vadd.f32 %v18641_v55, %v1508_v47  ;;  %v1510_v49 = vpop.f32.mrb[105].mxu1 }
 0x1f1   : > { %v1511_v51 = vpop.f32.mrb[106].mxu1 }
 0x1f2   : > { %v1575_v53 = vmax.f32 %v1509_v48, 0.0  ;;  %v1512_v54 = vadd.f32 %v18641_v55, %v1511_v51  ;;  %v1513_v38 = vpop.f32.mrb[107].mxu1 }
 0x1f3   : > { %v3519_v57 = vld [vmem:[#allocation2 + $0x189] sm:$0xff] }
 0x1f4   : > { %1607 = vst.msk [vmem:[#allocation2 + $0x1a0] sm:$0xff] %vm493_vm2, %v1575_v53  ;;  %v1576_v58 = vmax.f32 %v1512_v54, 0.0  ;;  %2585 = vmatmul.mubr.bf16.gmra.mrb[212].mxu1 %v17596_v50  ;;  %v3538_v59 = vpack.c.bf16 %v3519_v57, %v3518_v56  ;;  %v17611_v38 = vld [vmem:[%s18127_s23 + $0x3a0] ss:$8 sps:$4 sm:$0xff]   ;;  %v17614_v57 = vld [vmem:[%s18127_s23 + $0x3b4] ss:$8 sps:$4 sm:$0xff]  }
 0x1f5   : > { %13805 = vmatprep.mubr.msk.bf16.mxu1 %vm782_vm0, %v17597_v52  ;;  %v3520_v8 = vld [vmem:[#allocation2 + $0x191] sm:$0xff] }
 0x1f6   : > { %1608 = vst.msk [vmem:[#allocation2 + $0x1a8] sm:$0xff] %vm493_vm2, %v1576_v58  ;;  %15547 = vmatprep.mubr.msk.bf16.mxu0 %vm493_vm2, %v3538_v59 }
 0x1f7   : > { %v1516_v60 = vpop.f32.mrb[108].mxu1 }
 0x1f8   : > { %v1517_v61 = vadd.f32 %v18641_v55, %v1516_v60  ;;  %v1518_v62 = vpop.f32.mrb[109].mxu1 }
 0x1f9   : > { %v1519_v2 = vpop.f32.mrb[110].mxu1 }
 0x1fa   : > { %v1577_v4 = vmax.f32 %v1517_v61, 0.0  ;;  %v1520_v5 = vadd.f32 %v18641_v55, %v1519_v2  ;;  %v1521_v7 = vpop.f32.mrb[111].mxu1  ;;  %v3777_v61 = vld [vmem:[#allocation2 + $0xa] sm:$0xff] }
 0x1fb   : > { %v3521_v9 = vld [vmem:[#allocation2 + $0x199] sm:$0xff] }
 0x1fc   : > { %1609 = vst.msk [vmem:[#allocation2 + $0x1b0] sm:$0xff] %vm493_vm2, %v1577_v4  ;;  %v1578_v10 = vmax.f32 %v1520_v5, 0.0  ;;  %2593 = vmatmul.mubr.bf16.gmra.mrb[216].mxu1 %v17599_v63  ;;  %v3539_v11 = vpack.c.bf16 %v3521_v9, %v3520_v8  ;;  %v3776_v4 = vld [vmem:[#allocation2 + $0x2] sm:$0xff]  ;;  %v18735_v5 = vld [vmem:[%s20535_s8] ss:$0 sm:$0xff] }
 0x1fd   : > { %13806 = vmatprep.mubr.msk.bf16.mxu1 %vm782_vm0, %v17600_v3  ;;  %v3522_v21 = vld [vmem:[#allocation2 + $0x1a1] sm:$0xff]  ;;  %v3804_v7 = vpack.c.bf16 %v3777_v61, %v3776_v4 }
 0x1fe   : > { %1610 = vst.msk [vmem:[#allocation2 + $0x1b8] sm:$0xff] %vm493_vm2, %v1578_v10  ;;  %15548 = vmatmul.mubr.msk.bf16.gmra.mrb[16].mxu0 %vm493_vm2, %v3539_v11  ;;  %v17616_v10 = vld [vmem:[%s18127_s23 + $0x3b0] ss:$8 sps:$4 sm:$0xff]  }
 0x1ff   : > { %v1524_v12 = vpop.f32.mrb[112].mxu1 }
 0x200   : > { %v1525_v13 = vadd.f32 %v18641_v55, %v1524_v12  ;;  %v1526_v14 = vpop.f32.mrb[113].mxu1  ;;  %v3779_v12 = vld [vmem:[#allocation2 + $0x1a] sm:$0xff] }
 0x201   : > { %v1527_v16 = vpop.f32.mrb[114].mxu1 }
 0x202   : > { %v1579_v18 = vmax.f32 %v1525_v13, 0.0  ;;  %v1528_v19 = vadd.f32 %v18641_v55, %v1527_v16  ;;  %v1529_v20 = vpop.f32.mrb[115].mxu1  ;;  %v17617_v13 = vld [vmem:[%s18127_s23 + $0x3c4] ss:$8 sps:$4 sm:$0xff]  }
 0x203   : > { %v3523_v23 = vld [vmem:[#allocation2 + $0x1a9] sm:$0xff] }
 0x204   : > { %1611 = vst.msk [vmem:[#allocation2 + $0x1c0] sm:$0xff] %vm493_vm2, %v1579_v18  ;;  %v1580_v24 = vmax.f32 %v1528_v19, 0.0  ;;  %2601 = vmatmul.mubr.bf16.gmra.mrb[220].mxu1 %v17602_v15  ;;  %v3540_v25 = vpack.c.bf16 %v3523_v23, %v3522_v21  ;;  %v3778_v18 = vld [vmem:[#allocation2 + $0x12] sm:$0xff]  ;;  %v3780_v21 = vld [vmem:[#allocation2 + $0x22] sm:$0xff] }
 0x205   : > { %13807 = vmatprep.mubr.msk.bf16.mxu1 %vm782_vm0, %v17603_v17  ;;  %v3524_v36 = vld [vmem:[#allocation2 + $0x1b1] sm:$0xff]  ;;  %v3805_v20 = vpack.c.bf16 %v3779_v12, %v3778_v18  ;;  %v3795_v18 = vld [vmem:[#allocation2 + $0x9a] sm:$0xff] }
 0x206   : > { %1612 = vst.msk [vmem:[#allocation2 + $0x1c8] sm:$0xff] %vm493_vm2, %v1580_v24  ;;  %15551 = vmatprep.mubr.msk.bf16.mxu0 %vm493_vm2, %v3540_v25  ;;  %v3781_v17 = vld [vmem:[#allocation2 + $0x2a] sm:$0xff]  ;;  %v17632_v23 = vld [vmem:[%s20529_s2 + $0x58] sm:$0xff]  }
 0x207   : > { %v1532_v26 = vpop.f32.mrb[116].mxu1  ;;  %v3806_v24 = vpack.c.bf16 %v3781_v17, %v3780_v21 }
 0x208   : > { %v1533_v27 = vadd.f32 %v18641_v55, %v1532_v26  ;;  %v1534_v29 = vpop.f32.mrb[117].mxu1 }
 0x209   : > { %v1535_v31 = vpop.f32.mrb[118].mxu1  ;;  %v17619_v29 = vld [vmem:[%s18127_s23 + $0x3c0] ss:$8 sps:$4 sm:$0xff]  }
 0x20a   : > { %v1581_v33 = vmax.f32 %v1533_v27, 0.0  ;;  %v1536_v34 = vadd.f32 %v18641_v55, %v1535_v31  ;;  %v1537_v35 = vpop.f32.mrb[119].mxu1  ;;  %v3783_v31 = vld [vmem:[#allocation2 + $0x3a] sm:$0xff] }
 0x20b   : > { %v3525_v37 = vld [vmem:[#allocation2 + $0x1b9] sm:$0xff] }
 0x20c   : > { %1613 = vst.msk [vmem:[#allocation2 + $0x1d0] sm:$0xff] %vm493_vm2, %v1581_v33  ;;  %v1582_v39 = vmax.f32 %v1536_v34, 0.0  ;;  %2609 = vmatmul.mubr.bf16.gmra.mrb[224].mxu1 %v17605_v30  ;;  %v3541_v40 = vpack.c.bf16 %v3525_v37, %v3524_v36  ;;  %v3785_v36 = vld [vmem:[#allocation2 + $0x4a] sm:$0xff]  ;;  %v3782_v37 = vld [vmem:[#allocation2 + $0x32] sm:$0xff] }
 0x20d   : > { %13808 = vmatprep.mubr.msk.bf16.mxu1 %vm782_vm0, %v17606_v32  ;;  %v3526_v48 = vld [vmem:[#allocation2 + $0x1c1] sm:$0xff]  ;;  %v17620_v32 = vld [vmem:[%s18127_s23 + $0x3d4] ss:$8 sps:$4 sm:$0xff]  }
 0x20e   : > { %1614 = vst.msk [vmem:[#allocation2 + $0x1d8] sm:$0xff] %vm493_vm2, %v1582_v39  ;;  %15552 = vmatmul.mubr.msk.bf16.gmra.mrb[20].mxu0 %vm493_vm2, %v3541_v40  ;;  %v3784_v40 = vld [vmem:[#allocation2 + $0x42] sm:$0xff] }
 0x20f   : > { %v1540_v28 = vpop.f32.mrb[120].mxu1 }
 0x210   : > { %v1541_v41 = vadd.f32 %v18641_v55, %v1540_v28  ;;  %v1542_v42 = vpop.f32.mrb[121].mxu1  ;;  %v3808_v28 = vpack.c.bf16 %v3785_v36, %v3784_v40  ;;  %v2788_v36 = vld [vmem:[#allocation2 + $0x128] sm:$0xff] }
 0x211   : > { %v1543_v22 = vpop.f32.mrb[122].mxu1 }
 0x212   : > { %v1583_v45 = vmax.f32 %v1541_v41, 0.0  ;;  %v1544_v46 = vadd.f32 %v18641_v55, %v1543_v22  ;;  %v1545_v47 = vpop.f32.mrb[123].mxu1  ;;  %v18765_v41 = vld [vmem:[%s20529_s2 + $0x60] sm:$0xff]  }
 0x213   : > { %v3527_v49 = vld [vmem:[#allocation2 + $0x1c9] sm:$0xff] }
 0x214   : > { %1615 = vst.msk [vmem:[#allocation2 + $0x1e0] sm:$0xff] %vm493_vm2, %v1583_v45  ;;  %v1584_v50 = vmax.f32 %v1544_v46, 0.0  ;;  %2617 = vmatmul.mubr.bf16.gmra.mrb[228].mxu1 %v17608_v43  ;;  %v3542_v51 = vpack.c.bf16 %v3527_v49, %v3526_v48  ;;  %v3787_v46 = vld [vmem:[#allocation2 + $0x5a] sm:$0xff]  ;;  %v17623_v47 = vld [vmem:[%s18127_s23 + $0x3e4] ss:$8 sps:$4 sm:$0xff]  }
 0x215   : > { %13809 = vmatprep.mubr.msk.bf16.mxu1 %vm782_vm0, %v17609_v44  ;;  %v3528_v62 = vld [vmem:[#allocation2 + $0x1d1] sm:$0xff] }
 0x216   : > { %1616 = vst.msk [vmem:[#allocation2 + $0x1e8] sm:$0xff] %vm493_vm2, %v1584_v50  ;;  %15555 = vmatprep.mubr.msk.bf16.mxu0 %vm493_vm2, %v3542_v51  ;;  %v17622_v44 = vld [vmem:[%s18127_s23 + $0x3d0] ss:$8 sps:$4 sm:$0xff]  }
 0x217   : > { %v1548_v52 = vpop.f32.mrb[124].mxu1  ;;  %v3789_v51 = vld [vmem:[#allocation2 + $0x6a] sm:$0xff] }
 0x218   : > { %v1549_v53 = vadd.f32 %v18641_v55, %v1548_v52  ;;  %v1550_v54 = vpop.f32.mrb[125].mxu1  ;;  %v3786_v52 = vld [vmem:[#allocation2 + $0x52] sm:$0xff] }
 0x219   : > { %v1551_v56 = vpop.f32.mrb[126].mxu1  ;;  %v3809_v54 = vpack.c.bf16 %v3787_v46, %v3786_v52  ;;  %v3798_v46 = vld [vmem:[#allocation2 + $0xb2] sm:$0xff] }
 0x21a   : > { %v1585_v58 = vmax.f32 %v1549_v53, 0.0  ;;  %v1552_v59 = vadd.f32 %v18641_v55, %v1551_v56  ;;  %v1553_v60 = vpop.f32.mrb[127].mxu1 }
 0x21b   : > { %v3529_v63 = vld [vmem:[#allocation2 + $0x1d9] sm:$0xff] }
 0x21c   : > { %1617 = vst.msk [vmem:[#allocation2 + $0x1f0] sm:$0xff] %vm493_vm2, %v1585_v58  ;;  %v1586_v2 = vmax.f32 %v1552_v59, 0.0  ;;  %2625 = vmatmul.mubr.bf16.gmra.mrb[232].mxu1 %v17611_v38  ;;  %v3543_v3 = vpack.c.bf16 %v3529_v63, %v3528_v62  ;;  %v3788_v38 = vld [vmem:[#allocation2 + $0x62] sm:$0xff]  ;;  %v3791_v62 = vld [vmem:[#allocation2 + $0x7a] sm:$0xff] }
 0x21d   : > { %13810 = vmatprep.mubr.msk.bf16.mxu1 %vm782_vm0, %v17614_v57  ;;  %v3810_v56 = vpack.c.bf16 %v3789_v51, %v3788_v38  ;;  %v17625_v60 = vld [vmem:[%s18127_s23 + $0x3e0] ss:$8 sps:$4 sm:$0xff]   ;;  %v17626_v63 = vld [vmem:[%s18127_s23 + $0x3f4] ss:$8 sps:$4 sm:$0xff]  }
 0x21e   : > { %1618 = vst.msk [vmem:[#allocation2 + $0x1f8] sm:$0xff] %vm493_vm2, %v1586_v2  ;;  %15556 = vmatmul.mubr.msk.bf16.gmra.mrb[24].mxu0 %vm493_vm2, %v3543_v3  ;;  %v17909_v51 = vld [vmem:[%s20529_s2 + $0x8] sm:$0xff]  }
 0x21f   : > { %v1987_v55 = vpop.f32.mrb[128].mxu1  ;;  %15563 = vmatprep.mubr.msk.bf16.mxu0 %vm493_vm2, %v3804_v7  ;;  %v3793_v7 = vld [vmem:[#allocation2 + $0x8a] sm:$0xff] }
 0x220   : > { %v1988_v8 = vadd.f32 %v18735_v5, %v1987_v55  ;;  %v1989_v9 = vpop.f32.mrb[129].mxu1  ;;  %v3790_v55 = vld [vmem:[#allocation2 + $0x72] sm:$0xff] }
 0x221   : > { %v1990_v11 = vpop.f32.mrb[130].mxu1  ;;  %v3811_v9 = vpack.c.bf16 %v3791_v62, %v3790_v55 }
 0x222   : > { %v2114_v14 = vmax.f32 %v1988_v8, 0.0  ;;  %v1991_v15 = vadd.f32 %v18735_v5, %v1990_v11  ;;  %v1992_v16 = vpop.f32.mrb[131].mxu1 }
 0x223   : > { %v2784_v16 = vld [vmem:[#allocation2 + $0x108] sm:$0xff] }
 0x224   : > { %2146 = vst.msk [vmem:[#allocation2 + $0x200] sm:$0xff] %vm493_vm2, %v2114_v14  ;;  %v2115_v19 = vmax.f32 %v1991_v15, 0.0  ;;  %2633 = vmatmul.mubr.bf16.gmra.mrb[236].mxu1 %v17616_v10  ;;  %v3792_v10 = vld [vmem:[#allocation2 + $0x82] sm:$0xff]  ;;  %v17628_v15 = vld [vmem:[%s18127_s23 + $0x3f0] ss:$8 sps:$4 sm:$0xff]   ;;  %s20485_s23 = scalar_lea.hbm %s20542_s15, %s14821_s16 }
 0x225   : > { %13811 = vmatprep.mubr.msk.bf16.mxu1 %vm782_vm0, %v17617_v13  ;;  %v3812_v11 = vpack.c.bf16 %v3793_v7, %v3792_v10 }
 0x226   : > { %2147 = vst.msk [vmem:[#allocation2 + $0x208] sm:$0xff] %vm493_vm2, %v2115_v19  ;;  %15564 = vmatmul.mubr.msk.bf16.vlgmr.msra.gmra.mrb[0].mxu0 %vm493_vm2, %v3805_v20 }
 0x227   : > { %v1995_v25 = vpop.f32.mrb[132].mxu1  ;;  %15567 = vmatprep.mubr.msk.bf16.mxu0 %vm493_vm2, %v3806_v24  ;;  %15592 = vmatpush3.bf16.msra.mxu0 %v18657_v6  ;;  %v3807_v6 = vpack.c.bf16 %v3783_v31, %v3782_v37  ;;  %v3797_v24 = vld [vmem:[#allocation2 + $0xaa] sm:$0xff] }
 0x228   : > { %v1996_v26 = vadd.f32 %v18735_v5, %v1995_v25  ;;  %v1997_v27 = vpop.f32.mrb[133].mxu1  ;;  %15593 = vmatprep.subr.bf16.mxu0 %v17632_v23  ;;  %v2785_v37 = vld [vmem:[#allocation2 + $0x110] sm:$0xff] }
 0x229   : > { %v1998_v30 = vpop.f32.mrb[134].mxu1 }
 0x22a   : > { %v2116_v33 = vmax.f32 %v1996_v26, 0.0  ;;  %v1999_v34 = vadd.f32 %v18735_v5, %v1998_v30  ;;  %v2000_v35 = vpop.f32.mrb[135].mxu1  ;;  %v3794_v26 = vld [vmem:[#allocation2 + $0x92] sm:$0xff]  ;;  %v3796_v30 = vld [vmem:[#allocation2 + $0xa2] sm:$0xff] }
 0x22b   : > { %15594 = vmatpush3.bf16.msra.mxu0 %v17632_v23  ;;  %v2783_v23 = vld [vmem:[#allocation2 + $0x100] sm:$0xff]  ;;  %v3814_v31 = vpack.c.bf16 %v3797_v24, %v3796_v30 }
 0x22c   : > { %2148 = vst.msk [vmem:[#allocation2 + $0x210] sm:$0xff] %vm493_vm2, %v2116_v33  ;;  %v2117_v39 = vmax.f32 %v1999_v34, 0.0  ;;  %2641 = vmatmul.mubr.bf16.gmra.mrb[240].mxu1 %v17619_v29  ;;  %15623 = vmatprep.subr.bf16.mxu0 %v18765_v41  ;;  %v2811_v25 = vpack.c.bf16 %v2784_v16, %v2783_v23  ;;  %v3813_v29 = vpack.c.bf16 %v3795_v18, %v3794_v26  ;;  %v2793_v16 = vld [vmem:[#allocation2 + $0x150] sm:$0xff]  ;;  %v2795_v23 = vld [vmem:[#allocation2 + $0x160] sm:$0xff] }
 0x22d   : > { %13812 = vmatprep.mubr.msk.bf16.mxu1 %vm782_vm0, %v17620_v32  ;;  %v2786_v32 = vld [vmem:[#allocation2 + $0x118] sm:$0xff] }
 0x22e   : > { %2149 = vst.msk [vmem:[#allocation2 + $0x218] sm:$0xff] %vm493_vm2, %v2117_v39  ;;  %15568 = vmatmul.mubr.msk.bf16.gmra.mrb[4].mxu0 %vm493_vm2, %v3807_v6  ;;  %v3799_v6 = vld [vmem:[#allocation2 + $0xba] sm:$0xff]  ;;  %v2812_v40 = vpack.c.bf16 %v2786_v32, %v2785_v37  ;;  %v2800_v37 = vld [vmem:[#allocation2 + $0x188] sm:$0xff] }
 0x22f   : > { %v2003_v42 = vpop.f32.mrb[136].mxu1  ;;  %15571 = vmatprep.mubr.msk.bf16.mxu0 %vm493_vm2, %v3808_v28 }
 0x230   : > { %v2004_v43 = vadd.f32 %v18735_v5, %v2003_v42  ;;  %v2005_v22 = vpop.f32.mrb[137].mxu1 }
 0x231   : > { %v2006_v45 = vpop.f32.mrb[138].mxu1  ;;  %v2787_v22 = vld [vmem:[#allocation2 + $0x120] sm:$0xff] }
 0x232   : > { %v2118_v48 = vmax.f32 %v2004_v43, 0.0  ;;  %v2007_v49 = vadd.f32 %v18735_v5, %v2006_v45  ;;  %v2008_v50 = vpop.f32.mrb[139].mxu1  ;;  %v2813_v45 = vpack.c.bf16 %v2788_v36, %v2787_v22 }
 0x233   : > { %v4052_v26 = vld [vmem:[#allocation2 + $0x210] sm:$0xff] }
 0x234   : > { %2150 = vst.msk [vmem:[#allocation2 + $0x220] sm:$0xff] %vm493_vm2, %v2118_v48  ;;  %v2119_v53 = vmax.f32 %v2007_v49, 0.0  ;;  %2649 = vmatmul.mubr.bf16.gmra.mrb[244].mxu1 %v17622_v44  ;;  %v3801_v44 = vld [vmem:[#allocation2 + $0xca] sm:$0xff]  ;;  %v3815_v48 = vpack.c.bf16 %v3799_v6, %v3798_v46  ;;  %v3800_v49 = vld [vmem:[#allocation2 + $0xc2] sm:$0xff] }
 0x235   : > { %13813 = vmatprep.mubr.msk.bf16.mxu1 %vm782_vm0, %v17623_v47  ;;  %v3816_v50 = vpack.c.bf16 %v3801_v44, %v3800_v49  ;;  %v2797_v6 = vld [vmem:[#allocation2 + $0x170] sm:$0xff]  ;;  %v2799_v44 = vld [vmem:[#allocation2 + $0x180] sm:$0xff] }
 0x236   : > { %2151 = vst.msk [vmem:[#allocation2 + $0x228] sm:$0xff] %vm493_vm2, %v2119_v53  ;;  %15572 = vmatmul.mubr.msk.bf16.gmra.mrb[8].mxu0 %vm493_vm2, %v3809_v54  ;;  %v2790_v53 = vld [vmem:[#allocation2 + $0x138] sm:$0xff]  ;;  %v2819_v46 = vpack.c.bf16 %v2800_v37, %v2799_v44 }
 0x237   : > { %v2011_v57 = vpop.f32.mrb[140].mxu1  ;;  %15575 = vmatprep.mubr.msk.bf16.mxu0 %vm493_vm2, %v3810_v56  ;;  %v2792_v56 = vld [vmem:[#allocation2 + $0x148] sm:$0xff] }
 0x238   : > { %v2012_v58 = vadd.f32 %v18735_v5, %v2011_v57  ;;  %v2013_v59 = vpop.f32.mrb[141].mxu1 }
 0x239   : > { %v2014_v61 = vpop.f32.mrb[142].mxu1 }
 0x23a   : > { %v2120_v2 = vmax.f32 %v2012_v58, 0.0  ;;  %v2015_v3 = vadd.f32 %v18735_v5, %v2014_v61  ;;  %v2016_v4 = vpop.f32.mrb[143].mxu1  ;;  %v2789_v58 = vld [vmem:[#allocation2 + $0x130] sm:$0xff] }
 0x23b   : > { %v2814_v62 = vpack.c.bf16 %v2790_v53, %v2789_v58  ;;  %v3802_v4 = vld [vmem:[#allocation2 + $0xd2] sm:$0xff]  ;;  %v4054_v30 = vld [vmem:[#allocation2 + $0x220] sm:$0xff] }
 0x23c   : > { %2152 = vst.msk [vmem:[#allocation2 + $0x230] sm:$0xff] %vm493_vm2, %v2120_v2  ;;  %v2121_v8 = vmax.f32 %v2015_v3, 0.0  ;;  %2657 = vmatmul.mubr.bf16.gmra.mrb[248].mxu1 %v17625_v60  ;;  %v4051_v2 = vld [vmem:[#allocation2 + $0x208] sm:$0xff] }
 0x23d   : > { %13814 = vmatprep.mubr.msk.bf16.mxu1 %vm782_vm0, %v17626_v63  ;;  %v2791_v63 = vld [vmem:[#allocation2 + $0x140] sm:$0xff]  ;;  %v4055_v24 = vld [vmem:[#allocation2 + $0x228] sm:$0xff] }
 0x23e   : > { %2153 = vst.msk [vmem:[#allocation2 + $0x238] sm:$0xff] %vm493_vm2, %v2121_v8  ;;  %15576 = vmatmul.mubr.msk.bf16.gmra.mrb[12].mxu0 %vm493_vm2, %v3811_v9  ;;  %v2815_v3 = vpack.c.bf16 %v2792_v56, %v2791_v63  ;;  %v4050_v8 = vld [vmem:[#allocation2 + $0x200] sm:$0xff]  ;;  %v4080_v32 = vpack.c.bf16 %v4055_v24, %v4054_v30 }
 0x23f   : > { %v2019_v12 = vpop.f32.mrb[144].mxu1  ;;  %15579 = vmatprep.mubr.msk.bf16.mxu0 %vm493_vm2, %v3812_v11  ;;  %v4078_v9 = vpack.c.bf16 %v4051_v2, %v4050_v8  ;;  %v2794_v11 = vld [vmem:[#allocation2 + $0x158] sm:$0xff]  ;;  %v18842_v8 = vld [vmem:[%s20529_s2 + $0x70] sm:$0xff]  }
 0x240   : > { %v2020_v13 = vadd.f32 %v18735_v5, %v2019_v12  ;;  %v2021_v14 = vpop.f32.mrb[145].mxu1 }
 0x241   : > { %v2022_v17 = vpop.f32.mrb[146].mxu1  ;;  %v2796_v14 = vld [vmem:[#allocation2 + $0x168] sm:$0xff] }
 0x242   : > { %v2122_v19 = vmax.f32 %v2020_v13, 0.0  ;;  %v2023_v20 = vadd.f32 %v18735_v5, %v2022_v17  ;;  %v2024_v21 = vpop.f32.mrb[147].mxu1  ;;  %v4053_v17 = vld [vmem:[#allocation2 + $0x218] sm:$0xff] }
 0x243   : > { %v2816_v21 = vpack.c.bf16 %v2794_v11, %v2793_v16  ;;  %v2806_v11 = vld [vmem:[#allocation2 + $0x1b8] sm:$0xff]  ;;  %v2805_v16 = vld [vmem:[#allocation2 + $0x1b0] sm:$0xff] }
 0x244   : > { %2154 = vst.msk [vmem:[#allocation2 + $0x240] sm:$0xff] %vm493_vm2, %v2122_v19  ;;  %v2123_v27 = vmax.f32 %v2023_v20, 0.0  ;;  %2665 = vmatmul.mubr.bf16.gmra.mrb[252].mxu1 %v17628_v15 }
 0x245   : > { %15435 = vmatprep.mubr.msk.bf16.mxu1 %vm493_vm2, %v2811_v25  ;;  %v2817_v25 = vpack.c.bf16 %v2796_v14, %v2795_v23  ;;  %v2808_v14 = vld [vmem:[#allocation2 + $0x1c8] sm:$0xff]  ;;  %v2807_v23 = vld [vmem:[#allocation2 + $0x1c0] sm:$0xff] }
 0x246   : > { %2155 = vst.msk [vmem:[#allocation2 + $0x248] sm:$0xff] %vm493_vm2, %v2123_v27  ;;  %15580 = vmatmul.mubr.msk.bf16.gmra.mrb[16].mxu0 %vm493_vm2, %v3813_v29  ;;  %v4079_v29 = vpack.c.bf16 %v4053_v17, %v4052_v26 }
 0x247   : > { %v2027_v33 = vpop.f32.mrb[148].mxu1  ;;  %15583 = vmatprep.mubr.msk.bf16.mxu0 %vm493_vm2, %v3814_v31  ;;  %v17634_v31 = vld [vmem:[%s20529_s2 + $0x68] sm:$0xff]  }
 0x248   : > { %v2028_v34 = vadd.f32 %v18735_v5, %v2027_v33  ;;  %v2029_v35 = vpop.f32.mrb[149].mxu1 }
 0x249   : > { %v2030_v39 = vpop.f32.mrb[150].mxu1 }
 0x24a   : > { %v2124_v28 = vmax.f32 %v2028_v34, 0.0  ;;  %v2031_v42 = vadd.f32 %v18735_v5, %v2030_v39  ;;  %v2032_v43 = vpop.f32.mrb[151].mxu1  ;;  %v2798_v34 = vld [vmem:[#allocation2 + $0x178] sm:$0xff] }
 0x24b   : > { %v2818_v22 = vpack.c.bf16 %v2798_v34, %v2797_v6  ;;  %v4058_v49 = vld [vmem:[#allocation2 + $0x240] sm:$0xff] }
 0x24c   : > { %2156 = vst.msk [vmem:[#allocation2 + $0x250] sm:$0xff] %vm493_vm2, %v2124_v28  ;;  %v2125_v47 = vmax.f32 %v2031_v42, 0.0  ;;  %15436 = vmatmul.mubr.msk.bf16.vlgmr.msra.gmra.mrb[0].mxu1 %vm493_vm2, %v2812_v40  ;;  %v4057_v40 = vld [vmem:[#allocation2 + $0x238] sm:$0xff] }
 0x24d   : > { %15439 = vmatprep.mubr.msk.bf16.mxu1 %vm493_vm2, %v2813_v45  ;;  %16629 = vmatpush3.bf16.msra.mxu1 %v18650_v0  ;;  %v3803_v0 = vld [vmem:[#allocation2 + $0xda] sm:$0xff]  ;;  %v4059_v45 = vld [vmem:[#allocation2 + $0x248] sm:$0xff] }
 0x24e   : > { %2157 = vst.msk [vmem:[#allocation2 + $0x258] sm:$0xff] %vm493_vm2, %v2125_v47  ;;  %15584 = vmatmul.mubr.msk.bf16.gmra.mrb[20].mxu0 %vm493_vm2, %v3815_v48  ;;  %16628 = vmatprep.subr.bf16.mxu1 %v17909_v51  ;;  %v3817_v55 = vpack.c.bf16 %v3803_v0, %v3802_v4  ;;  %v4056_v47 = vld [vmem:[#allocation2 + $0x230] sm:$0xff] }
 0x24f   : > { %v2035_v52 = vpop.f32.mrb[152].mxu1  ;;  %15587 = vmatprep.mubr.msk.bf16.mxu0 %vm493_vm2, %v3816_v50  ;;  %v4081_v48 = vpack.c.bf16 %v4057_v40, %v4056_v47  ;;  %v4082_v50 = vpack.c.bf16 %v4059_v45, %v4058_v49 }
 0x250   : > { %v2036_v54 = vadd.f32 %v18735_v5, %v2035_v52  ;;  %v2037_v38 = vpop.f32.mrb[153].mxu1  ;;  %v2802_v52 = vld [vmem:[#allocation2 + $0x198] sm:$0xff] }
 0x251   : > { %v2038_v57 = vpop.f32.mrb[154].mxu1  ;;  %16630 = vmatpush3.bf16.msra.mxu1 %v17909_v51  ;;  %v2804_v38 = vld [vmem:[#allocation2 + $0x1a8] sm:$0xff] }
 0x252   : > { %v2126_v59 = vmax.f32 %v2036_v54, 0.0  ;;  %v2039_v60 = vadd.f32 %v18735_v5, %v2038_v57  ;;  %v2040_v61 = vpop.f32.mrb[155].mxu1  ;;  %v2801_v57 = vld [vmem:[#allocation2 + $0x190] sm:$0xff] }
 0x253   : > { %v2820_v61 = vpack.c.bf16 %v2802_v52, %v2801_v57 }
 0x254   : > { %2158 = vst.msk [vmem:[#allocation2 + $0x260] sm:$0xff] %vm493_vm2, %v2126_v59  ;;  %v2127_v7 = vmax.f32 %v2039_v60, 0.0  ;;  %15440 = vmatmul.mubr.msk.bf16.gmra.mrb[4].mxu1 %vm493_vm2, %v2814_v62  ;;  %v2803_v62 = vld [vmem:[#allocation2 + $0x1a0] sm:$0xff] }
 0x255   : > { %15443 = vmatprep.mubr.msk.bf16.mxu1 %vm493_vm2, %v2815_v3  ;;  %v4061_v58 = vld [vmem:[#allocation2 + $0x258] sm:$0xff]  ;;  %v2821_v2 = vpack.c.bf16 %v2804_v38, %v2803_v62  ;;  %v4060_v3 = vld [vmem:[#allocation2 + $0x250] sm:$0xff] }
 0x256   : > { %2159 = vst.msk [vmem:[#allocation2 + $0x268] sm:$0xff] %vm493_vm2, %v2127_v7  ;;  %15588 = vmatmul.mubr.msk.bf16.gmra.mrb[24].mxu0 %vm493_vm2, %v3817_v55  ;;  %v4083_v7 = vpack.c.bf16 %v4061_v58, %v4060_v3  ;;  %v2759_v38 = vld [vmem:[#allocation2 + $0xb0] sm:$0xff] }
 0x257   : > { %v2043_v10 = vpop.f32.mrb[156].mxu1  ;;  %15595 = vmatprep.mubr.msk.bf16.mxu0 %vm493_vm2, %v4078_v9 }
 0x258   : > { %v2044_v12 = vadd.f32 %v18735_v5, %v2043_v10  ;;  %v2045_v13 = vpop.f32.mrb[157].mxu1 }
 0x259   : > { %v2046_v15 = vpop.f32.mrb[158].mxu1 }
 0x25a   : > { %v2128_v18 = vmax.f32 %v2044_v12, 0.0  ;;  %v2047_v19 = vadd.f32 %v18735_v5, %v2046_v15  ;;  %v2048_v20 = vpop.f32.mrb[159].mxu1 }
 0x25b   : > { %v4062_v55 = vld [vmem:[#allocation2 + $0x260] sm:$0xff] }
 0x25c   : > { %2160 = vst.msk [vmem:[#allocation2 + $0x270] sm:$0xff] %vm493_vm2, %v2128_v18  ;;  %v2129_v27 = vmax.f32 %v2047_v19, 0.0  ;;  %15444 = vmatmul.mubr.msk.bf16.gmra.mrb[8].mxu1 %vm493_vm2, %v2816_v21  ;;  %v2822_v21 = vpack.c.bf16 %v2806_v11, %v2805_v16  ;;  %v2763_v11 = vld [vmem:[#allocation2 + $0xd0] sm:$0xff] }
 0x25d   : > { %15447 = vmatprep.mubr.msk.bf16.mxu1 %vm493_vm2, %v2817_v25  ;;  %v4063_v63 = vld [vmem:[#allocation2 + $0x268] sm:$0xff]  ;;  %v2823_v25 = vpack.c.bf16 %v2808_v14, %v2807_v23 }
 0x25e   : > { %2161 = vst.msk [vmem:[#allocation2 + $0x278] sm:$0xff] %vm493_vm2, %v2129_v27  ;;  %15596 = vmatmul.mubr.msk.bf16.vlgmr.msra.gmra.mrb[0].mxu0 %vm493_vm2, %v4079_v29  ;;  %v4084_v9 = vpack.c.bf16 %v4063_v63, %v4062_v55 }
 0x25f   : > { %v2051_v33 = vpop.f32.mrb[160].mxu1  ;;  %15599 = vmatprep.mubr.msk.bf16.mxu0 %vm493_vm2, %v4080_v32  ;;  %15624 = vmatpush3.bf16.msra.mxu0 %v18765_v41 }
 0x260   : > { %v2052_v35 = vadd.f32 %v18735_v5, %v2051_v33  ;;  %v2053_v36 = vpop.f32.mrb[161].mxu1  ;;  %15625 = vmatprep.subr.bf16.mxu0 %v17634_v31  ;;  %v2810_v33 = vld [vmem:[#allocation2 + $0x1d8] sm:$0xff] }
 0x261   : > { %v2054_v39 = vpop.f32.mrb[162].mxu1  ;;  %v2758_v36 = vld [vmem:[#allocation2 + $0xa8] sm:$0xff] }
 0x262   : > { %v2130_v28 = vmax.f32 %v2052_v35, 0.0  ;;  %v2055_v42 = vadd.f32 %v18735_v5, %v2054_v39  ;;  %v2056_v43 = vpop.f32.mrb[163].mxu1  ;;  %v2809_v39 = vld [vmem:[#allocation2 + $0x1d0] sm:$0xff] }
 0x263   : > { %15626 = vmatpush3.bf16.msra.mxu0 %v17634_v31  ;;  %v4064_v26 = vld [vmem:[#allocation2 + $0x270] sm:$0xff]  ;;  %v2824_v43 = vpack.c.bf16 %v2810_v33, %v2809_v39 }
 0x264   : > { %2162 = vst.msk [vmem:[#allocation2 + $0x280] sm:$0xff] %vm493_vm2, %v2130_v28  ;;  %v2131_v41 = vmax.f32 %v2055_v42, 0.0  ;;  %15448 = vmatmul.mubr.msk.bf16.gmra.mrb[12].mxu1 %vm493_vm2, %v2818_v22  ;;  %15655 = vmatprep.subr.bf16.mxu0 %v18842_v8  ;;  %v2757_v22 = vld [vmem:[#allocation2 + $0xa0] sm:$0xff] }
 0x265   : > { %15451 = vmatprep.mubr.msk.bf16.mxu1 %vm493_vm2, %v2819_v46  ;;  %v4065_v17 = vld [vmem:[#allocation2 + $0x278] sm:$0xff]  ;;  %v2775_v44 = vpack.c.bf16 %v2758_v36, %v2757_v22 }
 0x266   : > { %2163 = vst.msk [vmem:[#allocation2 + $0x288] sm:$0xff] %vm493_vm2, %v2131_v41  ;;  %15600 = vmatmul.mubr.msk.bf16.gmra.mrb[4].mxu0 %vm493_vm2, %v4081_v48  ;;  %v4085_v29 = vpack.c.bf16 %v4065_v17, %v4064_v26 }
 0x267   : > { %v2059_v51 = vpop.f32.mrb[164].mxu1  ;;  %15603 = vmatprep.mubr.msk.bf16.mxu0 %vm493_vm2, %v4082_v50  ;;  %v2760_v50 = vld [vmem:[#allocation2 + $0xb8] sm:$0xff] }
 0x268   : > { %v2060_v53 = vadd.f32 %v18735_v5, %v2059_v51  ;;  %v2061_v54 = vpop.f32.mrb[165].mxu1  ;;  %v2776_v57 = vpack.c.bf16 %v2760_v50, %v2759_v38 }
 0x269   : > { %v2062_v56 = vpop.f32.mrb[166].mxu1  ;;  %v2762_v54 = vld [vmem:[#allocation2 + $0xc8] sm:$0xff] }
 0x26a   : > { %v2132_v0 = vmax.f32 %v2060_v53, 0.0  ;;  %v2063_v59 = vadd.f32 %v18735_v5, %v2062_v56  ;;  %v2064_v60 = vpop.f32.mrb[167].mxu1 }
 0x26b   : > { %v4066_v30 = vld [vmem:[#allocation2 + $0x280] sm:$0xff] }
 0x26c   : > { %2164 = vst.msk [vmem:[#allocation2 + $0x290] sm:$0xff] %vm493_vm2, %v2132_v0  ;;  %v2133_v4 = vmax.f32 %v2063_v59, 0.0  ;;  %15452 = vmatmul.mubr.msk.bf16.gmra.mrb[16].mxu1 %vm493_vm2, %v2820_v61  ;;  %v2761_v60 = vld [vmem:[#allocation2 + $0xc0] sm:$0xff] }
 0x26d   : > { %15455 = vmatprep.mubr.msk.bf16.mxu1 %vm493_vm2, %v2821_v2  ;;  %v4067_v24 = vld [vmem:[#allocation2 + $0x288] sm:$0xff]  ;;  %v2777_v61 = vpack.c.bf16 %v2762_v54, %v2761_v60 }
 0x26e   : > { %2165 = vst.msk [vmem:[#allocation2 + $0x298] sm:$0xff] %vm493_vm2, %v2133_v4  ;;  %15604 = vmatmul.mubr.msk.bf16.gmra.mrb[8].mxu0 %vm493_vm2, %v4083_v7  ;;  %v4086_v31 = vpack.c.bf16 %v4067_v24, %v4066_v30  ;;  %v2764_v7 = vld [vmem:[#allocation2 + $0xd8] sm:$0xff] }
 0x26f   : > { %v2067_v10 = vpop.f32.mrb[168].mxu1  ;;  %15607 = vmatprep.mubr.msk.bf16.mxu0 %vm493_vm2, %v4084_v9 }
 0x270   : > { %v2068_v12 = vadd.f32 %v18735_v5, %v2067_v10  ;;  %v2069_v13 = vpop.f32.mrb[169].mxu1 }
 0x271   : > { %v2070_v15 = vpop.f32.mrb[170].mxu1 }
 0x272   : > { %v2134_v18 = vmax.f32 %v2068_v12, 0.0  ;;  %v2071_v19 = vadd.f32 %v18735_v5, %v2070_v15  ;;  %v2072_v20 = vpop.f32.mrb[171].mxu1  ;;  %v2778_v15 = vpack.c.bf16 %v2764_v7, %v2763_v11 }
 0x273   : > { %v4068_v45 = vld [vmem:[#allocation2 + $0x290] sm:$0xff] }
 0x274   : > { %2166 = vst.msk [vmem:[#allocation2 + $0x2a0] sm:$0xff] %vm493_vm2, %v2134_v18  ;;  %v2135_v27 = vmax.f32 %v2071_v19, 0.0  ;;  %15456 = vmatmul.mubr.msk.bf16.gmra.mrb[20].mxu1 %vm493_vm2, %v2822_v21 }
 0x275   : > { %15459 = vmatprep.mubr.msk.bf16.mxu1 %vm493_vm2, %v2823_v25  ;;  %v4069_v6 = vld [vmem:[#allocation2 + $0x298] sm:$0xff] }
 0x276   : > { %2167 = vst.msk [vmem:[#allocation2 + $0x2a8] sm:$0xff] %vm493_vm2, %v2135_v27  ;;  %15608 = vmatmul.mubr.msk.bf16.gmra.mrb[12].mxu0 %vm493_vm2, %v4085_v29  ;;  %v4087_v47 = vpack.c.bf16 %v4069_v6, %v4068_v45 }
 0x277   : > { %v2075_v32 = vpop.f32.mrb[172].mxu1  ;;  %15611 = vmatprep.mubr.msk.bf16.mxu0 %vm493_vm2, %v4086_v31 }
 0x278   : > { %v2076_v34 = vadd.f32 %v18735_v5, %v2075_v32  ;;  %v2077_v35 = vpop.f32.mrb[173].mxu1 }
 0x279   : > { %v2078_v37 = vpop.f32.mrb[174].mxu1 }
 0x27a   : > { %v2136_v40 = vmax.f32 %v2076_v34, 0.0  ;;  %v2079_v28 = vadd.f32 %v18735_v5, %v2078_v37  ;;  %v2080_v42 = vpop.f32.mrb[175].mxu1 }
 0x27b   : > { %v4070_v41 = vld [vmem:[#allocation2 + $0x2a0] sm:$0xff] }
 0x27c   : > { %2168 = vst.msk [vmem:[#allocation2 + $0x2b0] sm:$0xff] %vm493_vm2, %v2136_v40  ;;  %v2137_v46 = vmax.f32 %v2079_v28, 0.0  ;;  %15460 = vmatmul.mubr.msk.bf16.gmra.mrb[24].mxu1 %vm493_vm2, %v2824_v43 }
 0x27d   : > { %15487 = vmatprep.mubr.msk.bf16.mxu1 %vm493_vm2, %v2775_v44  ;;  %v4071_v48 = vld [vmem:[#allocation2 + $0x2a8] sm:$0xff] }
 0x27e   : > { %2169 = vst.msk [vmem:[#allocation2 + $0x2b8] sm:$0xff] %vm493_vm2, %v2137_v46  ;;  %15612 = vmatmul.mubr.msk.bf16.gmra.mrb[16].mxu0 %vm493_vm2, %v4087_v47  ;;  %v4088_v49 = vpack.c.bf16 %v4071_v48, %v4070_v41 }
 0x27f   : > { %v2083_v51 = vpop.f32.mrb[176].mxu1 }
 0x280   : > { %v2084_v52 = vadd.f32 %v18735_v5, %v2083_v51  ;;  %v2085_v53 = vpop.f32.mrb[177].mxu1  ;;  %15615 = vmatprep.mubr.msk.bf16.mxu0 %vm493_vm2, %v4088_v49 }
 0x281   : > { %v2086_v56 = vpop.f32.mrb[178].mxu1 }
 0x282   : > { %v2138_v58 = vmax.f32 %v2084_v52, 0.0  ;;  %v2087_v0 = vadd.f32 %v18735_v5, %v2086_v56  ;;  %v2088_v59 = vpop.f32.mrb[179].mxu1 }
 0x283   : > { %v4072_v63 = vld [vmem:[#allocation2 + $0x2b0] sm:$0xff] }
 0x284   : > { %2170 = vst.msk [vmem:[#allocation2 + $0x2c0] sm:$0xff] %vm493_vm2, %v2138_v58  ;;  %v2139_v62 = vmax.f32 %v2087_v0, 0.0  ;;  %15488 = vmatmul.mubr.msk.bf16.vlgmr.msra.gmra.mrb[20].mxu1 %vm493_vm2, %v2776_v57 }
 0x285   : > { %15491 = vmatprep.mubr.msk.bf16.mxu1 %vm493_vm2, %v2777_v61  ;;  %v4073_v2 = vld [vmem:[#allocation2 + $0x2b8] sm:$0xff] }
 0x286   : > { %2171 = vst.msk [vmem:[#allocation2 + $0x2c8] sm:$0xff] %vm493_vm2, %v2139_v62  ;;  %v4089_v3 = vpack.c.bf16 %v4073_v2, %v4072_v63 }
 0x287   : > { %v2091_v4 = vpop.f32.mrb[180].mxu1 }
 0x288   : > { %v2092_v55 = vadd.f32 %v18735_v5, %v2091_v4  ;;  %v2093_v9 = vpop.f32.mrb[181].mxu1  ;;  %15616 = vmatmul.mubr.msk.bf16.gmra.mrb[20].mxu0 %vm493_vm2, %v4089_v3  ;;  %v17636_v4 = vld [vmem:[%s20529_s2 + $0x78] sm:$0xff]  }
 0x289   : > { %v2094_v10 = vpop.f32.mrb[182].mxu1 }
 0x28a   : > { %v2140_v12 = vmax.f32 %v2092_v55, 0.0  ;;  %v2095_v13 = vadd.f32 %v18735_v5, %v2094_v10  ;;  %v2096_v14 = vpop.f32.mrb[183].mxu1 }
 0x28b   : > { %v4074_v17 = vld [vmem:[#allocation2 + $0x2c0] sm:$0xff] }
 0x28c   : > { %2172 = vst.msk [vmem:[#allocation2 + $0x2d0] sm:$0xff] %vm493_vm2, %v2140_v12  ;;  %v2141_v16 = vmax.f32 %v2095_v13, 0.0  ;;  %15492 = vmatmul.mubr.msk.bf16.gmra.mrb[24].mxu1 %vm493_vm2, %v2778_v15  ;;  %v18908_v14 = vld [vmem:[%s20529_s2 + $0x80] sm:$0xff]  }
 0x28d   : > { %v4075_v18 = vld [vmem:[#allocation2 + $0x2c8] sm:$0xff] }
 0x28e   : > { %2173 = vst.msk [vmem:[#allocation2 + $0x2d8] sm:$0xff] %vm493_vm2, %v2141_v16  ;;  %v4090_v19 = vpack.c.bf16 %v4075_v18, %v4074_v17 }
 0x28f   : > { %v2099_v20 = vpop.f32.mrb[184].mxu1 }
 0x290   : > { %v2100_v21 = vadd.f32 %v18735_v5, %v2099_v20  ;;  %v2101_v23 = vpop.f32.mrb[185].mxu1  ;;  %15619 = vmatprep.mubr.msk.bf16.mxu0 %vm493_vm2, %v4090_v19 }
 0x291   : > { %v2102_v24 = vpop.f32.mrb[186].mxu1 }
 0x292   : > { %v2142_v25 = vmax.f32 %v2100_v21, 0.0  ;;  %v2103_v26 = vadd.f32 %v18735_v5, %v2102_v24  ;;  %v2104_v27 = vpop.f32.mrb[187].mxu1 }
 0x293   : > { %v4076_v30 = vld [vmem:[#allocation2 + $0x2d0] sm:$0xff] }
 0x294   : > { %2174 = vst.msk [vmem:[#allocation2 + $0x2e0] sm:$0xff] %vm493_vm2, %v2142_v25  ;;  %v2143_v29 = vmax.f32 %v2103_v26, 0.0 }
 0x295   : > { %v4077_v31 = vld [vmem:[#allocation2 + $0x2d8] sm:$0xff] }
 0x296   : > { %2175 = vst.msk [vmem:[#allocation2 + $0x2e8] sm:$0xff] %vm493_vm2, %v2143_v29  ;;  %v4091_v32 = vpack.c.bf16 %v4077_v31, %v4076_v30 }
 0x297   : > { %v2107_v33 = vpop.f32.mrb[188].mxu1 }
 0x298   : > { %v2108_v34 = vadd.f32 %v18735_v5, %v2107_v33  ;;  %v2109_v35 = vpop.f32.mrb[189].mxu1  ;;  %15620 = vmatmul.mubr.msk.bf16.gmra.mrb[24].mxu0 %vm493_vm2, %v4091_v32 }
 0x299   : > { %v2110_v36 = vpop.f32.mrb[190].mxu1 }
 0x29a   : > { %v2144_v37 = vmax.f32 %v2108_v34, 0.0  ;;  %v2112_v39 = vpop.f32.mrb[191].mxu1 }
 0x29c   : > { %2176 = vst.msk [vmem:[#allocation2 + $0x2f0] sm:$0xff] %vm493_vm2, %v2144_v37 }
 0x29f   : > { %v2546_v6 = vpop.f32.mrb[192].mxu1 }
 0x2a0   : > { %v2547_v40 = vadd.f32 %v18735_v5, %v2546_v6  ;;  %v2548_v28 = vpop.f32.mrb[193].mxu1 }
 0x2a1   : > { %v2549_v42 = vpop.f32.mrb[194].mxu1 }
 0x2a2   : > { %v2673_v43 = vmax.f32 %v2547_v40, 0.0  ;;  %v2550_v22 = vadd.f32 %v18735_v5, %v2549_v42  ;;  %v2551_v44 = vpop.f32.mrb[195].mxu1 }
 0x2a4   : > { %2705 = vst.msk [vmem:[#allocation2 + $0x300] sm:$0xff] %vm493_vm2, %v2673_v43  ;;  %v2674_v45 = vmax.f32 %v2550_v22, 0.0 }
 0x2a6   : > { %2706 = vst.msk [vmem:[#allocation2 + $0x308] sm:$0xff] %vm493_vm2, %v2674_v45 }
 0x2a7   : > { %v2554_v46 = vpop.f32.mrb[196].mxu1 }
 0x2a8   : > { %v2555_v47 = vadd.f32 %v18735_v5, %v2554_v46  ;;  %v2556_v41 = vpop.f32.mrb[197].mxu1 }
 0x2a9   : > { %v2557_v48 = vpop.f32.mrb[198].mxu1 }
 0x2aa   : > { %v2675_v49 = vmax.f32 %v2555_v47, 0.0  ;;  %v2558_v50 = vadd.f32 %v18735_v5, %v2557_v48  ;;  %v2559_v51 = vpop.f32.mrb[199].mxu1 }
 0x2ab   : > { %v4324_v53 = vld [vmem:[#allocation2 + $0x300] sm:$0xff] }
 0x2ac   : > { %2707 = vst.msk [vmem:[#allocation2 + $0x310] sm:$0xff] %vm493_vm2, %v2675_v49  ;;  %v2676_v52 = vmax.f32 %v2558_v50, 0.0 }
 0x2ad   : > { %v4325_v54 = vld [vmem:[#allocation2 + $0x308] sm:$0xff] }
 0x2ae   : > { %2708 = vst.msk [vmem:[#allocation2 + $0x318] sm:$0xff] %vm493_vm2, %v2676_v52  ;;  %v4352_v38 = vpack.c.bf16 %v4325_v54, %v4324_v53 }
 0x2af   : > { %v2562_v56 = vpop.f32.mrb[200].mxu1 }
 0x2b0   : > { %v2563_v57 = vadd.f32 %v18735_v5, %v2562_v56  ;;  %v2564_v58 = vpop.f32.mrb[201].mxu1  ;;  %15627 = vmatprep.mubr.msk.bf16.mxu0 %vm493_vm2, %v4352_v38 }
 0x2b1   : > { %v2565_v0 = vpop.f32.mrb[202].mxu1 }
 0x2b2   : > { %v2677_v59 = vmax.f32 %v2563_v57, 0.0  ;;  %v2566_v60 = vadd.f32 %v18735_v5, %v2565_v0  ;;  %v2567_v61 = vpop.f32.mrb[203].mxu1 }
 0x2b3   : > { %v4326_v63 = vld [vmem:[#allocation2 + $0x310] sm:$0xff] }
 0x2b4   : > { %2709 = vst.msk [vmem:[#allocation2 + $0x320] sm:$0xff] %vm493_vm2, %v2677_v59  ;;  %v2678_v62 = vmax.f32 %v2566_v60, 0.0 }
 0x2b5   : > { %v4327_v2 = vld [vmem:[#allocation2 + $0x318] sm:$0xff] }
 0x2b6   : > { %2710 = vst.msk [vmem:[#allocation2 + $0x328] sm:$0xff] %vm493_vm2, %v2678_v62  ;;  %v4353_v3 = vpack.c.bf16 %v4327_v2, %v4326_v63 }
 0x2b7   : > { %v2570_v7 = vpop.f32.mrb[204].mxu1 }
 0x2b8   : > { %v2571_v55 = vadd.f32 %v18735_v5, %v2570_v7  ;;  %v2572_v9 = vpop.f32.mrb[205].mxu1  ;;  %15628 = vmatmul.mubr.msk.bf16.vlgmr.msra.gmra.mrb[0].mxu0 %vm493_vm2, %v4353_v3 }
 0x2b9   : > { %v2573_v10 = vpop.f32.mrb[206].mxu1  ;;  %15656 = vmatpush3.bf16.msra.mxu0 %v18842_v8 }
 0x2ba   : > { %v2679_v11 = vmax.f32 %v2571_v55, 0.0  ;;  %v2574_v12 = vadd.f32 %v18735_v5, %v2573_v10  ;;  %v2575_v13 = vpop.f32.mrb[207].mxu1  ;;  %15657 = vmatprep.subr.bf16.mxu0 %v17636_v4 }
 0x2bb   : > { %v4328_v16 = vld [vmem:[#allocation2 + $0x320] sm:$0xff] }
 0x2bc   : > { %2711 = vst.msk [vmem:[#allocation2 + $0x330] sm:$0xff] %vm493_vm2, %v2679_v11  ;;  %v2680_v15 = vmax.f32 %v2574_v12, 0.0 }
 0x2bd   : > { %v4329_v17 = vld [vmem:[#allocation2 + $0x328] sm:$0xff]  ;;  %15658 = vmatpush3.bf16.msra.mxu0 %v17636_v4 }
 0x2be   : > { %2712 = vst.msk [vmem:[#allocation2 + $0x338] sm:$0xff] %vm493_vm2, %v2680_v15  ;;  %v4354_v18 = vpack.c.bf16 %v4329_v17, %v4328_v16  ;;  %15687 = vmatprep.subr.bf16.mxu0 %v18908_v14 }
 0x2bf   : > { %v2578_v8 = vpop.f32.mrb[208].mxu1 }
 0x2c0   : > { %v2579_v19 = vadd.f32 %v18735_v5, %v2578_v8  ;;  %v2580_v20 = vpop.f32.mrb[209].mxu1  ;;  %15631 = vmatprep.mubr.msk.bf16.mxu0 %vm493_vm2, %v4354_v18  ;;  %v18943_v18 = vld [vmem:[%s20535_s8] ss:$0 sm:$0xff] }
 0x2c1   : > { %v2581_v21 = vpop.f32.mrb[210].mxu1 }
 0x2c2   : > { %v2681_v23 = vmax.f32 %v2579_v19, 0.0  ;;  %v2582_v24 = vadd.f32 %v18735_v5, %v2581_v21  ;;  %v2583_v25 = vpop.f32.mrb[211].mxu1 }
 0x2c3   : > { %v4330_v27 = vld [vmem:[#allocation2 + $0x330] sm:$0xff] }
 0x2c4   : > { %2713 = vst.msk [vmem:[#allocation2 + $0x340] sm:$0xff] %vm493_vm2, %v2681_v23  ;;  %v2682_v26 = vmax.f32 %v2582_v24, 0.0 }
 0x2c5   : > { %v4331_v29 = vld [vmem:[#allocation2 + $0x338] sm:$0xff] }
 0x2c6   : > { %2714 = vst.msk [vmem:[#allocation2 + $0x348] sm:$0xff] %vm493_vm2, %v2682_v26  ;;  %v4355_v30 = vpack.c.bf16 %v4331_v29, %v4330_v27 }
 0x2c7   : > { %v2586_v31 = vpop.f32.mrb[212].mxu1 }
 0x2c8   : > { %v2587_v32 = vadd.f32 %v18735_v5, %v2586_v31  ;;  %v2588_v33 = vpop.f32.mrb[213].mxu1  ;;  %15632 = vmatmul.mubr.msk.bf16.gmra.mrb[4].mxu0 %vm493_vm2, %v4355_v30 }
 0x2c9   : > { %v2589_v34 = vpop.f32.mrb[214].mxu1 }
 0x2ca   : > { %v2683_v35 = vmax.f32 %v2587_v32, 0.0  ;;  %v2590_v36 = vadd.f32 %v18735_v5, %v2589_v34  ;;  %v2591_v37 = vpop.f32.mrb[215].mxu1 }
 0x2cb   : > { %v4332_v6 = vld [vmem:[#allocation2 + $0x340] sm:$0xff] }
 0x2cc   : > { %2715 = vst.msk [vmem:[#allocation2 + $0x350] sm:$0xff] %vm493_vm2, %v2683_v35  ;;  %v2684_v39 = vmax.f32 %v2590_v36, 0.0 }
 0x2cd   : > { %v4333_v40 = vld [vmem:[#allocation2 + $0x348] sm:$0xff] }
 0x2ce   : > { %2716 = vst.msk [vmem:[#allocation2 + $0x358] sm:$0xff] %vm493_vm2, %v2684_v39  ;;  %v4356_v28 = vpack.c.bf16 %v4333_v40, %v4332_v6 }
 0x2cf   : > { %v2594_v42 = vpop.f32.mrb[216].mxu1 }
 0x2d0   : > { %v2595_v43 = vadd.f32 %v18735_v5, %v2594_v42  ;;  %v2596_v22 = vpop.f32.mrb[217].mxu1  ;;  %15635 = vmatprep.mubr.msk.bf16.mxu0 %vm493_vm2, %v4356_v28 }
 0x2d1   : > { %v2597_v44 = vpop.f32.mrb[218].mxu1 }
 0x2d2   : > { %v2685_v45 = vmax.f32 %v2595_v43, 0.0  ;;  %v2598_v46 = vadd.f32 %v18735_v5, %v2597_v44  ;;  %v2599_v47 = vpop.f32.mrb[219].mxu1 }
 0x2d3   : > { %v4334_v48 = vld [vmem:[#allocation2 + $0x350] sm:$0xff] }
 0x2d4   : > { %2717 = vst.msk [vmem:[#allocation2 + $0x360] sm:$0xff] %vm493_vm2, %v2685_v45  ;;  %v2686_v41 = vmax.f32 %v2598_v46, 0.0 }
 0x2d5   : > { %v4335_v49 = vld [vmem:[#allocation2 + $0x358] sm:$0xff] }
 0x2d6   : > { %2718 = vst.msk [vmem:[#allocation2 + $0x368] sm:$0xff] %vm493_vm2, %v2686_v41  ;;  %v4357_v50 = vpack.c.bf16 %v4335_v49, %v4334_v48 }
 0x2d7   : > { %v2602_v51 = vpop.f32.mrb[220].mxu1 }
 0x2d8   : > { %v2603_v52 = vadd.f32 %v18735_v5, %v2602_v51  ;;  %v2604_v53 = vpop.f32.mrb[221].mxu1  ;;  %15636 = vmatmul.mubr.msk.bf16.gmra.mrb[8].mxu0 %vm493_vm2, %v4357_v50 }
 0x2d9   : > { %v2605_v54 = vpop.f32.mrb[222].mxu1 }
 0x2da   : > { %v2687_v38 = vmax.f32 %v2603_v52, 0.0  ;;  %v2606_v56 = vadd.f32 %v18735_v5, %v2605_v54  ;;  %v2607_v57 = vpop.f32.mrb[223].mxu1 }
 0x2db   : > { %v4336_v0 = vld [vmem:[#allocation2 + $0x360] sm:$0xff] }
 0x2dc   : > { %2719 = vst.msk [vmem:[#allocation2 + $0x370] sm:$0xff] %vm493_vm2, %v2687_v38  ;;  %v2688_v58 = vmax.f32 %v2606_v56, 0.0 }
 0x2dd   : > { %v4337_v59 = vld [vmem:[#allocation2 + $0x368] sm:$0xff] }
 0x2de   : > { %2720 = vst.msk [vmem:[#allocation2 + $0x378] sm:$0xff] %vm493_vm2, %v2688_v58  ;;  %v4358_v60 = vpack.c.bf16 %v4337_v59, %v4336_v0 }
 0x2df   : > { %v2610_v61 = vpop.f32.mrb[224].mxu1 }
 0x2e0   : > { %v2611_v62 = vadd.f32 %v18735_v5, %v2610_v61  ;;  %v2612_v63 = vpop.f32.mrb[225].mxu1  ;;  %15639 = vmatprep.mubr.msk.bf16.mxu0 %vm493_vm2, %v4358_v60 }
 0x2e1   : > { %v2613_v2 = vpop.f32.mrb[226].mxu1 }
 0x2e2   : > { %v2689_v3 = vmax.f32 %v2611_v62, 0.0  ;;  %v2614_v4 = vadd.f32 %v18735_v5, %v2613_v2  ;;  %v2615_v7 = vpop.f32.mrb[227].mxu1 }
 0x2e3   : > { %v4338_v9 = vld [vmem:[#allocation2 + $0x370] sm:$0xff] }
 0x2e4   : > { %2721 = vst.msk [vmem:[#allocation2 + $0x380] sm:$0xff] %vm493_vm2, %v2689_v3  ;;  %v2690_v55 = vmax.f32 %v2614_v4, 0.0 }
 0x2e5   : > { %v4339_v10 = vld [vmem:[#allocation2 + $0x378] sm:$0xff] }
 0x2e6   : > { %2722 = vst.msk [vmem:[#allocation2 + $0x388] sm:$0xff] %vm493_vm2, %v2690_v55  ;;  %v4359_v11 = vpack.c.bf16 %v4339_v10, %v4338_v9 }
 0x2e7   : > { %v2618_v12 = vpop.f32.mrb[228].mxu1 }
 0x2e8   : > { %v2619_v13 = vadd.f32 %v18735_v5, %v2618_v12  ;;  %v2620_v15 = vpop.f32.mrb[229].mxu1  ;;  %15640 = vmatmul.mubr.msk.bf16.gmra.mrb[12].mxu0 %vm493_vm2, %v4359_v11 }
 0x2e9   : > { %v2621_v16 = vpop.f32.mrb[230].mxu1  ;;  %v4599_v15 = vld [vmem:[#allocation2 + $0x209] sm:$0xff] }
 0x2ea   : > { %v2691_v17 = vmax.f32 %v2619_v13, 0.0  ;;  %v2622_v8 = vadd.f32 %v18943_v18, %v2621_v16  ;;  %v2623_v19 = vpop.f32.mrb[231].mxu1 }
 0x2eb   : > { %v4340_v21 = vld [vmem:[#allocation2 + $0x380] sm:$0xff] }
 0x2ec   : > { %2723 = vst.msk [vmem:[#allocation2 + $0x390] sm:$0xff] %vm493_vm2, %v2691_v17  ;;  %v2692_v20 = vmax.f32 %v2622_v8, 0.0  ;;  %v4598_v19 = vld [vmem:[#allocation2 + $0x201] sm:$0xff] }
 0x2ed   : > { %v4341_v23 = vld [vmem:[#allocation2 + $0x388] sm:$0xff] }
 0x2ee   : > { %2724 = vst.msk [vmem:[#allocation2 + $0x398] sm:$0xff] %vm493_vm2, %v2692_v20  ;;  %v4360_v5 = vpack.c.bf16 %v4341_v23, %v4340_v21  ;;  %v4626_v20 = vpack.c.bf16 %v4599_v15, %v4598_v19 }
 0x2ef   : > { %v2626_v24 = vpop.f32.mrb[232].mxu1 }
 0x2f0   : > { %v2627_v25 = vadd.f32 %v18943_v18, %v2626_v24  ;;  %v2628_v26 = vpop.f32.mrb[233].mxu1  ;;  %15643 = vmatprep.mubr.msk.bf16.mxu0 %vm493_vm2, %v4360_v5 }
 0x2f1   : > { %v2629_v27 = vpop.f32.mrb[234].mxu1 }
 0x2f2   : > { %v2693_v29 = vmax.f32 %v2627_v25, 0.0  ;;  %v2630_v30 = vadd.f32 %v18943_v18, %v2629_v27  ;;  %v2631_v31 = vpop.f32.mrb[235].mxu1  ;;  %v4601_v27 = vld [vmem:[#allocation2 + $0x219] sm:$0xff] }
 0x2f3   : > { %v4342_v33 = vld [vmem:[#allocation2 + $0x390] sm:$0xff] }
 0x2f4   : > { %2725 = vst.msk [vmem:[#allocation2 + $0x3a0] sm:$0xff] %vm493_vm2, %v2693_v29  ;;  %v2694_v32 = vmax.f32 %v2630_v30, 0.0  ;;  %v4603_v29 = vld [vmem:[#allocation2 + $0x229] sm:$0xff]  ;;  %v4600_v30 = vld [vmem:[#allocation2 + $0x211] sm:$0xff] }
 0x2f5   : > { %v4343_v34 = vld [vmem:[#allocation2 + $0x398] sm:$0xff]  ;;  %v4627_v31 = vpack.c.bf16 %v4601_v27, %v4600_v30  ;;  %v4877_v30 = vld [vmem:[#allocation2 + $0x329] sm:$0xff] }
 0x2f6   : > { %2726 = vst.msk [vmem:[#allocation2 + $0x3a8] sm:$0xff] %vm493_vm2, %v2694_v32  ;;  %v4361_v35 = vpack.c.bf16 %v4343_v34, %v4342_v33  ;;  %v4602_v32 = vld [vmem:[#allocation2 + $0x221] sm:$0xff] }
 0x2f7   : > { %v2634_v36 = vpop.f32.mrb[236].mxu1  ;;  %v17638_v33 = vld [vmem:[%s20529_s2 + $0x88] sm:$0xff]  }
 0x2f8   : > { %v2635_v37 = vadd.f32 %v18943_v18, %v2634_v36  ;;  %v2636_v39 = vpop.f32.mrb[237].mxu1  ;;  %15644 = vmatmul.mubr.msk.bf16.gmra.mrb[16].mxu0 %vm493_vm2, %v4361_v35 }
 0x2f9   : > { %v2637_v6 = vpop.f32.mrb[238].mxu1  ;;  %v18994_v39 = vld [vmem:[%s20529_s2 + $0x90] sm:$0xff]  }
 0x2fa   : > { %v2695_v40 = vmax.f32 %v2635_v37, 0.0  ;;  %v2638_v28 = vadd.f32 %v18943_v18, %v2637_v6  ;;  %v2639_v42 = vpop.f32.mrb[239].mxu1  ;;  %v4605_v6 = vld [vmem:[#allocation2 + $0x239] sm:$0xff] }
 0x2fb   : > { %v4344_v22 = vld [vmem:[#allocation2 + $0x3a0] sm:$0xff] }
 0x2fc   : > { %2727 = vst.msk [vmem:[#allocation2 + $0x3b0] sm:$0xff] %vm493_vm2, %v2695_v40  ;;  %v2696_v43 = vmax.f32 %v2638_v28, 0.0  ;;  %v4607_v40 = vld [vmem:[#allocation2 + $0x249] sm:$0xff]  ;;  %v4604_v28 = vld [vmem:[#allocation2 + $0x231] sm:$0xff] }
 0x2fd   : > { %v4345_v44 = vld [vmem:[#allocation2 + $0x3a8] sm:$0xff]  ;;  %v4629_v42 = vpack.c.bf16 %v4605_v6, %v4604_v28 }
 0x2fe   : > { %2728 = vst.msk [vmem:[#allocation2 + $0x3b8] sm:$0xff] %vm493_vm2, %v2696_v43  ;;  %v4362_v45 = vpack.c.bf16 %v4345_v44, %v4344_v22  ;;  %v4606_v43 = vld [vmem:[#allocation2 + $0x241] sm:$0xff] }
 0x2ff   : > { %v2642_v46 = vpop.f32.mrb[240].mxu1  ;;  %v4630_v44 = vpack.c.bf16 %v4607_v40, %v4606_v43 }
 0x300   : > { %v2643_v47 = vadd.f32 %v18943_v18, %v2642_v46  ;;  %v2644_v41 = vpop.f32.mrb[241].mxu1  ;;  %15647 = vmatprep.mubr.msk.bf16.mxu0 %vm493_vm2, %v4362_v45 }
 0x301   : > { %v2645_v48 = vpop.f32.mrb[242].mxu1  ;;  %v4611_v41 = vld [vmem:[#allocation2 + $0x269] sm:$0xff] }
 0x302   : > { %v2697_v49 = vmax.f32 %v2643_v47, 0.0  ;;  %v2646_v50 = vadd.f32 %v18943_v18, %v2645_v48  ;;  %v2647_v51 = vpop.f32.mrb[243].mxu1  ;;  %v4609_v47 = vld [vmem:[#allocation2 + $0x259] sm:$0xff]  ;;  %v4608_v48 = vld [vmem:[#allocation2 + $0x251] sm:$0xff] }
 0x303   : > { %v4346_v53 = vld [vmem:[#allocation2 + $0x3b0] sm:$0xff] }
 0x304   : > { %2729 = vst.msk [vmem:[#allocation2 + $0x3c0] sm:$0xff] %vm493_vm2, %v2697_v49  ;;  %v2698_v52 = vmax.f32 %v2646_v50, 0.0  ;;  %v4631_v49 = vpack.c.bf16 %v4609_v47, %v4608_v48  ;;  %v4610_v50 = vld [vmem:[#allocation2 + $0x261] sm:$0xff]  ;;  %v4879_v47 = vld [vmem:[#allocation2 + $0x339] sm:$0xff]  ;;  %v4878_v48 = vld [vmem:[#allocation2 + $0x331] sm:$0xff] }
 0x305   : > { %v4347_v54 = vld [vmem:[#allocation2 + $0x3b8] sm:$0xff] }
 0x306   : > { %2730 = vst.msk [vmem:[#allocation2 + $0x3c8] sm:$0xff] %vm493_vm2, %v2698_v52  ;;  %v4363_v38 = vpack.c.bf16 %v4347_v54, %v4346_v53  ;;  %v4632_v52 = vpack.c.bf16 %v4611_v41, %v4610_v50  ;;  %v4881_v41 = vld [vmem:[#allocation2 + $0x349] sm:$0xff]  ;;  %v4880_v50 = vld [vmem:[#allocation2 + $0x341] sm:$0xff] }
 0x307   : > { %v2650_v56 = vpop.f32.mrb[244].mxu1 }
 0x308   : > { %v2651_v57 = vadd.f32 %v18943_v18, %v2650_v56  ;;  %v2652_v58 = vpop.f32.mrb[245].mxu1  ;;  %15648 = vmatmul.mubr.msk.bf16.gmra.mrb[20].mxu0 %vm493_vm2, %v4363_v38  ;;  %v4613_v56 = vld [vmem:[#allocation2 + $0x279] sm:$0xff] }
 0x309   : > { %v2653_v0 = vpop.f32.mrb[246].mxu1  ;;  %v4612_v58 = vld [vmem:[#allocation2 + $0x271] sm:$0xff] }
 0x30a   : > { %v2699_v59 = vmax.f32 %v2651_v57, 0.0  ;;  %v2654_v60 = vadd.f32 %v18943_v18, %v2653_v0  ;;  %v2655_v61 = vpop.f32.mrb[247].mxu1  ;;  %v4615_v57 = vld [vmem:[#allocation2 + $0x289] sm:$0xff]  ;;  %v4633_v0 = vpack.c.bf16 %v4613_v56, %v4612_v58  ;;  %v4904_v56 = vpack.c.bf16 %v4881_v41, %v4880_v50  ;;  %v5148_v50 = vld [vmem:[#allocation2 + $0x212] sm:$0xff] }
 0x30b   : > { %v4348_v63 = vld [vmem:[#allocation2 + $0x3c0] sm:$0xff] }
 0x30c   : > { %2731 = vst.msk [vmem:[#allocation2 + $0x3d0] sm:$0xff] %vm493_vm2, %v2699_v59  ;;  %v2700_v62 = vmax.f32 %v2654_v60, 0.0  ;;  %v4614_v59 = vld [vmem:[#allocation2 + $0x281] sm:$0xff] }
 0x30d   : > { %v4349_v2 = vld [vmem:[#allocation2 + $0x3c8] sm:$0xff]  ;;  %v4634_v61 = vpack.c.bf16 %v4615_v57, %v4614_v59 }
 0x30e   : > { %2732 = vst.msk [vmem:[#allocation2 + $0x3d8] sm:$0xff] %vm493_vm2, %v2700_v62  ;;  %v4364_v3 = vpack.c.bf16 %v4349_v2, %v4348_v63  ;;  %v4885_v59 = vld [vmem:[#allocation2 + $0x369] sm:$0xff] }
 0x30f   : > { %v2658_v4 = vpop.f32.mrb[248].mxu1 }
 0x310   : > { %v2659_v7 = vadd.f32 %v18943_v18, %v2658_v4  ;;  %15651 = vmatprep.mubr.msk.bf16.mxu0 %vm493_vm2, %v4364_v3  ;;  %v2660_v55 = vpop.f32.mrb[249].mxu1  ;;  %v4617_v3 = vld [vmem:[#allocation2 + $0x299] sm:$0xff]  ;;  %v4619_v4 = vld [vmem:[#allocation2 + $0x2a9] sm:$0xff] }
 0x311   : > { %v2661_v9 = vpop.f32.mrb[250].mxu1 }
 0x312   : > { %v2701_v10 = vmax.f32 %v2659_v7, 0.0  ;;  %v2662_v11 = vadd.f32 %v18943_v18, %v2661_v9  ;;  %v2663_v12 = vpop.f32.mrb[251].mxu1  ;;  %v4616_v7 = vld [vmem:[#allocation2 + $0x291] sm:$0xff]  ;;  %v4618_v9 = vld [vmem:[#allocation2 + $0x2a1] sm:$0xff] }
 0x313   : > { %v4350_v16 = vld [vmem:[#allocation2 + $0x3d0] sm:$0xff]  ;;  %v4635_v55 = vpack.c.bf16 %v4617_v3, %v4616_v7 }
 0x314   : > { %2733 = vst.msk [vmem:[#allocation2 + $0x3e0] sm:$0xff] %vm493_vm2, %v2701_v10  ;;  %v2702_v13 = vmax.f32 %v2662_v11, 0.0  ;;  %v4636_v11 = vpack.c.bf16 %v4619_v4, %v4618_v9  ;;  %v4884_v4 = vld [vmem:[#allocation2 + $0x361] sm:$0xff]  ;;  %v4889_v9 = vld [vmem:[#allocation2 + $0x389] sm:$0xff] }
 0x315   : > { %v4351_v17 = vld [vmem:[#allocation2 + $0x3d8] sm:$0xff]  ;;  %v4906_v7 = vpack.c.bf16 %v4885_v59, %v4884_v4  ;;  %v17642_v59 = vld [vmem:[%s20529_s2 + $0xa8] sm:$0xff]  }
 0x316   : > { %v4365_v8 = vpack.c.bf16 %v4351_v17, %v4350_v16  ;;  %2734 = vst.msk [vmem:[#allocation2 + $0x3e8] sm:$0xff] %vm493_vm2, %v2702_v13  ;;  %v4621_v16 = vld [vmem:[#allocation2 + $0x2b9] sm:$0xff]  ;;  %v4623_v17 = vld [vmem:[#allocation2 + $0x2c9] sm:$0xff] }
 0x317   : > { %v2666_v21 = vpop.f32.mrb[252].mxu1  ;;  %v5153_v4 = vld [vmem:[#allocation2 + $0x23a] sm:$0xff] }
 0x318   : > { %15652 = vmatmul.mubr.msk.bf16.gmra.mrb[24].mxu0 %vm493_vm2, %v4365_v8  ;;  %v2667_v23 = vadd.f32 %v18943_v18, %v2666_v21  ;;  %v2668_v5 = vpop.f32.mrb[253].mxu1  ;;  %v4628_v18 = vpack.c.bf16 %v4603_v29, %v4602_v32  ;;  %v4620_v8 = vld [vmem:[#allocation2 + $0x2b1] sm:$0xff]  ;;  %v4875_v29 = vld [vmem:[#allocation2 + $0x319] sm:$0xff] }
 0x319   : > { %15659 = vmatprep.mubr.msk.bf16.mxu0 %vm493_vm2, %v4626_v20  ;;  %v2669_v24 = vpop.f32.mrb[254].mxu1  ;;  %v4637_v19 = vpack.c.bf16 %v4621_v16, %v4620_v8  ;;  %v4622_v20 = vld [vmem:[#allocation2 + $0x2c1] sm:$0xff]  ;;  %v4873_v5 = vld [vmem:[#allocation2 + $0x309] sm:$0xff] }
 0x31a   : > { %v2703_v25 = vmax.f32 %v2667_v23, 0.0  ;;  %v2671_v26 = vpop.f32.mrb[255].mxu1  ;;  %v4638_v21 = vpack.c.bf16 %v4623_v17, %v4622_v20  ;;  %v4625_v23 = vld [vmem:[#allocation2 + $0x2d9] sm:$0xff]  ;;  %v4624_v24 = vld [vmem:[#allocation2 + $0x2d1] sm:$0xff]  ;;  %v4888_v17 = vld [vmem:[#allocation2 + $0x381] sm:$0xff] }
 0x31b   : > { %v4872_v26 = vld [vmem:[#allocation2 + $0x301] sm:$0xff]  ;;  %v4908_v8 = vpack.c.bf16 %v4889_v9, %v4888_v17  ;;  %v4893_v20 = vld [vmem:[#allocation2 + $0x3a9] sm:$0xff] }
 0x31c   : > { %2735 = vst.msk [vmem:[#allocation2 + $0x3f0] sm:$0xff] %vm493_vm2, %v2703_v25  ;;  %v4639_v25 = vpack.c.bf16 %v4625_v23, %v4624_v24  ;;  %v4900_v27 = vpack.c.bf16 %v4873_v5, %v4872_v26  ;;  %v4892_v5 = vld [vmem:[#allocation2 + $0x3a1] sm:$0xff]  ;;  %v4897_v26 = vld [vmem:[#allocation2 + $0x3c9] sm:$0xff] }
 0x31d   : > { %v4910_v24 = vpack.c.bf16 %v4893_v20, %v4892_v5  ;;  %v5157_v17 = vld [vmem:[#allocation2 + $0x25a] sm:$0xff]  ;;  %v5158_v20 = vld [vmem:[#allocation2 + $0x262] sm:$0xff]  ;;  %v5163_v5 = vld [vmem:[#allocation2 + $0x28a] sm:$0xff] }
 0x31f   : > { %v18980_v34 = vpop.f32.mrb[0].mxu1 }
 0x320   : > { %v18982_v35 = vpop.f32.mrb[1].mxu1  ;;  %15660 = vmatmul.mubr.msk.bf16.vlgmr.msra.gmra.mrb[0].mxu0 %vm493_vm2, %v4627_v31  ;;  %v4874_v31 = vld [vmem:[#allocation2 + $0x311] sm:$0xff] }
 0x321   : > { %v18985_v36 = vpop.f32.mrb[2].mxu1  ;;  %15663 = vmatprep.mubr.msk.bf16.mxu0 %vm493_vm2, %v4628_v18  ;;  %15688 = vmatpush3.bf16.msra.mxu0 %v18908_v14  ;;  %v4901_v32 = vpack.c.bf16 %v4875_v29, %v4874_v31  ;;  %v17640_v18 = vld [vmem:[%s20529_s2 + $0x98] sm:$0xff]  }
 0x322   : > { %v18989_v37 = vpop.f32.mrb[3].mxu1  ;;  %15689 = vmatprep.subr.bf16.mxu0 %v17638_v33 }
 0x325   : > { %15690 = vmatpush3.bf16.msra.mxu0 %v17638_v33  ;;  %v4876_v33 = vld [vmem:[#allocation2 + $0x321] sm:$0xff] }
 0x326   : > { %15719 = vmatprep.subr.bf16.mxu0 %v18994_v39  ;;  %v4902_v40 = vpack.c.bf16 %v4877_v30, %v4876_v33  ;;  %v4896_v30 = vld [vmem:[#allocation2 + $0x3c1] sm:$0xff]  ;;  %v5147_v33 = vld [vmem:[#allocation2 + $0x20a] sm:$0xff] }
 0x327   : > { %v18997_v22 = vpop.f32.mrb[4].mxu1  ;;  %v4912_v31 = vpack.c.bf16 %v4897_v26, %v4896_v30  ;;  %v5162_v26 = vld [vmem:[#allocation2 + $0x282] sm:$0xff]  ;;  %v5167_v30 = vld [vmem:[#allocation2 + $0x2aa] sm:$0xff] }
 0x328   : > { %v18999_v14 = vpop.f32.mrb[5].mxu1  ;;  %15664 = vmatmul.mubr.msk.bf16.gmra.mrb[4].mxu0 %vm493_vm2, %v4629_v42 }
 0x329   : > { %v19002_v45 = vpop.f32.mrb[6].mxu1  ;;  %15667 = vmatprep.mubr.msk.bf16.mxu0 %vm493_vm2, %v4630_v44  ;;  %v19058_v44 = vld [vmem:[%s20529_s2 + $0xa0] sm:$0xff]  }
 0x32a   : > { %v19005_v46 = vpop.f32.mrb[7].mxu1 }
 0x32f   : > { %v19007_v51 = vpop.f32.mrb[8].mxu1 }
 0x330   : > { %v19009_v53 = vpop.f32.mrb[9].mxu1  ;;  %15668 = vmatmul.mubr.msk.bf16.gmra.mrb[8].mxu0 %vm493_vm2, %v4631_v49  ;;  %v4903_v49 = vpack.c.bf16 %v4879_v47, %v4878_v48  ;;  %v5146_v47 = vld [vmem:[#allocation2 + $0x202] sm:$0xff]  ;;  %v5149_v48 = vld [vmem:[#allocation2 + $0x21a] sm:$0xff] }
 0x331   : > { %v19012_v54 = vpop.f32.mrb[10].mxu1  ;;  %15671 = vmatprep.mubr.msk.bf16.mxu0 %vm493_vm2, %v4632_v52  ;;  %v5174_v41 = vpack.c.bf16 %v5147_v33, %v5146_v47  ;;  %v5166_v33 = vld [vmem:[#allocation2 + $0x2a2] sm:$0xff]  ;;  %v5171_v47 = vld [vmem:[#allocation2 + $0x2ca] sm:$0xff] }
 0x332   : > { %v19015_v38 = vpop.f32.mrb[11].mxu1 }
 0x337   : > { %v19017_v60 = vpop.f32.mrb[12].mxu1 }
 0x338   : > { %v19019_v62 = vpop.f32.mrb[13].mxu1  ;;  %15672 = vmatmul.mubr.msk.bf16.gmra.mrb[12].mxu0 %vm493_vm2, %v4633_v0  ;;  %v4883_v0 = vld [vmem:[#allocation2 + $0x359] sm:$0xff] }
 0x339   : > { %v19022_v63 = vpop.f32.mrb[14].mxu1  ;;  %15675 = vmatprep.mubr.msk.bf16.mxu0 %vm493_vm2, %v4634_v61  ;;  %v4882_v61 = vld [vmem:[#allocation2 + $0x351] sm:$0xff] }
 0x33a   : > { %v19025_v2 = vpop.f32.mrb[15].mxu1  ;;  %v4905_v3 = vpack.c.bf16 %v4883_v0, %v4882_v61  ;;  %v5150_v0 = vld [vmem:[#allocation2 + $0x222] sm:$0xff] }
 0x33f   : > { %v19027_v10 = vpop.f32.mrb[16].mxu1 }
 0x340   : > { %v19029_v12 = vpop.f32.mrb[17].mxu1  ;;  %15676 = vmatmul.mubr.msk.bf16.gmra.mrb[16].mxu0 %vm493_vm2, %v4635_v55  ;;  %v4887_v55 = vld [vmem:[#allocation2 + $0x379] sm:$0xff] }
 0x341   : > { %v19032_v13 = vpop.f32.mrb[18].mxu1  ;;  %15679 = vmatprep.mubr.msk.bf16.mxu0 %vm493_vm2, %v4636_v11  ;;  %v4886_v11 = vld [vmem:[#allocation2 + $0x371] sm:$0xff] }
 0x342   : > { %v19035_v15 = vpop.f32.mrb[19].mxu1  ;;  %v4907_v16 = vpack.c.bf16 %v4887_v55, %v4886_v11  ;;  %v5152_v55 = vld [vmem:[#allocation2 + $0x232] sm:$0xff]  ;;  %v5154_v11 = vld [vmem:[#allocation2 + $0x242] sm:$0xff] }
 0x343   : > { %v5177_v9 = vpack.c.bf16 %v5153_v4, %v5152_v55  ;;  %v5420_v4 = vld [vmem:[#allocation2 + $0x10] sm:$0xff]  ;;  %v5423_v55 = vld [vmem:[#allocation2 + $0x28] sm:$0xff] }
 0x348   : > { %15680 = vmatmul.mubr.msk.bf16.gmra.mrb[20].mxu0 %vm493_vm2, %v4637_v19  ;;  %v4891_v19 = vld [vmem:[#allocation2 + $0x399] sm:$0xff] }
 0x349   : > { %15683 = vmatprep.mubr.msk.bf16.mxu0 %vm493_vm2, %v4638_v21  ;;  %v4890_v21 = vld [vmem:[#allocation2 + $0x391] sm:$0xff] }
 0x34a   : > { %v4909_v23 = vpack.c.bf16 %v4891_v19, %v4890_v21 }
 0x350   : > { %15684 = vmatmul.mubr.msk.bf16.gmra.mrb[24].mxu0 %vm493_vm2, %v4639_v25  ;;  %v4895_v25 = vld [vmem:[#allocation2 + $0x3b9] sm:$0xff] }
 0x351   : > { %15691 = vmatprep.mubr.msk.bf16.mxu0 %vm493_vm2, %v4900_v27  ;;  %v4894_v27 = vld [vmem:[#allocation2 + $0x3b1] sm:$0xff] }
 0x352   : > { %v4911_v29 = vpack.c.bf16 %v4895_v25, %v4894_v27  ;;  %v5182_v27 = vpack.c.bf16 %v5163_v5, %v5162_v26  ;;  %v5431_v26 = vld [vmem:[#allocation2 + $0x68] sm:$0xff] }
 0x357   : > { %v19044_v6 = vpop.f32.mrb[20].mxu1 }
 0x358   : > { %v19046_v28 = vpop.f32.mrb[21].mxu1  ;;  %15692 = vmatmul.mubr.msk.bf16.vlgmr.msra.gmra.mrb[0].mxu0 %vm493_vm2, %v4901_v32  ;;  %v4899_v32 = vld [vmem:[#allocation2 + $0x3d9] sm:$0xff] }
 0x359   : > { %v19049_v42 = vpop.f32.mrb[22].mxu1  ;;  %15695 = vmatprep.mubr.msk.bf16.mxu0 %vm493_vm2, %v4902_v40  ;;  %15720 = vmatpush3.bf16.msra.mxu0 %v18994_v39 }
 0x35a   : > { %v19053_v43 = vpop.f32.mrb[23].mxu1  ;;  %15721 = vmatprep.subr.bf16.mxu0 %v17640_v18 }
 0x35d   : > { %15722 = vmatpush3.bf16.msra.mxu0 %v17640_v18  ;;  %v4898_v18 = vld [vmem:[#allocation2 + $0x3d1] sm:$0xff] }
 0x35e   : > { %15751 = vmatprep.subr.bf16.mxu0 %v19058_v44  ;;  %v4913_v40 = vpack.c.bf16 %v4899_v32, %v4898_v18  ;;  %v5184_v18 = vpack.c.bf16 %v5167_v30, %v5166_v33  ;;  %v5432_v30 = vld [vmem:[#allocation2 + $0x70] sm:$0xff]  ;;  %v5437_v33 = vld [vmem:[#allocation2 + $0x98] sm:$0xff] }
 0x35f   : > { %v19061_v52 = vpop.f32.mrb[24].mxu1 }
 0x360   : > { %v19063_v39 = vpop.f32.mrb[25].mxu1  ;;  %15696 = vmatmul.mubr.msk.bf16.gmra.mrb[4].mxu0 %vm493_vm2, %v4903_v49  ;;  %v5151_v49 = vld [vmem:[#allocation2 + $0x22a] sm:$0xff] }
 0x361   : > { %v19066_v57 = vpop.f32.mrb[26].mxu1  ;;  %15699 = vmatprep.mubr.msk.bf16.mxu0 %vm493_vm2, %v4904_v56  ;;  %v5175_v56 = vpack.c.bf16 %v5149_v48, %v5148_v50  ;;  %v5176_v61 = vpack.c.bf16 %v5151_v49, %v5150_v0  ;;  %v5170_v49 = vld [vmem:[#allocation2 + $0x2c2] sm:$0xff]  ;;  %v5421_v0 = vld [vmem:[#allocation2 + $0x18] sm:$0xff] }
 0x362   : > { %v19069_v58 = vpop.f32.mrb[27].mxu1  ;;  %v5186_v50 = vpack.c.bf16 %v5171_v47, %v5170_v49  ;;  %v5436_v47 = vld [vmem:[#allocation2 + $0x90] sm:$0xff]  ;;  %v5441_v49 = vld [vmem:[#allocation2 + $0xb8] sm:$0xff] }
 0x368   : > { %15700 = vmatmul.mubr.msk.bf16.gmra.mrb[8].mxu0 %vm493_vm2, %v4905_v3  ;;  %v17643_v3 = vld [vmem:[%s20529_s2 + $0xb0] sm:$0xff]  }
 0x369   : > { %15703 = vmatprep.mubr.msk.bf16.mxu0 %vm493_vm2, %v4906_v7  ;;  %v5155_v7 = vld [vmem:[#allocation2 + $0x24a] sm:$0xff] }
 0x370   : > { %15704 = vmatmul.mubr.msk.bf16.gmra.mrb[12].mxu0 %vm493_vm2, %v4907_v16  ;;  %v5178_v16 = vpack.c.bf16 %v5155_v7, %v5154_v11  ;;  %v5448_v7 = vpack.c.bf16 %v5421_v0, %v5420_v4  ;;  %v5422_v11 = vld [vmem:[#allocation2 + $0x20] sm:$0xff]  ;;  %v5440_v0 = vld [vmem:[#allocation2 + $0xb0] sm:$0xff]  ;;  %v5445_v4 = vld [vmem:[#allocation2 + $0xd8] sm:$0xff] }
 0x371   : > { %15707 = vmatprep.mubr.msk.bf16.mxu0 %vm493_vm2, %v4908_v8  ;;  %v5159_v8 = vld [vmem:[#allocation2 + $0x26a] sm:$0xff] }
 0x372   : > { %v5180_v21 = vpack.c.bf16 %v5159_v8, %v5158_v20  ;;  %v17644_v8 = vld [vmem:[%s20529_s2 + $0xb8] sm:$0xff]   ;;  %v5427_v20 = vld [vmem:[#allocation2 + $0x48] sm:$0xff] }
 0x378   : > { %15708 = vmatmul.mubr.msk.bf16.gmra.mrb[16].mxu0 %vm493_vm2, %v4909_v23  ;;  %v5161_v23 = vld [vmem:[#allocation2 + $0x27a] sm:$0xff] }
 0x379   : > { %15711 = vmatprep.mubr.msk.bf16.mxu0 %vm493_vm2, %v4910_v24  ;;  %v5160_v24 = vld [vmem:[#allocation2 + $0x272] sm:$0xff] }
 0x37a   : > { %v5181_v25 = vpack.c.bf16 %v5161_v23, %v5160_v24  ;;  %v5426_v23 = vld [vmem:[#allocation2 + $0x40] sm:$0xff]  ;;  %v5428_v24 = vld [vmem:[#allocation2 + $0x50] sm:$0xff] }
 0x37b   : > { %v5451_v5 = vpack.c.bf16 %v5427_v20, %v5426_v23  ;;  %v5694_v20 = vld [vmem:[#allocation2 + $0x110] sm:$0xff]  ;;  %v5697_v23 = vld [vmem:[#allocation2 + $0x128] sm:$0xff] }
 0x380   : > { %15712 = vmatmul.mubr.msk.bf16.gmra.mrb[20].mxu0 %vm493_vm2, %v4911_v29  ;;  %v5165_v29 = vld [vmem:[#allocation2 + $0x29a] sm:$0xff] }
 0x381   : > { %15715 = vmatprep.mubr.msk.bf16.mxu0 %vm493_vm2, %v4912_v31  ;;  %v5164_v31 = vld [vmem:[#allocation2 + $0x292] sm:$0xff] }
 0x382   : > { %v5183_v32 = vpack.c.bf16 %v5165_v29, %v5164_v31 }
 0x388   : > { %15716 = vmatmul.mubr.msk.bf16.gmra.mrb[24].mxu0 %vm493_vm2, %v4913_v40  ;;  %v5169_v40 = vld [vmem:[#allocation2 + $0x2ba] sm:$0xff] }
 0x389   : > { %15723 = vmatprep.mubr.msk.bf16.mxu0 %vm493_vm2, %v5174_v41  ;;  %v5168_v41 = vld [vmem:[#allocation2 + $0x2b2] sm:$0xff] }
 0x38a   : > { %v5185_v48 = vpack.c.bf16 %v5169_v40, %v5168_v41  ;;  %v5456_v41 = vpack.c.bf16 %v5437_v33, %v5436_v47  ;;  %v5705_v47 = vld [vmem:[#allocation2 + $0x168] sm:$0xff] }
 0x390   : > { %15724 = vmatmul.mubr.msk.bf16.vlgmr.msra.gmra.mrb[0].mxu0 %vm493_vm2, %v5175_v56  ;;  %v5173_v56 = vld [vmem:[#allocation2 + $0x2da] sm:$0xff] }
 0x391   : > { %15727 = vmatprep.mubr.msk.bf16.mxu0 %vm493_vm2, %v5176_v61  ;;  %15752 = vmatpush3.bf16.msra.mxu0 %v19058_v44  ;;  %v5156_v44 = vld [vmem:[#allocation2 + $0x252] sm:$0xff] }
 0x392   : > { %15753 = vmatprep.subr.bf16.mxu0 %v17642_v59  ;;  %v5179_v19 = vpack.c.bf16 %v5157_v17, %v5156_v44  ;;  %v5424_v17 = vld [vmem:[#allocation2 + $0x30] sm:$0xff] }
 0x395   : > { %15754 = vmatpush3.bf16.msra.mxu0 %v17642_v59  ;;  %v5172_v59 = vld [vmem:[#allocation2 + $0x2d2] sm:$0xff] }
 0x396   : > { %15783 = vmatprep.subr.bf16.mxu0 %v17643_v3  ;;  %v5187_v61 = vpack.c.bf16 %v5173_v56, %v5172_v59  ;;  %v5458_v59 = vpack.c.bf16 %v5441_v49, %v5440_v0  ;;  %v5706_v49 = vld [vmem:[#allocation2 + $0x170] sm:$0xff]  ;;  %v5711_v0 = vld [vmem:[#allocation2 + $0x198] sm:$0xff] }
 0x398   : > { %15728 = vmatmul.mubr.msk.bf16.gmra.mrb[4].mxu0 %vm493_vm2, %v5177_v9  ;;  %v5425_v9 = vld [vmem:[#allocation2 + $0x38] sm:$0xff] }
 0x399   : > { %15731 = vmatprep.mubr.msk.bf16.mxu0 %vm493_vm2, %v5178_v16  ;;  %v5449_v16 = vpack.c.bf16 %v5423_v55, %v5422_v11  ;;  %v5450_v44 = vpack.c.bf16 %v5425_v9, %v5424_v17  ;;  %v5444_v9 = vld [vmem:[#allocation2 + $0xd0] sm:$0xff]  ;;  %v5695_v17 = vld [vmem:[#allocation2 + $0x118] sm:$0xff] }
 0x39a   : > { %v5460_v11 = vpack.c.bf16 %v5445_v4, %v5444_v9  ;;  %v5710_v4 = vld [vmem:[#allocation2 + $0x190] sm:$0xff]  ;;  %v5715_v9 = vld [vmem:[#allocation2 + $0x1b8] sm:$0xff] }
 0x3a0   : > { %15732 = vmatmul.mubr.msk.bf16.gmra.mrb[8].mxu0 %vm493_vm2, %v5179_v19  ;;  %v17645_v19 = vld [vmem:[%s20529_s2 + $0xc0] sm:$0xff]  }
 0x3a1   : > { %15735 = vmatprep.mubr.msk.bf16.mxu0 %vm493_vm2, %v5180_v21  ;;  %v5429_v21 = vld [vmem:[#allocation2 + $0x58] sm:$0xff] }
 0x3a8   : > { %15736 = vmatmul.mubr.msk.bf16.gmra.mrb[12].mxu0 %vm493_vm2, %v5181_v25  ;;  %v5452_v25 = vpack.c.bf16 %v5429_v21, %v5428_v24  ;;  %v5722_v21 = vpack.c.bf16 %v5695_v17, %v5694_v20  ;;  %v5696_v24 = vld [vmem:[#allocation2 + $0x120] sm:$0xff]  ;;  %v5714_v17 = vld [vmem:[#allocation2 + $0x1b0] sm:$0xff]  ;;  %v5719_v20 = vld [vmem:[#allocation2 + $0x1d8] sm:$0xff] }
 0x3a9   : > { %15739 = vmatprep.mubr.msk.bf16.mxu0 %vm493_vm2, %v5182_v27  ;;  %v5433_v27 = vld [vmem:[#allocation2 + $0x78] sm:$0xff] }
 0x3aa   : > { %v5454_v31 = vpack.c.bf16 %v5433_v27, %v5432_v30  ;;  %v17646_v27 = vld [vmem:[%s20529_s2 + $0xc8] sm:$0xff]  }
 0x3ab   : > { %v5701_v30 = vld [vmem:[#allocation2 + $0x148] sm:$0xff] }
 0x3b0   : > { %15740 = vmatmul.mubr.msk.bf16.gmra.mrb[16].mxu0 %vm493_vm2, %v5183_v32  ;;  %v5435_v32 = vld [vmem:[#allocation2 + $0x88] sm:$0xff] }
 0x3b1   : > { %15743 = vmatprep.mubr.msk.bf16.mxu0 %vm493_vm2, %v5184_v18  ;;  %v5434_v18 = vld [vmem:[#allocation2 + $0x80] sm:$0xff] }
 0x3b2   : > { %v5455_v40 = vpack.c.bf16 %v5435_v32, %v5434_v18  ;;  %v5700_v32 = vld [vmem:[#allocation2 + $0x140] sm:$0xff]  ;;  %v5702_v18 = vld [vmem:[#allocation2 + $0x150] sm:$0xff] }
 0x3b3   : > { %v5725_v33 = vpack.c.bf16 %v5701_v30, %v5700_v32  ;;  %v5968_v30 = vld [vmem:[#allocation2 + $0x11] sm:$0xff]  ;;  %v5971_v32 = vld [vmem:[#allocation2 + $0x29] sm:$0xff] }
 0x3b8   : > { %15744 = vmatmul.mubr.msk.bf16.gmra.mrb[20].mxu0 %vm493_vm2, %v5185_v48  ;;  %v5439_v48 = vld [vmem:[#allocation2 + $0xa8] sm:$0xff] }
 0x3b9   : > { %15747 = vmatprep.mubr.msk.bf16.mxu0 %vm493_vm2, %v5186_v50  ;;  %v5438_v50 = vld [vmem:[#allocation2 + $0xa0] sm:$0xff] }
 0x3ba   : > { %v5457_v56 = vpack.c.bf16 %v5439_v48, %v5438_v50 }
 0x3c0   : > { %15748 = vmatmul.mubr.msk.bf16.gmra.mrb[24].mxu0 %vm493_vm2, %v5187_v61  ;;  %v5443_v61 = vld [vmem:[#allocation2 + $0xc8] sm:$0xff] }
 0x3c1   : > { %15755 = vmatprep.mubr.msk.bf16.mxu0 %vm493_vm2, %v5448_v7  ;;  %v5442_v7 = vld [vmem:[#allocation2 + $0xc0] sm:$0xff] }
 0x3c2   : > { %v5459_v55 = vpack.c.bf16 %v5443_v61, %v5442_v7  ;;  %v5730_v7 = vpack.c.bf16 %v5711_v0, %v5710_v4  ;;  %v5979_v4 = vld [vmem:[#allocation2 + $0x69] sm:$0xff] }
 0x3c8   : > { %15756 = vmatmul.mubr.msk.bf16.vlgmr.msra.gmra.mrb[0].mxu0 %vm493_vm2, %v5449_v16  ;;  %v5447_v16 = vld [vmem:[#allocation2 + $0xe8] sm:$0xff] }
 0x3c9   : > { %15759 = vmatprep.mubr.msk.bf16.mxu0 %vm493_vm2, %v5450_v44  ;;  %15784 = vmatpush3.bf16.msra.mxu0 %v17643_v3  ;;  %v5430_v3 = vld [vmem:[#allocation2 + $0x60] sm:$0xff] }
 0x3ca   : > { %15785 = vmatprep.subr.bf16.mxu0 %v17644_v8  ;;  %v5453_v29 = vpack.c.bf16 %v5431_v26, %v5430_v3  ;;  %v5698_v26 = vld [vmem:[#allocation2 + $0x130] sm:$0xff] }
 0x3cd   : > { %15786 = vmatpush3.bf16.msra.mxu0 %v17644_v8  ;;  %v5446_v8 = vld [vmem:[#allocation2 + $0xe0] sm:$0xff] }
 0x3ce   : > { %15815 = vmatprep.subr.bf16.mxu0 %v17645_v19  ;;  %v5461_v44 = vpack.c.bf16 %v5447_v16, %v5446_v8  ;;  %v5732_v8 = vpack.c.bf16 %v5715_v9, %v5714_v17  ;;  %v5980_v9 = vld [vmem:[#allocation2 + $0x71] sm:$0xff]  ;;  %v5985_v17 = vld [vmem:[#allocation2 + $0x99] sm:$0xff] }
 0x3d0   : > { %15760 = vmatmul.mubr.msk.bf16.gmra.mrb[4].mxu0 %vm493_vm2, %v5451_v5  ;;  %v5699_v5 = vld [vmem:[#allocation2 + $0x138] sm:$0xff] }
 0x3d1   : > { %15763 = vmatprep.mubr.msk.bf16.mxu0 %vm493_vm2, %v5452_v25  ;;  %v5723_v25 = vpack.c.bf16 %v5697_v23, %v5696_v24  ;;  %v5724_v3 = vpack.c.bf16 %v5699_v5, %v5698_v26  ;;  %v5718_v5 = vld [vmem:[#allocation2 + $0x1d0] sm:$0xff]  ;;  %v5969_v26 = vld [vmem:[#allocation2 + $0x19] sm:$0xff] }
 0x3d2   : > { %v5734_v24 = vpack.c.bf16 %v5719_v20, %v5718_v5  ;;  %v5984_v20 = vld [vmem:[#allocation2 + $0x91] sm:$0xff]  ;;  %v5989_v5 = vld [vmem:[#allocation2 + $0xb9] sm:$0xff] }
 0x3d8   : > { %15764 = vmatmul.mubr.msk.bf16.gmra.mrb[8].mxu0 %vm493_vm2, %v5453_v29  ;;  %v17647_v29 = vld [vmem:[%s20529_s2 + $0xd0] sm:$0xff]  }
 0x3d9   : > { %15767 = vmatprep.mubr.msk.bf16.mxu0 %vm493_vm2, %v5454_v31  ;;  %v5703_v31 = vld [vmem:[#allocation2 + $0x158] sm:$0xff] }
 0x3e0   : > { %15768 = vmatmul.mubr.msk.bf16.gmra.mrb[12].mxu0 %vm493_vm2, %v5455_v40  ;;  %v5726_v40 = vpack.c.bf16 %v5703_v31, %v5702_v18  ;;  %v5996_v31 = vpack.c.bf16 %v5969_v26, %v5968_v30  ;;  %v5970_v18 = vld [vmem:[#allocation2 + $0x21] sm:$0xff]  ;;  %v5988_v26 = vld [vmem:[#allocation2 + $0xb1] sm:$0xff]  ;;  %v5993_v30 = vld [vmem:[#allocation2 + $0xd9] sm:$0xff] }
 0x3e1   : > { %15771 = vmatprep.mubr.msk.bf16.mxu0 %vm493_vm2, %v5456_v41  ;;  %v5707_v41 = vld [vmem:[#allocation2 + $0x178] sm:$0xff] }
 0x3e2   : > { %v5728_v50 = vpack.c.bf16 %v5707_v41, %v5706_v49  ;;  %v17648_v41 = vld [vmem:[%s20529_s2 + $0xd8] sm:$0xff]   ;;  %v5975_v49 = vld [vmem:[#allocation2 + $0x49] sm:$0xff] }
 0x3e8   : > { %15772 = vmatmul.mubr.msk.bf16.gmra.mrb[16].mxu0 %vm493_vm2, %v5457_v56  ;;  %v5709_v56 = vld [vmem:[#allocation2 + $0x188] sm:$0xff] }
 0x3e9   : > { %15775 = vmatprep.mubr.msk.bf16.mxu0 %vm493_vm2, %v5458_v59  ;;  %v5708_v59 = vld [vmem:[#allocation2 + $0x180] sm:$0xff] }
 0x3ea   : > { %v5729_v61 = vpack.c.bf16 %v5709_v56, %v5708_v59  ;;  %v5974_v56 = vld [vmem:[#allocation2 + $0x41] sm:$0xff]  ;;  %v5976_v59 = vld [vmem:[#allocation2 + $0x51] sm:$0xff] }
 0x3eb   : > { %v5999_v0 = vpack.c.bf16 %v5975_v49, %v5974_v56  ;;  %v6242_v49 = vld [vmem:[#allocation2 + $0x111] sm:$0xff]  ;;  %v6245_v56 = vld [vmem:[#allocation2 + $0x129] sm:$0xff] }
 0x3f0   : > { %15776 = vmatmul.mubr.msk.bf16.gmra.mrb[20].mxu0 %vm493_vm2, %v5459_v55  ;;  %v5713_v55 = vld [vmem:[#allocation2 + $0x1a8] sm:$0xff] }
 0x3f1   : > { %15779 = vmatprep.mubr.msk.bf16.mxu0 %vm493_vm2, %v5460_v11  ;;  %v5712_v11 = vld [vmem:[#allocation2 + $0x1a0] sm:$0xff] }
 0x3f2   : > { %v5731_v16 = vpack.c.bf16 %v5713_v55, %v5712_v11 }
 0x3f8   : > { %15780 = vmatmul.mubr.msk.bf16.gmra.mrb[24].mxu0 %vm493_vm2, %v5461_v44  ;;  %v5717_v44 = vld [vmem:[#allocation2 + $0x1c8] sm:$0xff] }
 0x3f9   : > { %15787 = vmatprep.mubr.msk.bf16.mxu0 %vm493_vm2, %v5722_v21  ;;  %v5716_v21 = vld [vmem:[#allocation2 + $0x1c0] sm:$0xff] }
 0x3fa   : > { %v5733_v23 = vpack.c.bf16 %v5717_v44, %v5716_v21  ;;  %v6004_v21 = vpack.c.bf16 %v5985_v17, %v5984_v20  ;;  %v6253_v20 = vld [vmem:[#allocation2 + $0x169] sm:$0xff] }
 0x400   : > { %15788 = vmatmul.mubr.msk.bf16.vlgmr.msra.gmra.mrb[0].mxu0 %vm493_vm2, %v5723_v25  ;;  %v5721_v25 = vld [vmem:[#allocation2 + $0x1e8] sm:$0xff] }
 0x401   : > { %15791 = vmatprep.mubr.msk.bf16.mxu0 %vm493_vm2, %v5724_v3  ;;  %15816 = vmatpush3.bf16.msra.mxu0 %v17645_v19  ;;  %v5704_v19 = vld [vmem:[#allocation2 + $0x160] sm:$0xff] }
 0x402   : > { %15817 = vmatprep.subr.bf16.mxu0 %v17646_v27  ;;  %v5727_v48 = vpack.c.bf16 %v5705_v47, %v5704_v19  ;;  %v5972_v47 = vld [vmem:[#allocation2 + $0x31] sm:$0xff] }
 0x405   : > { %15818 = vmatpush3.bf16.msra.mxu0 %v17646_v27  ;;  %v5720_v27 = vld [vmem:[#allocation2 + $0x1e0] sm:$0xff] }
 0x406   : > { %15847 = vmatprep.subr.bf16.mxu0 %v17647_v29  ;;  %v5735_v3 = vpack.c.bf16 %v5721_v25, %v5720_v27  ;;  %v6006_v27 = vpack.c.bf16 %v5989_v5, %v5988_v26  ;;  %v6254_v5 = vld [vmem:[#allocation2 + $0x171] sm:$0xff]  ;;  %v6259_v26 = vld [vmem:[#allocation2 + $0x199] sm:$0xff] }
 0x408   : > { %15792 = vmatmul.mubr.msk.bf16.gmra.mrb[4].mxu0 %vm493_vm2, %v5725_v33  ;;  %v5973_v33 = vld [vmem:[#allocation2 + $0x39] sm:$0xff] }
 0x409   : > { %15795 = vmatprep.mubr.msk.bf16.mxu0 %vm493_vm2, %v5726_v40  ;;  %v5997_v40 = vpack.c.bf16 %v5971_v32, %v5970_v18  ;;  %v5998_v19 = vpack.c.bf16 %v5973_v33, %v5972_v47  ;;  %v5992_v33 = vld [vmem:[#allocation2 + $0xd1] sm:$0xff]  ;;  %v6243_v47 = vld [vmem:[#allocation2 + $0x119] sm:$0xff] }
 0x40a   : > { %v6008_v18 = vpack.c.bf16 %v5993_v30, %v5992_v33  ;;  %v6258_v30 = vld [vmem:[#allocation2 + $0x191] sm:$0xff]  ;;  %v6263_v33 = vld [vmem:[#allocation2 + $0x1b9] sm:$0xff] }
 0x410   : > { %15796 = vmatmul.mubr.msk.bf16.gmra.mrb[8].mxu0 %vm493_vm2, %v5727_v48  ;;  %v17649_v48 = vld [vmem:[%s20529_s2 + $0xe0] sm:$0xff]  }
 0x411   : > { %15799 = vmatprep.mubr.msk.bf16.mxu0 %vm493_vm2, %v5728_v50  ;;  %v5977_v50 = vld [vmem:[#allocation2 + $0x59] sm:$0xff] }
 0x418   : > { %15800 = vmatmul.mubr.msk.bf16.gmra.mrb[12].mxu0 %vm493_vm2, %v5729_v61  ;;  %v6000_v61 = vpack.c.bf16 %v5977_v50, %v5976_v59  ;;  %v6270_v50 = vpack.c.bf16 %v6243_v47, %v6242_v49  ;;  %v6244_v59 = vld [vmem:[#allocation2 + $0x121] sm:$0xff]  ;;  %v6262_v47 = vld [vmem:[#allocation2 + $0x1b1] sm:$0xff]  ;;  %v6267_v49 = vld [vmem:[#allocation2 + $0x1d9] sm:$0xff] }
 0x419   : > { %15803 = vmatprep.mubr.msk.bf16.mxu0 %vm493_vm2, %v5730_v7  ;;  %v5981_v7 = vld [vmem:[#allocation2 + $0x79] sm:$0xff] }
 0x41a   : > { %v6002_v11 = vpack.c.bf16 %v5981_v7, %v5980_v9  ;;  %v17650_v7 = vld [vmem:[%s20529_s2 + $0xe8] sm:$0xff]  }
 0x41b   : > { %v6249_v9 = vld [vmem:[#allocation2 + $0x149] sm:$0xff] }
 0x420   : > { %15804 = vmatmul.mubr.msk.bf16.gmra.mrb[16].mxu0 %vm493_vm2, %v5731_v16  ;;  %v5983_v16 = vld [vmem:[#allocation2 + $0x89] sm:$0xff] }
 0x421   : > { %15807 = vmatprep.mubr.msk.bf16.mxu0 %vm493_vm2, %v5732_v8  ;;  %v5982_v8 = vld [vmem:[#allocation2 + $0x81] sm:$0xff] }
 0x422   : > { %v6003_v44 = vpack.c.bf16 %v5983_v16, %v5982_v8  ;;  %v6248_v16 = vld [vmem:[#allocation2 + $0x141] sm:$0xff]  ;;  %v6250_v8 = vld [vmem:[#allocation2 + $0x151] sm:$0xff] }
 0x423   : > { %v6273_v17 = vpack.c.bf16 %v6249_v9, %v6248_v16  ;;  %v6516_v9 = vld [vmem:[#allocation2 + $0x12] sm:$0xff]  ;;  %v6519_v16 = vld [vmem:[#allocation2 + $0x2a] sm:$0xff] }
 0x428   : > { %15808 = vmatmul.mubr.msk.bf16.gmra.mrb[20].mxu0 %vm493_vm2, %v5733_v23  ;;  %v5987_v23 = vld [vmem:[#allocation2 + $0xa9] sm:$0xff] }
 0x429   : > { %15811 = vmatprep.mubr.msk.bf16.mxu0 %vm493_vm2, %v5734_v24  ;;  %v5986_v24 = vld [vmem:[#allocation2 + $0xa1] sm:$0xff] }
 0x42a   : > { %v6005_v25 = vpack.c.bf16 %v5987_v23, %v5986_v24 }
 0x430   : > { %15812 = vmatmul.mubr.msk.bf16.gmra.mrb[24].mxu0 %vm493_vm2, %v5735_v3  ;;  %v5991_v3 = vld [vmem:[#allocation2 + $0xc9] sm:$0xff] }
 0x431   : > { %15819 = vmatprep.mubr.msk.bf16.mxu0 %vm493_vm2, %v5996_v31  ;;  %v5990_v31 = vld [vmem:[#allocation2 + $0xc1] sm:$0xff] }
 0x432   : > { %v6007_v32 = vpack.c.bf16 %v5991_v3, %v5990_v31  ;;  %v6278_v31 = vpack.c.bf16 %v6259_v26, %v6258_v30  ;;  %v6527_v30 = vld [vmem:[#allocation2 + $0x6a] sm:$0xff] }
 0x438   : > { %15820 = vmatmul.mubr.msk.bf16.vlgmr.msra.gmra.mrb[0].mxu0 %vm493_vm2, %v5997_v40  ;;  %v5995_v40 = vld [vmem:[#allocation2 + $0xe9] sm:$0xff] }
 0x439   : > { %15823 = vmatprep.mubr.msk.bf16.mxu0 %vm493_vm2, %v5998_v19  ;;  %15848 = vmatpush3.bf16.msra.mxu0 %v17647_v29  ;;  %v5978_v29 = vld [vmem:[#allocation2 + $0x61] sm:$0xff] }
 0x43a   : > { %15849 = vmatprep.subr.bf16.mxu0 %v17648_v41  ;;  %v6001_v55 = vpack.c.bf16 %v5979_v4, %v5978_v29  ;;  %v6246_v4 = vld [vmem:[#allocation2 + $0x131] sm:$0xff] }
 0x43d   : > { %15850 = vmatpush3.bf16.msra.mxu0 %v17648_v41  ;;  %v5994_v41 = vld [vmem:[#allocation2 + $0xe1] sm:$0xff] }
 0x43e   : > { %15879 = vmatprep.subr.bf16.mxu0 %v17649_v48  ;;  %v6009_v19 = vpack.c.bf16 %v5995_v40, %v5994_v41  ;;  %v6280_v41 = vpack.c.bf16 %v6263_v33, %v6262_v47  ;;  %v6528_v33 = vld [vmem:[#allocation2 + $0x72] sm:$0xff]  ;;  %v6533_v47 = vld [vmem:[#allocation2 + $0x9a] sm:$0xff] }
 0x440   : > { %15824 = vmatmul.mubr.msk.bf16.gmra.mrb[4].mxu0 %vm493_vm2, %v5999_v0  ;;  %v6247_v0 = vld [vmem:[#allocation2 + $0x139] sm:$0xff] }
 0x441   : > { %15827 = vmatprep.mubr.msk.bf16.mxu0 %vm493_vm2, %v6000_v61  ;;  %v6271_v61 = vpack.c.bf16 %v6245_v56, %v6244_v59  ;;  %v6272_v29 = vpack.c.bf16 %v6247_v0, %v6246_v4  ;;  %v6266_v0 = vld [vmem:[#allocation2 + $0x1d1] sm:$0xff]  ;;  %v6517_v4 = vld [vmem:[#allocation2 + $0x1a] sm:$0xff] }
 0x442   : > { %v6282_v59 = vpack.c.bf16 %v6267_v49, %v6266_v0  ;;  %v6532_v49 = vld [vmem:[#allocation2 + $0x92] sm:$0xff]  ;;  %v6537_v0 = vld [vmem:[#allocation2 + $0xba] sm:$0xff] }
 0x448   : > { %15828 = vmatmul.mubr.msk.bf16.gmra.mrb[8].mxu0 %vm493_vm2, %v6001_v55  ;;  %v17651_v55 = vld [vmem:[%s20529_s2 + $0xf0] sm:$0xff]  }
 0x449   : > { %15831 = vmatprep.mubr.msk.bf16.mxu0 %vm493_vm2, %v6002_v11  ;;  %v6251_v11 = vld [vmem:[#allocation2 + $0x159] sm:$0xff] }
 0x450   : > { %15832 = vmatmul.mubr.msk.bf16.gmra.mrb[12].mxu0 %vm493_vm2, %v6003_v44  ;;  %v6274_v44 = vpack.c.bf16 %v6251_v11, %v6250_v8  ;;  %v6544_v11 = vpack.c.bf16 %v6517_v4, %v6516_v9  ;;  %v6518_v8 = vld [vmem:[#allocation2 + $0x22] sm:$0xff]  ;;  %v6536_v4 = vld [vmem:[#allocation2 + $0xb2] sm:$0xff]  ;;  %v6541_v9 = vld [vmem:[#allocation2 + $0xda] sm:$0xff] }
 0x451   : > { %15835 = vmatprep.mubr.msk.bf16.mxu0 %vm493_vm2, %v6004_v21  ;;  %v6255_v21 = vld [vmem:[#allocation2 + $0x179] sm:$0xff] }
 0x452   : > { %v6276_v24 = vpack.c.bf16 %v6255_v21, %v6254_v5  ;;  %v17652_v21 = vld [vmem:[%s20529_s2 + $0xf8] sm:$0xff]   ;;  %v6523_v5 = vld [vmem:[#allocation2 + $0x4a] sm:$0xff] }
 0x458   : > { %15836 = vmatmul.mubr.msk.bf16.gmra.mrb[16].mxu0 %vm493_vm2, %v6005_v25  ;;  %v6257_v25 = vld [vmem:[#allocation2 + $0x189] sm:$0xff] }
 0x459   : > { %15839 = vmatprep.mubr.msk.bf16.mxu0 %vm493_vm2, %v6006_v27  ;;  %v6256_v27 = vld [vmem:[#allocation2 + $0x181] sm:$0xff] }
 0x45a   : > { %v6277_v3 = vpack.c.bf16 %v6257_v25, %v6256_v27  ;;  %v6522_v25 = vld [vmem:[#allocation2 + $0x42] sm:$0xff]  ;;  %v6524_v27 = vld [vmem:[#allocation2 + $0x52] sm:$0xff] }
 0x45b   : > { %v6547_v26 = vpack.c.bf16 %v6523_v5, %v6522_v25  ;;  %v6790_v5 = vld [vmem:[#allocation2 + $0x210] sm:$0xff]  ;;  %v6793_v25 = vld [vmem:[#allocation2 + $0x228] sm:$0xff] }
 0x460   : > { %15840 = vmatmul.mubr.msk.bf16.gmra.mrb[20].mxu0 %vm493_vm2, %v6007_v32  ;;  %v6261_v32 = vld [vmem:[#allocation2 + $0x1a9] sm:$0xff] }
 0x461   : > { %15843 = vmatprep.mubr.msk.bf16.mxu0 %vm493_vm2, %v6008_v18  ;;  %v6260_v18 = vld [vmem:[#allocation2 + $0x1a1] sm:$0xff] }
 0x462   : > { %v6279_v40 = vpack.c.bf16 %v6261_v32, %v6260_v18 }
 0x468   : > { %15844 = vmatmul.mubr.msk.bf16.gmra.mrb[24].mxu0 %vm493_vm2, %v6009_v19  ;;  %v6265_v19 = vld [vmem:[#allocation2 + $0x1c9] sm:$0xff] }
 0x469   : > { %15851 = vmatprep.mubr.msk.bf16.mxu0 %vm493_vm2, %v6270_v50  ;;  %v6264_v50 = vld [vmem:[#allocation2 + $0x1c1] sm:$0xff] }
 0x46a   : > { %v6281_v56 = vpack.c.bf16 %v6265_v19, %v6264_v50  ;;  %v6552_v50 = vpack.c.bf16 %v6533_v47, %v6532_v49  ;;  %v6801_v49 = vld [vmem:[#allocation2 + $0x268] sm:$0xff] }
 0x470   : > { %15852 = vmatmul.mubr.msk.bf16.vlgmr.msra.gmra.mrb[0].mxu0 %vm493_vm2, %v6271_v61  ;;  %v6269_v61 = vld [vmem:[#allocation2 + $0x1e9] sm:$0xff] }
 0x471   : > { %15855 = vmatprep.mubr.msk.bf16.mxu0 %vm493_vm2, %v6272_v29  ;;  %15880 = vmatpush3.bf16.msra.mxu0 %v17649_v48  ;;  %v6252_v48 = vld [vmem:[#allocation2 + $0x161] sm:$0xff] }
 0x472   : > { %15881 = vmatprep.subr.bf16.mxu0 %v17650_v7  ;;  %v6275_v23 = vpack.c.bf16 %v6253_v20, %v6252_v48  ;;  %v6520_v20 = vld [vmem:[#allocation2 + $0x32] sm:$0xff] }
 0x475   : > { %15882 = vmatpush3.bf16.msra.mxu0 %v17650_v7  ;;  %v6268_v7 = vld [vmem:[#allocation2 + $0x1e1] sm:$0xff] }
 0x476   : > { %15911 = vmatprep.subr.bf16.mxu0 %v17651_v55  ;;  %v6283_v29 = vpack.c.bf16 %v6269_v61, %v6268_v7  ;;  %v6554_v7 = vpack.c.bf16 %v6537_v0, %v6536_v4  ;;  %v6802_v0 = vld [vmem:[#allocation2 + $0x270] sm:$0xff]  ;;  %v6807_v4 = vld [vmem:[#allocation2 + $0x298] sm:$0xff] }
 0x478   : > { %15856 = vmatmul.mubr.msk.bf16.gmra.mrb[4].mxu0 %vm493_vm2, %v6273_v17  ;;  %v6521_v17 = vld [vmem:[#allocation2 + $0x3a] sm:$0xff] }
 0x479   : > { %15859 = vmatprep.mubr.msk.bf16.mxu0 %vm493_vm2, %v6274_v44  ;;  %v6545_v44 = vpack.c.bf16 %v6519_v16, %v6518_v8  ;;  %v6546_v48 = vpack.c.bf16 %v6521_v17, %v6520_v20  ;;  %v6540_v17 = vld [vmem:[#allocation2 + $0xd2] sm:$0xff] }
 0x47a   : > { %v6556_v8 = vpack.c.bf16 %v6541_v9, %v6540_v17  ;;  %v6791_v20 = vld [vmem:[#allocation2 + $0x218] sm:$0xff]  ;;  %v6806_v9 = vld [vmem:[#allocation2 + $0x290] sm:$0xff] }
 0x47b   : > { %v6811_v17 = vld [vmem:[#allocation2 + $0x2b8] sm:$0xff] }
 0x480   : > { %15860 = vmatmul.mubr.msk.bf16.gmra.mrb[8].mxu0 %vm493_vm2, %v6275_v23  ;;  %v17653_v23 = vld [vmem:[%s20529_s2 + $0x100] sm:$0xff]  }
 0x481   : > { %15863 = vmatprep.mubr.msk.bf16.mxu0 %vm493_vm2, %v6276_v24  ;;  %v6525_v24 = vld [vmem:[#allocation2 + $0x5a] sm:$0xff] }
 0x488   : > { %15864 = vmatmul.mubr.msk.bf16.gmra.mrb[12].mxu0 %vm493_vm2, %v6277_v3  ;;  %v6548_v3 = vpack.c.bf16 %v6525_v24, %v6524_v27  ;;  %v6818_v24 = vpack.c.bf16 %v6791_v20, %v6790_v5  ;;  %v6792_v27 = vld [vmem:[#allocation2 + $0x220] sm:$0xff]  ;;  %v6810_v20 = vld [vmem:[#allocation2 + $0x2b0] sm:$0xff]  ;;  %v6815_v5 = vld [vmem:[#allocation2 + $0x2d8] sm:$0xff] }
 0x489   : > { %15867 = vmatprep.mubr.msk.bf16.mxu0 %vm493_vm2, %v6278_v31  ;;  %v6529_v31 = vld [vmem:[#allocation2 + $0x7a] sm:$0xff] }
 0x48a   : > { %v6550_v18 = vpack.c.bf16 %v6529_v31, %v6528_v33  ;;  %v17654_v31 = vld [vmem:[%s20529_s2 + $0x108] sm:$0xff]  }
 0x48b   : > { %v6797_v33 = vld [vmem:[#allocation2 + $0x248] sm:$0xff] }
 0x490   : > { %15868 = vmatmul.mubr.msk.bf16.gmra.mrb[16].mxu0 %vm493_vm2, %v6279_v40  ;;  %v6531_v40 = vld [vmem:[#allocation2 + $0x8a] sm:$0xff] }
 0x491   : > { %15871 = vmatprep.mubr.msk.bf16.mxu0 %vm493_vm2, %v6280_v41  ;;  %v6530_v41 = vld [vmem:[#allocation2 + $0x82] sm:$0xff] }
 0x492   : > { %v6551_v19 = vpack.c.bf16 %v6531_v40, %v6530_v41  ;;  %v6796_v40 = vld [vmem:[#allocation2 + $0x240] sm:$0xff]  ;;  %v6798_v41 = vld [vmem:[#allocation2 + $0x250] sm:$0xff] }
 0x493   : > { %v6821_v47 = vpack.c.bf16 %v6797_v33, %v6796_v40  ;;  %v7064_v33 = vld [vmem:[#allocation2 + $0x310] sm:$0xff]  ;;  %v7067_v40 = vld [vmem:[#allocation2 + $0x328] sm:$0xff] }
 0x498   : > { %15872 = vmatmul.mubr.msk.bf16.gmra.mrb[20].mxu0 %vm493_vm2, %v6281_v56  ;;  %v6535_v56 = vld [vmem:[#allocation2 + $0xaa] sm:$0xff] }
 0x499   : > { %15875 = vmatprep.mubr.msk.bf16.mxu0 %vm493_vm2, %v6282_v59  ;;  %v6534_v59 = vld [vmem:[#allocation2 + $0xa2] sm:$0xff] }
 0x49a   : > { %v6553_v61 = vpack.c.bf16 %v6535_v56, %v6534_v59 }
 0x4a0   : > { %15876 = vmatmul.mubr.msk.bf16.gmra.mrb[24].mxu0 %vm493_vm2, %v6283_v29  ;;  %v6539_v29 = vld [vmem:[#allocation2 + $0xca] sm:$0xff] }
 0x4a1   : > { %15883 = vmatprep.mubr.msk.bf16.mxu0 %vm493_vm2, %v6544_v11  ;;  %v6538_v11 = vld [vmem:[#allocation2 + $0xc2] sm:$0xff] }
 0x4a2   : > { %v6555_v16 = vpack.c.bf16 %v6539_v29, %v6538_v11  ;;  %v6826_v11 = vpack.c.bf16 %v6807_v4, %v6806_v9  ;;  %v7075_v9 = vld [vmem:[#allocation2 + $0x368] sm:$0xff] }
 0x4a8   : > { %15884 = vmatmul.mubr.msk.bf16.vlgmr.msra.gmra.mrb[0].mxu0 %vm493_vm2, %v6545_v44  ;;  %v6543_v44 = vld [vmem:[#allocation2 + $0xea] sm:$0xff] }
 0x4a9   : > { %15887 = vmatprep.mubr.msk.bf16.mxu0 %vm493_vm2, %v6546_v48  ;;  %15912 = vmatpush3.bf16.msra.mxu0 %v17651_v55  ;;  %v6526_v55 = vld [vmem:[#allocation2 + $0x62] sm:$0xff] }
 0x4aa   : > { %15913 = vmatprep.subr.bf16.mxu0 %v17652_v21  ;;  %v6549_v32 = vpack.c.bf16 %v6527_v30, %v6526_v55  ;;  %v6794_v30 = vld [vmem:[#allocation2 + $0x230] sm:$0xff] }
 0x4ad   : > { %15914 = vmatpush3.bf16.msra.mxu0 %v17652_v21  ;;  %v6542_v21 = vld [vmem:[#allocation2 + $0xe2] sm:$0xff] }
 0x4ae   : > { %15943 = vmatprep.subr.bf16.mxu0 %v17653_v23  ;;  %v6557_v48 = vpack.c.bf16 %v6543_v44, %v6542_v21  ;;  %v6828_v21 = vpack.c.bf16 %v6811_v17, %v6810_v20  ;;  %v7076_v17 = vld [vmem:[#allocation2 + $0x370] sm:$0xff]  ;;  %v7081_v20 = vld [vmem:[#allocation2 + $0x398] sm:$0xff] }
 0x4b0   : > { %15888 = vmatmul.mubr.msk.bf16.gmra.mrb[4].mxu0 %vm493_vm2, %v6547_v26  ;;  %v6795_v26 = vld [vmem:[#allocation2 + $0x238] sm:$0xff] }
 0x4b1   : > { %15891 = vmatprep.mubr.msk.bf16.mxu0 %vm493_vm2, %v6548_v3  ;;  %v6819_v3 = vpack.c.bf16 %v6793_v25, %v6792_v27  ;;  %v6820_v55 = vpack.c.bf16 %v6795_v26, %v6794_v30  ;;  %v6814_v26 = vld [vmem:[#allocation2 + $0x2d0] sm:$0xff]  ;;  %v7065_v30 = vld [vmem:[#allocation2 + $0x318] sm:$0xff] }
 0x4b2   : > { %v6830_v27 = vpack.c.bf16 %v6815_v5, %v6814_v26  ;;  %v7080_v5 = vld [vmem:[#allocation2 + $0x390] sm:$0xff]  ;;  %v7085_v26 = vld [vmem:[#allocation2 + $0x3b8] sm:$0xff] }
 0x4b8   : > { %15892 = vmatmul.mubr.msk.bf16.gmra.mrb[8].mxu0 %vm493_vm2, %v6549_v32  ;;  %v17655_v32 = vld [vmem:[%s20529_s2 + $0x110] sm:$0xff]  }
 0x4b9   : > { %15895 = vmatprep.mubr.msk.bf16.mxu0 %vm493_vm2, %v6550_v18  ;;  %v6799_v18 = vld [vmem:[#allocation2 + $0x258] sm:$0xff] }
 0x4c0   : > { %15896 = vmatmul.mubr.msk.bf16.gmra.mrb[12].mxu0 %vm493_vm2, %v6551_v19  ;;  %v6822_v19 = vpack.c.bf16 %v6799_v18, %v6798_v41  ;;  %v7092_v18 = vpack.c.bf16 %v7065_v30, %v7064_v33  ;;  %v7066_v41 = vld [vmem:[#allocation2 + $0x320] sm:$0xff]  ;;  %v7084_v30 = vld [vmem:[#allocation2 + $0x3b0] sm:$0xff]  ;;  %v7089_v33 = vld [vmem:[#allocation2 + $0x3d8] sm:$0xff] }
 0x4c1   : > { %15899 = vmatprep.mubr.msk.bf16.mxu0 %vm493_vm2, %v6552_v50  ;;  %v6803_v50 = vld [vmem:[#allocation2 + $0x278] sm:$0xff] }
 0x4c2   : > { %v6824_v59 = vpack.c.bf16 %v6803_v50, %v6802_v0  ;;  %v17656_v50 = vld [vmem:[%s20529_s2 + $0x118] sm:$0xff]   ;;  %v7071_v0 = vld [vmem:[#allocation2 + $0x348] sm:$0xff] }
 0x4c8   : > { %15900 = vmatmul.mubr.msk.bf16.gmra.mrb[16].mxu0 %vm493_vm2, %v6553_v61  ;;  %v6805_v61 = vld [vmem:[#allocation2 + $0x288] sm:$0xff] }
 0x4c9   : > { %15903 = vmatprep.mubr.msk.bf16.mxu0 %vm493_vm2, %v6554_v7  ;;  %v6804_v7 = vld [vmem:[#allocation2 + $0x280] sm:$0xff] }
 0x4ca   : > { %v6825_v29 = vpack.c.bf16 %v6805_v61, %v6804_v7  ;;  %v7070_v61 = vld [vmem:[#allocation2 + $0x340] sm:$0xff]  ;;  %v7072_v7 = vld [vmem:[#allocation2 + $0x350] sm:$0xff] }
 0x4cb   : > { %v7095_v4 = vpack.c.bf16 %v7071_v0, %v7070_v61  ;;  %v7338_v0 = vld [vmem:[#allocation2 + $0x211] sm:$0xff]  ;;  %v7341_v61 = vld [vmem:[#allocation2 + $0x229] sm:$0xff] }
 0x4d0   : > { %15904 = vmatmul.mubr.msk.bf16.gmra.mrb[20].mxu0 %vm493_vm2, %v6555_v16  ;;  %v6809_v16 = vld [vmem:[#allocation2 + $0x2a8] sm:$0xff] }
 0x4d1   : > { %15907 = vmatprep.mubr.msk.bf16.mxu0 %vm493_vm2, %v6556_v8  ;;  %v6808_v8 = vld [vmem:[#allocation2 + $0x2a0] sm:$0xff] }
 0x4d2   : > { %v6827_v44 = vpack.c.bf16 %v6809_v16, %v6808_v8 }
 0x4d8   : > { %15908 = vmatmul.mubr.msk.bf16.gmra.mrb[24].mxu0 %vm493_vm2, %v6557_v48  ;;  %v6813_v48 = vld [vmem:[#allocation2 + $0x2c8] sm:$0xff] }
 0x4d9   : > { %15915 = vmatprep.mubr.msk.bf16.mxu0 %vm493_vm2, %v6818_v24  ;;  %v6812_v24 = vld [vmem:[#allocation2 + $0x2c0] sm:$0xff] }
 0x4da   : > { %v6829_v25 = vpack.c.bf16 %v6813_v48, %v6812_v24  ;;  %v7100_v24 = vpack.c.bf16 %v7081_v20, %v7080_v5  ;;  %v7349_v5 = vld [vmem:[#allocation2 + $0x269] sm:$0xff] }
 0x4e0   : > { %15916 = vmatmul.mubr.msk.bf16.vlgmr.msra.gmra.mrb[0].mxu0 %vm493_vm2, %v6819_v3  ;;  %v6817_v3 = vld [vmem:[#allocation2 + $0x2e8] sm:$0xff] }
 0x4e1   : > { %15919 = vmatprep.mubr.msk.bf16.mxu0 %vm493_vm2, %v6820_v55  ;;  %15944 = vmatpush3.bf16.msra.mxu0 %v17653_v23  ;;  %v6800_v23 = vld [vmem:[#allocation2 + $0x260] sm:$0xff] }
 0x4e2   : > { %15945 = vmatprep.subr.bf16.mxu0 %v17654_v31  ;;  %v6823_v56 = vpack.c.bf16 %v6801_v49, %v6800_v23  ;;  %v7068_v49 = vld [vmem:[#allocation2 + $0x330] sm:$0xff] }
 0x4e5   : > { %15946 = vmatpush3.bf16.msra.mxu0 %v17654_v31  ;;  %v6816_v31 = vld [vmem:[#allocation2 + $0x2e0] sm:$0xff] }
 0x4e6   : > { %15975 = vmatprep.subr.bf16.mxu0 %v17655_v32  ;;  %v6831_v55 = vpack.c.bf16 %v6817_v3, %v6816_v31  ;;  %v7102_v31 = vpack.c.bf16 %v7085_v26, %v7084_v30  ;;  %v7350_v26 = vld [vmem:[#allocation2 + $0x271] sm:$0xff]  ;;  %v7355_v30 = vld [vmem:[#allocation2 + $0x299] sm:$0xff] }
 0x4e8   : > { %15920 = vmatmul.mubr.msk.bf16.gmra.mrb[4].mxu0 %vm493_vm2, %v6821_v47  ;;  %v7069_v47 = vld [vmem:[#allocation2 + $0x338] sm:$0xff] }
 0x4e9   : > { %15923 = vmatprep.mubr.msk.bf16.mxu0 %vm493_vm2, %v6822_v19  ;;  %v7093_v19 = vpack.c.bf16 %v7067_v40, %v7066_v41  ;;  %v7094_v23 = vpack.c.bf16 %v7069_v47, %v7068_v49  ;;  %v7088_v47 = vld [vmem:[#allocation2 + $0x3d0] sm:$0xff]  ;;  %v7091_v49 = vld [vmem:[#allocation2 + $0x3e8] sm:$0xff] }
 0x4ea   : > { %v7104_v41 = vpack.c.bf16 %v7089_v33, %v7088_v47  ;;  %v7354_v33 = vld [vmem:[#allocation2 + $0x291] sm:$0xff]  ;;  %v7359_v47 = vld [vmem:[#allocation2 + $0x2b9] sm:$0xff] }
 0x4f0   : > { %15924 = vmatmul.mubr.msk.bf16.gmra.mrb[8].mxu0 %vm493_vm2, %v6823_v56  ;;  %v17657_v56 = vld [vmem:[%s20529_s2 + $0x120] sm:$0xff]  }
 0x4f1   : > { %15927 = vmatprep.mubr.msk.bf16.mxu0 %vm493_vm2, %v6824_v59  ;;  %v7073_v59 = vld [vmem:[#allocation2 + $0x358] sm:$0xff] }
 0x4f8   : > { %15928 = vmatmul.mubr.msk.bf16.gmra.mrb[12].mxu0 %vm493_vm2, %v6825_v29  ;;  %v7096_v29 = vpack.c.bf16 %v7073_v59, %v7072_v7  ;;  %v7340_v7 = vld [vmem:[#allocation2 + $0x221] sm:$0xff] }
 0x4f9   : > { %15931 = vmatprep.mubr.msk.bf16.mxu0 %vm493_vm2, %v6826_v11  ;;  %v7077_v11 = vld [vmem:[#allocation2 + $0x378] sm:$0xff] }
 0x4fa   : > { %v7098_v8 = vpack.c.bf16 %v7077_v11, %v7076_v17  ;;  %v17658_v11 = vld [vmem:[%s20529_s2 + $0x128] sm:$0xff]  }
 0x4fb   : > { %v7345_v17 = vld [vmem:[#allocation2 + $0x249] sm:$0xff] }
 0x500   : > { %15932 = vmatmul.mubr.msk.bf16.gmra.mrb[16].mxu0 %vm493_vm2, %v6827_v44  ;;  %v7079_v44 = vld [vmem:[#allocation2 + $0x388] sm:$0xff] }
 0x501   : > { %15935 = vmatprep.mubr.msk.bf16.mxu0 %vm493_vm2, %v6828_v21  ;;  %v7078_v21 = vld [vmem:[#allocation2 + $0x380] sm:$0xff] }
 0x502   : > { %v7099_v48 = vpack.c.bf16 %v7079_v44, %v7078_v21  ;;  %v7344_v44 = vld [vmem:[#allocation2 + $0x241] sm:$0xff]  ;;  %v7346_v21 = vld [vmem:[#allocation2 + $0x251] sm:$0xff] }
 0x503   : > { %v7369_v20 = vpack.c.bf16 %v7345_v17, %v7344_v44  ;;  %v7612_v17 = vld [vmem:[#allocation2 + $0x311] sm:$0xff]  ;;  %v7615_v44 = vld [vmem:[#allocation2 + $0x329] sm:$0xff] }
 0x508   : > { %15936 = vmatmul.mubr.msk.bf16.gmra.mrb[20].mxu0 %vm493_vm2, %v6829_v25  ;;  %v7083_v25 = vld [vmem:[#allocation2 + $0x3a8] sm:$0xff] }
 0x509   : > { %15939 = vmatprep.mubr.msk.bf16.mxu0 %vm493_vm2, %v6830_v27  ;;  %v7082_v27 = vld [vmem:[#allocation2 + $0x3a0] sm:$0xff] }
 0x50a   : > { %v7101_v3 = vpack.c.bf16 %v7083_v25, %v7082_v27 }
 0x510   : > { %15940 = vmatmul.mubr.msk.bf16.gmra.mrb[24].mxu0 %vm493_vm2, %v6831_v55  ;;  %v7087_v55 = vld [vmem:[#allocation2 + $0x3c8] sm:$0xff] }
 0x511   : > { %15947 = vmatprep.mubr.msk.bf16.mxu0 %vm493_vm2, %v7092_v18  ;;  %v7086_v18 = vld [vmem:[#allocation2 + $0x3c0] sm:$0xff] }
 0x512   : > { %v7103_v40 = vpack.c.bf16 %v7087_v55, %v7086_v18  ;;  %v7374_v18 = vpack.c.bf16 %v7355_v30, %v7354_v33  ;;  %v7623_v33 = vld [vmem:[#allocation2 + $0x369] sm:$0xff] }
 0x518   : > { %15948 = vmatmul.mubr.msk.bf16.vlgmr.msra.gmra.mrb[0].mxu0 %vm493_vm2, %v7093_v19  ;;  %v7090_v19 = vld [vmem:[#allocation2 + $0x3e0] sm:$0xff] }
 0x519   : > { %15951 = vmatprep.mubr.msk.bf16.mxu0 %vm493_vm2, %v7094_v23  ;;  %15976 = vmatpush3.bf16.msra.mxu0 %v17655_v32  ;;  %v7074_v32 = vld [vmem:[#allocation2 + $0x360] sm:$0xff]  ;;  %v7105_v23 = vpack.c.bf16 %v7091_v49, %v7090_v19  ;;  %v7358_v49 = vld [vmem:[#allocation2 + $0x2b1] sm:$0xff] }
 0x51a   : > { %15977 = vmatprep.subr.bf16.mxu0 %v17656_v50  ;;  %v7097_v16 = vpack.c.bf16 %v7075_v9, %v7074_v32  ;;  %v7342_v9 = vld [vmem:[#allocation2 + $0x231] sm:$0xff] }
 0x51d   : > { %15978 = vmatpush3.bf16.msra.mxu0 %v17656_v50  ;;  %v7339_v50 = vld [vmem:[#allocation2 + $0x219] sm:$0xff] }
 0x51e   : > { %16007 = vmatprep.subr.bf16.mxu0 %v17657_v56  ;;  %v7366_v59 = vpack.c.bf16 %v7339_v50, %v7338_v0  ;;  %v7376_v50 = vpack.c.bf16 %v7359_v47, %v7358_v49  ;;  %v7363_v0 = vld [vmem:[#allocation2 + $0x2d9] sm:$0xff]  ;;  %v7624_v47 = vld [vmem:[#allocation2 + $0x371] sm:$0xff] }
 0x51f   : > { %v7629_v49 = vld [vmem:[#allocation2 + $0x399] sm:$0xff] }
 0x520   : > { %15952 = vmatmul.mubr.msk.bf16.gmra.mrb[4].mxu0 %vm493_vm2, %v7095_v4  ;;  %v7343_v4 = vld [vmem:[#allocation2 + $0x239] sm:$0xff] }
 0x521   : > { %15955 = vmatprep.mubr.msk.bf16.mxu0 %vm493_vm2, %v7096_v29  ;;  %v7367_v29 = vpack.c.bf16 %v7341_v61, %v7340_v7  ;;  %v7368_v32 = vpack.c.bf16 %v7343_v4, %v7342_v9  ;;  %v7362_v4 = vld [vmem:[#allocation2 + $0x2d1] sm:$0xff]  ;;  %v7613_v9 = vld [vmem:[#allocation2 + $0x319] sm:$0xff] }
 0x522   : > { %v7378_v7 = vpack.c.bf16 %v7363_v0, %v7362_v4  ;;  %v7628_v0 = vld [vmem:[#allocation2 + $0x391] sm:$0xff]  ;;  %v7633_v4 = vld [vmem:[#allocation2 + $0x3b9] sm:$0xff] }
 0x528   : > { %15956 = vmatmul.mubr.msk.bf16.gmra.mrb[8].mxu0 %vm493_vm2, %v7097_v16  ;;  %v17659_v16 = vld [vmem:[%s20529_s2 + $0x130] sm:$0xff]  }
 0x529   : > { %15959 = vmatprep.mubr.msk.bf16.mxu0 %vm493_vm2, %v7098_v8  ;;  %v7347_v8 = vld [vmem:[#allocation2 + $0x259] sm:$0xff] }
 0x530   : > { %15960 = vmatmul.mubr.msk.bf16.gmra.mrb[12].mxu0 %vm493_vm2, %v7099_v48  ;;  %v7370_v48 = vpack.c.bf16 %v7347_v8, %v7346_v21  ;;  %v7640_v8 = vpack.c.bf16 %v7613_v9, %v7612_v17  ;;  %v7614_v21 = vld [vmem:[#allocation2 + $0x321] sm:$0xff]  ;;  %v7632_v9 = vld [vmem:[#allocation2 + $0x3b1] sm:$0xff]  ;;  %v7637_v17 = vld [vmem:[#allocation2 + $0x3d9] sm:$0xff] }
 0x531   : > { %15963 = vmatprep.mubr.msk.bf16.mxu0 %vm493_vm2, %v7100_v24  ;;  %v7351_v24 = vld [vmem:[#allocation2 + $0x279] sm:$0xff] }
 0x532   : > { %v7372_v27 = vpack.c.bf16 %v7351_v24, %v7350_v26  ;;  %v17660_v24 = vld [vmem:[%s20529_s2 + $0x138] sm:$0xff]   ;;  %v7619_v26 = vld [vmem:[#allocation2 + $0x349] sm:$0xff] }
 0x538   : > { %15964 = vmatmul.mubr.msk.bf16.gmra.mrb[16].mxu0 %vm493_vm2, %v7101_v3  ;;  %v7353_v3 = vld [vmem:[#allocation2 + $0x289] sm:$0xff] }
 0x539   : > { %15967 = vmatprep.mubr.msk.bf16.mxu0 %vm493_vm2, %v7102_v31  ;;  %v7352_v31 = vld [vmem:[#allocation2 + $0x281] sm:$0xff] }
 0x53a   : > { %v7373_v55 = vpack.c.bf16 %v7353_v3, %v7352_v31  ;;  %v7618_v3 = vld [vmem:[#allocation2 + $0x341] sm:$0xff]  ;;  %v7620_v31 = vld [vmem:[#allocation2 + $0x351] sm:$0xff] }
 0x53b   : > { %v7643_v30 = vpack.c.bf16 %v7619_v26, %v7618_v3  ;;  %v7886_v26 = vld [vmem:[#allocation2 + $0x212] sm:$0xff]  ;;  %v7889_v3 = vld [vmem:[#allocation2 + $0x22a] sm:$0xff] }
 0x540   : > { %15968 = vmatmul.mubr.msk.bf16.gmra.mrb[20].mxu0 %vm493_vm2, %v7103_v40  ;;  %v7357_v40 = vld [vmem:[#allocation2 + $0x2a9] sm:$0xff] }
 0x541   : > { %15971 = vmatprep.mubr.msk.bf16.mxu0 %vm493_vm2, %v7104_v41  ;;  %v7356_v41 = vld [vmem:[#allocation2 + $0x2a1] sm:$0xff] }
 0x542   : > { %v7375_v19 = vpack.c.bf16 %v7357_v40, %v7356_v41 }
 0x548   : > { %15972 = vmatmul.mubr.msk.bf16.gmra.mrb[24].mxu0 %vm493_vm2, %v7105_v23  ;;  %v7361_v23 = vld [vmem:[#allocation2 + $0x2c9] sm:$0xff] }
 0x549   : > { %15979 = vmatprep.mubr.msk.bf16.mxu0 %vm493_vm2, %v7366_v59  ;;  %v7360_v59 = vld [vmem:[#allocation2 + $0x2c1] sm:$0xff] }
 0x54a   : > { %v7377_v61 = vpack.c.bf16 %v7361_v23, %v7360_v59  ;;  %v7648_v59 = vpack.c.bf16 %v7629_v49, %v7628_v0  ;;  %v7897_v0 = vld [vmem:[#allocation2 + $0x26a] sm:$0xff] }
 0x550   : > { %15980 = vmatmul.mubr.msk.bf16.vlgmr.msra.gmra.mrb[0].mxu0 %vm493_vm2, %v7367_v29  ;;  %v7365_v29 = vld [vmem:[#allocation2 + $0x2e9] sm:$0xff] }
 0x551   : > { %15983 = vmatprep.mubr.msk.bf16.mxu0 %vm493_vm2, %v7368_v32  ;;  %16008 = vmatpush3.bf16.msra.mxu0 %v17657_v56  ;;  %v7348_v56 = vld [vmem:[#allocation2 + $0x261] sm:$0xff] }
 0x552   : > { %16009 = vmatprep.subr.bf16.mxu0 %v17658_v11  ;;  %v7371_v25 = vpack.c.bf16 %v7349_v5, %v7348_v56  ;;  %v7616_v5 = vld [vmem:[#allocation2 + $0x331] sm:$0xff] }
 0x555   : > { %16010 = vmatpush3.bf16.msra.mxu0 %v17658_v11  ;;  %v7364_v11 = vld [vmem:[#allocation2 + $0x2e1] sm:$0xff] }
 0x556   : > { %16039 = vmatprep.subr.bf16.mxu0 %v17659_v16  ;;  %v7379_v32 = vpack.c.bf16 %v7365_v29, %v7364_v11  ;;  %v7650_v11 = vpack.c.bf16 %v7633_v4, %v7632_v9  ;;  %v7898_v4 = vld [vmem:[#allocation2 + $0x272] sm:$0xff]  ;;  %v7903_v9 = vld [vmem:[#allocation2 + $0x29a] sm:$0xff] }
 0x558   : > { %15984 = vmatmul.mubr.msk.bf16.gmra.mrb[4].mxu0 %vm493_vm2, %v7369_v20  ;;  %v7617_v20 = vld [vmem:[#allocation2 + $0x339] sm:$0xff] }
 0x559   : > { %15987 = vmatprep.mubr.msk.bf16.mxu0 %vm493_vm2, %v7370_v48  ;;  %v7641_v48 = vpack.c.bf16 %v7615_v44, %v7614_v21  ;;  %v7642_v56 = vpack.c.bf16 %v7617_v20, %v7616_v5  ;;  %v7636_v20 = vld [vmem:[#allocation2 + $0x3d1] sm:$0xff]  ;;  %v7639_v5 = vld [vmem:[#allocation2 + $0x3e9] sm:$0xff] }
 0x55a   : > { %v7652_v21 = vpack.c.bf16 %v7637_v17, %v7636_v20  ;;  %v7902_v17 = vld [vmem:[#allocation2 + $0x292] sm:$0xff]  ;;  %v7907_v20 = vld [vmem:[#allocation2 + $0x2ba] sm:$0xff] }
 0x560   : > { %15988 = vmatmul.mubr.msk.bf16.gmra.mrb[8].mxu0 %vm493_vm2, %v7371_v25  ;;  %v17661_v25 = vld [vmem:[%s20529_s2 + $0x140] sm:$0xff]  }
 0x561   : > { %15991 = vmatprep.mubr.msk.bf16.mxu0 %vm493_vm2, %v7372_v27  ;;  %v7621_v27 = vld [vmem:[#allocation2 + $0x359] sm:$0xff] }
 0x568   : > { %15992 = vmatmul.mubr.msk.bf16.gmra.mrb[12].mxu0 %vm493_vm2, %v7373_v55  ;;  %v7644_v55 = vpack.c.bf16 %v7621_v27, %v7620_v31  ;;  %v7888_v31 = vld [vmem:[#allocation2 + $0x222] sm:$0xff] }
 0x569   : > { %15995 = vmatprep.mubr.msk.bf16.mxu0 %vm493_vm2, %v7374_v18  ;;  %v7625_v18 = vld [vmem:[#allocation2 + $0x379] sm:$0xff] }
 0x56a   : > { %v7646_v41 = vpack.c.bf16 %v7625_v18, %v7624_v47  ;;  %v17662_v18 = vld [vmem:[%s20529_s2 + $0x148] sm:$0xff]  }
 0x56b   : > { %v7893_v47 = vld [vmem:[#allocation2 + $0x24a] sm:$0xff] }
 0x570   : > { %15996 = vmatmul.mubr.msk.bf16.gmra.mrb[16].mxu0 %vm493_vm2, %v7375_v19  ;;  %v7627_v19 = vld [vmem:[#allocation2 + $0x389] sm:$0xff] }
 0x571   : > { %15999 = vmatprep.mubr.msk.bf16.mxu0 %vm493_vm2, %v7376_v50  ;;  %v7626_v50 = vld [vmem:[#allocation2 + $0x381] sm:$0xff] }
 0x572   : > { %v7647_v23 = vpack.c.bf16 %v7627_v19, %v7626_v50  ;;  %v7892_v19 = vld [vmem:[#allocation2 + $0x242] sm:$0xff]  ;;  %v7894_v50 = vld [vmem:[#allocation2 + $0x252] sm:$0xff] }
 0x573   : > { %v7917_v49 = vpack.c.bf16 %v7893_v47, %v7892_v19  ;;  %v8160_v47 = vld [vmem:[#allocation2 + $0x20] sm:$0xff]  ;;  %v8163_v19 = vld [vmem:[#allocation2 + $0x38] sm:$0xff] }
 0x578   : > { %16000 = vmatmul.mubr.msk.bf16.gmra.mrb[20].mxu0 %vm493_vm2, %v7377_v61  ;;  %v7631_v61 = vld [vmem:[#allocation2 + $0x3a9] sm:$0xff] }
 0x579   : > { %16003 = vmatprep.mubr.msk.bf16.mxu0 %vm493_vm2, %v7378_v7  ;;  %v7630_v7 = vld [vmem:[#allocation2 + $0x3a1] sm:$0xff] }
 0x57a   : > { %v7649_v29 = vpack.c.bf16 %v7631_v61, %v7630_v7 }
 0x580   : > { %16004 = vmatmul.mubr.msk.bf16.gmra.mrb[24].mxu0 %vm493_vm2, %v7379_v32  ;;  %v7635_v32 = vld [vmem:[#allocation2 + $0x3c9] sm:$0xff] }
 0x581   : > { %16011 = vmatprep.mubr.msk.bf16.mxu0 %vm493_vm2, %v7640_v8  ;;  %v7634_v8 = vld [vmem:[#allocation2 + $0x3c1] sm:$0xff] }
 0x582   : > { %v7651_v44 = vpack.c.bf16 %v7635_v32, %v7634_v8  ;;  %v7922_v8 = vpack.c.bf16 %v7903_v9, %v7902_v17  ;;  %v8171_v17 = vld [vmem:[#allocation2 + $0x78] sm:$0xff] }
 0x588   : > { %16012 = vmatmul.mubr.msk.bf16.vlgmr.msra.gmra.mrb[0].mxu0 %vm493_vm2, %v7641_v48  ;;  %v7638_v48 = vld [vmem:[#allocation2 + $0x3e1] sm:$0xff] }
 0x589   : > { %16015 = vmatprep.mubr.msk.bf16.mxu0 %vm493_vm2, %v7642_v56  ;;  %16040 = vmatpush3.bf16.msra.mxu0 %v17659_v16  ;;  %v7622_v16 = vld [vmem:[#allocation2 + $0x361] sm:$0xff]  ;;  %v7653_v56 = vpack.c.bf16 %v7639_v5, %v7638_v48  ;;  %v7906_v5 = vld [vmem:[#allocation2 + $0x2b2] sm:$0xff] }
 0x58a   : > { %16041 = vmatprep.subr.bf16.mxu0 %v17660_v24  ;;  %v7645_v40 = vpack.c.bf16 %v7623_v33, %v7622_v16  ;;  %v7890_v33 = vld [vmem:[#allocation2 + $0x232] sm:$0xff] }
 0x58d   : > { %16042 = vmatpush3.bf16.msra.mxu0 %v17660_v24  ;;  %v7887_v24 = vld [vmem:[#allocation2 + $0x21a] sm:$0xff] }
 0x58e   : > { %16071 = vmatprep.subr.bf16.mxu0 %v17661_v25  ;;  %v7914_v27 = vpack.c.bf16 %v7887_v24, %v7886_v26  ;;  %v7924_v24 = vpack.c.bf16 %v7907_v20, %v7906_v5  ;;  %v7911_v26 = vld [vmem:[#allocation2 + $0x2da] sm:$0xff]  ;;  %v8177_v5 = vld [vmem:[#allocation2 + $0xa8] sm:$0xff] }
 0x58f   : > { %v8172_v20 = vld [vmem:[#allocation2 + $0x80] sm:$0xff] }
 0x590   : > { %16016 = vmatmul.mubr.msk.bf16.gmra.mrb[4].mxu0 %vm493_vm2, %v7643_v30  ;;  %v7891_v30 = vld [vmem:[#allocation2 + $0x23a] sm:$0xff] }
 0x591   : > { %16019 = vmatprep.mubr.msk.bf16.mxu0 %vm493_vm2, %v7644_v55  ;;  %v7915_v55 = vpack.c.bf16 %v7889_v3, %v7888_v31  ;;  %v7916_v16 = vpack.c.bf16 %v7891_v30, %v7890_v33  ;;  %v7910_v30 = vld [vmem:[#allocation2 + $0x2d2] sm:$0xff]  ;;  %v8161_v33 = vld [vmem:[#allocation2 + $0x28] sm:$0xff] }
 0x592   : > { %v7926_v31 = vpack.c.bf16 %v7911_v26, %v7910_v30  ;;  %v8176_v26 = vld [vmem:[#allocation2 + $0xa0] sm:$0xff]  ;;  %v8181_v30 = vld [vmem:[#allocation2 + $0xc8] sm:$0xff] }
 0x598   : > { %16020 = vmatmul.mubr.msk.bf16.gmra.mrb[8].mxu0 %vm493_vm2, %v7645_v40  ;;  %v17663_v40 = vld [vmem:[%s20529_s2 + $0x150] sm:$0xff]  }
 0x599   : > { %16023 = vmatprep.mubr.msk.bf16.mxu0 %vm493_vm2, %v7646_v41  ;;  %v7895_v41 = vld [vmem:[#allocation2 + $0x25a] sm:$0xff] }
 0x5a0   : > { %16024 = vmatmul.mubr.msk.bf16.gmra.mrb[12].mxu0 %vm493_vm2, %v7647_v23  ;;  %v7918_v23 = vpack.c.bf16 %v7895_v41, %v7894_v50  ;;  %v8188_v41 = vpack.c.bf16 %v8161_v33, %v8160_v47  ;;  %v8162_v50 = vld [vmem:[#allocation2 + $0x30] sm:$0xff]  ;;  %v8180_v33 = vld [vmem:[#allocation2 + $0xc0] sm:$0xff]  ;;  %v8185_v47 = vld [vmem:[#allocation2 + $0xe8] sm:$0xff] }
 0x5a1   : > { %16027 = vmatprep.mubr.msk.bf16.mxu0 %vm493_vm2, %v7648_v59  ;;  %v7899_v59 = vld [vmem:[#allocation2 + $0x27a] sm:$0xff] }
 0x5a2   : > { %v7920_v7 = vpack.c.bf16 %v7899_v59, %v7898_v4  ;;  %v17664_v59 = vld [vmem:[%s20529_s2 + $0x158] sm:$0xff]  }
 0x5a3   : > { %v8167_v4 = vld [vmem:[#allocation2 + $0x58] sm:$0xff] }
 0x5a8   : > { %16028 = vmatmul.mubr.msk.bf16.gmra.mrb[16].mxu0 %vm493_vm2, %v7649_v29  ;;  %v7901_v29 = vld [vmem:[#allocation2 + $0x28a] sm:$0xff] }
 0x5a9   : > { %16031 = vmatprep.mubr.msk.bf16.mxu0 %vm493_vm2, %v7650_v11  ;;  %v7900_v11 = vld [vmem:[#allocation2 + $0x282] sm:$0xff] }
 0x5aa   : > { %v7921_v32 = vpack.c.bf16 %v7901_v29, %v7900_v11  ;;  %v8166_v29 = vld [vmem:[#allocation2 + $0x50] sm:$0xff]  ;;  %v8168_v11 = vld [vmem:[#allocation2 + $0x60] sm:$0xff] }
 0x5ab   : > { %v8191_v9 = vpack.c.bf16 %v8167_v4, %v8166_v29  ;;  %v8434_v4 = vld [vmem:[#allocation2 + $0x120] sm:$0xff]  ;;  %v8437_v29 = vld [vmem:[#allocation2 + $0x138] sm:$0xff] }
 0x5b0   : > { %16032 = vmatmul.mubr.msk.bf16.gmra.mrb[20].mxu0 %vm493_vm2, %v7651_v44  ;;  %v7905_v44 = vld [vmem:[#allocation2 + $0x2aa] sm:$0xff] }
 0x5b1   : > { %16035 = vmatprep.mubr.msk.bf16.mxu0 %vm493_vm2, %v7652_v21  ;;  %v7904_v21 = vld [vmem:[#allocation2 + $0x2a2] sm:$0xff] }
 0x5b2   : > { %v7923_v48 = vpack.c.bf16 %v7905_v44, %v7904_v21 }
 0x5b8   : > { %16036 = vmatmul.mubr.msk.bf16.gmra.mrb[24].mxu0 %vm493_vm2, %v7653_v56  ;;  %v7909_v56 = vld [vmem:[#allocation2 + $0x2ca] sm:$0xff] }
 0x5b9   : > { %16043 = vmatprep.mubr.msk.bf16.mxu0 %vm493_vm2, %v7914_v27  ;;  %v7908_v27 = vld [vmem:[#allocation2 + $0x2c2] sm:$0xff] }
 0x5ba   : > { %v7925_v3 = vpack.c.bf16 %v7909_v56, %v7908_v27  ;;  %v8196_v27 = vpack.c.bf16 %v8177_v5, %v8176_v26  ;;  %v8445_v26 = vld [vmem:[#allocation2 + $0x178] sm:$0xff] }
 0x5c0   : > { %16044 = vmatmul.mubr.msk.bf16.vlgmr.msra.gmra.mrb[0].mxu0 %vm493_vm2, %v7915_v55  ;;  %v7913_v55 = vld [vmem:[#allocation2 + $0x2ea] sm:$0xff] }
 0x5c1   : > { %16047 = vmatprep.mubr.msk.bf16.mxu0 %vm493_vm2, %v7916_v16  ;;  %16072 = vmatpush3.bf16.msra.mxu0 %v17661_v25  ;;  %v7896_v25 = vld [vmem:[#allocation2 + $0x262] sm:$0xff] }
 0x5c2   : > { %16073 = vmatprep.subr.bf16.mxu0 %v17662_v18  ;;  %v7919_v61 = vpack.c.bf16 %v7897_v0, %v7896_v25  ;;  %v8164_v0 = vld [vmem:[#allocation2 + $0x40] sm:$0xff] }
 0x5c5   : > { %16074 = vmatpush3.bf16.msra.mxu0 %v17662_v18  ;;  %v7912_v18 = vld [vmem:[#allocation2 + $0x2e2] sm:$0xff] }
 0x5c6   : > { %16103 = vmatprep.subr.bf16.mxu0 %v17663_v40  ;;  %v7927_v16 = vpack.c.bf16 %v7913_v55, %v7912_v18  ;;  %v8198_v18 = vpack.c.bf16 %v8181_v30, %v8180_v33  ;;  %v8446_v30 = vld [vmem:[#allocation2 + $0x180] sm:$0xff]  ;;  %v8451_v33 = vld [vmem:[#allocation2 + $0x1a8] sm:$0xff] }
 0x5c8   : > { %16048 = vmatmul.mubr.msk.bf16.gmra.mrb[4].mxu0 %vm493_vm2, %v7917_v49  ;;  %v8165_v49 = vld [vmem:[#allocation2 + $0x48] sm:$0xff] }
 0x5c9   : > { %16051 = vmatprep.mubr.msk.bf16.mxu0 %vm493_vm2, %v7918_v23  ;;  %v8189_v23 = vpack.c.bf16 %v8163_v19, %v8162_v50  ;;  %v8190_v25 = vpack.c.bf16 %v8165_v49, %v8164_v0  ;;  %v8184_v49 = vld [vmem:[#allocation2 + $0xe0] sm:$0xff]  ;;  %v8435_v0 = vld [vmem:[#allocation2 + $0x128] sm:$0xff] }
 0x5ca   : > { %v8200_v50 = vpack.c.bf16 %v8185_v47, %v8184_v49  ;;  %v8450_v47 = vld [vmem:[#allocation2 + $0x1a0] sm:$0xff]  ;;  %v8455_v49 = vld [vmem:[#allocation2 + $0x1c8] sm:$0xff] }
 0x5d0   : > { %16052 = vmatmul.mubr.msk.bf16.gmra.mrb[8].mxu0 %vm493_vm2, %v7919_v61  ;;  %v17665_v61 = vld [vmem:[%s20529_s2 + $0x160] sm:$0xff]  }
 0x5d1   : > { %16055 = vmatprep.mubr.msk.bf16.mxu0 %vm493_vm2, %v7920_v7  ;;  %v8169_v7 = vld [vmem:[#allocation2 + $0x68] sm:$0xff] }
 0x5d8   : > { %16056 = vmatmul.mubr.msk.bf16.gmra.mrb[12].mxu0 %vm493_vm2, %v7921_v32  ;;  %v8192_v32 = vpack.c.bf16 %v8169_v7, %v8168_v11  ;;  %v8462_v7 = vpack.c.bf16 %v8435_v0, %v8434_v4  ;;  %v8436_v11 = vld [vmem:[#allocation2 + $0x130] sm:$0xff]  ;;  %v8454_v0 = vld [vmem:[#allocation2 + $0x1c0] sm:$0xff]  ;;  %v8459_v4 = vld [vmem:[#allocation2 + $0x1e8] sm:$0xff] }
 0x5d9   : > { %16059 = vmatprep.mubr.msk.bf16.mxu0 %vm493_vm2, %v7922_v8  ;;  %v8173_v8 = vld [vmem:[#allocation2 + $0x88] sm:$0xff] }
 0x5da   : > { %v8194_v21 = vpack.c.bf16 %v8173_v8, %v8172_v20  ;;  %v17666_v8 = vld [vmem:[%s20529_s2 + $0x168] sm:$0xff]   ;;  %v8441_v20 = vld [vmem:[#allocation2 + $0x158] sm:$0xff] }
 0x5e0   : > { %16060 = vmatmul.mubr.msk.bf16.gmra.mrb[16].mxu0 %vm493_vm2, %v7923_v48  ;;  %v8175_v48 = vld [vmem:[#allocation2 + $0x98] sm:$0xff] }
 0x5e1   : > { %16063 = vmatprep.mubr.msk.bf16.mxu0 %vm493_vm2, %v7924_v24  ;;  %v8174_v24 = vld [vmem:[#allocation2 + $0x90] sm:$0xff] }
 0x5e2   : > { %v8195_v56 = vpack.c.bf16 %v8175_v48, %v8174_v24  ;;  %v8440_v48 = vld [vmem:[#allocation2 + $0x150] sm:$0xff]  ;;  %v8442_v24 = vld [vmem:[#allocation2 + $0x160] sm:$0xff] }
 0x5e3   : > { %v8465_v5 = vpack.c.bf16 %v8441_v20, %v8440_v48  ;;  %v8708_v20 = vld [vmem:[#allocation2 + $0x21] sm:$0xff]  ;;  %v8711_v48 = vld [vmem:[#allocation2 + $0x39] sm:$0xff] }
 0x5e8   : > { %16064 = vmatmul.mubr.msk.bf16.gmra.mrb[20].mxu0 %vm493_vm2, %v7925_v3  ;;  %v8179_v3 = vld [vmem:[#allocation2 + $0xb8] sm:$0xff] }
 0x5e9   : > { %16067 = vmatprep.mubr.msk.bf16.mxu0 %vm493_vm2, %v7926_v31  ;;  %v8178_v31 = vld [vmem:[#allocation2 + $0xb0] sm:$0xff] }
 0x5ea   : > { %v8197_v55 = vpack.c.bf16 %v8179_v3, %v8178_v31 }
 0x5f0   : > { %16068 = vmatmul.mubr.msk.bf16.gmra.mrb[24].mxu0 %vm493_vm2, %v7927_v16  ;;  %v8183_v16 = vld [vmem:[#allocation2 + $0xd8] sm:$0xff] }
 0x5f1   : > { %16075 = vmatprep.mubr.msk.bf16.mxu0 %vm493_vm2, %v8188_v41  ;;  %v8182_v41 = vld [vmem:[#allocation2 + $0xd0] sm:$0xff] }
 0x5f2   : > { %v8199_v19 = vpack.c.bf16 %v8183_v16, %v8182_v41  ;;  %v8470_v41 = vpack.c.bf16 %v8451_v33, %v8450_v47  ;;  %v8719_v47 = vld [vmem:[#allocation2 + $0x79] sm:$0xff] }
 0x5f8   : > { %16076 = vmatmul.mubr.msk.bf16.vlgmr.msra.gmra.mrb[0].mxu0 %vm493_vm2, %v8189_v23  ;;  %v8187_v23 = vld [vmem:[#allocation2 + $0xf8] sm:$0xff] }
 0x5f9   : > { %16079 = vmatprep.mubr.msk.bf16.mxu0 %vm493_vm2, %v8190_v25  ;;  %16104 = vmatpush3.bf16.msra.mxu0 %v17663_v40  ;;  %v8170_v40 = vld [vmem:[#allocation2 + $0x70] sm:$0xff] }
 0x5fa   : > { %16105 = vmatprep.subr.bf16.mxu0 %v17664_v59  ;;  %v8193_v44 = vpack.c.bf16 %v8171_v17, %v8170_v40  ;;  %v8438_v17 = vld [vmem:[#allocation2 + $0x140] sm:$0xff] }
 0x5fd   : > { %16106 = vmatpush3.bf16.msra.mxu0 %v17664_v59  ;;  %v8186_v59 = vld [vmem:[#allocation2 + $0xf0] sm:$0xff] }
 0x5fe   : > { %16135 = vmatprep.subr.bf16.mxu0 %v17665_v61  ;;  %v8201_v25 = vpack.c.bf16 %v8187_v23, %v8186_v59  ;;  %v8472_v59 = vpack.c.bf16 %v8455_v49, %v8454_v0  ;;  %v8720_v49 = vld [vmem:[#allocation2 + $0x81] sm:$0xff]  ;;  %v8725_v0 = vld [vmem:[#allocation2 + $0xa9] sm:$0xff] }
 0x600   : > { %16080 = vmatmul.mubr.msk.bf16.gmra.mrb[4].mxu0 %vm493_vm2, %v8191_v9  ;;  %v8439_v9 = vld [vmem:[#allocation2 + $0x148] sm:$0xff] }
 0x601   : > { %16083 = vmatprep.mubr.msk.bf16.mxu0 %vm493_vm2, %v8192_v32  ;;  %v8463_v32 = vpack.c.bf16 %v8437_v29, %v8436_v11  ;;  %v8464_v40 = vpack.c.bf16 %v8439_v9, %v8438_v17  ;;  %v8458_v9 = vld [vmem:[#allocation2 + $0x1e0] sm:$0xff]  ;;  %v8709_v17 = vld [vmem:[#allocation2 + $0x29] sm:$0xff] }
 0x602   : > { %v8474_v11 = vpack.c.bf16 %v8459_v4, %v8458_v9  ;;  %v8724_v4 = vld [vmem:[#allocation2 + $0xa1] sm:$0xff]  ;;  %v8729_v9 = vld [vmem:[#allocation2 + $0xc9] sm:$0xff] }
 0x608   : > { %16084 = vmatmul.mubr.msk.bf16.gmra.mrb[8].mxu0 %vm493_vm2, %v8193_v44  ;;  %v17667_v44 = vld [vmem:[%s20529_s2 + $0x170] sm:$0xff]  }
 0x609   : > { %16087 = vmatprep.mubr.msk.bf16.mxu0 %vm493_vm2, %v8194_v21  ;;  %v8443_v21 = vld [vmem:[#allocation2 + $0x168] sm:$0xff] }
 0x610   : > { %16088 = vmatmul.mubr.msk.bf16.gmra.mrb[12].mxu0 %vm493_vm2, %v8195_v56  ;;  %v8466_v56 = vpack.c.bf16 %v8443_v21, %v8442_v24  ;;  %v8736_v21 = vpack.c.bf16 %v8709_v17, %v8708_v20  ;;  %v8710_v24 = vld [vmem:[#allocation2 + $0x31] sm:$0xff]  ;;  %v8728_v17 = vld [vmem:[#allocation2 + $0xc1] sm:$0xff]  ;;  %v8733_v20 = vld [vmem:[#allocation2 + $0xe9] sm:$0xff] }
 0x611   : > { %16091 = vmatprep.mubr.msk.bf16.mxu0 %vm493_vm2, %v8196_v27  ;;  %v8447_v27 = vld [vmem:[#allocation2 + $0x188] sm:$0xff] }
 0x612   : > { %v8468_v31 = vpack.c.bf16 %v8447_v27, %v8446_v30  ;;  %v17668_v27 = vld [vmem:[%s20529_s2 + $0x178] sm:$0xff]  }
 0x613   : > { %v8715_v30 = vld [vmem:[#allocation2 + $0x59] sm:$0xff] }
 0x618   : > { %16092 = vmatmul.mubr.msk.bf16.gmra.mrb[16].mxu0 %vm493_vm2, %v8197_v55  ;;  %v8449_v55 = vld [vmem:[#allocation2 + $0x198] sm:$0xff] }
 0x619   : > { %16095 = vmatprep.mubr.msk.bf16.mxu0 %vm493_vm2, %v8198_v18  ;;  %v8448_v18 = vld [vmem:[#allocation2 + $0x190] sm:$0xff] }
 0x61a   : > { %v8469_v16 = vpack.c.bf16 %v8449_v55, %v8448_v18  ;;  %v8714_v55 = vld [vmem:[#allocation2 + $0x51] sm:$0xff]  ;;  %v8716_v18 = vld [vmem:[#allocation2 + $0x61] sm:$0xff] }
 0x61b   : > { %v8739_v33 = vpack.c.bf16 %v8715_v30, %v8714_v55  ;;  %v8982_v30 = vld [vmem:[#allocation2 + $0x121] sm:$0xff]  ;;  %v8985_v55 = vld [vmem:[#allocation2 + $0x139] sm:$0xff] }
 0x620   : > { %16096 = vmatmul.mubr.msk.bf16.gmra.mrb[20].mxu0 %vm493_vm2, %v8199_v19  ;;  %v8453_v19 = vld [vmem:[#allocation2 + $0x1b8] sm:$0xff] }
 0x621   : > { %16099 = vmatprep.mubr.msk.bf16.mxu0 %vm493_vm2, %v8200_v50  ;;  %v8452_v50 = vld [vmem:[#allocation2 + $0x1b0] sm:$0xff] }
 0x622   : > { %v8471_v23 = vpack.c.bf16 %v8453_v19, %v8452_v50 }
 0x628   : > { %16100 = vmatmul.mubr.msk.bf16.gmra.mrb[24].mxu0 %vm493_vm2, %v8201_v25  ;;  %v8457_v25 = vld [vmem:[#allocation2 + $0x1d8] sm:$0xff] }
 0x629   : > { %16107 = vmatprep.mubr.msk.bf16.mxu0 %vm493_vm2, %v8462_v7  ;;  %v8456_v7 = vld [vmem:[#allocation2 + $0x1d0] sm:$0xff] }
 0x62a   : > { %v8473_v29 = vpack.c.bf16 %v8457_v25, %v8456_v7  ;;  %v8744_v7 = vpack.c.bf16 %v8725_v0, %v8724_v4  ;;  %v8990_v0 = vld [vmem:[#allocation2 + $0x161] sm:$0xff]  ;;  %v8995_v4 = vld [vmem:[#allocation2 + $0x189] sm:$0xff] }
 0x630   : > { %16108 = vmatmul.mubr.msk.bf16.vlgmr.msra.gmra.mrb[0].mxu0 %vm493_vm2, %v8463_v32  ;;  %v8461_v32 = vld [vmem:[#allocation2 + $0x1f8] sm:$0xff] }
 0x631   : > { %16111 = vmatprep.mubr.msk.bf16.mxu0 %vm493_vm2, %v8464_v40  ;;  %16136 = vmatpush3.bf16.msra.mxu0 %v17665_v61  ;;  %v8444_v61 = vld [vmem:[#allocation2 + $0x170] sm:$0xff] }
 0x632   : > { %16137 = vmatprep.subr.bf16.mxu0 %v17666_v8  ;;  %v8467_v3 = vpack.c.bf16 %v8445_v26, %v8444_v61  ;;  %v8712_v26 = vld [vmem:[#allocation2 + $0x41] sm:$0xff] }
 0x635   : > { %16138 = vmatpush3.bf16.msra.mxu0 %v17666_v8  ;;  %v8460_v8 = vld [vmem:[#allocation2 + $0x1f0] sm:$0xff] }
 0x636   : > { %16167 = vmatprep.subr.bf16.mxu0 %v17667_v44  ;;  %v8475_v40 = vpack.c.bf16 %v8461_v32, %v8460_v8  ;;  %v8746_v8 = vpack.c.bf16 %v8729_v9, %v8728_v17  ;;  %v8994_v9 = vld [vmem:[#allocation2 + $0x181] sm:$0xff]  ;;  %v8996_v17 = vld [vmem:[#allocation2 + $0x191] sm:$0xff] }
 0x638   : > { %16112 = vmatmul.mubr.msk.bf16.gmra.mrb[4].mxu0 %vm493_vm2, %v8465_v5  ;;  %v8713_v5 = vld [vmem:[#allocation2 + $0x49] sm:$0xff] }
 0x639   : > { %16115 = vmatprep.mubr.msk.bf16.mxu0 %vm493_vm2, %v8466_v56  ;;  %v8737_v56 = vpack.c.bf16 %v8711_v48, %v8710_v24  ;;  %v8738_v61 = vpack.c.bf16 %v8713_v5, %v8712_v26  ;;  %v8732_v5 = vld [vmem:[#allocation2 + $0xe1] sm:$0xff]  ;;  %v8983_v26 = vld [vmem:[#allocation2 + $0x129] sm:$0xff] }
 0x63a   : > { %v8748_v24 = vpack.c.bf16 %v8733_v20, %v8732_v5  ;;  %v9000_v5 = vld [vmem:[#allocation2 + $0x1b1] sm:$0xff] }
 0x640   : > { %16116 = vmatmul.mubr.msk.bf16.gmra.mrb[8].mxu0 %vm493_vm2, %v8467_v3  ;;  %v17669_v3 = vld [vmem:[%s20529_s2 + $0x180] sm:$0xff]  }
 0x641   : > { %16119 = vmatprep.mubr.msk.bf16.mxu0 %vm493_vm2, %v8468_v31  ;;  %v8717_v31 = vld [vmem:[#allocation2 + $0x69] sm:$0xff] }
 0x648   : > { %16120 = vmatmul.mubr.msk.bf16.gmra.mrb[12].mxu0 %vm493_vm2, %v8469_v16  ;;  %v8740_v16 = vpack.c.bf16 %v8717_v31, %v8716_v18  ;;  %v9010_v31 = vpack.c.bf16 %v8983_v26, %v8982_v30  ;;  %v8984_v18 = vld [vmem:[#allocation2 + $0x131] sm:$0xff] }
 0x649   : > { %16123 = vmatprep.mubr.msk.bf16.mxu0 %vm493_vm2, %v8470_v41  ;;  %v8721_v41 = vld [vmem:[#allocation2 + $0x89] sm:$0xff]  ;;  %v9004_v30 = vld [vmem:[#allocation2 + $0x1d1] sm:$0xff] }
 0x64a   : > { %v8742_v50 = vpack.c.bf16 %v8721_v41, %v8720_v49  ;;  %v17670_v41 = vld [vmem:[%s20529_s2 + $0x188] sm:$0xff]  }
 0x64b   : > { %v8991_v49 = vld [vmem:[#allocation2 + $0x169] sm:$0xff] }
 0x650   : > { %16124 = vmatmul.mubr.msk.bf16.gmra.mrb[16].mxu0 %vm493_vm2, %v8471_v23  ;;  %v8723_v23 = vld [vmem:[#allocation2 + $0x99] sm:$0xff] }
 0x651   : > { %16127 = vmatprep.mubr.msk.bf16.mxu0 %vm493_vm2, %v8472_v59  ;;  %v8722_v59 = vld [vmem:[#allocation2 + $0x91] sm:$0xff] }
 0x652   : > { %v8743_v25 = vpack.c.bf16 %v8723_v23, %v8722_v59  ;;  %v9014_v59 = vpack.c.bf16 %v8991_v49, %v8990_v0  ;;  %v9259_v49 = vld [vmem:[#allocation2 + $0x3a] sm:$0xff] }
 0x658   : > { %16128 = vmatmul.mubr.msk.bf16.gmra.mrb[20].mxu0 %vm493_vm2, %v8473_v29  ;;  %v8727_v29 = vld [vmem:[#allocation2 + $0xb9] sm:$0xff] }
 0x659   : > { %16131 = vmatprep.mubr.msk.bf16.mxu0 %vm493_vm2, %v8474_v11  ;;  %v8726_v11 = vld [vmem:[#allocation2 + $0xb1] sm:$0xff] }
 0x65a   : > { %v8745_v32 = vpack.c.bf16 %v8727_v29, %v8726_v11  ;;  %v9016_v11 = vpack.c.bf16 %v8995_v4, %v8994_v9  ;;  %v9263_v4 = vld [vmem:[#allocation2 + $0x5a] sm:$0xff] }
 0x660   : > { %16132 = vmatmul.mubr.msk.bf16.gmra.mrb[24].mxu0 %vm493_vm2, %v8475_v40  ;;  %v8731_v40 = vld [vmem:[#allocation2 + $0xd9] sm:$0xff] }
 0x661   : > { %16139 = vmatprep.mubr.msk.bf16.mxu0 %vm493_vm2, %v8736_v21  ;;  %v8730_v21 = vld [vmem:[#allocation2 + $0xd1] sm:$0xff] }
 0x662   : > { %v8747_v48 = vpack.c.bf16 %v8731_v40, %v8730_v21  ;;  %v8998_v40 = vld [vmem:[#allocation2 + $0x1a1] sm:$0xff]  ;;  %v9001_v21 = vld [vmem:[#allocation2 + $0x1b9] sm:$0xff] }
 0x668   : > { %16140 = vmatmul.mubr.msk.bf16.vlgmr.msra.gmra.mrb[0].mxu0 %vm493_vm2, %v8737_v56  ;;  %v8735_v56 = vld [vmem:[#allocation2 + $0xf9] sm:$0xff] }
 0x669   : > { %16143 = vmatprep.mubr.msk.bf16.mxu0 %vm493_vm2, %v8738_v61  ;;  %16168 = vmatpush3.bf16.msra.mxu0 %v17667_v44  ;;  %v8718_v44 = vld [vmem:[#allocation2 + $0x71] sm:$0xff] }
 0x66a   : > { %16169 = vmatprep.subr.bf16.mxu0 %v17668_v27  ;;  %v8741_v19 = vpack.c.bf16 %v8719_v47, %v8718_v44  ;;  %v8986_v47 = vld [vmem:[#allocation2 + $0x141] sm:$0xff] }
 0x66d   : > { %16170 = vmatpush3.bf16.msra.mxu0 %v17668_v27  ;;  %v8734_v27 = vld [vmem:[#allocation2 + $0xf1] sm:$0xff] }
 0x66e   : > { %16199 = vmatprep.subr.bf16.mxu0 %v17669_v3  ;;  %v8749_v61 = vpack.c.bf16 %v8735_v56, %v8734_v27  ;;  %v9002_v56 = vld [vmem:[#allocation2 + $0x1c1] sm:$0xff]  ;;  %v9005_v27 = vld [vmem:[#allocation2 + $0x1d9] sm:$0xff] }
 0x670   : > { %16144 = vmatmul.mubr.msk.bf16.gmra.mrb[4].mxu0 %vm493_vm2, %v8739_v33  ;;  %v8987_v33 = vld [vmem:[#allocation2 + $0x149] sm:$0xff] }
 0x671   : > { %16147 = vmatprep.mubr.msk.bf16.mxu0 %vm493_vm2, %v8740_v16  ;;  %v9011_v16 = vpack.c.bf16 %v8985_v55, %v8984_v18  ;;  %v9012_v44 = vpack.c.bf16 %v8987_v33, %v8986_v47  ;;  %v9006_v55 = vld [vmem:[#allocation2 + $0x1e1] sm:$0xff]  ;;  %v9009_v18 = vld [vmem:[#allocation2 + $0x1f9] sm:$0xff]  ;;  %v9008_v47 = vld [vmem:[#allocation2 + $0x1f1] sm:$0xff] }
 0x678   : > { %16148 = vmatmul.mubr.msk.bf16.gmra.mrb[8].mxu0 %vm493_vm2, %v8741_v19  ;;  %v8989_v19 = vld [vmem:[#allocation2 + $0x159] sm:$0xff] }
 0x679   : > { %16151 = vmatprep.mubr.msk.bf16.mxu0 %vm493_vm2, %v8742_v50  ;;  %v8988_v50 = vld [vmem:[#allocation2 + $0x151] sm:$0xff] }
 0x67a   : > { %v9013_v23 = vpack.c.bf16 %v8989_v19, %v8988_v50  ;;  %v9261_v50 = vld [vmem:[#allocation2 + $0x4a] sm:$0xff] }
 0x680   : > { %16152 = vmatmul.mubr.msk.bf16.gmra.mrb[12].mxu0 %vm493_vm2, %v8743_v25  ;;  %v8993_v25 = vld [vmem:[#allocation2 + $0x179] sm:$0xff] }
 0x681   : > { %16155 = vmatprep.mubr.msk.bf16.mxu0 %vm493_vm2, %v8744_v7  ;;  %v8992_v7 = vld [vmem:[#allocation2 + $0x171] sm:$0xff] }
 0x682   : > { %v9015_v29 = vpack.c.bf16 %v8993_v25, %v8992_v7  ;;  %v9265_v7 = vld [vmem:[#allocation2 + $0x6a] sm:$0xff] }
 0x688   : > { %16156 = vmatmul.mubr.msk.bf16.gmra.mrb[16].mxu0 %vm493_vm2, %v8745_v32  ;;  %v8999_v32 = vld [vmem:[#allocation2 + $0x1a9] sm:$0xff] }
 0x689   : > { %16159 = vmatprep.mubr.msk.bf16.mxu0 %vm493_vm2, %v8746_v8  ;;  %v9018_v20 = vpack.c.bf16 %v8999_v32, %v8998_v40  ;;  %v9267_v32 = vld [vmem:[#allocation2 + $0x7a] sm:$0xff] }
 0x690   : > { %16160 = vmatmul.mubr.msk.bf16.gmra.mrb[20].mxu0 %vm493_vm2, %v8747_v48  ;;  %v9003_v48 = vld [vmem:[#allocation2 + $0x1c9] sm:$0xff] }
 0x691   : > { %16163 = vmatprep.mubr.msk.bf16.mxu0 %vm493_vm2, %v8748_v24  ;;  %v9019_v24 = vpack.c.bf16 %v9001_v21, %v9000_v5  ;;  %v9020_v26 = vpack.c.bf16 %v9003_v48, %v9002_v56  ;;  %v9271_v48 = vld [vmem:[#allocation2 + $0x9a] sm:$0xff]  ;;  %v9273_v5 = vld [vmem:[#allocation2 + $0xaa] sm:$0xff] }
 0x698   : > { %16164 = vmatmul.mubr.msk.bf16.gmra.mrb[24].mxu0 %vm493_vm2, %v8749_v61  ;;  %v9007_v61 = vld [vmem:[#allocation2 + $0x1e9] sm:$0xff] }
 0x699   : > { %16171 = vmatprep.mubr.msk.bf16.mxu0 %vm493_vm2, %v9010_v31  ;;  %v9021_v31 = vpack.c.bf16 %v9005_v27, %v9004_v30  ;;  %v9022_v33 = vpack.c.bf16 %v9007_v61, %v9006_v55  ;;  %v9275_v61 = vld [vmem:[#allocation2 + $0xba] sm:$0xff]  ;;  %v9277_v30 = vld [vmem:[#allocation2 + $0xca] sm:$0xff] }
 0x6a0   : > { %16172 = vmatmul.mubr.msk.bf16.vlgmr.msra.gmra.mrb[0].mxu0 %vm493_vm2, %v9011_v16  ;;  %v9257_v16 = vld [vmem:[#allocation2 + $0x2a] sm:$0xff] }
 0x6a1   : > { %16175 = vmatprep.mubr.msk.bf16.mxu0 %vm493_vm2, %v9012_v44  ;;  %16200 = vmatpush3.bf16.msra.mxu0 %v17669_v3  ;;  %v8997_v3 = vld [vmem:[#allocation2 + $0x199] sm:$0xff]  ;;  %v9256_v44 = vld [vmem:[#allocation2 + $0x22] sm:$0xff] }
 0x6a2   : > { %16201 = vmatprep.subr.bf16.mxu0 %v17670_v41  ;;  %v9017_v8 = vpack.c.bf16 %v8997_v3, %v8996_v17  ;;  %v9284_v19 = vpack.c.bf16 %v9257_v16, %v9256_v44  ;;  %v9269_v17 = vld [vmem:[#allocation2 + $0x8a] sm:$0xff]  ;;  %v9279_v16 = vld [vmem:[#allocation2 + $0xda] sm:$0xff] }
 0x6a5   : > { %16202 = vmatpush3.bf16.msra.mxu0 %v17670_v41  ;;  %v9023_v41 = vpack.c.bf16 %v9009_v18, %v9008_v47  ;;  %v9281_v47 = vld [vmem:[#allocation2 + $0xea] sm:$0xff] }
 0x6a8   : > { %16176 = vmatmul.mubr.msk.bf16.gmra.mrb[4].mxu0 %vm493_vm2, %v9013_v23  ;;  %v9258_v23 = vld [vmem:[#allocation2 + $0x32] sm:$0xff] }
 0x6a9   : > { %16179 = vmatprep.mubr.msk.bf16.mxu0 %vm493_vm2, %v9014_v59  ;;  %v9285_v0 = vpack.c.bf16 %v9259_v49, %v9258_v23  ;;  %v9260_v59 = vld [vmem:[#allocation2 + $0x42] sm:$0xff]  ;;  %v9282_v23 = vld [vmem:[#allocation2 + $0xf2] sm:$0xff] }
 0x6aa   : > { %v9286_v25 = vpack.c.bf16 %v9261_v50, %v9260_v59  ;;  %v9283_v50 = vld [vmem:[#allocation2 + $0xfa] sm:$0xff] }
 0x6ab   : > { %v17671_v59 = vld [vmem:[%s20530_s3 + $0x20] sm:$0xff]  }
 0x6b0   : > { %16180 = vmatmul.mubr.msk.bf16.gmra.mrb[8].mxu0 %vm493_vm2, %v9015_v29  ;;  %v9262_v29 = vld [vmem:[#allocation2 + $0x52] sm:$0xff] }
 0x6b1   : > { %16183 = vmatprep.mubr.msk.bf16.mxu0 %vm493_vm2, %v9016_v11  ;;  %v9287_v9 = vpack.c.bf16 %v9263_v4, %v9262_v29  ;;  %v9264_v11 = vld [vmem:[#allocation2 + $0x62] sm:$0xff]  ;;  %v17674_v29 = vld [vmem:[%s20530_s3 + $0x38] sm:$0xff]  }
 0x6b2   : > { %v9288_v3 = vpack.c.bf16 %v9265_v7, %v9264_v11  ;;  %v17672_v4 = vld [vmem:[%s20530_s3 + $0x28] sm:$0xff]   ;;  %v17673_v7 = vld [vmem:[%s20530_s3 + $0x30] sm:$0xff]   ;;  %v19418_v11 = vld [vmem:[%s20536_s9] ss:$0 sm:$0xff] }
 0x6b8   : > { %16184 = vmatmul.mubr.msk.bf16.gmra.mrb[12].mxu0 %vm493_vm2, %v9017_v8  ;;  %v9266_v8 = vld [vmem:[#allocation2 + $0x72] sm:$0xff] }
 0x6b9   : > { %16187 = vmatprep.mubr.msk.bf16.mxu0 %vm493_vm2, %v9018_v20  ;;  %v9289_v40 = vpack.c.bf16 %v9267_v32, %v9266_v8  ;;  %v9268_v20 = vld [vmem:[#allocation2 + $0x82] sm:$0xff] }
 0x6ba   : > { %v9290_v21 = vpack.c.bf16 %v9269_v17, %v9268_v20 }
 0x6c0   : > { %16188 = vmatmul.mubr.msk.bf16.gmra.mrb[16].mxu0 %vm493_vm2, %v9019_v24  ;;  %v9270_v24 = vld [vmem:[#allocation2 + $0x92] sm:$0xff] }
 0x6c1   : > { %16191 = vmatprep.mubr.msk.bf16.mxu0 %vm493_vm2, %v9020_v26  ;;  %v9291_v56 = vpack.c.bf16 %v9271_v48, %v9270_v24  ;;  %v9272_v26 = vld [vmem:[#allocation2 + $0xa2] sm:$0xff] }
 0x6c2   : > { %v9292_v27 = vpack.c.bf16 %v9273_v5, %v9272_v26 }
 0x6c8   : > { %16192 = vmatmul.mubr.msk.bf16.gmra.mrb[20].mxu0 %vm493_vm2, %v9021_v31  ;;  %v9274_v31 = vld [vmem:[#allocation2 + $0xb2] sm:$0xff] }
 0x6c9   : > { %16195 = vmatprep.mubr.msk.bf16.mxu0 %vm493_vm2, %v9022_v33  ;;  %v9293_v55 = vpack.c.bf16 %v9275_v61, %v9274_v31  ;;  %v9276_v33 = vld [vmem:[#allocation2 + $0xc2] sm:$0xff] }
 0x6ca   : > { %v9294_v18 = vpack.c.bf16 %v9277_v30, %v9276_v33 }
 0x6d0   : > { %16196 = vmatmul.mubr.msk.bf16.gmra.mrb[24].mxu0 %vm493_vm2, %v9023_v41  ;;  %v9278_v41 = vld [vmem:[#allocation2 + $0xd2] sm:$0xff] }
 0x6d1   : > { %16203 = vmatprep.mubr.msk.bf16.mxu0 %vm493_vm2, %v9284_v19  ;;  %v9295_v44 = vpack.c.bf16 %v9279_v16, %v9278_v41  ;;  %v9280_v19 = vld [vmem:[#allocation2 + $0xe2] sm:$0xff] }
 0x6d2   : > { %v9296_v49 = vpack.c.bf16 %v9281_v47, %v9280_v19 }
 0x6d8   : > { %16204 = vmatmul.mubr.msk.bf16.vlgmr.msra.gmra.mrb[0].mxu0 %vm493_vm2, %v9285_v0  ;;  %v9297_v0 = vpack.c.bf16 %v9283_v50, %v9282_v23 }
 0x6d9   : > { %16207 = vmatprep.mubr.msk.bf16.mxu0 %vm493_vm2, %v9286_v25  ;;  %v17976_v25 = vmov 0.0  }
 0x6da   : > { %16231 = vmatprep.subr.bf16.mxu1 %v17976_v25  ;;  %497 = vst.msk [vmem:[#allocation5 + $0x30] sm:$0xff] %vm495_vm3, %v17976_v25  ;;  %498 = vst.msk [vmem:[#allocation6 + $0x20] sm:$0xff] %vm495_vm3, %v17976_v25  ;;  %16239 = vmatprep.mubr.msk.bf16.mxu1 %vm17977_vm4, %v17976_v25 }
 0x6db   : > { %16232 = vmatpush3.bf16.msra.mxu1 %v17671_v59 }
 0x6dc   : > { %16233 = vmatprep.subr.bf16.mxu1 %v17976_v25 }
 0x6df   : > { %16234 = vmatpush3.bf16.msra.mxu1 %v17672_v4 }
 0x6e0   : > { %16208 = vmatmul.mubr.msk.bf16.gmra.mrb[4].mxu0 %vm493_vm2, %v9287_v9  ;;  %16235 = vmatprep.subr.bf16.mxu1 %v17976_v25 }
 0x6e1   : > { %16211 = vmatprep.mubr.msk.bf16.mxu0 %vm493_vm2, %v9288_v3 }
 0x6e3   : > { %16236 = vmatpush3.bf16.msra.mxu1 %v17673_v7 }
 0x6e4   : > { %16237 = vmatprep.subr.bf16.mxu1 %v17976_v25 }
 0x6e7   : > { %16238 = vmatpush3.bf16.msra.mxu1 %v17674_v29 }
 0x6e8   : > { %16212 = vmatmul.mubr.msk.bf16.gmra.mrb[8].mxu0 %vm493_vm2, %v9289_v40  ;;  %16251 = vmatprep.subr.bf16.mxu1 %v17976_v25 }
 0x6e9   : > { %16215 = vmatprep.mubr.msk.bf16.mxu0 %vm493_vm2, %v9290_v21 }
 0x6f0   : > { %16216 = vmatmul.mubr.msk.bf16.gmra.mrb[12].mxu0 %vm493_vm2, %v9291_v56 }
 0x6f1   : > { %16219 = vmatprep.mubr.msk.bf16.mxu0 %vm493_vm2, %v9292_v27 }
 0x6f8   : > { %16220 = vmatmul.mubr.msk.bf16.gmra.mrb[16].mxu0 %vm493_vm2, %v9293_v55 }
 0x6f9   : > { %16223 = vmatprep.mubr.msk.bf16.mxu0 %vm493_vm2, %v9294_v18 }
 0x700   : > { %16224 = vmatmul.mubr.msk.bf16.gmra.mrb[20].mxu0 %vm493_vm2, %v9295_v44 }
 0x701   : > { %16227 = vmatprep.mubr.msk.bf16.mxu0 %vm493_vm2, %v9296_v49 }
 0x708   : > { %16228 = vmatmul.mubr.msk.bf16.gmra.mrb[24].mxu0 %vm493_vm2, %v9297_v0 }
 0x7ab   : > { %v16205_v9 = vpop.f32.mrb[0].mxu0 }
 0x7ac   : > { %v16631_v3 = vadd.f32 %v16205_v9, %v18980_v34  ;;  %v9391_v32 = vpop.f32.mrb[1].mxu0 }
 0x7ad   : > { %v16632_v17 = vadd.f32 %v9391_v32, %v18982_v35  ;;  %v16206_v8 = vpop.f32.mrb[2].mxu0 }
 0x7ae   : > { %v9539_v40 = vadd.f32 %v16631_v3, %v19418_v11  ;;  %v16633_v20 = vadd.f32 %v16206_v8, %v18985_v36  ;;  %v9394_v21 = vpop.f32.mrb[3].mxu0 }
 0x7af   : > { %v9537_v48 = vadd.f32 %v16632_v17, %v19418_v11  ;;  %v16634_v5 = vadd.f32 %v9394_v21, %v18989_v37 }
 0x7b0   : > { %v9567_v24 = vmax.f32 %v9539_v40, 0.0  ;;  %v9540_v56 = vadd.f32 %v16633_v20, %v19418_v11 }
 0x7b1   : > { %v9565_v26 = vmax.f32 %v9537_v48, 0.0  ;;  %v9538_v27 = vadd.f32 %v16634_v5, %v19418_v11 }
 0x7b2   : > { %9595 = vst.msk [vmem:[#allocation3 + $0x10] sm:$0xff] %vm495_vm3, %v9567_v24  ;;  %v9568_v34 = vmax.f32 %v9540_v56, 0.0 }
 0x7b3   : > { %9593 = vst.msk [vmem:[#allocation3] sm:$0xff] %vm495_vm3, %v9565_v26  ;;  %v9566_v35 = vmax.f32 %v9538_v27, 0.0  ;;  %v16209_v61 = vpop.f32.mrb[4].mxu0 }
 0x7b4   : > { %9596 = vst.msk [vmem:[#allocation3 + $0x18] sm:$0xff] %vm495_vm3, %v9568_v34  ;;  %v16635_v36 = vadd.f32 %v16209_v61, %v18997_v22  ;;  %v9407_v30 = vpop.f32.mrb[5].mxu0 }
 0x7b5   : > { %9594 = vst.msk [vmem:[#allocation3 + $0x8] sm:$0xff] %vm495_vm3, %v9566_v35  ;;  %v16636_v37 = vadd.f32 %v9407_v30, %v18999_v14  ;;  %v16210_v31 = vpop.f32.mrb[6].mxu0 }
 0x7b6   : > { %v9543_v55 = vadd.f32 %v16635_v36, %v19418_v11  ;;  %v16637_v33 = vadd.f32 %v16210_v31, %v19002_v45  ;;  %v9410_v18 = vpop.f32.mrb[7].mxu0 }
 0x7b7   : > { %v9541_v16 = vadd.f32 %v16636_v37, %v19418_v11  ;;  %v16638_v47 = vadd.f32 %v9410_v18, %v19005_v46 }
 0x7b8   : > { %v9571_v41 = vmax.f32 %v9543_v55, 0.0  ;;  %v9544_v44 = vadd.f32 %v16637_v33, %v19418_v11 }
 0x7b9   : > { %v9569_v22 = vmax.f32 %v9541_v16, 0.0  ;;  %v9542_v19 = vadd.f32 %v16638_v47, %v19418_v11 }
 0x7ba   : > { %9599 = vst.msk [vmem:[#allocation3 + $0x30] sm:$0xff] %vm495_vm3, %v9571_v41  ;;  %v9572_v14 = vmax.f32 %v9544_v44, 0.0 }
 0x7bb   : > { %v9664_v49 = vld [vmem:[#allocation3 + $0x10] ss:$2 sm:$0x7f]  ;;  %v9685_v50 = vld [vmem:[#allocation3 + $0x11] ss:$2 sm:$0x7f] }
 0x7bc   : > { %9597 = vst.msk [vmem:[#allocation3 + $0x20] sm:$0xff] %vm495_vm3, %v9569_v22  ;;  %v9621_v45 = vld [vmem:[#allocation3] ss:$2 sm:$0x7f]  ;;  %9600 = vst.msk [vmem:[#allocation3 + $0x38] sm:$0xff] %vm495_vm3, %v9572_v14  ;;  %v9570_v23 = vmax.f32 %v9542_v19, 0.0 }
 0x7bd   : > { %9665 = vst.msk [vmem:[#allocation4 + $0x70] sm:$0x7f] %vm9622_vm5, %v9664_v49  ;;  %9686 = vst.msk [vmem:[#allocation4 + $0xa8] sm:$0x7f] %vm9622_vm5, %v9685_v50  ;;  %v16213_v0 = vpop.f32.mrb[8].mxu0 }
 0x7be   : > { %v9643_v46 = vld [vmem:[#allocation3 + $0x1] ss:$2 sm:$0x7f]  ;;  %9623 = vst.msk [vmem:[#allocation4] sm:$0x7f] %vm9622_vm5, %v9621_v45  ;;  %v16639_v59 = vadd.f32 %v16213_v0, %v19007_v51  ;;  %v9423_v4 = vpop.f32.mrb[9].mxu0 }
 0x7bf   : > { %9644 = vst.msk [vmem:[#allocation4 + $0x38] sm:$0x7f] %vm9622_vm5, %v9643_v46  ;;  %v16640_v7 = vadd.f32 %v9423_v4, %v19009_v53  ;;  %v16214_v29 = vpop.f32.mrb[10].mxu0  ;;  %v17675_v46 = vld [vmem:[%s20530_s3] sm:$0xff]  }
 0x7c0   : > { %9598 = vst.msk [vmem:[#allocation3 + $0x28] sm:$0xff] %vm495_vm3, %v9570_v23  ;;  %v9547_v9 = vadd.f32 %v16639_v59, %v19418_v11  ;;  %v16641_v3 = vadd.f32 %v16214_v29, %v19012_v54  ;;  %v9426_v32 = vpop.f32.mrb[11].mxu0 }
 0x7c1   : > { %v9545_v17 = vadd.f32 %v16640_v7, %v19418_v11  ;;  %v16642_v8 = vadd.f32 %v9426_v32, %v19015_v38 }
 0x7c2   : > { %v9575_v40 = vmax.f32 %v9547_v9, 0.0  ;;  %v9548_v20 = vadd.f32 %v16641_v3, %v19418_v11 }
 0x7c3   : > { %v9667_v21 = vld [vmem:[#allocation3 + $0x30] ss:$2 sm:$0x7f]  ;;  %v9688_v51 = vld [vmem:[#allocation3 + $0x31] ss:$2 sm:$0x7f]  ;;  %v9546_v48 = vadd.f32 %v16642_v8, %v19418_v11 }
 0x7c4   : > { %9668 = vst.msk [vmem:[#allocation4 + $0x78] sm:$0x7f] %vm9622_vm5, %v9667_v21  ;;  %9689 = vst.msk [vmem:[#allocation4 + $0xb0] sm:$0x7f] %vm9622_vm5, %v9688_v51  ;;  %v9573_v53 = vmax.f32 %v9545_v17, 0.0  ;;  %v9576_v54 = vmax.f32 %v9548_v20, 0.0 }
 0x7c5   : > { %9603 = vst.msk [vmem:[#allocation3 + $0x50] sm:$0xff] %vm495_vm3, %v9575_v40  ;;  %v16217_v5 = vpop.f32.mrb[12].mxu0  ;;  %v9574_v24 = vmax.f32 %v9546_v48, 0.0 }
 0x7c6   : > { %v16643_v56 = vadd.f32 %v16217_v5, %v19017_v60  ;;  %v9439_v38 = vpop.f32.mrb[13].mxu0  ;;  %9601 = vst.msk [vmem:[#allocation3 + $0x40] sm:$0xff] %vm495_vm3, %v9573_v53  ;;  %9604 = vst.msk [vmem:[#allocation3 + $0x58] sm:$0xff] %vm495_vm3, %v9576_v54  ;;  %v9722_v45 = vld [vmem:[#allocation4 + $0x38] sm:$0xff] }
 0x7c7   : > { %v9625_v26 = vld [vmem:[#allocation3 + $0x20] ss:$2 sm:$0x7f]  ;;  %v9646_v27 = vld [vmem:[#allocation3 + $0x21] ss:$2 sm:$0x7f]  ;;  %v16644_v34 = vadd.f32 %v9439_v38, %v19019_v62 }
 0x7c8   : > { %9626 = vst.msk [vmem:[#allocation4 + $0x8] sm:$0x7f] %vm9622_vm5, %v9625_v26  ;;  %9647 = vst.msk [vmem:[#allocation4 + $0x40] sm:$0x7f] %vm9622_vm5, %v9646_v27  ;;  %v9551_v35 = vadd.f32 %v16643_v56, %v19418_v11  ;;  %v16218_v61 = vpop.f32.mrb[14].mxu0  ;;  %v17677_v38 = vld [vmem:[%s20530_s3 + $0x10] sm:$0xff]  }
 0x7c9   : > { %9602 = vst.msk [vmem:[#allocation3 + $0x48] sm:$0xff] %vm495_vm3, %v9574_v24  ;;  %v9549_v60 = vadd.f32 %v16644_v34, %v19418_v11  ;;  %v16645_v36 = vadd.f32 %v16218_v61, %v19022_v63  ;;  %v9442_v30 = vpop.f32.mrb[15].mxu0 }
 0x7ca   : > { %v9579_v37 = vmax.f32 %v9551_v35, 0.0  ;;  %v16646_v31 = vadd.f32 %v9442_v30, %v19025_v2 }
 0x7cb   : > { %v9577_v55 = vmax.f32 %v9549_v60, 0.0  ;;  %v9552_v62 = vadd.f32 %v16645_v36, %v19418_v11  ;;  %v16221_v18 = vpop.f32.mrb[16].mxu0 }
 0x7cc   : > { %9607 = vst.msk [vmem:[#allocation3 + $0x70] sm:$0xff] %vm495_vm3, %v9579_v37  ;;  %v9550_v33 = vadd.f32 %v16646_v31, %v19418_v11  ;;  %v16647_v47 = vadd.f32 %v16221_v18, %v19027_v10  ;;  %v9455_v41 = vpop.f32.mrb[17].mxu0  ;;  %v17678_v31 = vld [vmem:[%s20530_s3 + $0x18] sm:$0xff]  }
 0x7cd   : > { %9605 = vst.msk [vmem:[#allocation3 + $0x60] sm:$0xff] %vm495_vm3, %v9577_v55  ;;  %v9580_v16 = vmax.f32 %v9552_v62, 0.0  ;;  %v9670_v44 = vld [vmem:[#allocation3 + $0x50] ss:$2 sm:$0x7f]  ;;  %v16648_v22 = vadd.f32 %v9455_v41, %v19029_v12  ;;  %v16222_v50 = vpop.f32.mrb[18].mxu0 }
 0x7ce   : > { %v9691_v63 = vld [vmem:[#allocation3 + $0x51] ss:$2 sm:$0x7f]  ;;  %9671 = vst.msk [vmem:[#allocation4 + $0x80] sm:$0x7f] %vm9622_vm5, %v9670_v44  ;;  %v9555_v14 = vadd.f32 %v16647_v47, %v19418_v11  ;;  %v9578_v10 = vmax.f32 %v9550_v33, 0.0  ;;  %v16649_v0 = vadd.f32 %v16222_v50, %v19032_v13 }
 0x7cf   : > { %9692 = vst.msk [vmem:[#allocation4 + $0xb8] sm:$0x7f] %vm9622_vm5, %v9691_v63  ;;  %v9553_v49 = vadd.f32 %v16648_v22, %v19418_v11  ;;  %v19483_v12 = vld [vmem:[#allocation4 + $0x40] sm:$0xff]  ;;  %v9458_v59 = vpop.f32.mrb[19].mxu0 }
 0x7d0   : > { %v9628_v2 = vld [vmem:[#allocation3 + $0x40] ss:$2 sm:$0x7f]  ;;  %v9649_v19 = vld [vmem:[#allocation3 + $0x41] ss:$2 sm:$0x7f]  ;;  %v9728_v4 = vpack.c.bf16 %v19483_v12, %v9722_v45  ;;  %v16650_v29 = vadd.f32 %v9458_v59, %v19035_v15  ;;  %v9556_v9 = vadd.f32 %v16649_v0, %v19418_v11 }
 0x7d1   : > { %9608 = vst.msk [vmem:[#allocation3 + $0x78] sm:$0xff] %vm495_vm3, %v9580_v16  ;;  %v9583_v23 = vmax.f32 %v9555_v14, 0.0  ;;  %9606 = vst.msk [vmem:[#allocation3 + $0x68] sm:$0xff] %vm495_vm3, %v9578_v10  ;;  %v9581_v7 = vmax.f32 %v9553_v49, 0.0  ;;  %v17676_v13 = vld [vmem:[%s20530_s3 + $0x8] sm:$0xff]  }
 0x7d2   : > { %9629 = vst.msk [vmem:[#allocation4 + $0x10] sm:$0x7f] %vm9622_vm5, %v9628_v2  ;;  %9650 = vst.msk [vmem:[#allocation4 + $0x48] sm:$0x7f] %vm9622_vm5, %v9649_v19  ;;  %16240 = vmatmul.mubr.msk.bf16.vlgmr.msra.gmra.mrb[28].mxu1 %vm495_vm3, %v9728_v4  ;;  %v9554_v3 = vadd.f32 %v16650_v29, %v19418_v11  ;;  %v9584_v15 = vmax.f32 %v9556_v9, 0.0 }
 0x7d3   : > { %9611 = vst.msk [vmem:[#allocation3 + $0x90] sm:$0xff] %vm495_vm3, %v9583_v23  ;;  %9609 = vst.msk [vmem:[#allocation3 + $0x80] sm:$0xff] %vm495_vm3, %v9581_v7  ;;  %v16225_v32 = vpop.f32.mrb[20].mxu0  ;;  %16243 = vmatprep.mubr.msk.bf16.mxu1 %vm17977_vm4, %v17976_v25  ;;  %16252 = vmatpush3.bf16.msra.mxu1 %v17675_v46 }
 0x7d4   : > { %v16651_v17 = vadd.f32 %v16225_v32, %v19044_v6  ;;  %v9471_v8 = vpop.f32.mrb[21].mxu0  ;;  %16253 = vmatprep.subr.bf16.mxu1 %v17976_v25  ;;  %9612 = vst.msk [vmem:[#allocation3 + $0x98] sm:$0xff] %vm495_vm3, %v9584_v15  ;;  %v9582_v51 = vmax.f32 %v9554_v3, 0.0  ;;  %v19511_v6 = vld [vmem:[#allocation4 + $0x8] sm:$0xff] }
 0x7d5   : > { %v16652_v21 = vadd.f32 %v9471_v8, %v19046_v28  ;;  %v16226_v53 = vpop.f32.mrb[22].mxu0 }
 0x7d6   : > { %v9559_v48 = vadd.f32 %v16651_v17, %v19418_v11  ;;  %v16653_v28 = vadd.f32 %v16226_v53, %v19049_v42  ;;  %v9474_v56 = vpop.f32.mrb[23].mxu0  ;;  %9610 = vst.msk [vmem:[#allocation3 + $0x88] sm:$0xff] %vm495_vm3, %v9582_v51 }
 0x7d7   : > { %v9557_v24 = vadd.f32 %v16652_v21, %v19418_v11  ;;  %16254 = vmatpush3.bf16.msra.mxu1 %v17676_v13  ;;  %v16654_v35 = vadd.f32 %v9474_v56, %v19053_v43 }
 0x7d8   : > { %v9673_v40 = vld [vmem:[#allocation3 + $0x70] ss:$2 sm:$0x7f]  ;;  %v9694_v20 = vld [vmem:[#allocation3 + $0x71] ss:$2 sm:$0x7f]  ;;  %16255 = vmatprep.subr.bf16.mxu1 %v17976_v25  ;;  %v9560_v36 = vadd.f32 %v16653_v28, %v19418_v11 }
 0x7d9   : > { %9674 = vst.msk [vmem:[#allocation4 + $0x88] sm:$0x7f] %vm9622_vm5, %v9673_v40  ;;  %9695 = vst.msk [vmem:[#allocation4 + $0xc0] sm:$0x7f] %vm9622_vm5, %v9694_v20  ;;  %v19509_v54 = vld [vmem:[#allocation4 + $0x48] sm:$0xff]  ;;  %v19513_v5 = vld [vmem:[#allocation4 + $0x10] sm:$0xff]  ;;  %v9558_v30 = vadd.f32 %v16654_v35, %v19418_v11 }
 0x7da   : > { %v10382_v26 = vpack.c.bf16 %v19513_v5, %v19511_v6  ;;  %v9631_v27 = vld [vmem:[#allocation3 + $0x60] ss:$2 sm:$0x7f]  ;;  %v9652_v34 = vld [vmem:[#allocation3 + $0x61] ss:$2 sm:$0x7f]  ;;  %v10496_v42 = vpack.c.bf16 %v19509_v54, %v19483_v12 }
 0x7db   : > { %9632 = vst.msk [vmem:[#allocation4 + $0x18] sm:$0x7f] %vm9622_vm5, %v9631_v27  ;;  %9653 = vst.msk [vmem:[#allocation4 + $0x50] sm:$0x7f] %vm9622_vm5, %v9652_v34  ;;  %v9587_v61 = vmax.f32 %v9559_v48, 0.0  ;;  %v9585_v60 = vmax.f32 %v9557_v24, 0.0  ;;  %16256 = vmatpush3.bf16.msra.mxu1 %v17677_v38 }
 0x7dc   : > { %v9588_v43 = vmax.f32 %v9560_v36, 0.0  ;;  %v16229_v37 = vpop.f32.mrb[24].mxu0  ;;  %v9586_v55 = vmax.f32 %v9558_v30, 0.0  ;;  %16257 = vmatprep.subr.bf16.mxu1 %v17976_v25  ;;  %v9676_v18 = vld [vmem:[#allocation3 + $0x90] ss:$2 sm:$0x7f] }
 0x7dd   : > { %9615 = vst.msk [vmem:[#allocation3 + $0xb0] sm:$0xff] %vm495_vm3, %v9587_v61  ;;  %9613 = vst.msk [vmem:[#allocation3 + $0xa0] sm:$0xff] %vm495_vm3, %v9585_v60  ;;  %v16655_v62 = vadd.f32 %v16229_v37, %v19061_v52  ;;  %v9487_v33 = vpop.f32.mrb[25].mxu0  ;;  %v9697_v16 = vld [vmem:[#allocation3 + $0x91] ss:$2 sm:$0x7f] }
 0x7de   : > { %9616 = vst.msk [vmem:[#allocation3 + $0xb8] sm:$0xff] %vm495_vm3, %v9588_v43  ;;  %v16656_v47 = vadd.f32 %v9487_v33, %v19063_v39  ;;  %9614 = vst.msk [vmem:[#allocation3 + $0xa8] sm:$0xff] %vm495_vm3, %v9586_v55  ;;  %v16230_v44 = vpop.f32.mrb[26].mxu0  ;;  %v9634_v63 = vld [vmem:[#allocation3 + $0x80] ss:$2 sm:$0x7f] }
 0x7df   : > { %9677 = vst.msk [vmem:[#allocation4 + $0x90] sm:$0x7f] %vm9622_vm5, %v9676_v18  ;;  %9698 = vst.msk [vmem:[#allocation4 + $0xc8] sm:$0x7f] %vm9622_vm5, %v9697_v16  ;;  %v9563_v41 = vadd.f32 %v16655_v62, %v19418_v11  ;;  %v16657_v2 = vadd.f32 %v16230_v44, %v19066_v57  ;;  %16258 = vmatpush3.bf16.msra.mxu1 %v17678_v31  ;;  %v9490_v19 = vpop.f32.mrb[27].mxu0  ;;  %v19557_v46 = vld [vmem:[#allocation4 + $0x9] sm:$0xff] }
 0x7e0   : > { %v9655_v52 = vld [vmem:[#allocation3 + $0x81] ss:$2 sm:$0x7f]  ;;  %v9561_v22 = vadd.f32 %v16656_v47, %v19418_v11  ;;  %9635 = vst.msk [vmem:[#allocation4 + $0x20] sm:$0x7f] %vm9622_vm5, %v9634_v63  ;;  %16271 = vmatprep.subr.bf16.mxu1 %v17976_v25  ;;  %v16658_v45 = vadd.f32 %v9490_v19, %v19069_v58  ;;  %v17679_v28 = vld [vmem:[%s20530_s3 + $0x40] sm:$0xff]  }
 0x7e1   : > { %9656 = vst.msk [vmem:[#allocation4 + $0x58] sm:$0x7f] %vm9622_vm5, %v9655_v52  ;;  %v9591_v39 = vmax.f32 %v9563_v41, 0.0  ;;  %v9564_v50 = vadd.f32 %v16657_v2, %v19418_v11  ;;  %v9705_v24 = vld [vmem:[#allocation4] sm:$0xff]  ;;  %v17681_v27 = vld [vmem:[%s20530_s3 + $0x50] sm:$0xff]   ;;  %v17682_v35 = vld [vmem:[%s20530_s3 + $0x58] sm:$0xff]  }
 0x7e2   : > { %v19548_v14 = vld [vmem:[#allocation4 + $0x50] sm:$0xff]  ;;  %v9589_v49 = vmax.f32 %v9561_v22, 0.0  ;;  %v9562_v59 = vadd.f32 %v16658_v45, %v19418_v11  ;;  %v19574_v3 = vld [vmem:[#allocation4 + $0x18] sm:$0xff]  ;;  %v9711_v56 = vpack.c.bf16 %v19511_v6, %v9705_v24  ;;  %v17680_v38 = vld [vmem:[%s20530_s3 + $0x48] sm:$0xff]  }
 0x7e3   : > { %v19551_v10 = vld [vmem:[#allocation4 + $0x11] sm:$0xff]  ;;  %v9729_v57 = vpack.c.bf16 %v19548_v14, %v19509_v54  ;;  %9619 = vst.msk [vmem:[#allocation3 + $0xd0] sm:$0xff] %vm495_vm3, %v9591_v39  ;;  %v9592_v0 = vmax.f32 %v9564_v50, 0.0  ;;  %v9712_v34 = vpack.c.bf16 %v19574_v3, %v19513_v5  ;;  %v9920_v36 = vld [vmem:[#allocation4 + $0x1] sm:$0xff] }
 0x7e4   : > { %v10610_v23 = vpack.c.bf16 %v19551_v10, %v19557_v46  ;;  %9617 = vst.msk [vmem:[#allocation3 + $0xc0] sm:$0xff] %vm495_vm3, %v9589_v49  ;;  %v9590_v11 = vmax.f32 %v9562_v59, 0.0  ;;  %v17683_v30 = vld [vmem:[%s20530_s3 + $0x60] sm:$0xff]   ;;  %v9926_v43 = vpack.c.bf16 %v19557_v46, %v9920_v36  ;;  %v17684_v37 = vld [vmem:[%s20530_s3 + $0x68] sm:$0xff]   ;;  %v17685_v31 = vld [vmem:[%s20530_s3 + $0x70] sm:$0xff]  }
 0x7e5   : > { %16244 = vmatmul.mubr.msk.bf16.gmra.mrb[32].mxu1 %vm495_vm3, %v9729_v57  ;;  %v9679_v4 = vld [vmem:[#allocation3 + $0xb0] ss:$2 sm:$0x7f]  ;;  %v9700_v7 = vld [vmem:[#allocation3 + $0xb1] ss:$2 sm:$0x7f] }
 0x7e6   : > { %16247 = vmatprep.mubr.msk.bf16.mxu1 %vm17977_vm4, %v17976_v25  ;;  %9680 = vst.msk [vmem:[#allocation4 + $0x98] sm:$0x7f] %vm9622_vm5, %v9679_v4  ;;  %9701 = vst.msk [vmem:[#allocation4 + $0xd0] sm:$0x7f] %vm9622_vm5, %v9700_v7  ;;  %v17686_v62 = vld [vmem:[%s20530_s3 + $0x78] sm:$0xff]   ;;  %v10035_v16 = vld [vmem:[#allocation4 + $0x78] sm:$0xff] }
 0x7e7   : > { %v9637_v58 = vld [vmem:[#allocation3 + $0xa0] ss:$2 sm:$0x7f]  ;;  %v9658_v29 = vld [vmem:[#allocation3 + $0xa1] ss:$2 sm:$0x7f] }
 0x7e8   : > { %9620 = vst.msk [vmem:[#allocation3 + $0xd8] sm:$0xff] %vm495_vm3, %v9592_v0  ;;  %v19572_v9 = vld [vmem:[#allocation4 + $0x58] sm:$0xff]  ;;  %v19576_v32 = vld [vmem:[#allocation4 + $0x20] sm:$0xff]  ;;  %9618 = vst.msk [vmem:[#allocation3 + $0xc8] sm:$0xff] %vm495_vm3, %v9590_v11 }
 0x7e9   : > { %9638 = vst.msk [vmem:[#allocation4 + $0x28] sm:$0x7f] %vm9622_vm5, %v9637_v58  ;;  %9659 = vst.msk [vmem:[#allocation4 + $0x60] sm:$0x7f] %vm9622_vm5, %v9658_v29  ;;  %v10383_v13 = vpack.c.bf16 %v19576_v32, %v19574_v3  ;;  %v10497_v15 = vpack.c.bf16 %v19572_v9, %v19548_v14  ;;  %v19586_v40 = vld [vmem:[#allocation4 + $0x19] sm:$0xff]  ;;  %v10034_v47 = vld [vmem:[#allocation4 + $0x70] sm:$0xff] }
 0x7ea   : > { %v9927_v55 = vpack.c.bf16 %v19586_v40, %v19551_v10  ;;  %v17687_v41 = vld [vmem:[%s20530_s3 + $0x80] sm:$0xff]   ;;  %v10040_v44 = vpack.c.bf16 %v10035_v16, %v10034_v47  ;;  %v17688_v63 = vld [vmem:[%s20530_s3 + $0x88] sm:$0xff]   ;;  %v10037_v52 = vld [vmem:[#allocation4 + $0x88] sm:$0xff] }
 0x7eb   : > { %v10036_v22 = vld [vmem:[#allocation4 + $0x80] sm:$0xff]  ;;  %v17689_v2 = vld [vmem:[%s20530_s3 + $0x90] sm:$0xff]   ;;  %v17690_v19 = vld [vmem:[%s20530_s3 + $0x98] sm:$0xff]  }
 0x7ec   : > { %v10041_v39 = vpack.c.bf16 %v10037_v52, %v10036_v22  ;;  %v10038_v50 = vld [vmem:[#allocation4 + $0x90] sm:$0xff]  ;;  %v10148_v0 = vld [vmem:[#allocation4 + $0xa8] sm:$0xff]  ;;  %v17691_v59 = vld [vmem:[%s20530_s3 + $0xa0] sm:$0xff]  }
 0x7ed   : > { %v10039_v49 = vld [vmem:[#allocation4 + $0x98] sm:$0xff]  ;;  %v10149_v57 = vld [vmem:[#allocation4 + $0xb0] sm:$0xff]  ;;  %v17692_v7 = vld [vmem:[%s20530_s3 + $0xa8] sm:$0xff]  }
 0x7ee   : > { %v10042_v45 = vpack.c.bf16 %v10039_v49, %v10038_v50  ;;  %v10154_v4 = vpack.c.bf16 %v10149_v57, %v10148_v0  ;;  %v10151_v58 = vld [vmem:[#allocation4 + $0xc0] sm:$0xff]  ;;  %v10150_v29 = vld [vmem:[#allocation4 + $0xb8] sm:$0xff]  ;;  %v17693_v11 = vld [vmem:[%s20530_s3 + $0xb0] sm:$0xff]  }
 0x7ef   : > { %v9682_v17 = vld [vmem:[#allocation3 + $0xd0] ss:$2 sm:$0x7f]  ;;  %v9640_v48 = vld [vmem:[#allocation3 + $0xc0] ss:$2 sm:$0x7f] }
 0x7f0   : > { %9683 = vst.msk [vmem:[#allocation4 + $0xa0] sm:$0x7f] %vm9622_vm5, %v9682_v17  ;;  %v19584_v8 = vld [vmem:[#allocation4 + $0x60] sm:$0xff]  ;;  %9641 = vst.msk [vmem:[#allocation4 + $0x30] sm:$0x7f] %vm9622_vm5, %v9640_v48  ;;  %v19623_v61 = vld [vmem:[#allocation4 + $0x28] sm:$0xff]  ;;  %v10155_v17 = vpack.c.bf16 %v10151_v58, %v10150_v29 }
 0x7f1   : > { %v19588_v20 = vld [vmem:[#allocation4 + $0x21] sm:$0xff]  ;;  %v9730_v21 = vpack.c.bf16 %v19584_v8, %v19572_v9  ;;  %v9713_v60 = vpack.c.bf16 %v19623_v61, %v19576_v32  ;;  %v10153_v48 = vld [vmem:[#allocation4 + $0xd0] sm:$0xff]  ;;  %v17703_v3 = vld [vmem:[%s20530_s3 + $0x100] sm:$0xff]  }
 0x7f2   : > { %v10611_v51 = vpack.c.bf16 %v19588_v20, %v19586_v40  ;;  %v9661_v53 = vld [vmem:[#allocation3 + $0xc1] ss:$2 sm:$0x7f]  ;;  %v17702_v6 = vld [vmem:[%s20530_s3 + $0xf8] sm:$0xff]  }
 0x7f3   : > { %9662 = vst.msk [vmem:[#allocation4 + $0x68] sm:$0x7f] %vm9622_vm5, %v9661_v53  ;;  %16248 = vmatmul.mubr.msk.bf16.gmra.mrb[36].mxu1 %vm495_vm3, %v9730_v21  ;;  %v17694_v21 = vld [vmem:[%s20530_s3 + $0xb8] sm:$0xff]   ;;  %v10152_v53 = vld [vmem:[#allocation4 + $0xc8] sm:$0xff]  ;;  %v17704_v32 = vld [vmem:[%s20530_s3 + $0x108] sm:$0xff]  }
 0x7f4   : > { %16259 = vmatprep.mubr.msk.bf16.mxu1 %vm17977_vm4, %v17976_v25  ;;  %v10156_v24 = vpack.c.bf16 %v10153_v48, %v10152_v53  ;;  %v17697_v36 = vld [vmem:[%s20530_s3 + $0xd0] sm:$0xff]   ;;  %v17706_v12 = vld [vmem:[%s20530_s3 + $0x118] sm:$0xff]  }
 0x7f5   : > { %v17701_v16 = vld [vmem:[%s20530_s3 + $0xf0] sm:$0xff]  }
 0x7f7   : > { %v19655_v33 = vld [vmem:[#allocation4 + $0x29] sm:$0xff] }
 0x7f8   : > { %v9928_v18 = vpack.c.bf16 %v19655_v33, %v19588_v20  ;;  %v10381_v5 = vld [vmem:[#allocation4 + $0x30] sm:$0xff] }
 0x7fa   : > { %v10495_v54 = vld [vmem:[#allocation4 + $0x68] sm:$0xff] }
 0x7fb   : > { %16260 = vmatmul.mubr.msk.bf16.vlgmr.msra.gmra.mrb[40].mxu1 %vm495_vm3, %v9711_v56  ;;  %v10262_v56 = vld [vmem:[#allocation4 + $0x71] sm:$0xff] }
 0x7fc   : > { %16272 = vmatpush3.bf16.msra.mxu1 %v17679_v28  ;;  %16263 = vmatprep.mubr.msk.bf16.mxu1 %vm17977_vm4, %v17976_v25  ;;  %v10263_v28 = vld [vmem:[#allocation4 + $0x79] sm:$0xff] }
 0x7fd   : > { %16273 = vmatprep.subr.bf16.mxu1 %v17976_v25 }
 0x800   : > { %16274 = vmatpush3.bf16.msra.mxu1 %v17680_v38  ;;  %v17695_v38 = vld [vmem:[%s20530_s3 + $0xc0] sm:$0xff]  }
 0x801   : > { %16275 = vmatprep.subr.bf16.mxu1 %v17976_v25 }
 0x803   : > { %16264 = vmatmul.mubr.msk.bf16.gmra.mrb[44].mxu1 %vm495_vm3, %v9712_v34  ;;  %v17696_v34 = vld [vmem:[%s20530_s3 + $0xc8] sm:$0xff]  }
 0x804   : > { %16276 = vmatpush3.bf16.msra.mxu1 %v17681_v27  ;;  %16267 = vmatprep.mubr.msk.bf16.mxu1 %vm17977_vm4, %v17976_v25  ;;  %v10268_v27 = vpack.c.bf16 %v10263_v28, %v10262_v56 }
 0x805   : > { %16277 = vmatprep.subr.bf16.mxu1 %v17976_v25 }
 0x808   : > { %16278 = vmatpush3.bf16.msra.mxu1 %v17682_v35  ;;  %v10265_v35 = vld [vmem:[#allocation4 + $0x89] sm:$0xff] }
 0x809   : > { %16291 = vmatprep.subr.bf16.mxu1 %v17976_v25 }
 0x80b   : > { %16268 = vmatmul.mubr.msk.bf16.gmra.mrb[48].mxu1 %vm495_vm3, %v9713_v60  ;;  %v10264_v60 = vld [vmem:[#allocation4 + $0x81] sm:$0xff] }
 0x80c   : > { %16279 = vmatprep.mubr.msk.bf16.mxu1 %vm17977_vm4, %v17976_v25 }
 0x813   : > { %16280 = vmatmul.mubr.msk.bf16.vlgmr.msra.gmra.mrb[52].mxu1 %vm495_vm3, %v9926_v43  ;;  %v17698_v43 = vld [vmem:[%s20530_s3 + $0xd8] sm:$0xff]  }
 0x814   : > { %16292 = vmatpush3.bf16.msra.mxu1 %v17683_v30  ;;  %16283 = vmatprep.mubr.msk.bf16.mxu1 %vm17977_vm4, %v17976_v25  ;;  %v10269_v30 = vpack.c.bf16 %v10265_v35, %v10264_v60 }
 0x815   : > { %16293 = vmatprep.subr.bf16.mxu1 %v17976_v25 }
 0x818   : > { %16294 = vmatpush3.bf16.msra.mxu1 %v17684_v37  ;;  %v10267_v37 = vld [vmem:[#allocation4 + $0x99] sm:$0xff] }
 0x819   : > { %16295 = vmatprep.subr.bf16.mxu1 %v17976_v25 }
 0x81b   : > { %16284 = vmatmul.mubr.msk.bf16.gmra.mrb[56].mxu1 %vm495_vm3, %v9927_v55 }
 0x81c   : > { %16296 = vmatpush3.bf16.msra.mxu1 %v17685_v31  ;;  %16287 = vmatprep.mubr.msk.bf16.mxu1 %vm17977_vm4, %v17976_v25  ;;  %v10266_v31 = vld [vmem:[#allocation4 + $0x91] sm:$0xff] }
 0x81d   : > { %16297 = vmatprep.subr.bf16.mxu1 %v17976_v25  ;;  %v10270_v55 = vpack.c.bf16 %v10267_v37, %v10266_v31 }
 0x820   : > { %16298 = vmatpush3.bf16.msra.mxu1 %v17686_v62  ;;  %v17699_v62 = vld [vmem:[%s20530_s3 + $0xe0] sm:$0xff]  }
 0x821   : > { %16311 = vmatprep.subr.bf16.mxu1 %v17976_v25 }
 0x823   : > { %16288 = vmatmul.mubr.msk.bf16.gmra.mrb[60].mxu1 %vm495_vm3, %v9928_v18  ;;  %v17700_v18 = vld [vmem:[%s20530_s3 + $0xe8] sm:$0xff]  }
 0x824   : > { %16299 = vmatprep.mubr.msk.bf16.mxu1 %vm17977_vm4, %v17976_v25 }
 0x82b   : > { %16300 = vmatmul.mubr.msk.bf16.vlgmr.msra.gmra.mrb[64].mxu1 %vm495_vm3, %v10040_v44 }
 0x82c   : > { %16312 = vmatpush3.bf16.msra.mxu1 %v17687_v41  ;;  %16303 = vmatprep.mubr.msk.bf16.mxu1 %vm17977_vm4, %v17976_v25 }
 0x82d   : > { %16313 = vmatprep.subr.bf16.mxu1 %v17976_v25 }
 0x830   : > { %16314 = vmatpush3.bf16.msra.mxu1 %v17688_v63 }
 0x831   : > { %16315 = vmatprep.subr.bf16.mxu1 %v17976_v25 }
 0x833   : > { %16304 = vmatmul.mubr.msk.bf16.gmra.mrb[68].mxu1 %vm495_vm3, %v10041_v39 }
 0x834   : > { %16316 = vmatpush3.bf16.msra.mxu1 %v17689_v2  ;;  %16307 = vmatprep.mubr.msk.bf16.mxu1 %vm17977_vm4, %v17976_v25 }
 0x835   : > { %16317 = vmatprep.subr.bf16.mxu1 %v17976_v25 }
 0x838   : > { %16318 = vmatpush3.bf16.msra.mxu1 %v17690_v19 }
 0x839   : > { %16331 = vmatprep.subr.bf16.mxu1 %v17976_v25 }
 0x83b   : > { %16308 = vmatmul.mubr.msk.bf16.gmra.mrb[72].mxu1 %vm495_vm3, %v10042_v45 }
 0x83c   : > { %16319 = vmatprep.mubr.msk.bf16.mxu1 %vm17977_vm4, %v17976_v25 }
 0x843   : > { %16320 = vmatmul.mubr.msk.bf16.vlgmr.msra.gmra.mrb[76].mxu1 %vm495_vm3, %v10154_v4 }
 0x844   : > { %16332 = vmatpush3.bf16.msra.mxu1 %v17691_v59  ;;  %16323 = vmatprep.mubr.msk.bf16.mxu1 %vm17977_vm4, %v17976_v25 }
 0x845   : > { %16333 = vmatprep.subr.bf16.mxu1 %v17976_v25 }
 0x848   : > { %16334 = vmatpush3.bf16.msra.mxu1 %v17692_v7 }
 0x849   : > { %16335 = vmatprep.subr.bf16.mxu1 %v17976_v25 }
 0x84b   : > { %16324 = vmatmul.mubr.msk.bf16.gmra.mrb[80].mxu1 %vm495_vm3, %v10155_v17 }
 0x84c   : > { %16336 = vmatpush3.bf16.msra.mxu1 %v17693_v11  ;;  %16327 = vmatprep.mubr.msk.bf16.mxu1 %vm17977_vm4, %v17976_v25 }
 0x84d   : > { %16337 = vmatprep.subr.bf16.mxu1 %v17976_v25 }
 0x850   : > { %16338 = vmatpush3.bf16.msra.mxu1 %v17694_v21 }
 0x851   : > { %16351 = vmatprep.subr.bf16.mxu1 %v17976_v25 }
 0x853   : > { %16328 = vmatmul.mubr.msk.bf16.gmra.mrb[84].mxu1 %vm495_vm3, %v10156_v24 }
 0x854   : > { %16339 = vmatprep.mubr.msk.bf16.mxu1 %vm17977_vm4, %v17976_v25 }
 0x85b   : > { %16340 = vmatmul.mubr.msk.bf16.vlgmr.msra.gmra.mrb[88].mxu1 %vm495_vm3, %v10268_v27 }
 0x85c   : > { %16352 = vmatpush3.bf16.msra.mxu1 %v17695_v38  ;;  %16343 = vmatprep.mubr.msk.bf16.mxu1 %vm17977_vm4, %v17976_v25 }
 0x85d   : > { %16353 = vmatprep.subr.bf16.mxu1 %v17976_v25 }
 0x860   : > { %16354 = vmatpush3.bf16.msra.mxu1 %v17696_v34 }
 0x861   : > { %16355 = vmatprep.subr.bf16.mxu1 %v17976_v25 }
 0x863   : > { %16344 = vmatmul.mubr.msk.bf16.gmra.mrb[92].mxu1 %vm495_vm3, %v10269_v30 }
 0x864   : > { %16356 = vmatpush3.bf16.msra.mxu1 %v17697_v36  ;;  %16347 = vmatprep.mubr.msk.bf16.mxu1 %vm17977_vm4, %v17976_v25 }
 0x865   : > { %16357 = vmatprep.subr.bf16.mxu1 %v17976_v25 }
 0x868   : > { %16358 = vmatpush3.bf16.msra.mxu1 %v17698_v43 }
 0x869   : > { %16371 = vmatprep.subr.bf16.mxu1 %v17976_v25 }
 0x86b   : > { %16348 = vmatmul.mubr.msk.bf16.gmra.mrb[96].mxu1 %vm495_vm3, %v10270_v55 }
 0x86c   : > { %16359 = vmatprep.mubr.msk.bf16.mxu1 %vm17977_vm4, %v17976_v25 }
 0x873   : > { %16360 = vmatmul.mubr.msk.bf16.vlgmr.msra.gmra.mrb[100].mxu1 %vm495_vm3, %v10382_v26  ;;  %v10384_v26 = vpack.c.bf16 %v10381_v5, %v19623_v61 }
 0x874   : > { %16372 = vmatpush3.bf16.msra.mxu1 %v17699_v62  ;;  %16363 = vmatprep.mubr.msk.bf16.mxu1 %vm17977_vm4, %v17976_v25 }
 0x875   : > { %16373 = vmatprep.subr.bf16.mxu1 %v17976_v25 }
 0x878   : > { %16374 = vmatpush3.bf16.msra.mxu1 %v17700_v18 }
 0x879   : > { %16375 = vmatprep.subr.bf16.mxu1 %v17976_v25 }
 0x87b   : > { %16364 = vmatmul.mubr.msk.bf16.gmra.mrb[104].mxu1 %vm495_vm3, %v10383_v13  ;;  %v17705_v13 = vld [vmem:[%s20530_s3 + $0x110] sm:$0xff]  }
 0x87c   : > { %16376 = vmatpush3.bf16.msra.mxu1 %v17701_v16  ;;  %16367 = vmatprep.mubr.msk.bf16.mxu1 %vm17977_vm4, %v17976_v25 }
 0x87d   : > { %16377 = vmatprep.subr.bf16.mxu1 %v17976_v25 }
 0x880   : > { %16378 = vmatpush3.bf16.msra.mxu1 %v17702_v6 }
 0x881   : > { %16391 = vmatprep.subr.bf16.mxu1 %v17976_v25 }
 0x883   : > { %16368 = vmatmul.mubr.msk.bf16.gmra.mrb[108].mxu1 %vm495_vm3, %v10384_v26 }
 0x884   : > { %16379 = vmatprep.mubr.msk.bf16.mxu1 %vm17977_vm4, %v17976_v25 }
 0x88b   : > { %16380 = vmatmul.mubr.msk.bf16.vlgmr.msra.gmra.mrb[112].mxu1 %vm495_vm3, %v10496_v42  ;;  %v10498_v42 = vpack.c.bf16 %v10495_v54, %v19584_v8  ;;  %v10609_v8 = vld [vmem:[#allocation4 + $0x31] sm:$0xff] }
 0x88c   : > { %16392 = vmatpush3.bf16.msra.mxu1 %v17703_v3  ;;  %16383 = vmatprep.mubr.msk.bf16.mxu1 %vm17977_vm4, %v17976_v25  ;;  %v10612_v10 = vpack.c.bf16 %v10609_v8, %v19655_v33  ;;  %v17707_v54 = vld [vmem:[%s20531_s4 + $0x20] sm:$0xff]  }
 0x88d   : > { %16393 = vmatprep.subr.bf16.mxu1 %v17976_v25 }
 0x890   : > { %16394 = vmatpush3.bf16.msra.mxu1 %v17704_v32 }
 0x891   : > { %16395 = vmatprep.subr.bf16.mxu1 %v17976_v25 }
 0x893   : > { %16384 = vmatmul.mubr.msk.bf16.gmra.mrb[116].mxu1 %vm495_vm3, %v10497_v15 }
 0x894   : > { %16396 = vmatpush3.bf16.msra.mxu1 %v17705_v13  ;;  %16387 = vmatprep.mubr.msk.bf16.mxu1 %vm17977_vm4, %v17976_v25 }
 0x895   : > { %16397 = vmatprep.subr.bf16.mxu1 %v17976_v25 }
 0x898   : > { %16398 = vmatpush3.bf16.msra.mxu1 %v17706_v12 }
 0x899   : > { %16411 = vmatprep.subr.bf16.mxu1 %v17707_v54 }
 0x89b   : > { %16388 = vmatmul.mubr.msk.bf16.gmra.mrb[120].mxu1 %vm495_vm3, %v10498_v42 }
 0x89c   : > { %16399 = vmatprep.mubr.msk.bf16.mxu1 %vm17977_vm4, %v17976_v25 }
 0x8a3   : > { %16400 = vmatmul.mubr.msk.bf16.vlgmr.msra.gmra.mrb[124].mxu1 %vm495_vm3, %v10610_v23 }
 0x8a4   : > { %16403 = vmatprep.mubr.msk.bf16.mxu1 %vm17977_vm4, %v17976_v25  ;;  %16412 = vmatpush3.bf16.msra.mxu1 %v17707_v54 }
 0x8a5   : > { %v9807_v14 = vpop.f32.mrb[28].mxu1 }
 0x8a6   : > { %v16241_v9 = vpop.f32.mrb[29].mxu1 }
 0x8a7   : > { %v9810_v15 = vpop.f32.mrb[30].mxu1  ;;  %v17708_v9 = vld [vmem:[%s20531_s4 + $0x28] sm:$0xff]  }
 0x8a8   : > { %v16242_v61 = vpop.f32.mrb[31].mxu1  ;;  %16413 = vmatprep.subr.bf16.mxu1 %v17708_v9 }
 0x8a9   : > { %16414 = vmatpush3.bf16.msra.mxu1 %v17708_v9 }
 0x8ab   : > { %16404 = vmatmul.mubr.msk.bf16.gmra.mrb[128].mxu1 %vm495_vm3, %v10611_v51 }
 0x8ac   : > { %16407 = vmatprep.mubr.msk.bf16.mxu1 %vm17977_vm4, %v17976_v25 }
 0x8b3   : > { %16408 = vmatmul.mubr.msk.bf16.gmra.mrb[132].mxu1 %vm495_vm3, %v10612_v10 }
 0x8b8   : > { %v9815_v46 = vpop.f32.mrb[32].mxu1 }
 0x8b9   : > { %v16245_v23 = vpop.f32.mrb[33].mxu1 }
 0x8ba   : > { %v9818_v47 = vpop.f32.mrb[34].mxu1 }
 0x8bb   : > { %v16246_v41 = vpop.f32.mrb[35].mxu1 }
 0x8bc   : > { %v17710_v41 = vld [vmem:[%s20531_s4 + $0x38] sm:$0xff]  }
 0x8c6   : > { %v9823_v44 = vpop.f32.mrb[36].mxu1 }
 0x8c7   : > { %v16249_v63 = vpop.f32.mrb[37].mxu1 }
 0x8c8   : > { %v9826_v52 = vpop.f32.mrb[38].mxu1 }
 0x8c9   : > { %v16250_v22 = vpop.f32.mrb[39].mxu1 }
 0x8ce   : > { %v9897_v2 = vpop.f32.mrb[40].mxu1 }
 0x8cf   : > { %v9898_v40 = vadd.f32 %v9897_v2, %v9807_v14  ;;  %v16261_v20 = vpop.f32.mrb[41].mxu1  ;;  %v19830_v2 = vld [vmem:[%s20531_s4] sm:$0xff]  }
 0x8d0   : > { %v9900_v51 = vpop.f32.mrb[42].mxu1 }
 0x8d1   : > { %v9901_v39 = vadd.f32 %v9900_v51, %v9810_v15  ;;  %v16262_v19 = vpop.f32.mrb[43].mxu1 }
 0x8d6   : > { %v9905_v49 = vpop.f32.mrb[44].mxu1 }
 0x8d7   : > { %v9906_v50 = vadd.f32 %v9905_v49, %v9815_v46  ;;  %v16265_v45 = vpop.f32.mrb[45].mxu1  ;;  %v17709_v46 = vld [vmem:[%s20531_s4 + $0x30] sm:$0xff]  }
 0x8d8   : > { %v9908_v33 = vpop.f32.mrb[46].mxu1  ;;  %16415 = vmatprep.subr.bf16.mxu1 %v17709_v46 }
 0x8d9   : > { %v9909_v57 = vadd.f32 %v9908_v33, %v9818_v47  ;;  %v16266_v0 = vpop.f32.mrb[47].mxu1  ;;  %16416 = vmatpush3.bf16.msra.mxu1 %v17709_v46 }
 0x8da   : > { %16417 = vmatprep.subr.bf16.mxu1 %v17710_v41 }
 0x8dd   : > { %16418 = vmatpush3.bf16.msra.mxu1 %v17710_v41 }
 0x8de   : > { %v9913_v59 = vpop.f32.mrb[48].mxu1  ;;  %16423 = vmatprep.subr.bf16.mxu1 %v19830_v2 }
 0x8df   : > { %v9914_v4 = vadd.f32 %v9913_v59, %v9823_v44  ;;  %v16269_v7 = vpop.f32.mrb[49].mxu1 }
 0x8e0   : > { %v9916_v58 = vpop.f32.mrb[50].mxu1 }
 0x8e1   : > { %v9917_v29 = vadd.f32 %v9916_v58, %v9826_v52  ;;  %v16270_v11 = vpop.f32.mrb[51].mxu1 }
 0x8e6   : > { %v10005_v17 = vpop.f32.mrb[52].mxu1 }
 0x8e7   : > { %v10028_v21 = vadd.f32 %v10005_v17, %v9898_v40  ;;  %v16281_v48 = vpop.f32.mrb[53].mxu1 }
 0x8e8   : > { %v10008_v53 = vpop.f32.mrb[54].mxu1 }
 0x8e9   : > { %v10029_v24 = vadd.f32 %v10008_v53, %v9901_v39  ;;  %v16282_v28 = vpop.f32.mrb[55].mxu1 }
 0x8ee   : > { %v10013_v56 = vpop.f32.mrb[56].mxu1 }
 0x8ef   : > { %v10030_v38 = vadd.f32 %v10013_v56, %v9906_v50  ;;  %v16285_v27 = vpop.f32.mrb[57].mxu1 }
 0x8f0   : > { %v10016_v34 = vpop.f32.mrb[58].mxu1 }
 0x8f1   : > { %v10031_v35 = vadd.f32 %v10016_v34, %v9909_v57  ;;  %v16286_v60 = vpop.f32.mrb[59].mxu1 }
 0x8f6   : > { %v10021_v36 = vpop.f32.mrb[60].mxu1 }
 0x8f7   : > { %v10032_v30 = vadd.f32 %v10021_v36, %v9914_v4  ;;  %v16289_v43 = vpop.f32.mrb[61].mxu1 }
 0x8f8   : > { %v10024_v37 = vpop.f32.mrb[62].mxu1 }
 0x8f9   : > { %v10033_v31 = vadd.f32 %v10024_v37, %v9917_v29  ;;  %v16290_v55 = vpop.f32.mrb[63].mxu1 }
 0x8fe   : > { %v10119_v62 = vpop.f32.mrb[64].mxu1 }
 0x8ff   : > { %v10142_v18 = vadd.f32 %v10119_v62, %v10028_v21  ;;  %v16301_v16 = vpop.f32.mrb[65].mxu1 }
 0x900   : > { %v10122_v6 = vpop.f32.mrb[66].mxu1 }
 0x901   : > { %v10143_v5 = vadd.f32 %v10122_v6, %v10029_v24  ;;  %v16302_v26 = vpop.f32.mrb[67].mxu1 }
 0x906   : > { %v10127_v3 = vpop.f32.mrb[68].mxu1 }
 0x907   : > { %v10144_v32 = vadd.f32 %v10127_v3, %v10030_v38  ;;  %v16305_v13 = vpop.f32.mrb[69].mxu1 }
 0x908   : > { %v10130_v12 = vpop.f32.mrb[70].mxu1 }
 0x909   : > { %v10145_v42 = vadd.f32 %v10130_v12, %v10031_v35  ;;  %v16306_v14 = vpop.f32.mrb[71].mxu1 }
 0x90e   : > { %v10135_v15 = vpop.f32.mrb[72].mxu1 }
 0x90f   : > { %v10146_v61 = vadd.f32 %v10135_v15, %v10032_v30  ;;  %v16309_v8 = vpop.f32.mrb[73].mxu1 }
 0x910   : > { %v10138_v10 = vpop.f32.mrb[74].mxu1 }
 0x911   : > { %v10147_v23 = vadd.f32 %v10138_v10, %v10033_v31  ;;  %v16310_v47 = vpop.f32.mrb[75].mxu1 }
 0x916   : > { %v10233_v44 = vpop.f32.mrb[76].mxu1 }
 0x917   : > { %v10256_v63 = vadd.f32 %v10233_v44, %v10142_v18  ;;  %v16321_v52 = vpop.f32.mrb[77].mxu1 }
 0x918   : > { %v10236_v22 = vpop.f32.mrb[78].mxu1 }
 0x919   : > { %v10257_v40 = vadd.f32 %v10236_v22, %v10143_v5  ;;  %v16322_v20 = vpop.f32.mrb[79].mxu1 }
 0x91e   : > { %v10241_v51 = vpop.f32.mrb[80].mxu1 }
 0x91f   : > { %v10258_v39 = vadd.f32 %v10241_v51, %v10144_v32  ;;  %v16325_v19 = vpop.f32.mrb[81].mxu1 }
 0x920   : > { %v10244_v49 = vpop.f32.mrb[82].mxu1 }
 0x921   : > { %v10259_v50 = vadd.f32 %v10244_v49, %v10145_v42  ;;  %v16326_v45 = vpop.f32.mrb[83].mxu1 }
 0x926   : > { %v10249_v33 = vpop.f32.mrb[84].mxu1 }
 0x927   : > { %v10260_v57 = vadd.f32 %v10249_v33, %v10146_v61  ;;  %v16329_v0 = vpop.f32.mrb[85].mxu1  ;;  %v14439_v33 = vld [vmem:[%s20537_s10] ss:$0 sm:$0xff] }
 0x928   : > { %v10252_v59 = vpop.f32.mrb[86].mxu1 }
 0x929   : > { %v10261_v4 = vadd.f32 %v10252_v59, %v10147_v23  ;;  %v16330_v7 = vpop.f32.mrb[87].mxu1 }
 0x92e   : > { %v10347_v58 = vpop.f32.mrb[88].mxu1 }
 0x92f   : > { %v10370_v29 = vadd.f32 %v10347_v58, %v10256_v63  ;;  %v16341_v11 = vpop.f32.mrb[89].mxu1 }
 0x930   : > { %v10350_v17 = vpop.f32.mrb[90].mxu1 }
 0x931   : > { %v10371_v21 = vadd.f32 %v10350_v17, %v10257_v40  ;;  %v16342_v48 = vpop.f32.mrb[91].mxu1 }
 0x936   : > { %v10355_v53 = vpop.f32.mrb[92].mxu1 }
 0x937   : > { %v10372_v24 = vadd.f32 %v10355_v53, %v10258_v39  ;;  %v16345_v28 = vpop.f32.mrb[93].mxu1 }
 0x938   : > { %v10358_v56 = vpop.f32.mrb[94].mxu1 }
 0x939   : > { %v10373_v38 = vadd.f32 %v10358_v56, %v10259_v50  ;;  %v16346_v27 = vpop.f32.mrb[95].mxu1 }
 0x93e   : > { %v10363_v34 = vpop.f32.mrb[96].mxu1 }
 0x93f   : > { %v10374_v35 = vadd.f32 %v10363_v34, %v10260_v57  ;;  %v16349_v60 = vpop.f32.mrb[97].mxu1 }
 0x940   : > { %v10366_v36 = vpop.f32.mrb[98].mxu1 }
 0x941   : > { %v10375_v30 = vadd.f32 %v10366_v36, %v10261_v4  ;;  %v16350_v43 = vpop.f32.mrb[99].mxu1 }
 0x946   : > { %v10461_v37 = vpop.f32.mrb[100].mxu1 }
 0x947   : > { %v10484_v31 = vadd.f32 %v10461_v37, %v10370_v29  ;;  %v16361_v55 = vpop.f32.mrb[101].mxu1 }
 0x948   : > { %v10464_v62 = vpop.f32.mrb[102].mxu1 }
 0x949   : > { %v10485_v18 = vadd.f32 %v10464_v62, %v10371_v21  ;;  %v16362_v16 = vpop.f32.mrb[103].mxu1 }
 0x94e   : > { %v10469_v6 = vpop.f32.mrb[104].mxu1 }
 0x94f   : > { %v10486_v5 = vadd.f32 %v10469_v6, %v10372_v24  ;;  %v16365_v26 = vpop.f32.mrb[105].mxu1 }
 0x950   : > { %v10472_v3 = vpop.f32.mrb[106].mxu1 }
 0x951   : > { %v10487_v32 = vadd.f32 %v10472_v3, %v10373_v38  ;;  %v16366_v13 = vpop.f32.mrb[107].mxu1 }
 0x956   : > { %v10477_v12 = vpop.f32.mrb[108].mxu1 }
 0x957   : > { %v10488_v54 = vadd.f32 %v10477_v12, %v10374_v35  ;;  %v16369_v42 = vpop.f32.mrb[109].mxu1 }
 0x958   : > { %v10480_v14 = vpop.f32.mrb[110].mxu1  ;;  %v17712_v42 = vld [vmem:[%s20531_s4 + $0x8] sm:$0xff]  }
 0x959   : > { %v10489_v9 = vadd.f32 %v10480_v14, %v10375_v30  ;;  %v16370_v15 = vpop.f32.mrb[111].mxu1 }
 0x95a   : > { %v17714_v15 = vld [vmem:[%s20531_s4 + $0x18] sm:$0xff]  }
 0x95e   : > { %v10575_v61 = vpop.f32.mrb[112].mxu1 }
 0x95f   : > { %v10598_v8 = vadd.f32 %v10575_v61, %v10484_v31  ;;  %v16381_v10 = vpop.f32.mrb[113].mxu1  ;;  %v17715_v61 = vld [vmem:[%s20531_s4 + $0x40] sm:$0xff]  }
 0x960   : > { %v10578_v46 = vpop.f32.mrb[114].mxu1 }
 0x961   : > { %v10599_v23 = vadd.f32 %v10578_v46, %v10485_v18  ;;  %v16382_v47 = vpop.f32.mrb[115].mxu1 }
 0x962   : > { %v17716_v47 = vld [vmem:[%s20531_s4 + $0x48] sm:$0xff]  }
 0x966   : > { %v10583_v41 = vpop.f32.mrb[116].mxu1 }
 0x967   : > { %v10600_v44 = vadd.f32 %v10583_v41, %v10486_v5  ;;  %v16385_v63 = vpop.f32.mrb[117].mxu1 }
 0x968   : > { %v10586_v52 = vpop.f32.mrb[118].mxu1  ;;  %v17718_v63 = vld [vmem:[%s20531_s4 + $0x58] sm:$0xff]  }
 0x969   : > { %v10601_v22 = vadd.f32 %v10586_v52, %v10487_v32  ;;  %v16386_v40 = vpop.f32.mrb[119].mxu1  ;;  %v17719_v52 = vld [vmem:[%s20531_s4 + $0x60] sm:$0xff]  }
 0x96e   : > { %v10591_v20 = vpop.f32.mrb[120].mxu1 }
 0x96f   : > { %v10602_v51 = vadd.f32 %v10591_v20, %v10488_v54  ;;  %v16389_v39 = vpop.f32.mrb[121].mxu1 }
 0x970   : > { %v10594_v19 = vpop.f32.mrb[122].mxu1 }
 0x971   : > { %v10603_v49 = vadd.f32 %v10594_v19, %v10489_v9  ;;  %v16390_v50 = vpop.f32.mrb[123].mxu1  ;;  %v17713_v9 = vld [vmem:[%s20531_s4 + $0x10] sm:$0xff]  }
 0x972   : > { %v17721_v19 = vld [vmem:[%s20531_s4 + $0x70] sm:$0xff]   ;;  %v17723_v50 = vld [vmem:[%s20531_s4 + $0x80] sm:$0xff]  }
 0x976   : > { %v10689_v45 = vpop.f32.mrb[124].mxu1 }
 0x977   : > { %v10712_v57 = vadd.f32 %v10689_v45, %v10598_v8  ;;  %v16401_v0 = vpop.f32.mrb[125].mxu1 }
 0x978   : > { %v10692_v59 = vpop.f32.mrb[126].mxu1 }
 0x979   : > { %v10725_v4 = vadd.f32 %v14439_v33, %v10712_v57  ;;  %v10713_v7 = vadd.f32 %v10692_v59, %v10599_v23  ;;  %v16402_v58 = vpop.f32.mrb[127].mxu1  ;;  %v17724_v57 = vld [vmem:[%s20531_s4 + $0x88] sm:$0xff]   ;;  %v17725_v59 = vld [vmem:[%s20531_s4 + $0x90] sm:$0xff]  }
 0x97b   : > { %v10731_v29 = vmax.f32 %v10725_v4, 0.0  ;;  %v10726_v11 = vadd.f32 %v14439_v33, %v10713_v7  ;;  %v17726_v4 = vld [vmem:[%s20531_s4 + $0x98] sm:$0xff]   ;;  %v17727_v7 = vld [vmem:[%s20531_s4 + $0xa0] sm:$0xff]  }
 0x97d   : > { %10737 = vst.msk [vmem:[#allocation5] sm:$0xff] %vm495_vm3, %v10731_v29  ;;  %v10732_v17 = vmax.f32 %v10726_v11, 0.0  ;;  %v17728_v11 = vld [vmem:[%s20531_s4 + $0xa8] sm:$0xff]  }
 0x97e   : > { %v10697_v21 = vpop.f32.mrb[128].mxu1 }
 0x97f   : > { %10738 = vst.msk [vmem:[#allocation5 + $0x8] sm:$0xff] %vm495_vm3, %v10732_v17  ;;  %v10714_v48 = vadd.f32 %v10697_v21, %v10600_v44  ;;  %v16405_v53 = vpop.f32.mrb[129].mxu1  ;;  %v17717_v44 = vld [vmem:[%s20531_s4 + $0x50] sm:$0xff]  }
 0x980   : > { %v10700_v24 = vpop.f32.mrb[130].mxu1  ;;  %v17729_v21 = vld [vmem:[%s20531_s4 + $0xb0] sm:$0xff]   ;;  %v17731_v53 = vld [vmem:[%s20531_s4 + $0xc0] sm:$0xff]  }
 0x981   : > { %v10727_v28 = vadd.f32 %v14439_v33, %v10714_v48  ;;  %v10715_v56 = vadd.f32 %v10700_v24, %v10601_v22  ;;  %v16406_v38 = vpop.f32.mrb[131].mxu1  ;;  %v17730_v48 = vld [vmem:[%s20531_s4 + $0xb8] sm:$0xff]  }
 0x982   : > { %v17733_v38 = vld [vmem:[%s20531_s4 + $0xd0] sm:$0xff]  }
 0x983   : > { %v10733_v27 = vmax.f32 %v10727_v28, 0.0  ;;  %v10728_v34 = vadd.f32 %v14439_v33, %v10715_v56  ;;  %v17732_v56 = vld [vmem:[%s20531_s4 + $0xc8] sm:$0xff]  }
 0x984   : > { %v10743_v54 = vld [vmem:[#allocation5] sm:$0xff] }
 0x985   : > { %10739 = vst.msk [vmem:[#allocation5 + $0x10] sm:$0xff] %vm495_vm3, %v10733_v27  ;;  %v10734_v35 = vmax.f32 %v10728_v34, 0.0  ;;  %v17734_v27 = vld [vmem:[%s20531_s4 + $0xd8] sm:$0xff]   ;;  %v17735_v34 = vld [vmem:[%s20531_s4 + $0xe0] sm:$0xff]  }
 0x986   : > { %v10705_v60 = vpop.f32.mrb[132].mxu1  ;;  %v10757_v16 = vld [vmem:[#allocation5 + $0x1] sm:$0xff] }
 0x987   : > { %10740 = vst.msk [vmem:[#allocation5 + $0x18] sm:$0xff] %vm495_vm3, %v10734_v35  ;;  %v10716_v36 = vadd.f32 %v10705_v60, %v10602_v51  ;;  %v16409_v30 = vpop.f32.mrb[133].mxu1  ;;  %v10744_v3 = vld [vmem:[#allocation5 + $0x8] sm:$0xff]  ;;  %v17720_v51 = vld [vmem:[%s20531_s4 + $0x68] sm:$0xff]  }
 0x988   : > { %v10708_v43 = vpop.f32.mrb[134].mxu1  ;;  %v10747_v14 = vpack.c.bf16 %v10744_v3, %v10743_v54  ;;  %v10930_v23 = vld [vmem:[#allocation5 + $0x2] sm:$0xff] }
 0x989   : > { %v10729_v37 = vadd.f32 %v14439_v33, %v10716_v36  ;;  %v10717_v31 = vadd.f32 %v10708_v43, %v10603_v49  ;;  %v16410_v55 = vpop.f32.mrb[135].mxu1  ;;  %v17722_v49 = vld [vmem:[%s20531_s4 + $0x78] sm:$0xff]   ;;  %v17736_v36 = vld [vmem:[%s20531_s4 + $0xe8] sm:$0xff]   ;;  %v17737_v30 = vld [vmem:[%s20531_s4 + $0xf0] sm:$0xff]  }
 0x98a   : > { %v17738_v43 = vld [vmem:[%s20531_s4 + $0xf8] sm:$0xff]  }
 0x98b   : > { %v10735_v62 = vmax.f32 %v10729_v37, 0.0  ;;  %v10730_v18 = vadd.f32 %v14439_v33, %v10717_v31  ;;  %v17739_v37 = vld [vmem:[%s20531_s4 + $0x100] sm:$0xff]  }
 0x98c   : > { %v19840_v6 = vld [vmem:[#allocation5 + $0x9] sm:$0xff] }
 0x98d   : > { %10741 = vst.msk [vmem:[#allocation5 + $0x20] sm:$0xff] %vm495_vm3, %v10735_v62  ;;  %v10736_v5 = vmax.f32 %v10730_v18, 0.0  ;;  %v10761_v26 = vpack.c.bf16 %v19840_v6, %v10757_v16  ;;  %v19870_v8 = vld [vmem:[#allocation5 + $0xa] sm:$0xff]  ;;  %v17740_v62 = vld [vmem:[%s20531_s4 + $0x108] sm:$0xff]   ;;  %v17741_v18 = vld [vmem:[%s20531_s4 + $0x110] sm:$0xff]  }
 0x98e   : > { %v19846_v32 = vld [vmem:[#allocation5 + $0x11] sm:$0xff]  ;;  %v10934_v41 = vpack.c.bf16 %v19870_v8, %v10930_v23  ;;  %v17742_v16 = vld [vmem:[%s20531_s4 + $0x118] sm:$0xff]  }
 0x98f   : > { %10742 = vst.msk [vmem:[#allocation5 + $0x28] sm:$0xff] %vm495_vm3, %v10736_v5  ;;  %16419 = vmatprep.mubr.msk.bf16.mxu1 %vm495_vm3, %v10761_v26  ;;  %v10745_v10 = vld [vmem:[#allocation5 + $0x10] sm:$0xff]  ;;  %v11130_v0 = vpack.c.bf16 %v19846_v32, %v19840_v6 }
 0x990   : > { %v10932_v40 = vld [vmem:[#allocation5 + $0x12] sm:$0xff]  ;;  %v11032_v39 = vpack.c.bf16 %v10745_v10, %v10744_v3 }
 0x991   : > { %v11228_v17 = vpack.c.bf16 %v10932_v40, %v19870_v8  ;;  %v17743_v26 = vld [vmem:[%s20532_s5 + $0x20] sm:$0xff]   ;;  %v17744_v3 = vld [vmem:[%s20532_s5 + $0x28] sm:$0xff]  }
 0x994   : > { %v19848_v13 = vld [vmem:[#allocation5 + $0x19] sm:$0xff] }
 0x995   : > { %v19852_v12 = vpack.c.bf16 %v19848_v13, %v19846_v32  ;;  %v10933_v22 = vld [vmem:[#allocation5 + $0x1a] sm:$0xff] }
 0x996   : > { %v19890_v20 = vpack.c.bf16 %v10933_v22, %v10932_v40  ;;  %v11031_v45 = vld [vmem:[#allocation5 + $0x20] sm:$0xff]  ;;  %v11325_v35 = vld [vmem:[#allocation5 + $0x28] sm:$0xff] }
 0x997   : > { %16420 = vmatmul.mubr.msk.bf16.vlgmr.msra.gmra.mrb[136].mxu1 %vm495_vm3, %v19852_v12  ;;  %v11129_v58 = vld [vmem:[#allocation5 + $0x21] sm:$0xff]  ;;  %v11327_v60 = vpack.c.bf16 %v11325_v35, %v11031_v45  ;;  %v11423_v31 = vld [vmem:[#allocation5 + $0x29] sm:$0xff] }
 0x998   : > { %16424 = vmatpush3.bf16.msra.mxu1 %v19830_v2  ;;  %16431 = vmatprep.mubr.msk.bf16.mxu1 %vm495_vm3, %v10747_v14  ;;  %v10746_v2 = vld [vmem:[#allocation5 + $0x18] sm:$0xff]  ;;  %v11131_v29 = vpack.c.bf16 %v11129_v58, %v19848_v13  ;;  %v11227_v24 = vld [vmem:[#allocation5 + $0x22] sm:$0xff]  ;;  %v11425_v55 = vpack.c.bf16 %v11423_v31, %v11129_v58  ;;  %v11521_v6 = vld [vmem:[#allocation5 + $0x2a] sm:$0xff] }
 0x999   : > { %16425 = vmatprep.subr.bf16.mxu1 %v17712_v42  ;;  %v19872_v46 = vpack.c.bf16 %v10746_v2, %v10745_v10  ;;  %v11033_v33 = vpack.c.bf16 %v11031_v45, %v10746_v2  ;;  %v11229_v28 = vpack.c.bf16 %v11227_v24, %v10933_v22  ;;  %v11523_v5 = vpack.c.bf16 %v11521_v6, %v11227_v24  ;;  %v17745_v32 = vld [vmem:[%s20532_s5 + $0x30] sm:$0xff]   ;;  %v17746_v13 = vld [vmem:[%s20532_s5 + $0x38] sm:$0xff]   ;;  %v17748_v22 = vld [vmem:[%s20532_s5 + $0x8] sm:$0xff]  }
 0x99a   : > { %v17749_v40 = vld [vmem:[%s20532_s5 + $0x10] sm:$0xff]   ;;  %v17762_v24 = vld [vmem:[%s20532_s5 + $0x98] sm:$0xff]  }
 0x99b   : > { %v17753_v45 = vld [vmem:[%s20532_s5 + $0x50] sm:$0xff]   ;;  %v17766_v35 = vld [vmem:[%s20532_s5 + $0xb8] sm:$0xff]  }
 0x99c   : > { %16426 = vmatpush3.bf16.msra.mxu1 %v17712_v42  ;;  %v17757_v58 = vld [vmem:[%s20532_s5 + $0x70] sm:$0xff]   ;;  %v17770_v31 = vld [vmem:[%s20532_s5 + $0xd8] sm:$0xff]  }
 0x99d   : > { %16427 = vmatprep.subr.bf16.mxu1 %v17713_v9  ;;  %v17773_v6 = vld [vmem:[%s20532_s5 + $0xf0] sm:$0xff]  }
 0x9a0   : > { %16428 = vmatpush3.bf16.msra.mxu1 %v17713_v9 }
 0x9a1   : > { %16429 = vmatprep.subr.bf16.mxu1 %v17714_v15 }
 0x9a4   : > { %16430 = vmatpush3.bf16.msra.mxu1 %v17714_v15 }
 0x9a5   : > { %16435 = vmatprep.subr.bf16.mxu1 %v17715_v61 }
 0x9a7   : > { %16432 = vmatmul.mubr.msk.bf16.vlgmr.msra.gmra.mrb[136].mxu1 %vm495_vm3, %v19872_v46 }
 0x9a8   : > { %16436 = vmatpush3.bf16.msra.mxu1 %v17715_v61  ;;  %16443 = vmatprep.mubr.msk.bf16.mxu1 %vm495_vm3, %v10934_v41 }
 0x9a9   : > { %16437 = vmatprep.subr.bf16.mxu1 %v17716_v47 }
 0x9ac   : > { %16438 = vmatpush3.bf16.msra.mxu1 %v17716_v47 }
 0x9ad   : > { %16439 = vmatprep.subr.bf16.mxu1 %v17717_v44 }
 0x9b0   : > { %16440 = vmatpush3.bf16.msra.mxu1 %v17717_v44 }
 0x9b1   : > { %16441 = vmatprep.subr.bf16.mxu1 %v17718_v63 }
 0x9b4   : > { %16442 = vmatpush3.bf16.msra.mxu1 %v17718_v63  ;;  %v17747_v63 = vld [vmem:[%s20532_s5] sm:$0xff]  }
 0x9b5   : > { %16447 = vmatprep.subr.bf16.mxu1 %v17719_v52 }
 0x9b7   : > { %16444 = vmatmul.mubr.msk.bf16.vlgmr.msra.gmra.mrb[136].mxu1 %vm495_vm3, %v19890_v20 }
 0x9b8   : > { %16448 = vmatpush3.bf16.msra.mxu1 %v17719_v52  ;;  %16455 = vmatprep.mubr.msk.bf16.mxu1 %vm495_vm3, %v11032_v39 }
 0x9b9   : > { %16449 = vmatprep.subr.bf16.mxu1 %v17720_v51 }
 0x9bc   : > { %16450 = vmatpush3.bf16.msra.mxu1 %v17720_v51 }
 0x9bd   : > { %16451 = vmatprep.subr.bf16.mxu1 %v17721_v19 }
 0x9c0   : > { %16452 = vmatpush3.bf16.msra.mxu1 %v17721_v19  ;;  %v17751_v19 = vld [vmem:[%s20532_s5 + $0x40] sm:$0xff]  }
 0x9c1   : > { %16453 = vmatprep.subr.bf16.mxu1 %v17722_v49 }
 0x9c4   : > { %16454 = vmatpush3.bf16.msra.mxu1 %v17722_v49 }
 0x9c5   : > { %16459 = vmatprep.subr.bf16.mxu1 %v17723_v50 }
 0x9c7   : > { %16456 = vmatmul.mubr.msk.bf16.vlgmr.msra.gmra.mrb[136].mxu1 %vm495_vm3, %v11033_v33  ;;  %v17754_v33 = vld [vmem:[%s20532_s5 + $0x58] sm:$0xff]  }
 0x9c8   : > { %16460 = vmatpush3.bf16.msra.mxu1 %v17723_v50  ;;  %16467 = vmatprep.mubr.msk.bf16.mxu1 %vm495_vm3, %v11130_v0  ;;  %v17752_v50 = vld [vmem:[%s20532_s5 + $0x48] sm:$0xff]  }
 0x9c9   : > { %16461 = vmatprep.subr.bf16.mxu1 %v17724_v57 }
 0x9cc   : > { %16462 = vmatpush3.bf16.msra.mxu1 %v17724_v57 }
 0x9cd   : > { %16463 = vmatprep.subr.bf16.mxu1 %v17725_v59 }
 0x9d0   : > { %16464 = vmatpush3.bf16.msra.mxu1 %v17725_v59  ;;  %v17755_v59 = vld [vmem:[%s20532_s5 + $0x60] sm:$0xff]  }
 0x9d1   : > { %16465 = vmatprep.subr.bf16.mxu1 %v17726_v4 }
 0x9d4   : > { %16466 = vmatpush3.bf16.msra.mxu1 %v17726_v4 }
 0x9d5   : > { %16471 = vmatprep.subr.bf16.mxu1 %v17727_v7 }
 0x9d7   : > { %16468 = vmatmul.mubr.msk.bf16.vlgmr.msra.gmra.mrb[136].mxu1 %vm495_vm3, %v11131_v29  ;;  %v17758_v29 = vld [vmem:[%s20532_s5 + $0x78] sm:$0xff]  }
 0x9d8   : > { %16472 = vmatpush3.bf16.msra.mxu1 %v17727_v7  ;;  %16479 = vmatprep.mubr.msk.bf16.mxu1 %vm495_vm3, %v11228_v17  ;;  %v17756_v7 = vld [vmem:[%s20532_s5 + $0x68] sm:$0xff]   ;;  %v17759_v17 = vld [vmem:[%s20532_s5 + $0x80] sm:$0xff]  }
 0x9d9   : > { %16473 = vmatprep.subr.bf16.mxu1 %v17728_v11 }
 0x9dc   : > { %16474 = vmatpush3.bf16.msra.mxu1 %v17728_v11 }
 0x9dd   : > { %16475 = vmatprep.subr.bf16.mxu1 %v17729_v21 }
 0x9e0   : > { %16476 = vmatpush3.bf16.msra.mxu1 %v17729_v21 }
 0x9e1   : > { %16477 = vmatprep.subr.bf16.mxu1 %v17730_v48 }
 0x9e4   : > { %16478 = vmatpush3.bf16.msra.mxu1 %v17730_v48  ;;  %v17760_v48 = vld [vmem:[%s20532_s5 + $0x88] sm:$0xff]  }
 0x9e5   : > { %16483 = vmatprep.subr.bf16.mxu1 %v17731_v53 }
 0x9e7   : > { %16480 = vmatmul.mubr.msk.bf16.vlgmr.msra.gmra.mrb[136].mxu1 %vm495_vm3, %v11229_v28 }
 0x9e8   : > { %16484 = vmatpush3.bf16.msra.mxu1 %v17731_v53  ;;  %16491 = vmatprep.mubr.msk.bf16.mxu1 %vm495_vm3, %v19872_v46  ;;  %v17761_v53 = vld [vmem:[%s20532_s5 + $0x90] sm:$0xff]  }
 0x9e9   : > { %16485 = vmatprep.subr.bf16.mxu1 %v17732_v56 }
 0x9ec   : > { %16486 = vmatpush3.bf16.msra.mxu1 %v17732_v56  ;;  %v17763_v56 = vld [vmem:[%s20532_s5 + $0xa0] sm:$0xff]  }
 0x9ed   : > { %16487 = vmatprep.subr.bf16.mxu1 %v17733_v38 }
 0x9f0   : > { %16488 = vmatpush3.bf16.msra.mxu1 %v17733_v38 }
 0x9f1   : > { %16489 = vmatprep.subr.bf16.mxu1 %v17734_v27 }
 0x9f4   : > { %16490 = vmatpush3.bf16.msra.mxu1 %v17734_v27  ;;  %v17764_v27 = vld [vmem:[%s20532_s5 + $0xa8] sm:$0xff]  }
 0x9f5   : > { %16495 = vmatprep.subr.bf16.mxu1 %v17735_v34 }
 0x9f7   : > { %16492 = vmatmul.mubr.msk.bf16.vlgmr.msra.gmra.mrb[136].mxu1 %vm495_vm3, %v11327_v60 }
 0x9f8   : > { %16496 = vmatpush3.bf16.msra.mxu1 %v17735_v34  ;;  %16503 = vmatprep.mubr.msk.bf16.mxu1 %vm495_vm3, %v19852_v12  ;;  %v14558_v12 = vld [vmem:[%s20538_s11] ss:$0 sm:$0xff]  ;;  %v17765_v34 = vld [vmem:[%s20532_s5 + $0xb0] sm:$0xff]  }
 0x9f9   : > { %16497 = vmatprep.subr.bf16.mxu1 %v17736_v36 }
 0x9fc   : > { %16498 = vmatpush3.bf16.msra.mxu1 %v17736_v36  ;;  %v17767_v36 = vld [vmem:[%s20532_s5 + $0xc0] sm:$0xff]  }
 0x9fd   : > { %16499 = vmatprep.subr.bf16.mxu1 %v17737_v30 }
 0xa00   : > { %16500 = vmatpush3.bf16.msra.mxu1 %v17737_v30 }
 0xa01   : > { %16501 = vmatprep.subr.bf16.mxu1 %v17738_v43 }
 0xa04   : > { %16502 = vmatpush3.bf16.msra.mxu1 %v17738_v43  ;;  %v17768_v43 = vld [vmem:[%s20532_s5 + $0xc8] sm:$0xff]  }
 0xa05   : > { %16507 = vmatprep.subr.bf16.mxu1 %v17739_v37 }
 0xa07   : > { %16504 = vmatmul.mubr.msk.bf16.vlgmr.msra.gmra.mrb[136].mxu1 %vm495_vm3, %v11425_v55 }
 0xa08   : > { %16508 = vmatpush3.bf16.msra.mxu1 %v17739_v37  ;;  %16515 = vmatprep.mubr.msk.bf16.mxu1 %vm495_vm3, %v19890_v20  ;;  %v17750_v20 = vld [vmem:[%s20532_s5 + $0x18] sm:$0xff]   ;;  %v17769_v37 = vld [vmem:[%s20532_s5 + $0xd0] sm:$0xff]  }
 0xa09   : > { %16509 = vmatprep.subr.bf16.mxu1 %v17740_v62 }
 0xa0c   : > { %16510 = vmatpush3.bf16.msra.mxu1 %v17740_v62  ;;  %v17771_v62 = vld [vmem:[%s20532_s5 + $0xe0] sm:$0xff]  }
 0xa0d   : > { %16511 = vmatprep.subr.bf16.mxu1 %v17741_v18 }
 0xa10   : > { %16512 = vmatpush3.bf16.msra.mxu1 %v17741_v18 }
 0xa11   : > { %16513 = vmatprep.subr.bf16.mxu1 %v17742_v16 }
 0xa14   : > { %16514 = vmatpush3.bf16.msra.mxu1 %v17742_v16  ;;  %v17772_v16 = vld [vmem:[%s20532_s5 + $0xe8] sm:$0xff]  }
 0xa15   : > { %16519 = vmatprep.subr.bf16.mxu1 %v17976_v25 }
 0xa17   : > { %16516 = vmatmul.mubr.msk.bf16.vlgmr.msra.gmra.mrb[136].mxu1 %vm495_vm3, %v11523_v5  ;;  %v17774_v5 = vld [vmem:[%s20532_s5 + $0xf8] sm:$0xff]  }
 0xa18   : > { %16527 = vmatprep.mubr.msk.bf16.mxu1 %vm17977_vm4, %v17976_v25  ;;  %16520 = vmatpush3.bf16.msra.mxu1 %v17743_v26 }
 0xa19   : > { %16521 = vmatprep.subr.bf16.mxu1 %v17976_v25 }
 0xa1c   : > { %16522 = vmatpush3.bf16.msra.mxu1 %v17744_v3  ;;  %v17775_v3 = vld [vmem:[%s20532_s5 + $0x100] sm:$0xff]  }
 0xa1d   : > { %16523 = vmatprep.subr.bf16.mxu1 %v17976_v25 }
 0xa20   : > { %16524 = vmatpush3.bf16.msra.mxu1 %v17745_v32 }
 0xa21   : > { %16525 = vmatprep.subr.bf16.mxu1 %v17976_v25 }
 0xa24   : > { %16526 = vmatpush3.bf16.msra.mxu1 %v17746_v13  ;;  %v17776_v13 = vld [vmem:[%s20532_s5 + $0x108] sm:$0xff]  }
 0xa25   : > { %16531 = vmatprep.subr.bf16.mxu1 %v17976_v25 }
 0xaea   : > { %v16517_v54 = vpop.f32.mrb[136].mxu1 }
 0xaeb   : > { %v11625_v42 = vadd.f32 %v16517_v54, %v14558_v12  ;;  %v11597_v14 = vpop.f32.mrb[137].mxu1  ;;  %v17778_v54 = vld [vmem:[%s20532_s5 + $0x118] sm:$0xff]  }
 0xaec   : > { %v11623_v9 = vadd.f32 %v14558_v12, %v11597_v14  ;;  %v16518_v15 = vpop.f32.mrb[138].mxu1 }
 0xaed   : > { %v11629_v61 = vmax.f32 %v11625_v42, 0.0  ;;  %v11626_v2 = vadd.f32 %v16518_v15, %v14558_v12  ;;  %v11600_v8 = vpop.f32.mrb[139].mxu1  ;;  %v17781_v15 = vld [vmem:[%s20533_s6 + $0x84] ss:$16 sps:$4 sm:$0xff]  }
 0xaee   : > { %v11627_v10 = vmax.f32 %v11623_v9, 0.0  ;;  %v11624_v46 = vadd.f32 %v14558_v12, %v11600_v8  ;;  %v17777_v12 = vld [vmem:[%s20532_s5 + $0x110] sm:$0xff]  }
 0xaef   : > { %11633 = vst.msk [vmem:[#allocation6 + $0x10] sm:$0xff] %vm495_vm3, %v11629_v61  ;;  %v11630_v23 = vmax.f32 %v11626_v2, 0.0  ;;  %v17779_v9 = vld [vmem:[%s20533_s6 + $0x80] ss:$16 sps:$4 sm:$0xff]   ;;  %v17784_v61 = vld [vmem:[%s20533_s6 + $0xa4] ss:$16 sps:$4 sm:$0xff]  }
 0xaf0   : > { %11631 = vst.msk [vmem:[#allocation6] sm:$0xff] %vm495_vm3, %v11627_v10  ;;  %v11628_v47 = vmax.f32 %v11624_v46, 0.0  ;;  %v17787_v10 = vld [vmem:[%s20533_s6 + $0xc4] ss:$16 sps:$4 sm:$0xff]  }
 0xaf1   : > { %11634 = vst.msk [vmem:[#allocation6 + $0x18] sm:$0xff] %vm495_vm3, %v11630_v23  ;;  %v17785_v23 = vld [vmem:[%s20533_s6 + $0xc0] ss:$16 sps:$4 sm:$0xff]  }
 0xaf2   : > { %11632 = vst.msk [vmem:[#allocation6 + $0x8] sm:$0xff] %vm495_vm3, %v11628_v47 }
 0xaf6   : > { %v11877_v11 = vld [vmem:[#allocation6 + $0x10] sm:$0xff] }
 0xaf7   : > { %v11635_v39 = vld [vmem:[#allocation6] sm:$0xff] }
 0xaf8   : > { %v11959_v28 = vld [vmem:[#allocation6 + $0x11] sm:$0xff]  ;;  %v12205_v26 = vld [vmem:[#allocation6 + $0x19] sm:$0xff] }
 0xaf9   : > { %v11646_v41 = vld [vmem:[#allocation6 + $0x1] sm:$0xff]  ;;  %v20008_v44 = vld [vmem:[#allocation6 + $0x9] sm:$0xff]  ;;  %v12041_v60 = vld [vmem:[#allocation6 + $0x12] sm:$0xff]  ;;  %v12206_v32 = vpack.c.bf16 %v12205_v26, %v11959_v28 }
 0xafa   : > { %v11648_v52 = vpack.c.bf16 %v20008_v44, %v11646_v41  ;;  %v11636_v51 = vld [vmem:[#allocation6 + $0x8] sm:$0xff]  ;;  %v11960_v38 = vpack.c.bf16 %v11959_v28, %v20008_v44  ;;  %v12123_v55 = vld [vmem:[#allocation6 + $0x18] sm:$0xff] }
 0xafb   : > { %v11637_v49 = vpack.c.bf16 %v11636_v51, %v11635_v39  ;;  %v11794_v57 = vld [vmem:[#allocation6 + $0x2] sm:$0xff]  ;;  %v11795_v0 = vld [vmem:[#allocation6 + $0xa] sm:$0xff]  ;;  %v11878_v21 = vpack.c.bf16 %v11877_v11, %v11636_v51  ;;  %v12124_v18 = vpack.c.bf16 %v12123_v55, %v11877_v11  ;;  %v12287_v42 = vld [vmem:[#allocation6 + $0x1a] sm:$0xff] }
 0xafc   : > { %16528 = vmatmul.mubr.msk.bf16.vlgmr.msra.gmra.mrb[140].mxu1 %vm495_vm3, %v11648_v52  ;;  %v11796_v4 = vpack.c.bf16 %v11795_v0, %v11794_v57  ;;  %v12042_v30 = vpack.c.bf16 %v12041_v60, %v11795_v0  ;;  %v12288_v14 = vpack.c.bf16 %v12287_v42, %v12041_v60  ;;  %v17790_v41 = vld [vmem:[%s20533_s6 + $0xe4] ss:$16 sps:$4 sm:$0xff]   ;;  %v17788_v44 = vld [vmem:[%s20533_s6 + $0xe0] ss:$16 sps:$4 sm:$0xff]  }
 0xafd   : > { %16532 = vmatpush3.bf16.msra.mxu1 %v17747_v63  ;;  %16539 = vmatprep.mubr.msk.bf16.mxu1 %vm17977_vm4, %v17976_v25  ;;  %v17793_v63 = vld [vmem:[%s20533_s6 + $0x8c] ss:$16 sps:$4 sm:$0xff]  }
 0xafe   : > { %16533 = vmatprep.subr.bf16.mxu1 %v17976_v25 }
 0xb01   : > { %16534 = vmatpush3.bf16.msra.mxu1 %v17748_v22 }
 0xb02   : > { %16535 = vmatprep.subr.bf16.mxu1 %v17976_v25 }
 0xb05   : > { %16536 = vmatpush3.bf16.msra.mxu1 %v17749_v40 }
 0xb06   : > { %16537 = vmatprep.subr.bf16.mxu1 %v17976_v25 }
 0xb09   : > { %16538 = vmatpush3.bf16.msra.mxu1 %v17750_v20 }
 0xb0a   : > { %16543 = vmatprep.subr.bf16.mxu1 %v17976_v25 }
 0xb0c   : > { %16540 = vmatmul.mubr.msk.bf16.vlgmr.msra.gmra.mrb[144].mxu1 %vm495_vm3, %v11637_v49 }
 0xb0d   : > { %16544 = vmatpush3.bf16.msra.mxu1 %v17751_v19  ;;  %16551 = vmatprep.mubr.msk.bf16.mxu1 %vm17977_vm4, %v17976_v25 }
 0xb0e   : > { %16545 = vmatprep.subr.bf16.mxu1 %v17976_v25 }
 0xb11   : > { %16546 = vmatpush3.bf16.msra.mxu1 %v17752_v50 }
 0xb12   : > { %16547 = vmatprep.subr.bf16.mxu1 %v17976_v25 }
 0xb15   : > { %16548 = vmatpush3.bf16.msra.mxu1 %v17753_v45 }
 0xb16   : > { %16549 = vmatprep.subr.bf16.mxu1 %v17976_v25 }
 0xb19   : > { %16550 = vmatpush3.bf16.msra.mxu1 %v17754_v33 }
 0xb1a   : > { %16555 = vmatprep.subr.bf16.mxu1 %v17976_v25 }
 0xb1c   : > { %16552 = vmatmul.mubr.msk.bf16.vlgmr.msra.gmra.mrb[148].mxu1 %vm495_vm3, %v11796_v4 }
 0xb1d   : > { %16556 = vmatpush3.bf16.msra.mxu1 %v17755_v59  ;;  %16563 = vmatprep.mubr.msk.bf16.mxu1 %vm17977_vm4, %v17976_v25 }
 0xb1e   : > { %16557 = vmatprep.subr.bf16.mxu1 %v17976_v25 }
 0xb21   : > { %16558 = vmatpush3.bf16.msra.mxu1 %v17756_v7 }
 0xb22   : > { %16559 = vmatprep.subr.bf16.mxu1 %v17976_v25 }
 0xb25   : > { %16560 = vmatpush3.bf16.msra.mxu1 %v17757_v58 }
 0xb26   : > { %16561 = vmatprep.subr.bf16.mxu1 %v17976_v25 }
 0xb29   : > { %16562 = vmatpush3.bf16.msra.mxu1 %v17758_v29 }
 0xb2a   : > { %16567 = vmatprep.subr.bf16.mxu1 %v17976_v25 }
 0xb2c   : > { %16564 = vmatmul.mubr.msk.bf16.vlgmr.msra.gmra.mrb[152].mxu1 %vm495_vm3, %v11878_v21 }
 0xb2d   : > { %16568 = vmatpush3.bf16.msra.mxu1 %v17759_v17  ;;  %16575 = vmatprep.mubr.msk.bf16.mxu1 %vm17977_vm4, %v17976_v25 }
 0xb2e   : > { %16569 = vmatprep.subr.bf16.mxu1 %v17976_v25 }
 0xb31   : > { %16570 = vmatpush3.bf16.msra.mxu1 %v17760_v48 }
 0xb32   : > { %16571 = vmatprep.subr.bf16.mxu1 %v17976_v25 }
 0xb35   : > { %16572 = vmatpush3.bf16.msra.mxu1 %v17761_v53 }
 0xb36   : > { %16573 = vmatprep.subr.bf16.mxu1 %v17976_v25 }
 0xb39   : > { %16574 = vmatpush3.bf16.msra.mxu1 %v17762_v24 }
 0xb3a   : > { %16579 = vmatprep.subr.bf16.mxu1 %v17976_v25 }
 0xb3c   : > { %16576 = vmatmul.mubr.msk.bf16.vlgmr.msra.gmra.mrb[156].mxu1 %vm495_vm3, %v11960_v38 }
 0xb3d   : > { %16580 = vmatpush3.bf16.msra.mxu1 %v17763_v56  ;;  %16587 = vmatprep.mubr.msk.bf16.mxu1 %vm17977_vm4, %v17976_v25 }
 0xb3e   : > { %16581 = vmatprep.subr.bf16.mxu1 %v17976_v25 }
 0xb41   : > { %16582 = vmatpush3.bf16.msra.mxu1 %v17764_v27 }
 0xb42   : > { %16583 = vmatprep.subr.bf16.mxu1 %v17976_v25 }
 0xb45   : > { %16584 = vmatpush3.bf16.msra.mxu1 %v17765_v34 }
 0xb46   : > { %16585 = vmatprep.subr.bf16.mxu1 %v17976_v25 }
 0xb49   : > { %16586 = vmatpush3.bf16.msra.mxu1 %v17766_v35 }
 0xb4a   : > { %16591 = vmatprep.subr.bf16.mxu1 %v17976_v25 }
 0xb4c   : > { %16588 = vmatmul.mubr.msk.bf16.vlgmr.msra.gmra.mrb[160].mxu1 %vm495_vm3, %v12042_v30 }
 0xb4d   : > { %16592 = vmatpush3.bf16.msra.mxu1 %v17767_v36  ;;  %16599 = vmatprep.mubr.msk.bf16.mxu1 %vm17977_vm4, %v17976_v25 }
 0xb4e   : > { %16593 = vmatprep.subr.bf16.mxu1 %v17976_v25 }
 0xb51   : > { %16594 = vmatpush3.bf16.msra.mxu1 %v17768_v43 }
 0xb52   : > { %16595 = vmatprep.subr.bf16.mxu1 %v17976_v25 }
 0xb55   : > { %16596 = vmatpush3.bf16.msra.mxu1 %v17769_v37 }
 0xb56   : > { %16597 = vmatprep.subr.bf16.mxu1 %v17976_v25 }
 0xb59   : > { %16598 = vmatpush3.bf16.msra.mxu1 %v17770_v31 }
 0xb5a   : > { %16603 = vmatprep.subr.bf16.mxu1 %v17976_v25 }
 0xb5c   : > { %16600 = vmatmul.mubr.msk.bf16.vlgmr.msra.gmra.mrb[164].mxu1 %vm495_vm3, %v12124_v18 }
 0xb5d   : > { %16604 = vmatpush3.bf16.msra.mxu1 %v17771_v62  ;;  %16611 = vmatprep.mubr.msk.bf16.mxu1 %vm17977_vm4, %v17976_v25 }
 0xb5e   : > { %16605 = vmatprep.subr.bf16.mxu1 %v17976_v25 }
 0xb61   : > { %16606 = vmatpush3.bf16.msra.mxu1 %v17772_v16 }
 0xb62   : > { %16607 = vmatprep.subr.bf16.mxu1 %v17976_v25 }
 0xb65   : > { %16608 = vmatpush3.bf16.msra.mxu1 %v17773_v6 }
 0xb66   : > { %16609 = vmatprep.subr.bf16.mxu1 %v17976_v25 }
 0xb69   : > { %16610 = vmatpush3.bf16.msra.mxu1 %v17774_v5 }
 0xb6a   : > { %16615 = vmatprep.subr.bf16.mxu1 %v17976_v25 }
 0xb6c   : > { %16612 = vmatmul.mubr.msk.bf16.vlgmr.msra.gmra.mrb[168].mxu1 %vm495_vm3, %v12206_v32 }
 0xb6d   : > { %16616 = vmatpush3.bf16.msra.mxu1 %v17775_v3  ;;  %16623 = vmatprep.mubr.msk.bf16.mxu1 %vm17977_vm4, %v17976_v25  ;;  %v14668_v3 = vld [vmem:[%s20539_s12] ss:$0 sm:$0xff] }
 0xb6e   : > { %16617 = vmatprep.subr.bf16.mxu1 %v17976_v25 }
 0xb71   : > { %16618 = vmatpush3.bf16.msra.mxu1 %v17776_v13 }
 0xb72   : > { %16619 = vmatprep.subr.bf16.mxu1 %v17976_v25 }
 0xb75   : > { %16620 = vmatpush3.bf16.msra.mxu1 %v17777_v12 }
 0xb76   : > { %16621 = vmatprep.subr.bf16.mxu1 %v17976_v25  ;;  %v17782_v25 = vld [vmem:[%s20533_s6 + $0xa0] ss:$16 sps:$4 sm:$0xff]  }
 0xb79   : > { %16622 = vmatpush3.bf16.msra.mxu1 %v17778_v54 }
 0xb7a   : > { %12499 = vmatprep.subr.bf16.mxu1 %v17781_v15 }
 0xb7c   : > { %16624 = vmatmul.mubr.msk.bf16.vlgmr.msra.gmra.mrb[172].mxu1 %vm495_vm3, %v12288_v14 }
 0xb7d   : > { %12531 = vmatprep.mubr.bf16.mxu1 %v17975_v1  ;;  %12500 = vmatpush1.bf16.msra.mxu1 %v17779_v9 }
 0xb7e   : > { %12501 = vmatprep.subr.bf16.mxu1 %v17784_v61 }
 0xb81   : > { %12502 = vmatpush1.bf16.msra.mxu1 %v17782_v25  ;;  %v17791_v25 = vld [vmem:[%s20533_s6 + $0x88] ss:$16 sps:$4 sm:$0xff]  }
 0xb82   : > { %12503 = vmatprep.subr.bf16.mxu1 %v17787_v10  ;;  %v17794_v10 = vld [vmem:[%s20533_s6 + $0xa8] ss:$16 sps:$4 sm:$0xff]  }
 0xb85   : > { %12504 = vmatpush1.bf16.msra.mxu1 %v17785_v23  ;;  %v17797_v23 = vld [vmem:[%s20533_s6 + $0xc8] ss:$16 sps:$4 sm:$0xff]  }
 0xb86   : > { %12505 = vmatprep.subr.bf16.mxu1 %v17790_v41  ;;  %v17800_v41 = vld [vmem:[%s20533_s6 + $0xe8] ss:$16 sps:$4 sm:$0xff]  }
 0xb89   : > { %12506 = vmatpush1.bf16.msra.mxu1 %v17788_v44  ;;  %v17805_v44 = vld [vmem:[%s20533_s6 + $0x4] ss:$16 sps:$4 sm:$0xff]  }
 0xb8a   : > { %12540 = vmatprep.subr.bf16.mxu1 %v17793_v63  ;;  %v17803_v63 = vld [vmem:[%s20533_s6] ss:$16 sps:$4 sm:$0xff]  }
 0xbcf   : > { %v11719_v2 = vpop.f32.mrb[140].mxu1 }
 0xbd0   : > { %v16529_v8 = vpop.f32.mrb[141].mxu1 }
 0xbd1   : > { %v11722_v46 = vpop.f32.mrb[142].mxu1  ;;  %v17796_v8 = vld [vmem:[%s20533_s6 + $0xac] ss:$16 sps:$4 sm:$0xff]  }
 0xbd2   : > { %v16530_v47 = vpop.f32.mrb[143].mxu1 }
 0xbd3   : > { %v17802_v47 = vld [vmem:[%s20533_s6 + $0xec] ss:$16 sps:$4 sm:$0xff]  }
 0xbdf   : > { %v11787_v52 = vpop.f32.mrb[144].mxu1 }
 0xbe0   : > { %v11788_v22 = vadd.f32 %v11787_v52, %v11719_v2  ;;  %v16541_v40 = vpop.f32.mrb[145].mxu1  ;;  %v17808_v52 = vld [vmem:[%s20533_s6 + $0x24] ss:$16 sps:$4 sm:$0xff]  }
 0xbe1   : > { %v11790_v20 = vpop.f32.mrb[146].mxu1  ;;  %v17811_v40 = vld [vmem:[%s20533_s6 + $0x44] ss:$16 sps:$4 sm:$0xff]  }
 0xbe2   : > { %v11791_v51 = vadd.f32 %v11790_v20, %v11722_v46  ;;  %v16542_v39 = vpop.f32.mrb[147].mxu1  ;;  %v17799_v46 = vld [vmem:[%s20533_s6 + $0xcc] ss:$16 sps:$4 sm:$0xff]   ;;  %v17809_v20 = vld [vmem:[%s20533_s6 + $0x40] ss:$16 sps:$4 sm:$0xff]  }
 0xbe3   : > { %v17812_v39 = vld [vmem:[%s20533_s6 + $0x60] ss:$16 sps:$4 sm:$0xff]  }
 0xbef   : > { %v11867_v19 = vpop.f32.mrb[148].mxu1 }
 0xbf0   : > { %v11874_v49 = vadd.f32 %v11867_v19, %v11788_v22  ;;  %v16553_v50 = vpop.f32.mrb[149].mxu1  ;;  %v17806_v22 = vld [vmem:[%s20533_s6 + $0x20] ss:$16 sps:$4 sm:$0xff]   ;;  %v17817_v19 = vld [vmem:[%s20533_s6 + $0xc] ss:$16 sps:$4 sm:$0xff]  }
 0xbf1   : > { %v11870_v45 = vpop.f32.mrb[150].mxu1  ;;  %v17820_v50 = vld [vmem:[%s20533_s6 + $0x2c] ss:$16 sps:$4 sm:$0xff]  }
 0xbf2   : > { %v11875_v33 = vadd.f32 %v11870_v45, %v11791_v51  ;;  %v16554_v57 = vpop.f32.mrb[151].mxu1  ;;  %v17814_v51 = vld [vmem:[%s20533_s6 + $0x64] ss:$16 sps:$4 sm:$0xff]   ;;  %v17818_v45 = vld [vmem:[%s20533_s6 + $0x28] ss:$16 sps:$4 sm:$0xff]  }
 0xbf3   : > { %v17821_v57 = vld [vmem:[%s20533_s6 + $0x48] ss:$16 sps:$4 sm:$0xff]  }
 0xbff   : > { %v11949_v0 = vpop.f32.mrb[152].mxu1 }
 0xc00   : > { %v11956_v59 = vadd.f32 %v11949_v0, %v11874_v49  ;;  %v16565_v4 = vpop.f32.mrb[153].mxu1  ;;  %v17815_v49 = vld [vmem:[%s20533_s6 + $0x8] ss:$16 sps:$4 sm:$0xff]   ;;  %v17826_v0 = vld [vmem:[%s20533_s6 + $0x6c] ss:$16 sps:$4 sm:$0xff]  }
 0xc01   : > { %v11952_v7 = vpop.f32.mrb[154].mxu1  ;;  %v17829_v4 = vld [vmem:[%s20533_s6 + $0x104] ss:$16 sps:$4 sm:$0xff]  }
 0xc02   : > { %v11957_v58 = vadd.f32 %v11952_v7, %v11875_v33  ;;  %v16566_v29 = vpop.f32.mrb[155].mxu1  ;;  %v17823_v33 = vld [vmem:[%s20533_s6 + $0x4c] ss:$16 sps:$4 sm:$0xff]   ;;  %v17827_v7 = vld [vmem:[%s20533_s6 + $0x100] ss:$16 sps:$4 sm:$0xff]  }
 0xc03   : > { %v17830_v29 = vld [vmem:[%s20533_s6 + $0x120] ss:$16 sps:$4 sm:$0xff]  }
 0xc0f   : > { %v12031_v11 = vpop.f32.mrb[156].mxu1 }
 0xc10   : > { %v12038_v17 = vadd.f32 %v12031_v11, %v11956_v59  ;;  %v16577_v21 = vpop.f32.mrb[157].mxu1  ;;  %v17824_v59 = vld [vmem:[%s20533_s6 + $0x68] ss:$16 sps:$4 sm:$0xff]   ;;  %v17835_v11 = vld [vmem:[%s20533_s6 + $0x144] ss:$16 sps:$4 sm:$0xff]  }
 0xc11   : > { %v12034_v48 = vpop.f32.mrb[158].mxu1  ;;  %v17838_v21 = vld [vmem:[%s20533_s6 + $0x164] ss:$16 sps:$4 sm:$0xff]  }
 0xc12   : > { %v12039_v53 = vadd.f32 %v12034_v48, %v11957_v58  ;;  %v16578_v24 = vpop.f32.mrb[159].mxu1  ;;  %v17832_v58 = vld [vmem:[%s20533_s6 + $0x124] ss:$16 sps:$4 sm:$0xff]   ;;  %v17836_v48 = vld [vmem:[%s20533_s6 + $0x160] ss:$16 sps:$4 sm:$0xff]  }
 0xc13   : > { %v17841_v24 = vld [vmem:[%s20533_s6 + $0x10c] ss:$16 sps:$4 sm:$0xff]  }
 0xc1f   : > { %v12113_v28 = vpop.f32.mrb[160].mxu1 }
 0xc20   : > { %v12120_v56 = vadd.f32 %v12113_v28, %v12038_v17  ;;  %v16589_v38 = vpop.f32.mrb[161].mxu1  ;;  %v17833_v17 = vld [vmem:[%s20533_s6 + $0x140] ss:$16 sps:$4 sm:$0xff]   ;;  %v17839_v28 = vld [vmem:[%s20533_s6 + $0x108] ss:$16 sps:$4 sm:$0xff]  }
 0xc21   : > { %v12116_v27 = vpop.f32.mrb[162].mxu1  ;;  %v17844_v38 = vld [vmem:[%s20533_s6 + $0x12c] ss:$16 sps:$4 sm:$0xff]  }
 0xc22   : > { %v12121_v34 = vadd.f32 %v12116_v27, %v12039_v53  ;;  %v16590_v35 = vpop.f32.mrb[163].mxu1  ;;  %v17842_v27 = vld [vmem:[%s20533_s6 + $0x128] ss:$16 sps:$4 sm:$0xff]  }
 0xc23   : > { %v17845_v35 = vld [vmem:[%s20533_s6 + $0x148] ss:$16 sps:$4 sm:$0xff]  }
 0xc2f   : > { %v12195_v60 = vpop.f32.mrb[164].mxu1 }
 0xc30   : > { %v12202_v36 = vadd.f32 %v12195_v60, %v12120_v56  ;;  %v16601_v30 = vpop.f32.mrb[165].mxu1  ;;  %v17850_v60 = vld [vmem:[%s20533_s6 + $0x16c] ss:$16 sps:$4 sm:$0xff]  }
 0xc31   : > { %v12198_v43 = vpop.f32.mrb[166].mxu1  ;;  %v17853_v30 = vld [vmem:[%s20533_s6 + $0x184] ss:$16 sps:$4 sm:$0xff]  }
 0xc32   : > { %v12203_v37 = vadd.f32 %v12198_v43, %v12121_v34  ;;  %v16602_v31 = vpop.f32.mrb[167].mxu1  ;;  %v17847_v34 = vld [vmem:[%s20533_s6 + $0x14c] ss:$16 sps:$4 sm:$0xff]   ;;  %v17851_v43 = vld [vmem:[%s20533_s6 + $0x180] ss:$16 sps:$4 sm:$0xff]  }
 0xc33   : > { %v17854_v31 = vld [vmem:[%s20533_s6 + $0x1a0] ss:$16 sps:$4 sm:$0xff]  }
 0xc3f   : > { %v12277_v55 = vpop.f32.mrb[168].mxu1 }
 0xc40   : > { %v12284_v62 = vadd.f32 %v12277_v55, %v12202_v36  ;;  %v16613_v18 = vpop.f32.mrb[169].mxu1  ;;  %v17848_v36 = vld [vmem:[%s20533_s6 + $0x168] ss:$16 sps:$4 sm:$0xff]   ;;  %v17859_v55 = vld [vmem:[%s20533_s6 + $0x1c4] ss:$16 sps:$4 sm:$0xff]  }
 0xc41   : > { %v12280_v16 = vpop.f32.mrb[170].mxu1  ;;  %v17862_v18 = vld [vmem:[%s20533_s6 + $0x1e4] ss:$16 sps:$4 sm:$0xff]  }
 0xc42   : > { %v12285_v6 = vadd.f32 %v12280_v16, %v12203_v37  ;;  %v16614_v5 = vpop.f32.mrb[171].mxu1  ;;  %v17856_v37 = vld [vmem:[%s20533_s6 + $0x1a4] ss:$16 sps:$4 sm:$0xff]   ;;  %v17860_v16 = vld [vmem:[%s20533_s6 + $0x1e0] ss:$16 sps:$4 sm:$0xff]  }
 0xc43   : > { %v17863_v5 = vld [vmem:[%s20533_s6 + $0x188] ss:$16 sps:$4 sm:$0xff]  }
 0xc4f   : > { %v12359_v26 = vpop.f32.mrb[172].mxu1 }
 0xc50   : > { %v12366_v32 = vadd.f32 %v12359_v26, %v12284_v62  ;;  %v16625_v13 = vpop.f32.mrb[173].mxu1  ;;  %v17857_v62 = vld [vmem:[%s20533_s6 + $0x1c0] ss:$16 sps:$4 sm:$0xff]  }
 0xc51   : > { %v12362_v12 = vpop.f32.mrb[174].mxu1  ;;  %v17871_v13 = vld [vmem:[%s20533_s6 + $0x1cc] ss:$16 sps:$4 sm:$0xff]  }
 0xc52   : > { %v12375_v54 = vadd.f32 %v14668_v3, %v12366_v32  ;;  %v12367_v42 = vadd.f32 %v12362_v12, %v12285_v6  ;;  %v16626_v14 = vpop.f32.mrb[175].mxu1  ;;  %v17865_v6 = vld [vmem:[%s20533_s6 + $0x18c] ss:$16 sps:$4 sm:$0xff]   ;;  %v17866_v32 = vld [vmem:[%s20533_s6 + $0x1a8] ss:$16 sps:$4 sm:$0xff]  }
 0xc53   : > { %v17869_v12 = vld [vmem:[%s20533_s6 + $0x1c8] ss:$16 sps:$4 sm:$0xff]   ;;  %v17876_v14 = vld [vmem:[%s20534_s7] sm:$0xff]  }
 0xc54   : > { %v12377_v9 = vmax.f32 %v12375_v54, 0.0  ;;  %v20195_v15 = vadd.f32 %v14668_v3, %v12367_v42  ;;  %v17868_v3 = vld [vmem:[%s20533_s6 + $0x1ac] ss:$16 sps:$4 sm:$0xff]   ;;  %v17875_v42 = vld [vmem:[%s20534_s7 + $0x40] sm:$0xff]  }
 0xc55   : > { %v17874_v54 = vld [vmem:[%s20533_s6 + $0x1ec] ss:$16 sps:$4 sm:$0xff]  }
 0xc56   : > { %v12379_v61 = vpack.c.bf16 %v12377_v9, %v12377_v9  ;;  %v12378_v53 = vmax.f32 %v20195_v15, 0.0  ;;  %v17877_v9 = vld [vmem:[%s20534_s7 + $0x48] sm:$0xff]  }
 0xc57   : > { %v17878_v15 = vld [vmem:[%s20534_s7 + $0x8] sm:$0xff]  }
 0xc58   : > { %v12414_v2 = vshrl.u32 %v12379_v61, 16  ;;  %v12745_v56 = vpack.c.bf16 %v12378_v53, %v12378_v53 }
 0xc5a   : > { %14701 = vmatmul.mubr.msk.bf16.vlgmr.msra.gmra.mrb[176].mxu1 %vm495_vm3, %v12414_v2  ;;  %v12949_v26 = vshrl.u32 %v12745_v56, 16 }
 0xc5b   : > { %12541 = vmatpush1.bf16.msra.mxu1 %v17791_v25  ;;  %12572 = vmatprep.mubr.bf16.mxu1 %v17975_v1  ;;  %v17880_v25 = vld [vmem:[%s20534_s7 + $0x10] sm:$0xff]  }
 0xc5c   : > { %12542 = vmatprep.subr.bf16.mxu1 %v17796_v8  ;;  %v17882_v8 = vld [vmem:[%s20534_s7 + $0x18] sm:$0xff]  }
 0xc5f   : > { %12543 = vmatpush1.bf16.msra.mxu1 %v17794_v10  ;;  %v17883_v10 = vld [vmem:[%s20534_s7 + $0x60] sm:$0xff]  }
 0xc60   : > { %12544 = vmatprep.subr.bf16.mxu1 %v17799_v46  ;;  %v17884_v46 = vld [vmem:[%s20534_s7 + $0x20] sm:$0xff]  }
 0xc63   : > { %12545 = vmatpush1.bf16.msra.mxu1 %v17797_v23  ;;  %v17885_v23 = vld [vmem:[%s20534_s7 + $0x68] sm:$0xff]  }
 0xc64   : > { %12546 = vmatprep.subr.bf16.mxu1 %v17802_v47  ;;  %v17886_v47 = vld [vmem:[%s20534_s7 + $0x28] sm:$0xff]  }
 0xc67   : > { %12547 = vmatpush1.bf16.msra.mxu1 %v17800_v41  ;;  %v17887_v41 = vld [vmem:[%s20534_s7 + $0x70] sm:$0xff]  }
 0xc68   : > { %12663 = vmatprep.subr.bf16.mxu1 %v17805_v44  ;;  %v17888_v44 = vld [vmem:[%s20534_s7 + $0x30] sm:$0xff]  }
 0xc6a   : > { %14702 = vmatmul.mubr.msk.bf16.vlgmr.msra.gmra.mrb[180].mxu1 %vm495_vm3, %v12414_v2  ;;  %v17881_v2 = vld [vmem:[%s20534_s7 + $0x58] sm:$0xff]  }
 0xc6b   : > { %12664 = vmatpush1.bf16.msra.mxu1 %v17803_v63  ;;  %12695 = vmatprep.mubr.bf16.mxu1 %v17975_v1  ;;  %v17889_v63 = vld [vmem:[%s20534_s7 + $0x78] sm:$0xff]  }
 0xc6c   : > { %12665 = vmatprep.subr.bf16.mxu1 %v17808_v52  ;;  %v17890_v52 = vld [vmem:[%s20534_s7 + $0x38] sm:$0xff]  }
 0xc6f   : > { %12666 = vmatpush1.bf16.msra.mxu1 %v17806_v22  ;;  %v17891_v22 = vld [vmem:[%s20534_s7 + $0xc0] sm:$0xff]  }
 0xc70   : > { %12667 = vmatprep.subr.bf16.mxu1 %v17811_v40 }
 0xc73   : > { %12668 = vmatpush1.bf16.msra.mxu1 %v17809_v20 }
 0xc74   : > { %12669 = vmatprep.subr.bf16.mxu1 %v17814_v51 }
 0xc77   : > { %12670 = vmatpush1.bf16.msra.mxu1 %v17812_v39 }
 0xc78   : > { %12704 = vmatprep.subr.bf16.mxu1 %v17817_v19 }
 0xc7a   : > { %14719 = vmatmul.mubr.msk.bf16.vlgmr.msra.gmra.mrb[184].mxu1 %vm495_vm3, %v12379_v61 }
 0xc7b   : > { %12705 = vmatpush1.bf16.msra.mxu1 %v17815_v49  ;;  %12736 = vmatprep.mubr.bf16.mxu1 %v17975_v1 }
 0xc7c   : > { %12706 = vmatprep.subr.bf16.mxu1 %v17820_v50 }
 0xc7f   : > { %12707 = vmatpush1.bf16.msra.mxu1 %v17818_v45 }
 0xc80   : > { %12708 = vmatprep.subr.bf16.mxu1 %v17823_v33 }
 0xc83   : > { %12709 = vmatpush1.bf16.msra.mxu1 %v17821_v57 }
 0xc84   : > { %12710 = vmatprep.subr.bf16.mxu1 %v17826_v0 }
 0xc87   : > { %12711 = vmatpush1.bf16.msra.mxu1 %v17824_v59 }
 0xc88   : > { %12846 = vmatprep.subr.bf16.mxu1 %v17829_v4 }
 0xc8a   : > { %14720 = vmatmul.mubr.msk.bf16.vlgmr.msra.gmra.mrb[188].mxu1 %vm495_vm3, %v12379_v61  ;;  %v17879_v61 = vld [vmem:[%s20534_s7 + $0x50] sm:$0xff]  }
 0xc8b   : > { %12847 = vmatpush1.bf16.msra.mxu1 %v17827_v7  ;;  %12878 = vmatprep.mubr.bf16.mxu1 %v17975_v1 }
 0xc8c   : > { %12848 = vmatprep.subr.bf16.mxu1 %v17832_v58 }
 0xc8f   : > { %12849 = vmatpush1.bf16.msra.mxu1 %v17830_v29 }
 0xc90   : > { %12850 = vmatprep.subr.bf16.mxu1 %v17835_v11 }
 0xc93   : > { %12851 = vmatpush1.bf16.msra.mxu1 %v17833_v17 }
 0xc94   : > { %12852 = vmatprep.subr.bf16.mxu1 %v17838_v21 }
 0xc97   : > { %12853 = vmatpush1.bf16.msra.mxu1 %v17836_v48 }
 0xc98   : > { %12887 = vmatprep.subr.bf16.mxu1 %v17841_v24 }
 0xc9a   : > { %14753 = vmatmul.mubr.msk.bf16.vlgmr.msra.gmra.mrb[192].mxu1 %vm495_vm3, %v12745_v56 }
 0xc9b   : > { %12888 = vmatpush1.bf16.msra.mxu1 %v17839_v28  ;;  %12919 = vmatprep.mubr.bf16.mxu1 %v17975_v1 }
 0xc9c   : > { %12889 = vmatprep.subr.bf16.mxu1 %v17844_v38 }
 0xc9f   : > { %12890 = vmatpush1.bf16.msra.mxu1 %v17842_v27 }
 0xca0   : > { %12891 = vmatprep.subr.bf16.mxu1 %v17847_v34 }
 0xca3   : > { %12892 = vmatpush1.bf16.msra.mxu1 %v17845_v35 }
 0xca4   : > { %12893 = vmatprep.subr.bf16.mxu1 %v17850_v60 }
 0xca7   : > { %12894 = vmatpush1.bf16.msra.mxu1 %v17848_v36 }
 0xca8   : > { %13034 = vmatprep.subr.bf16.mxu1 %v17853_v30 }
 0xcaa   : > { %14754 = vmatmul.mubr.msk.bf16.vlgmr.msra.gmra.mrb[196].mxu1 %vm495_vm3, %v12745_v56 }
 0xcab   : > { %13035 = vmatpush1.bf16.msra.mxu1 %v17851_v43  ;;  %13066 = vmatprep.mubr.bf16.mxu1 %v17975_v1 }
 0xcac   : > { %13036 = vmatprep.subr.bf16.mxu1 %v17856_v37  ;;  %v13122_v37 = vlaneseq }
 0xcaf   : > { %13037 = vmatpush1.bf16.msra.mxu1 %v17854_v31  ;;  %v13123_v31 = vshrl.u32 %v13122_v37, 7 }
 0xcb0   : > { %13038 = vmatprep.subr.bf16.mxu1 %v17859_v55 }
 0xcb1   : > { %v13124_v55 = vsub.s32 0, %v13123_v31 }
 0xcb3   : > { %13039 = vmatpush1.bf16.msra.mxu1 %v17857_v62  ;;  %v13120_v62 = vld [vmem:[%s20540_s13] sm:$0xf] }
 0xcb4   : > { %13040 = vmatprep.subr.bf16.mxu1 %v17862_v18  ;;  %v13128_v18 = vsub.s32 1, %v13123_v31 }
 0xcb7   : > { %13041 = vmatpush1.bf16.msra.mxu1 %v17860_v16  ;;  %v13125_v16 = vrot.slane %v13120_v62, %v13124_v55 }
 0xcb8   : > { %13075 = vmatprep.subr.bf16.mxu1 %v17865_v6 }
 0xcba   : > { %14787 = vmatmul.mubr.msk.bf16.vlgmr.msra.gmra.mrb[200].mxu1 %vm495_vm3, %v12949_v26 }
 0xcbb   : > { %13076 = vmatpush1.bf16.msra.mxu1 %v17863_v5  ;;  %13107 = vmatprep.mubr.bf16.mxu1 %v17975_v1  ;;  %v17872_v1 = vld [vmem:[%s20533_s6 + $0x1e8] ss:$16 sps:$4 sm:$0xff]   ;;  %v13129_v5 = vrot.slane %v13120_v62, %v13128_v18 }
 0xcbc   : > { %13077 = vmatprep.subr.bf16.mxu1 %v17868_v3 }
 0xcbf   : > { %13078 = vmatpush1.bf16.msra.mxu1 %v17866_v32 }
 0xcc0   : > { %13079 = vmatprep.subr.bf16.mxu1 %v17871_v13 }
 0xcc3   : > { %13080 = vmatpush1.bf16.msra.mxu1 %v17869_v12 }
 0xcc4   : > { %13081 = vmatprep.subr.bf16.mxu1 %v17874_v54 }
 0xcc7   : > { %13082 = vmatpush1.bf16.msra.mxu1 %v17872_v1 }
 0xcc8   : > { %15387 = vmatprep.subr.bf16.mxu1 %v17875_v42 }
 0xcca   : > { %14788 = vmatmul.mubr.msk.bf16.vlgmr.msra.gmra.mrb[204].mxu1 %vm495_vm3, %v12949_v26 }
 0xccb   : > { %15388 = vmatpush3.bf16.msra.mxu1 %v17876_v14 }
 0xccc   : > { %15389 = vmatprep.subr.bf16.mxu1 %v17877_v9 }
 0xccf   : > { %15390 = vmatpush3.bf16.msra.mxu1 %v17878_v15  ;;  %v17892_v15 = vld [vmem:[%s20534_s7 + $0x80] sm:$0xff]  }
 0xcd0   : > { %15391 = vmatprep.subr.bf16.mxu1 %v17879_v61 }
 0xcd3   : > { %15392 = vmatpush3.bf16.msra.mxu1 %v17880_v25  ;;  %v17893_v25 = vld [vmem:[%s20534_s7 + $0xc8] sm:$0xff]  }
 0xcd4   : > { %15393 = vmatprep.subr.bf16.mxu1 %v17881_v2  ;;  %v17894_v2 = vld [vmem:[%s20534_s7 + $0x88] sm:$0xff]  }
 0xcd7   : > { %15394 = vmatpush3.bf16.msra.mxu1 %v17882_v8  ;;  %v13136_v8 = vsub.s32 3, %v13123_v31 }
 0xcd8   : > { %15395 = vmatprep.subr.bf16.mxu1 %v17883_v10  ;;  %v17895_v10 = vld [vmem:[%s20534_s7 + $0xd0] sm:$0xff]  }
 0xcdb   : > { %15396 = vmatpush3.bf16.msra.mxu1 %v17884_v46 }
 0xcdc   : > { %15397 = vmatprep.subr.bf16.mxu1 %v17885_v23  ;;  %v13137_v23 = vrot.slane %v13120_v62, %v13136_v8 }
 0xcdf   : > { %15398 = vmatpush3.bf16.msra.mxu1 %v17886_v47  ;;  %v17896_v47 = vld [vmem:[%s20534_s7 + $0x90] sm:$0xff]  }
 0xce0   : > { %15399 = vmatprep.subr.bf16.mxu1 %v17887_v41 }
 0xce3   : > { %15400 = vmatpush3.bf16.msra.mxu1 %v17888_v44 }
 0xce4   : > { %15401 = vmatprep.subr.bf16.mxu1 %v17889_v63  ;;  %v17897_v63 = vld [vmem:[%s20534_s7 + $0xd8] sm:$0xff]  }
 0xce7   : > { %15402 = vmatpush3.bf16.msra.mxu1 %v17890_v52 }
 0xce8   : > { %15409 = vmatprep.subr.bf16.mxu1 %v17891_v22 }
 0xd2d   : > { %v12533_v40 = vpop.f32.mrb[176].mxu1 }
 0xd2e   : > { %v12535_v20 = vpop.f32.mrb[177].mxu1 }
 0xd2f   : > { %v12537_v51 = vpop.f32.mrb[178].mxu1 }
 0xd30   : > { %v12538_v39 = vpop.f32.mrb[179].mxu1  ;;  %v17898_v51 = vld [vmem:[%s20534_s7 + $0x98] sm:$0xff]  }
 0xd31   : > { %v17899_v39 = vld [vmem:[%s20534_s7 + $0xe0] sm:$0xff]  }
 0xd3d   : > { %v12574_v19 = vpop.f32.mrb[180].mxu1 }
 0xd3e   : > { %v12576_v49 = vpop.f32.mrb[181].mxu1 }
 0xd3f   : > { %v12578_v50 = vpop.f32.mrb[182].mxu1 }
 0xd40   : > { %v12579_v45 = vpop.f32.mrb[183].mxu1  ;;  %v17900_v50 = vld [vmem:[%s20534_s7 + $0xa0] sm:$0xff]  }
 0xd41   : > { %v13132_v45 = vsub.s32 2, %v13123_v31 }
 0xd4d   : > { %v12697_v33 = vpop.f32.mrb[184].mxu1 }
 0xd4e   : > { %v12698_v57 = vadd.f32 %v12697_v33, %v12533_v40  ;;  %v12699_v0 = vpop.f32.mrb[185].mxu1  ;;  %v17901_v33 = vld [vmem:[%s20534_s7 + $0xe8] sm:$0xff]  }
 0xd4f   : > { %v12700_v59 = vadd.f32 %v12699_v0, %v12535_v20  ;;  %v12701_v4 = vpop.f32.mrb[186].mxu1  ;;  %v13133_v0 = vrot.slane %v13120_v62, %v13132_v45 }
 0xd50   : > { %v12702_v7 = vpop.f32.mrb[187].mxu1  ;;  %v17904_v4 = vld [vmem:[%s20534_s7 + $0xb0] sm:$0xff]  }
 0xd5d   : > { %v12738_v58 = vpop.f32.mrb[188].mxu1 }
 0xd5e   : > { %v12739_v29 = vadd.f32 %v12738_v58, %v12574_v19  ;;  %v12740_v11 = vpop.f32.mrb[189].mxu1  ;;  %v17905_v58 = vld [vmem:[%s20534_s7 + $0xf8] sm:$0xff]  }
 0xd5f   : > { %v12741_v17 = vadd.f32 %v12740_v11, %v12576_v49  ;;  %v12742_v21 = vpop.f32.mrb[190].mxu1 }
 0xd60   : > { %v12743_v48 = vpop.f32.mrb[191].mxu1 }
 0xd6d   : > { %v12880_v53 = vpop.f32.mrb[192].mxu1 }
 0xd6e   : > { %v12928_v24 = vadd.f32 %v12880_v53, %v12698_v57  ;;  %v12882_v28 = vpop.f32.mrb[193].mxu1  ;;  %v17902_v57 = vld [vmem:[%s20534_s7 + $0xa8] sm:$0xff]  }
 0xd6f   : > { %v12929_v56 = vadd.f32 %v12882_v28, %v12700_v59  ;;  %v12884_v38 = vpop.f32.mrb[194].mxu1  ;;  %v17903_v59 = vld [vmem:[%s20534_s7 + $0xf0] sm:$0xff]  }
 0xd70   : > { %v12885_v27 = vpop.f32.mrb[195].mxu1 }
 0xd7d   : > { %v12921_v34 = vpop.f32.mrb[196].mxu1 }
 0xd7e   : > { %v12930_v35 = vadd.f32 %v12921_v34, %v12739_v29  ;;  %v12923_v60 = vpop.f32.mrb[197].mxu1  ;;  %v17906_v29 = vld [vmem:[%s20534_s7 + $0xb8] sm:$0xff]  }
 0xd7f   : > { %v12931_v36 = vadd.f32 %v12923_v60, %v12741_v17  ;;  %v12925_v30 = vpop.f32.mrb[198].mxu1 }
 0xd80   : > { %v12926_v43 = vpop.f32.mrb[199].mxu1 }
 0xd8d   : > { %v13068_v6 = vpop.f32.mrb[200].mxu1 }
 0xd8e   : > { %v13116_v26 = vadd.f32 %v13068_v6, %v12928_v24  ;;  %v13070_v3 = vpop.f32.mrb[201].mxu1 }
 0xd8f   : > { %v13117_v32 = vadd.f32 %v13070_v3, %v12929_v56  ;;  %v13072_v13 = vpop.f32.mrb[202].mxu1  ;;  %v13218_v56 = vld [vmem:[%s20541_s14] sm:$0x1] }
 0xd90   : > { %v13142_v12 = vadd.f32 %v13125_v16, %v13116_v26  ;;  %v13073_v54 = vpop.f32.mrb[203].mxu1 }
 0xd91   : > { %v13143_v1 = vadd.f32 %v13129_v5, %v13117_v32 }
 0xd92   : > { %v13146_v42 = vmax.f32 %v13142_v12, 0.0 }
 0xd93   : > { %v13147_v14 = vmax.f32 %v13143_v1, 0.0 }
 0xd94   : > { %v13150_v61 = vpack.c.bf16 %v13146_v42, %v13146_v42 }
 0xd95   : > { %v13151_v9 = vpack.c.bf16 %v13147_v14, %v13147_v14 }
 0xd97   : > { %13443 = vmatprep.mubr.bf16.mxu1 %v13151_v9 }
 0xd98   : > { %13444 = vmatmul.mubr.bf16.vlgmr.msra.gmra.mrb[208].mxu1 %v13150_v61 }
 0xd99   : > { %15410 = vmatpush3.bf16.msra.mxu1 %v17892_v15 }
 0xd9a   : > { %15411 = vmatprep.subr.bf16.mxu1 %v17893_v25 }
 0xd9d   : > { %15412 = vmatpush3.bf16.msra.mxu1 %v17894_v2  ;;  %v13109_v46 = vpop.f32.mrb[204].mxu1 }
 0xd9e   : > { %v13118_v41 = vadd.f32 %v13109_v46, %v12930_v35  ;;  %v13111_v44 = vpop.f32.mrb[205].mxu1  ;;  %15413 = vmatprep.subr.bf16.mxu1 %v17895_v10 }
 0xd9f   : > { %v13119_v52 = vadd.f32 %v13111_v44, %v12931_v36  ;;  %v13113_v22 = vpop.f32.mrb[206].mxu1 }
 0xda0   : > { %v13114_v40 = vpop.f32.mrb[207].mxu1  ;;  %v13144_v7 = vadd.f32 %v13133_v0, %v13118_v41 }
 0xda1   : > { %v13145_v20 = vadd.f32 %v13137_v23, %v13119_v52  ;;  %15414 = vmatpush3.bf16.msra.mxu1 %v17896_v47 }
 0xda2   : > { %15415 = vmatprep.subr.bf16.mxu1 %v17897_v63  ;;  %v13148_v11 = vmax.f32 %v13144_v7, 0.0 }
 0xda3   : > { %v13149_v19 = vmax.f32 %v13145_v20, 0.0 }
 0xda4   : > { %v13152_v17 = vpack.c.bf16 %v13148_v11, %v13148_v11 }
 0xda5   : > { %v13153_v49 = vpack.c.bf16 %v13149_v19, %v13149_v19  ;;  %15416 = vmatpush3.bf16.msra.mxu1 %v17898_v51 }
 0xda6   : > { %15417 = vmatprep.subr.bf16.mxu1 %v17899_v39 }
 0xda7   : > { %13483 = vmatprep.mubr.bf16.mxu1 %v13153_v49 }
 0xda9   : > { %15418 = vmatpush3.bf16.msra.mxu1 %v17900_v50 }
 0xdaa   : > { %15419 = vmatprep.subr.bf16.mxu1 %v17901_v33 }
 0xdad   : > { %15420 = vmatpush3.bf16.msra.mxu1 %v17902_v57 }
 0xdae   : > { %15421 = vmatprep.subr.bf16.mxu1 %v17903_v59 }
 0xdb1   : > { %15422 = vmatpush3.bf16.msra.mxu1 %v17904_v4 }
 0xdb2   : > { %15423 = vmatprep.subr.bf16.mxu1 %v17905_v58 }
 0xdb5   : > { %15424 = vmatpush3.bf16.msra.mxu1 %v17906_v29 }
 0xdb8   : > { %13484 = vmatmul.mubr.bf16.vlgmr.msra.gmra.mrb[212].mxu1 %v13152_v17 }
 0xe6b   : > { %v15403_v21 = vpop.f32.mrb[208].mxu1 }
 0xe6c   : > { %v15404_v48 = vpop.f32.mrb[209].mxu1 }
 0xe6d   : > { %v15405_v53 = vadd.f32 %v15404_v48, %v15403_v21  ;;  %v15406_v24 = vpop.f32.mrb[210].mxu1 }
 0xe6e   : > { %v15407_v28 = vpop.f32.mrb[211].mxu1 }
 0xe6f   : > { %v13446_v34 = vadd.f32 %v15405_v53, %v13218_v56 }
 0xe8b   : > { %v15425_v38 = vpop.f32.mrb[212].mxu1 }
 0xe8c   : > { %v15426_v27 = vpop.f32.mrb[213].mxu1 }
 0xe8d   : > { %v15427_v35 = vadd.f32 %v15426_v27, %v15425_v38  ;;  %v15428_v60 = vpop.f32.mrb[214].mxu1 }
 0xe8e   : > { %v15429_v36 = vpop.f32.mrb[215].mxu1 }
 0xe8f   : > { %v13486_v30 = vadd.f32 %v15427_v35, %v13446_v34 }
 0xe91   : > { %13492 = vst.msk [vmem:[%s486_s17] sm:$0x1] %vm13491_vm6, %v13486_v30 }
 0xe92   : > { %17924 = shalt.err (!%p17921_p3)
}
 0xe93   : > { %s17925_s25 = scalar_lea.hbm %s20485_s23, 16  ;;  %s17929_s0 = scalar_lea.hbm %s20542_s15, 32 }
 0xe94   : > { %p17926_p4 = scmp.ne.s32.totalorder %s20485_s23, %s17925_s25  ;;  %p17930_p9 = scmp.lt.u32.totalorder %s20485_s23, %s20542_s15 }
 0xe95   : > { %p17931_p10 = scmp.lt.u32.totalorder %s17929_s0, %s17925_s25  ;;  %p17933_p12 = scmp.lt.u32.totalorder %s17925_s25, %s20485_s23 }
 0xe96   : > { %p17927_p7 = pnand %p17926_p4, %p18097_p5 }
 0xe97   : > { %p17932_p11 = por %p17931_p10, %p17930_p9 }
 0xe98   : > { %p17928_p8 = pneg %p17927_p7 }
 0xe99   : > { %p17934_p13 = por %p17933_p12, %p17932_p11 }
 0xe9b   : > { %p17935_p0 = pnand %p17934_p13, %p17928_p8 }
 0xe9d   : > { %17938 = shalt.err (!%p17935_p0)
}
 0xe9e   : > { %17335 = dma.vmem_to_hbm [thread:$0]  (%p18097_p5), %s20487_s27, 16, %s20485_s23, %s13494_s22  }
 0xe9f PF: > { %p17341_p1 = scmp.ge.s32.totalorder %s17973_s21, 2  ;;  %s13518_s1 = sand.u32 1, %s17961_s18  }
 0xea0   : > { %s13519_s20 = scalar_lea.sflag [#allocation8], %s13518_s1 }
 0xea1   : > { %p17338_p2 = pnand %p17341_p1, %p18101_p6 }
 0xea3   : > { %17956 = dma.done.wait (!%p17338_p2), %s13519_s20, 16  }
 0xea4   : > { %17958 = vsyncadd (!%p17338_p2), %s13519_s20, 4294967280  ;;  %s20555_s21 = sld [smem:[#allocation11_spill]]  ;;  %s20556_s30 = sld [smem:[#allocation10_spill]] }
 0xea5   : > { %s20557_s20 = sld [smem:[#allocation12_spill]]  ;;  %s20558_s18 = smov %s17965_s19 }
 0xeaa   : > { %p25_p3 = scmp.ge.s32.totalorder %s20555_s21, 4   ;;  %s20559_s19 = smov %s20556_s30 }
 0xeac   :  { %27 = sbr.rel (!%p25_p3) target bundleno = 6 (0x6), region = 193 }
 0xeb3   :  { %13523 = vsyncpa [#allocation8], 1 }
 0xeb4   :  { %13525 = vsyncpa [#allocation8 + $0x1], 1 }

</bundles_post_ra>
